<compile_context>
chip_gen: v6e
topology: v6e:2x2x1
jax: 0.10.0
libtpu: 0.0.40
codegen_flags: <defaults>
</compile_context>

<pallas_src>
import functools
import math

import jax
import jax.numpy as jnp
from jax.experimental import pallas as pl
from jax.experimental.pallas import tpu as pltpu


def _residual_block_kernel(H, W, Wr,
                           x_ref, w1_ref, s1_ref, t1_ref, w2_ref, s2_ref, t2_ref,
                           mask_ref, out_ref, acc_ref, hpad_ref):
    # x_ref   : ((H+2)*Wr, Cp)  zero-bordered input rows, flattened, compute dtype
    # w*_ref  : (3, Cp, 3*Cp)   dy-major weights, the 3 dx taps packed along N
    # s*/t*   : (1, Cp) f32     folded BN scale / (conv-bias + BN) shift
    # mask_ref: (H*Wr, 1) f32   1 on valid interior columns, 0 on pad columns
    # out_ref : (H*Wr, Cp) f32
    # acc_ref : VMEM (H*Wr, Cp) f32 scratch, shared by both convs
    # hpad_ref: VMEM ((H+2)*Wr, Cp) compute-dtype scratch (zero-bordered conv1 output)
    HWr = H * Wr
    Cp = acc_ref.shape[1]

    def conv3x3(src_ref, w_ref):
        for dy in range(3):
            lhs = src_ref[pl.ds(dy * Wr, HWr), :]          # sublane-aligned strip
            z = jnp.dot(lhs, w_ref[dy], preferred_element_type=jnp.float32)
            # Undo the dx column shift on the result with XLU rolls along the row axis;
            # wrapped values land only in pad columns, which are never read.
            zsum = (pltpu.roll(z[:, :Cp], shift=1, axis=0)               # dx = 0
                    + z[:, Cp:2 * Cp]                                    # dx = 1
                    + pltpu.roll(z[:, 2 * Cp:], shift=HWr - 1, axis=0))  # dx = 2
            if dy == 0:
                acc_ref[...] = zsum
            else:
                acc_ref[...] += zsum

    # ---- conv1 (MXU) + folded conv-bias/BN1 + ReLU (VPU, f32) ----
    conv3x3(x_ref, w1_ref)
    h1 = jnp.maximum(acc_ref[...] * s1_ref[...] + t1_ref[...], 0.0)
    h1 = h1 * mask_ref[...]            # zero pad columns => true zero padding for conv2

    # conv2 spatial padding: zero only the two border row blocks, then one aligned store
    # of the masked interior (interior pad columns are already zero via the mask).
    zeros_row = jnp.zeros((Wr, Cp), hpad_ref.dtype)
    hpad_ref[pl.ds(0, Wr), :] = zeros_row
    hpad_ref[pl.ds((H + 1) * Wr, Wr), :] = zeros_row
    hpad_ref[pl.ds(Wr, HWr), :] = h1.astype(hpad_ref.dtype)

    # ---- conv2 (MXU) + folded BN2, residual add, final ReLU ----
    conv3x3(hpad_ref, w2_ref)
    identity = x_ref[pl.ds(Wr, HWr), :].astype(jnp.float32)   # aligned strip, no copy
    y = acc_ref[...] * s2_ref[...] + t2_ref[...] + identity
    out_ref[...] = jnp.maximum(y, 0.0).astype(out_ref.dtype)


def _pack_conv_weight(w_oihw, cp):
    """PyTorch OIHW (C_out, C_in, 3, 3) -> (3, Cp, 3*Cp): dy-major, dx packed along N."""
    c_out, c_in, kh, kw = w_oihw.shape
    w = jnp.transpose(w_oihw, (2, 1, 3, 0))                      # (ky, cin, kx, cout)
    w = jnp.pad(w, ((0, 0), (0, cp - c_in), (0, 0), (0, cp - c_out)))
    return w.reshape(kh, cp, kw * cp)


def _fold_bn(conv_bias, gamma, beta, mean, var, eps):
    scale = gamma / jnp.sqrt(var + eps)
    shift = scale * (conv_bias - mean) + beta
    return scale, shift


def residual_block_forward(x_nchw, params, eps=1e-5, mxu_dtype=jnp.bfloat16):
    """x_nchw: (B, C, H, W) float32 (PyTorch layout). Returns (B, C, H, W) float32."""
    B, C, H, W = x_nchw.shape
    Cp = ((C + 127) // 128) * 128            # channels padded to a full 128-lane slab
    Wr = ((W + 2 + 7) // 8) * 8              # padded width, multiple of 8 (sublanes)
    HWr = H * Wr
    bpe = jnp.dtype(mxu_dtype).itemsize

    # NCHW -> NHWC; zero pad 1 row top/bottom, 1 col left, Wr-W-1 cols right, channels
    # to Cp; flatten the (H+2, Wr) spatial grid into one sublane axis (XLA-side plumbing).
    x = jnp.transpose(x_nchw, (0, 2, 3, 1))
    xp = jnp.pad(x, ((0, 0), (1, 1), (1, Wr - W - 1), (0, Cp - C))).astype(mxu_dtype)
    x_flat = xp.reshape(B, (H + 2) * Wr, Cp)

    w1 = _pack_conv_weight(params["w1"], Cp).astype(mxu_dtype)
    w2 = _pack_conv_weight(params["w2"], Cp).astype(mxu_dtype)
    s1, t1 = _fold_bn(params["b1"], params["g1"], params["be1"],
                      params["m1"], params["v1"], eps)
    s2, t2 = _fold_bn(params["b2"], params["g2"], params["be2"],
                      params["m2"], params["v2"], eps)
    pad_vec = lambda v: jnp.pad(v, (0, Cp - C)).reshape(1, Cp).astype(jnp.float32)
    s1, t1, s2, t2 = pad_vec(s1), pad_vec(t1), pad_vec(s2), pad_vec(t2)

    # 1.0 on valid interior columns (w' in [1, W]) of every row, 0.0 on pad columns.
    col = jnp.arange(Wr)
    mask = jnp.tile(((col >= 1) & (col <= W)).astype(jnp.float32), H).reshape(HWr, 1)

    kernel = functools.partial(_residual_block_kernel, H, W, Wr)

    def _resident_spec(shape, index_map):
        # Constant-index inputs: single-buffer so the pipeline doesn't hold a dead copy.
        buffered = getattr(pl, "Buffered", None)
        if buffered is not None:
            try:
                return pl.BlockSpec(shape, index_map, pipeline_mode=buffered(1))
            except TypeError:
                pass
        return pl.BlockSpec(shape, index_map)

    w_spec = _resident_spec((3, Cp, 3 * Cp), lambda b: (0, 0, 0))
    v_spec = _resident_spec((1, Cp), lambda b: (0, 0))
    m_spec = _resident_spec((HWr, 1), lambda b: (0, 0))

    flops = 2 * 2 * 9 * B * HWr * Cp * Cp          # 2 convs, 9 taps, 2 flops/MAC
    bytes_accessed = (B * (H + 2) * Wr * Cp * bpe + B * HWr * Cp * 4
                      + 2 * 9 * Cp * Cp * bpe + 4 * Cp * 4 + HWr * 4)

    vmem_est = (2 * (H + 2) * Wr * Cp * bpe        # input block (double buffered)
                + 2 * HWr * Cp * 4                 # output block (double buffered)
                + 2 * 9 * Cp * Cp * bpe            # both weight tensors (single buffer)
                + HWr * Cp * 4                     # f32 accumulator scratch
                + (H + 2) * Wr * Cp * bpe          # hpad scratch
                + 4 * HWr * Cp * 4)                # matmul / epilogue temporaries
    vmem_limit = int(min(128 * 1024 * 1024, max(32 * 1024 * 1024, 2 * vmem_est)))

    out = pl.pallas_call(
        kernel,
        out_shape=jax.ShapeDtypeStruct((B, HWr, Cp), jnp.float32),
        grid_spec=pltpu.PrefetchScalarGridSpec(
            num_scalar_prefetch=0,
            grid=(B,),
            in_specs=[
                pl.BlockSpec((None, (H + 2) * Wr, Cp), lambda b: (b, 0, 0)),
                w_spec, v_spec, v_spec,
                w_spec, v_spec, v_spec,
                m_spec,
            ],
            out_specs=pl.BlockSpec((None, HWr, Cp), lambda b: (b, 0, 0)),
            scratch_shapes=[pltpu.VMEM((HWr, Cp), jnp.float32),
                            pltpu.VMEM(((H + 2) * Wr, Cp), mxu_dtype)],
        ),
        compiler_params=pltpu.CompilerParams(
            dimension_semantics=("parallel",),
            vmem_limit_bytes=vmem_limit),
        cost_estimate=pl.CostEstimate(flops=flops, transcendentals=0,
                                      bytes_accessed=bytes_accessed),
    )(x_flat, w1, s1, t1, w2, s2, t2, mask)

    # Drop pad columns / channels and return to NCHW (layout plumbing outside the kernel).
    y = out.reshape(B, H, Wr, Cp)[:, :, 1:W + 1, :C]
    return jnp.transpose(y, (0, 3, 1, 2))


def init_params(key, c):
    """Deterministic init mimicking torch defaults (conv: U(+-1/sqrt(fan_in))); BN
    running stats / affine params randomized so the fold is actually exercised."""
    ks = jax.random.split(key, 14)
    bound = 1.0 / math.sqrt(c * 9)

    def conv(kw, kb):
        w = jax.random.uniform(kw, (c, c, 3, 3), jnp.float32, -bound, bound)  # OIHW
        b = jax.random.uniform(kb, (c,), jnp.float32, -bound, bound)
        return w, b

    def bn(kg, kb, km, kv):
        g = jax.random.uniform(kg, (c,), jnp.float32, 0.5, 1.5)
        be = jax.random.uniform(kb, (c,), jnp.float32, -0.5, 0.5)
        m = jax.random.uniform(km, (c,), jnp.float32, -0.5, 0.5)
        v = jax.random.uniform(kv, (c,), jnp.float32, 0.5, 1.5)
        return g, be, m, v

    w1, b1 = conv(ks[0], ks[1])
    g1, be1, m1, v1 = bn(ks[2], ks[3], ks[4], ks[5])
    w2, b2 = conv(ks[6], ks[7])
    g2, be2, m2, v2 = bn(ks[8], ks[9], ks[10], ks[11])
    return dict(w1=w1, b1=b1, g1=g1, be1=be1, m1=m1, v1=v1,
                w2=w2, b2=b2, g2=g2, be2=be2, m2=m2, v2=v2)


def residual_block_ref(x, p, eps=1e-5):
    """Pure-JAX reference (NCHW) matching the PyTorch module in eval mode."""
    def conv(x, w, b):
        y = jax.lax.conv_general_dilated(
            x, w, window_strides=(1, 1), padding=((1, 1), (1, 1)),
            dimension_numbers=('NCHW', 'OIHW', 'NCHW'))
        return y + b[None, :, None, None]

    def bn(x, g, be, m, v):
        return ((x - m[None, :, None, None])
                * (g[None, :, None, None] / jnp.sqrt(v[None, :, None, None] + eps))
                + be[None, :, None, None])

    h = jax.nn.relu(bn(conv(x, p["w1"], p["b1"]), p["g1"], p["be1"], p["m1"], p["v1"]))
    y = bn(conv(h, p["w2"], p["b2"]), p["g2"], p["be2"], p["m2"], p["v2"])
    return jax.nn.relu(y + x)


if __name__ == "__main__":
    key = jax.random.PRNGKey(0)
    k_x, k_p = jax.random.split(key)

    B, C, H, W = 2, 4, 16, 16
    x = jax.random.normal(k_x, (B, C, H, W), jnp.float32)
    params = init_params(k_p, C)

    y_ref = residual_block_ref(x, params)

    # Exact mode (f32 MXU operands): validates the kernel structure tightly.
    y32 = residual_block_forward(x, params, mxu_dtype=jnp.float32)
    jax.block_until_ready(y32)
    assert y32.shape == (B, C, H, W)
    err32 = float(jnp.max(jnp.abs(y32 - y_ref)))
    assert err32 < 1e-4, f"f32 max abs err {err32}"

    # Fast path per the perf review: bf16 MXU operands, f32 accumulation / epilogue.
    ybf = residual_block_forward(x, params, mxu_dtype=jnp.bfloat16)
    jax.block_until_ready(ybf)
    assert ybf.shape == (B, C, H, W)
    errbf = float(jnp.max(jnp.abs(ybf - y_ref)))
    assert errbf < 2.5e-1, f"bf16 max abs err {errbf}"

    print("KERNEL_OK")
</pallas_src>

<mosaic_0001>
module attributes {stable_mosaic.version = 11 : i64} {
  func.func @_residual_block_kernel(%arg0: i32, %arg1: memref<1x432x128xf32, #tpu.memory_space<vmem>>, %arg2: memref<3x128x384xf32, #tpu.memory_space<vmem>>, %arg3: memref<1x128xf32, #tpu.memory_space<vmem>>, %arg4: memref<1x128xf32, #tpu.memory_space<vmem>>, %arg5: memref<3x128x384xf32, #tpu.memory_space<vmem>>, %arg6: memref<1x128xf32, #tpu.memory_space<vmem>>, %arg7: memref<1x128xf32, #tpu.memory_space<vmem>>, %arg8: memref<384x1xf32, #tpu.memory_space<vmem>>, %arg9: memref<1x384x128xf32, #tpu.memory_space<vmem>>, %arg10: memref<384x128xf32, #tpu.memory_space<vmem>>, %arg11: memref<432x128xf32, #tpu.memory_space<vmem>>) attributes {dimension_semantics = [#tpu.dimension_semantics<parallel>], iteration_bounds = array<i64: 2>, scalar_prefetch = 0 : i64, scratch_operands = 2 : i64, tpu.core_type = #tpu.core_type<tc>, window_params = [{transform_indices = @transform_0, window_bounds = array<i64: 1, 432, 128>}, {pipeline_mode = #tpu.pipeline_mode<synchronous>, transform_indices = @transform_1, window_bounds = array<i64: 3, 128, 384>}, {pipeline_mode = #tpu.pipeline_mode<synchronous>, transform_indices = @transform_2, window_bounds = array<i64: 1, 128>}, {pipeline_mode = #tpu.pipeline_mode<synchronous>, transform_indices = @transform_3, window_bounds = array<i64: 1, 128>}, {pipeline_mode = #tpu.pipeline_mode<synchronous>, transform_indices = @transform_4, window_bounds = array<i64: 3, 128, 384>}, {pipeline_mode = #tpu.pipeline_mode<synchronous>, transform_indices = @transform_5, window_bounds = array<i64: 1, 128>}, {pipeline_mode = #tpu.pipeline_mode<synchronous>, transform_indices = @transform_6, window_bounds = array<i64: 1, 128>}, {pipeline_mode = #tpu.pipeline_mode<synchronous>, transform_indices = @transform_7, window_bounds = array<i64: 384, 1>}, {transform_indices = @transform_8, window_bounds = array<i64: 1, 384, 128>}]} {
    %c0 = arith.constant 0 : index
    %c0_0 = arith.constant 0 : index
    %c0_1 = arith.constant 0 : index
    %0 = vector.load %arg1[%c0, %c0_0, %c0_1] : memref<1x432x128xf32, #tpu.memory_space<vmem>>, vector<1x384x128xf32>
    %1 = vector.shape_cast %0 : vector<1x384x128xf32> to vector<384x128xf32>
    %c0_2 = arith.constant 0 : index
    %c0_3 = arith.constant 0 : index
    %c0_4 = arith.constant 0 : index
    %2 = vector.load %arg2[%c0_2, %c0_3, %c0_4] : memref<3x128x384xf32, #tpu.memory_space<vmem>>, vector<1x128x384xf32>
    %3 = vector.shape_cast %2 : vector<1x128x384xf32> to vector<128x384xf32>
    %cst = arith.constant dense<0.000000e+00> : vector<384x384xf32>
    %4 = tpu.matmul %1, %3, %cst {dimension_numbers = #tpu.dot_dimension_numbers<[1], [0], [0], [1], [0, 0, 1, 1], [], []>} : vector<384x128xf32>, vector<128x384xf32>, vector<384x384xf32> -> vector<384x384xf32>
    %5 = vector.extract_strided_slice %4 {offsets = [0, 0], sizes = [384, 128], strides = [1, 1]} : vector<384x384xf32> to vector<384x128xf32>
    %c1_i32 = arith.constant 1 : i32
    %6 = tpu.dynamic_rotate %5 by %c1_i32 dim 0 : vector<384x128xf32>, i32 -> vector<384x128xf32>
    %7 = vector.extract_strided_slice %4 {offsets = [0, 128], sizes = [384, 128], strides = [1, 1]} : vector<384x384xf32> to vector<384x128xf32>
    %8 = arith.addf %6, %7 : vector<384x128xf32>
    %9 = vector.extract_strided_slice %4 {offsets = [0, 256], sizes = [384, 128], strides = [1, 1]} : vector<384x384xf32> to vector<384x128xf32>
    %c383_i32 = arith.constant 383 : i32
    %10 = tpu.dynamic_rotate %9 by %c383_i32 dim 0 : vector<384x128xf32>, i32 -> vector<384x128xf32>
    %11 = arith.addf %8, %10 : vector<384x128xf32>
    %c0_5 = arith.constant 0 : index
    %c0_6 = arith.constant 0 : index
    %12 = vector.load %arg10[%c0_5, %c0_6] : memref<384x128xf32, #tpu.memory_space<vmem>>, vector<384x128xf32>
    tpu.vector_store %arg10[%c0_5, %c0_6], %11 {strides = array<i32>} : memref<384x128xf32, #tpu.memory_space<vmem>>, vector<384x128xf32>,
    %c0_7 = arith.constant 0 : index
    %c24 = arith.constant 24 : index
    %c0_8 = arith.constant 0 : index
    %13 = vector.load %arg1[%c0_7, %c24, %c0_8] : memref<1x432x128xf32, #tpu.memory_space<vmem>>, vector<1x384x128xf32>
    %14 = vector.shape_cast %13 : vector<1x384x128xf32> to vector<384x128xf32>
    %c1 = arith.constant 1 : index
    %c0_9 = arith.constant 0 : index
    %c0_10 = arith.constant 0 : index
    %15 = vector.load %arg2[%c1, %c0_9, %c0_10] : memref<3x128x384xf32, #tpu.memory_space<vmem>>, vector<1x128x384xf32>
    %16 = vector.shape_cast %15 : vector<1x128x384xf32> to vector<128x384xf32>
    %cst_11 = arith.constant dense<0.000000e+00> : vector<384x384xf32>
    %17 = tpu.matmul %14, %16, %cst_11 {dimension_numbers = #tpu.dot_dimension_numbers<[1], [0], [0], [1], [0, 0, 1, 1], [], []>} : vector<384x128xf32>, vector<128x384xf32>, vector<384x384xf32> -> vector<384x384xf32>
    %18 = vector.extract_strided_slice %17 {offsets = [0, 0], sizes = [384, 128], strides = [1, 1]} : vector<384x384xf32> to vector<384x128xf32>
    %c1_i32_12 = arith.constant 1 : i32
    %19 = tpu.dynamic_rotate %18 by %c1_i32_12 dim 0 : vector<384x128xf32>, i32 -> vector<384x128xf32>
    %20 = vector.extract_strided_slice %17 {offsets = [0, 128], sizes = [384, 128], strides = [1, 1]} : vector<384x384xf32> to vector<384x128xf32>
    %21 = arith.addf %19, %20 : vector<384x128xf32>
    %22 = vector.extract_strided_slice %17 {offsets = [0, 256], sizes = [384, 128], strides = [1, 1]} : vector<384x384xf32> to vector<384x128xf32>
    %c383_i32_13 = arith.constant 383 : i32
    %23 = tpu.dynamic_rotate %22 by %c383_i32_13 dim 0 : vector<384x128xf32>, i32 -> vector<384x128xf32>
    %24 = arith.addf %21, %23 : vector<384x128xf32>
    %c0_14 = arith.constant 0 : index
    %c0_15 = arith.constant 0 : index
    %25 = vector.load %arg10[%c0_14, %c0_15] : memref<384x128xf32, #tpu.memory_space<vmem>>, vector<384x128xf32>
    %26 = arith.addf %25, %24 : vector<384x128xf32>
    %c0_16 = arith.constant 0 : index
    %c0_17 = arith.constant 0 : index
    %27 = vector.load %arg10[%c0_16, %c0_17] : memref<384x128xf32, #tpu.memory_space<vmem>>, vector<384x128xf32>
    tpu.vector_store %arg10[%c0_16, %c0_17], %26 {strides = array<i32>} : memref<384x128xf32, #tpu.memory_space<vmem>>, vector<384x128xf32>,
    %c0_18 = arith.constant 0 : index
    %c48 = arith.constant 48 : index
    %c0_19 = arith.constant 0 : index
    %28 = vector.load %arg1[%c0_18, %c48, %c0_19] : memref<1x432x128xf32, #tpu.memory_space<vmem>>, vector<1x384x128xf32>
    %29 = vector.shape_cast %28 : vector<1x384x128xf32> to vector<384x128xf32>
    %c2 = arith.constant 2 : index
    %c0_20 = arith.constant 0 : index
    %c0_21 = arith.constant 0 : index
    %30 = vector.load %arg2[%c2, %c0_20, %c0_21] : memref<3x128x384xf32, #tpu.memory_space<vmem>>, vector<1x128x384xf32>
    %31 = vector.shape_cast %30 : vector<1x128x384xf32> to vector<128x384xf32>
    %cst_22 = arith.constant dense<0.000000e+00> : vector<384x384xf32>
    %32 = tpu.matmul %29, %31, %cst_22 {dimension_numbers = #tpu.dot_dimension_numbers<[1], [0], [0], [1], [0, 0, 1, 1], [], []>} : vector<384x128xf32>, vector<128x384xf32>, vector<384x384xf32> -> vector<384x384xf32>
    %33 = vector.extract_strided_slice %32 {offsets = [0, 0], sizes = [384, 128], strides = [1, 1]} : vector<384x384xf32> to vector<384x128xf32>
    %c1_i32_23 = arith.constant 1 : i32
    %34 = tpu.dynamic_rotate %33 by %c1_i32_23 dim 0 : vector<384x128xf32>, i32 -> vector<384x128xf32>
    %35 = vector.extract_strided_slice %32 {offsets = [0, 128], sizes = [384, 128], strides = [1, 1]} : vector<384x384xf32> to vector<384x128xf32>
    %36 = arith.addf %34, %35 : vector<384x128xf32>
    %37 = vector.extract_strided_slice %32 {offsets = [0, 256], sizes = [384, 128], strides = [1, 1]} : vector<384x384xf32> to vector<384x128xf32>
    %c383_i32_24 = arith.constant 383 : i32
    %38 = tpu.dynamic_rotate %37 by %c383_i32_24 dim 0 : vector<384x128xf32>, i32 -> vector<384x128xf32>
    %39 = arith.addf %36, %38 : vector<384x128xf32>
    %c0_25 = arith.constant 0 : index
    %c0_26 = arith.constant 0 : index
    %40 = vector.load %arg10[%c0_25, %c0_26] : memref<384x128xf32, #tpu.memory_space<vmem>>, vector<384x128xf32>
    %41 = arith.addf %40, %39 : vector<384x128xf32>
    %c0_27 = arith.constant 0 : index
    %c0_28 = arith.constant 0 : index
    %42 = vector.load %arg10[%c0_27, %c0_28] : memref<384x128xf32, #tpu.memory_space<vmem>>, vector<384x128xf32>
    tpu.vector_store %arg10[%c0_27, %c0_28], %41 {strides = array<i32>} : memref<384x128xf32, #tpu.memory_space<vmem>>, vector<384x128xf32>,
    %c0_29 = arith.constant 0 : index
    %c0_30 = arith.constant 0 : index
    %43 = vector.load %arg10[%c0_29, %c0_30] : memref<384x128xf32, #tpu.memory_space<vmem>>, vector<384x128xf32>
    %c0_31 = arith.constant 0 : index
    %c0_32 = arith.constant 0 : index
    %44 = vector.load %arg3[%c0_31, %c0_32] : memref<1x128xf32, #tpu.memory_space<vmem>>, vector<1x128xf32>
    %45 = vector.broadcast %44 : vector<1x128xf32> to vector<384x128xf32>
    %46 = arith.mulf %43, %45 : vector<384x128xf32>
    %c0_33 = arith.constant 0 : index
    %c0_34 = arith.constant 0 : index
    %47 = vector.load %arg4[%c0_33, %c0_34] : memref<1x128xf32, #tpu.memory_space<vmem>>, vector<1x128xf32>
    %48 = vector.broadcast %47 : vector<1x128xf32> to vector<384x128xf32>
    %49 = arith.addf %46, %48 : vector<384x128xf32>
    %cst_35 = arith.constant 0.000000e+00 : f32
    %50 = vector.broadcast %cst_35 : f32 to vector<384x128xf32>
    %51 = arith.maximumf %49, %50 : vector<384x128xf32>
    %c0_36 = arith.constant 0 : index
    %c0_37 = arith.constant 0 : index
    %52 = vector.load %arg8[%c0_36, %c0_37] : memref<384x1xf32, #tpu.memory_space<vmem>>, vector<384x1xf32>
    %53 = vector.broadcast %52 : vector<384x1xf32> to vector<384x128xf32>
    %54 = arith.mulf %51, %53 : vector<384x128xf32>
    %cst_38 = arith.constant 0.000000e+00 : f32
    %55 = vector.broadcast %cst_38 : f32 to vector<24x128xf32>
    %c0_39 = arith.constant 0 : index
    %c0_40 = arith.constant 0 : index
    %56 = vector.load %arg11[%c0_39, %c0_40] : memref<432x128xf32, #tpu.memory_space<vmem>>, vector<24x128xf32>
    tpu.vector_store %arg11[%c0_39, %c0_40], %55 {strides = array<i32>} : memref<432x128xf32, #tpu.memory_space<vmem>>, vector<24x128xf32>,
    %c408 = arith.constant 408 : index
    %c0_41 = arith.constant 0 : index
    %57 = vector.load %arg11[%c408, %c0_41] : memref<432x128xf32, #tpu.memory_space<vmem>>, vector<24x128xf32>
    tpu.vector_store %arg11[%c408, %c0_41], %55 {strides = array<i32>} : memref<432x128xf32, #tpu.memory_space<vmem>>, vector<24x128xf32>,
    %c24_42 = arith.constant 24 : index
    %c0_43 = arith.constant 0 : index
    %58 = vector.load %arg11[%c24_42, %c0_43] : memref<432x128xf32, #tpu.memory_space<vmem>>, vector<384x128xf32>
    tpu.vector_store %arg11[%c24_42, %c0_43], %54 {strides = array<i32>} : memref<432x128xf32, #tpu.memory_space<vmem>>, vector<384x128xf32>,
    %c0_44 = arith.constant 0 : index
    %c0_45 = arith.constant 0 : index
    %59 = vector.load %arg11[%c0_44, %c0_45] : memref<432x128xf32, #tpu.memory_space<vmem>>, vector<384x128xf32>
    %c0_46 = arith.constant 0 : index
    %c0_47 = arith.constant 0 : index
    %c0_48 = arith.constant 0 : index
    %60 = vector.load %arg5[%c0_46, %c0_47, %c0_48] : memref<3x128x384xf32, #tpu.memory_space<vmem>>, vector<1x128x384xf32>
    %61 = vector.shape_cast %60 : vector<1x128x384xf32> to vector<128x384xf32>
    %cst_49 = arith.constant dense<0.000000e+00> : vector<384x384xf32>
    %62 = tpu.matmul %59, %61, %cst_49 {dimension_numbers = #tpu.dot_dimension_numbers<[1], [0], [0], [1], [0, 0, 1, 1], [], []>} : vector<384x128xf32>, vector<128x384xf32>, vector<384x384xf32> -> vector<384x384xf32>
    %63 = vector.extract_strided_slice %62 {offsets = [0, 0], sizes = [384, 128], strides = [1, 1]} : vector<384x384xf32> to vector<384x128xf32>
    %c1_i32_50 = arith.constant 1 : i32
    %64 = tpu.dynamic_rotate %63 by %c1_i32_50 dim 0 : vector<384x128xf32>, i32 -> vector<384x128xf32>
    %65 = vector.extract_strided_slice %62 {offsets = [0, 128], sizes = [384, 128], strides = [1, 1]} : vector<384x384xf32> to vector<384x128xf32>
    %66 = arith.addf %64, %65 : vector<384x128xf32>
    %67 = vector.extract_strided_slice %62 {offsets = [0, 256], sizes = [384, 128], strides = [1, 1]} : vector<384x384xf32> to vector<384x128xf32>
    %c383_i32_51 = arith.constant 383 : i32
    %68 = tpu.dynamic_rotate %67 by %c383_i32_51 dim 0 : vector<384x128xf32>, i32 -> vector<384x128xf32>
    %69 = arith.addf %66, %68 : vector<384x128xf32>
    %c0_52 = arith.constant 0 : index
    %c0_53 = arith.constant 0 : index
    %70 = vector.load %arg10[%c0_52, %c0_53] : memref<384x128xf32, #tpu.memory_space<vmem>>, vector<384x128xf32>
    tpu.vector_store %arg10[%c0_52, %c0_53], %69 {strides = array<i32>} : memref<384x128xf32, #tpu.memory_space<vmem>>, vector<384x128xf32>,
    %c24_54 = arith.constant 24 : index
    %c0_55 = arith.constant 0 : index
    %71 = vector.load %arg11[%c24_54, %c0_55] : memref<432x128xf32, #tpu.memory_space<vmem>>, vector<384x128xf32>
    %c1_56 = arith.constant 1 : index
    %c0_57 = arith.constant 0 : index
    %c0_58 = arith.constant 0 : index
    %72 = vector.load %arg5[%c1_56, %c0_57, %c0_58] : memref<3x128x384xf32, #tpu.memory_space<vmem>>, vector<1x128x384xf32>
    %73 = vector.shape_cast %72 : vector<1x128x384xf32> to vector<128x384xf32>
    %cst_59 = arith.constant dense<0.000000e+00> : vector<384x384xf32>
    %74 = tpu.matmul %71, %73, %cst_59 {dimension_numbers = #tpu.dot_dimension_numbers<[1], [0], [0], [1], [0, 0, 1, 1], [], []>} : vector<384x128xf32>, vector<128x384xf32>, vector<384x384xf32> -> vector<384x384xf32>
    %75 = vector.extract_strided_slice %74 {offsets = [0, 0], sizes = [384, 128], strides = [1, 1]} : vector<384x384xf32> to vector<384x128xf32>
    %c1_i32_60 = arith.constant 1 : i32
    %76 = tpu.dynamic_rotate %75 by %c1_i32_60 dim 0 : vector<384x128xf32>, i32 -> vector<384x128xf32>
    %77 = vector.extract_strided_slice %74 {offsets = [0, 128], sizes = [384, 128], strides = [1, 1]} : vector<384x384xf32> to vector<384x128xf32>
    %78 = arith.addf %76, %77 : vector<384x128xf32>
    %79 = vector.extract_strided_slice %74 {offsets = [0, 256], sizes = [384, 128], strides = [1, 1]} : vector<384x384xf32> to vector<384x128xf32>
    %c383_i32_61 = arith.constant 383 : i32
    %80 = tpu.dynamic_rotate %79 by %c383_i32_61 dim 0 : vector<384x128xf32>, i32 -> vector<384x128xf32>
    %81 = arith.addf %78, %80 : vector<384x128xf32>
    %c0_62 = arith.constant 0 : index
    %c0_63 = arith.constant 0 : index
    %82 = vector.load %arg10[%c0_62, %c0_63] : memref<384x128xf32, #tpu.memory_space<vmem>>, vector<384x128xf32>
    %83 = arith.addf %82, %81 : vector<384x128xf32>
    %c0_64 = arith.constant 0 : index
    %c0_65 = arith.constant 0 : index
    %84 = vector.load %arg10[%c0_64, %c0_65] : memref<384x128xf32, #tpu.memory_space<vmem>>, vector<384x128xf32>
    tpu.vector_store %arg10[%c0_64, %c0_65], %83 {strides = array<i32>} : memref<384x128xf32, #tpu.memory_space<vmem>>, vector<384x128xf32>,
    %c48_66 = arith.constant 48 : index
    %c0_67 = arith.constant 0 : index
    %85 = vector.load %arg11[%c48_66, %c0_67] : memref<432x128xf32, #tpu.memory_space<vmem>>, vector<384x128xf32>
    %c2_68 = arith.constant 2 : index
    %c0_69 = arith.constant 0 : index
    %c0_70 = arith.constant 0 : index
    %86 = vector.load %arg5[%c2_68, %c0_69, %c0_70] : memref<3x128x384xf32, #tpu.memory_space<vmem>>, vector<1x128x384xf32>
    %87 = vector.shape_cast %86 : vector<1x128x384xf32> to vector<128x384xf32>
    %cst_71 = arith.constant dense<0.000000e+00> : vector<384x384xf32>
    %88 = tpu.matmul %85, %87, %cst_71 {dimension_numbers = #tpu.dot_dimension_numbers<[1], [0], [0], [1], [0, 0, 1, 1], [], []>} : vector<384x128xf32>, vector<128x384xf32>, vector<384x384xf32> -> vector<384x384xf32>
    %89 = vector.extract_strided_slice %88 {offsets = [0, 0], sizes = [384, 128], strides = [1, 1]} : vector<384x384xf32> to vector<384x128xf32>
    %c1_i32_72 = arith.constant 1 : i32
    %90 = tpu.dynamic_rotate %89 by %c1_i32_72 dim 0 : vector<384x128xf32>, i32 -> vector<384x128xf32>
    %91 = vector.extract_strided_slice %88 {offsets = [0, 128], sizes = [384, 128], strides = [1, 1]} : vector<384x384xf32> to vector<384x128xf32>
    %92 = arith.addf %90, %91 : vector<384x128xf32>
    %93 = vector.extract_strided_slice %88 {offsets = [0, 256], sizes = [384, 128], strides = [1, 1]} : vector<384x384xf32> to vector<384x128xf32>
    %c383_i32_73 = arith.constant 383 : i32
    %94 = tpu.dynamic_rotate %93 by %c383_i32_73 dim 0 : vector<384x128xf32>, i32 -> vector<384x128xf32>
    %95 = arith.addf %92, %94 : vector<384x128xf32>
    %c0_74 = arith.constant 0 : index
    %c0_75 = arith.constant 0 : index
    %96 = vector.load %arg10[%c0_74, %c0_75] : memref<384x128xf32, #tpu.memory_space<vmem>>, vector<384x128xf32>
    %97 = arith.addf %96, %95 : vector<384x128xf32>
    %c0_76 = arith.constant 0 : index
    %c0_77 = arith.constant 0 : index
    %98 = vector.load %arg10[%c0_76, %c0_77] : memref<384x128xf32, #tpu.memory_space<vmem>>, vector<384x128xf32>
    tpu.vector_store %arg10[%c0_76, %c0_77], %97 {strides = array<i32>} : memref<384x128xf32, #tpu.memory_space<vmem>>, vector<384x128xf32>,
    %c0_78 = arith.constant 0 : index
    %c24_79 = arith.constant 24 : index
    %c0_80 = arith.constant 0 : index
    %99 = vector.load %arg1[%c0_78, %c24_79, %c0_80] : memref<1x432x128xf32, #tpu.memory_space<vmem>>, vector<1x384x128xf32>
    %100 = vector.shape_cast %99 : vector<1x384x128xf32> to vector<384x128xf32>
    %c0_81 = arith.constant 0 : index
    %c0_82 = arith.constant 0 : index
    %101 = vector.load %arg10[%c0_81, %c0_82] : memref<384x128xf32, #tpu.memory_space<vmem>>, vector<384x128xf32>
    %c0_83 = arith.constant 0 : index
    %c0_84 = arith.constant 0 : index
    %102 = vector.load %arg6[%c0_83, %c0_84] : memref<1x128xf32, #tpu.memory_space<vmem>>, vector<1x128xf32>
    %103 = vector.broadcast %102 : vector<1x128xf32> to vector<384x128xf32>
    %104 = arith.mulf %101, %103 : vector<384x128xf32>
    %c0_85 = arith.constant 0 : index
    %c0_86 = arith.constant 0 : index
    %105 = vector.load %arg7[%c0_85, %c0_86] : memref<1x128xf32, #tpu.memory_space<vmem>>, vector<1x128xf32>
    %106 = vector.broadcast %105 : vector<1x128xf32> to vector<384x128xf32>
    %107 = arith.addf %104, %106 : vector<384x128xf32>
    %108 = arith.addf %107, %100 : vector<384x128xf32>
    %cst_87 = arith.constant 0.000000e+00 : f32
    %109 = vector.broadcast %cst_87 : f32 to vector<384x128xf32>
    %110 = arith.maximumf %108, %109 : vector<384x128xf32>
    %c0_88 = arith.constant 0 : index
    %c0_89 = arith.constant 0 : index
    %c0_90 = arith.constant 0 : index
    %111 = vector.load %arg9[%c0_88, %c0_89, %c0_90] : memref<1x384x128xf32, #tpu.memory_space<vmem>>, vector<1x384x128xf32>
    %112 = vector.shape_cast %111 : vector<1x384x128xf32> to vector<384x128xf32>
    %113 = vector.shape_cast %110 : vector<384x128xf32> to vector<1x384x128xf32>
    tpu.vector_store %arg9[%c0_88, %c0_89, %c0_90], %113 {strides = array<i32>} : memref<1x384x128xf32, #tpu.memory_space<vmem>>, vector<1x384x128xf32>,
    return
  }
  func.func @transform_0(%arg0: i32) -> (i32, i32, i32) {
    %c0_i32 = arith.constant 0 : i32
    %c0_i32_0 = arith.constant 0 : i32
    %c0_i32_1 = arith.constant 0 : i32
    return %arg0, %c0_i32, %c0_i32_0 : i32, i32, i32
  }
  func.func @transform_1(%arg0: i32) -> (i32, i32, i32) {
    %c0_i32 = arith.constant 0 : i32
    %c0_i32_0 = arith.constant 0 : i32
    %c0_i32_1 = arith.constant 0 : i32
    %c0_i32_2 = arith.constant 0 : i32
    return %c0_i32, %c0_i32_0, %c0_i32_1 : i32, i32, i32
  }
  func.func @transform_2(%arg0: i32) -> (i32, i32) {
    %c0_i32 = arith.constant 0 : i32
    %c0_i32_0 = arith.constant 0 : i32
    %c0_i32_1 = arith.constant 0 : i32
    return %c0_i32, %c0_i32_0 : i32, i32
  }
  func.func @transform_3(%arg0: i32) -> (i32, i32) {
    %c0_i32 = arith.constant 0 : i32
    %c0_i32_0 = arith.constant 0 : i32
    %c0_i32_1 = arith.constant 0 : i32
    return %c0_i32, %c0_i32_0 : i32, i32
  }
  func.func @transform_4(%arg0: i32) -> (i32, i32, i32) {
    %c0_i32 = arith.constant 0 : i32
    %c0_i32_0 = arith.constant 0 : i32
    %c0_i32_1 = arith.constant 0 : i32
    %c0_i32_2 = arith.constant 0 : i32
    return %c0_i32, %c0_i32_0, %c0_i32_1 : i32, i32, i32
  }
  func.func @transform_5(%arg0: i32) -> (i32, i32) {
    %c0_i32 = arith.constant 0 : i32
    %c0_i32_0 = arith.constant 0 : i32
    %c0_i32_1 = arith.constant 0 : i32
    return %c0_i32, %c0_i32_0 : i32, i32
  }
  func.func @transform_6(%arg0: i32) -> (i32, i32) {
    %c0_i32 = arith.constant 0 : i32
    %c0_i32_0 = arith.constant 0 : i32
    %c0_i32_1 = arith.constant 0 : i32
    return %c0_i32, %c0_i32_0 : i32, i32
  }
  func.func @transform_7(%arg0: i32) -> (i32, i32) {
    %c0_i32 = arith.constant 0 : i32
    %c0_i32_0 = arith.constant 0 : i32
    %c0_i32_1 = arith.constant 0 : i32
    return %c0_i32, %c0_i32_0 : i32, i32
  }
  func.func @transform_8(%arg0: i32) -> (i32, i32, i32) {
    %c0_i32 = arith.constant 0 : i32
    %c0_i32_0 = arith.constant 0 : i32
    %c0_i32_1 = arith.constant 0 : i32
    return %arg0, %c0_i32, %c0_i32_0 : i32, i32, i32
  }
}

</mosaic_0001>

<bundles_post_ra>
// kernel: tpu_custom_call.1
= control target key start
LH: loop header
LB: loop body
LE: loop exit
PB: predicated region body
PF: predicated region fallthrough
CT: control target
= control target key end

     0   :  { %s14203_s0 = inlined_call_operand.hbm [shape: f32[2,432,128], index: 0, kind: input, shape index: {}]   ;;  %s14204_s1 = inlined_call_operand.hbm [shape: f32[3,128,384], index: 1, kind: input, shape index: {}]   ;;  %s14205_s2 = inlined_call_operand.vmem [shape: f32[1,128], index: 2, kind: input, shape index: {}]   ;;  %s14206_s3 = inlined_call_operand.vmem [shape: f32[1,128], index: 3, kind: input, shape index: {}]   ;;  %s14207_s4 = inlined_call_operand.hbm [shape: f32[3,128,384], index: 4, kind: input, shape index: {}]   ;;  %s14208_s5 = inlined_call_operand.vmem [shape: f32[1,128], index: 5, kind: input, shape index: {}]   ;;  %s14209_s6 = inlined_call_operand.vmem [shape: f32[1,128], index: 6, kind: input, shape index: {}]   ;;  %s14210_s7 = inlined_call_operand.vmem [shape: f32[384,1], index: 7, kind: input, shape index: {}]   ;;  %s14211_s8 = inlined_call_operand.hbm [shape: f32[2,384,128], index: 8, kind: output, shape index: {}]  }
   0x1   :  { %14298 = sst [smem:[#allocation78_spill]] %s14204_s1 }
   0x2   :  { %14299 = sst [smem:[#allocation79_spill]] %s14207_s4 }
   0x3   :  { %13 = vsyncpa [#allocation5], 0 }
   0x4   :  { %15 = vsyncpa [#allocation5 + $0x1], 0 }
   0x5   :  { %16 = vsyncpa [#allocation8], 0 }
   0x6   :  { %17 = vsyncpa [#allocation6], 0 }
   0x7   :  { %19 = vsyncpa [#allocation6 + $0x1], 0  ;;  %s9663_s27 = smov 0   ;;  %s9665_s28 = smov 0  }
   0x8   :  { %s9667_s29 = smov 0   ;;  %s9669_s30 = smov 0  }
   0x9 LB: > { %s9684_s9 = sadd.s32 4294967295, %s9604_s30   ;;  %s8337_s10 = sadd.s32 4294967294, %s9604_s30   ;;  %s9604_s30 = sphi %s9669_s30, %s14702_s30   ;;  %s9600_s29 = sphi %s9667_s29, %s14701_s29   ;;  %s9596_s28 = sphi %s9665_s28, %s14700_s28   ;;  %s9592_s27 = sphi %s9663_s27, %s14699_s27  }
   0xa   : > { %p45_p0 = scmp.ne.s32.totalorder %s9596_s28, %s9592_s27  ;;  %p14212_p1 = scmp.eq.s32.totalorder %s9684_s9, 0 }
   0xb   : > { %p222_p3 = scmp.eq.s32.totalorder %s8337_s10, 1  ;;  %p8338_p5 = scmp.ge.s32.totalorder %s9604_s30, 1 }
   0xc   : > { %p9693_p4 = por %p14212_p1, %p45_p0  ;;  %p229_p7 = scmp.lt.s32.totalorder %s9604_s30, 3 }
   0xd   : > { %p9698_p6 = por %p222_p3, %p45_p0  ;;  %s9606_s14 = smov [#allocation7]  }
   0xe   : > { %s14300_s11 = scalar_select %p9693_p4, 1, 0 }
   0xf   : > { %s14301_s12 = scalar_select %p9698_p6, 1, 0 }
  0x10   : > { %p9703_p8 = pnand %p8338_p5, %p229_p7  ;;  %s241_s15 = sshll.u32 %s9606_s14, 4  ;;  %s242_s15 = int_to_ptr.vmem [resolvable:$true] %s241_s15 }
  0x11   : > { %s9607_s17 = smov [#allocation9]   ;;  %s9467_s19 = scalar_lea.vmem %s242_s15, 18432 }
  0x12   : > { %s14302_s13 = scalar_select %p9703_p8, 1, 0 }
  0x13   : > { %p9378_p9 = pneg %p9703_p8  ;;  %s260_s18 = sshll.u32 %s9607_s17, 4  ;;  %s261_s18 = int_to_ptr.vmem [resolvable:$true] %s260_s18 }
  0x14   : > { %p9468_p13 = scmp.ne.s32.totalorder %s242_s15, %s9467_s19  ;;  %p9475_p5 = scmp.lt.s32.totalorder %s242_s15, %s242_s15 }
  0x15   : > { %p9712_p11 = pnand %p9378_p9, %p14212_p1  ;;  %p9476_p7 = scmp.lt.s32.totalorder %s9467_s19, %s9467_s19 }
  0x17   : > { %p9458_p12 = pneg %p9712_p11  ;;  %p9477_p10 = por %p9476_p7, %p9475_p5 }
  0x19   : > { %p9470_p0 = pnand %p9468_p13, %p9458_p12 }
  0x1b   : > { %p9471_p3 = pneg %p9470_p0 }
  0x1d   : > { %p9478_p9 = pnand %p9477_p10, %p9471_p3 }
  0x1f   : > { %9481 = shalt.err (!%p9478_p9)
}
  0x20   : > { %s9608_s20 = smov 384   ;;  %s9609_s21 = smov 24  }
  0x21   : > { %s14304_s1 = sld [smem:[#allocation78_spill]]  ;;  %s9493_s24 = scalar_lea.vmem %s261_s18, 18432 }
  0x22   : > { %p9494_p1 = scmp.ne.s32.totalorder %s261_s18, %s9493_s24  ;;  %p9501_p2 = scmp.lt.s32.totalorder %s261_s18, %s261_s18 }
  0x23   : > { %p9502_p6 = scmp.lt.s32.totalorder %s9493_s24, %s9493_s24 }
  0x24   : > { %p9496_p13 = pnand %p9494_p1, %p9458_p12 }
  0x25   : > { %p9503_p5 = por %p9502_p6, %p9501_p2 }
  0x26   : > { %p9497_p0 = pneg %p9496_p13 }
  0x27   : > { %9381 = dma.hbm_to_vmem [thread:$0]  (!%p9712_p11), %s14304_s1, 18432, %s242_s15, [#allocation8], %s9608_s20, %s9608_s20, %s9609_s21  }
  0x28   : > { %p9504_p10 = pnand %p9503_p5, %p9497_p0 }
  0x2a   : > { %9507 = shalt.err (!%p9504_p10)
}
  0x2b   : > { %s14305_s4 = sld [smem:[#allocation79_spill]]  ;;  %s9735_s10 = sadd.s32 1, %s9604_s30  }
  0x2c   : > { %s32_s14 = sadd.s32 1, %s9600_s29  ;;  %s29_s15 = ssub.s32 %s9604_s30, %s9735_s10 }
  0x2d   : > { %p39_p1 = scmp.ne.s32.totalorder %s9600_s29, %s9596_s28  ;;  %p30_p2 = scmp.eq.s32.totalorder %s29_s15, 0 }
  0x2e   : > { %p40_p6 = scmp.eq.s32.totalorder %s9604_s30, 0  ;;  %p14306_p12 = scmp.eq.s32.totalorder %s9684_s9, 1 }
  0x2f   : > { %p9395_p7 = scmp.lt.s32.totalorder %s9604_s30, 2  ;;  %s283_s19 = sand.u32 1, %s9600_s29  }
  0x30   : > { %p9745_p3 = por %p14306_p12, %p39_p1  ;;  %p41_p9 = por %p40_p6, %p39_p1 }
  0x31   : > { %9384 = dma.hbm_to_vmem [thread:$0]  (!%p9712_p11), %s14305_s4, 18432, %s261_s18, [#allocation8], %s9608_s20, %s9608_s20, %s9609_s21  }
  0x32   : > { %s14307_s16 = scalar_select %p9745_p3, 1, 0 }
  0x33   : > { %s9751_s17 = scalar_select %p30_p2, %s9600_s29, %s32_s14  }
  0x34   : > { %s9361_s22 = smul.u32 432, %s283_s19  ;;  %p9755_p11 = pnand %p9395_p7, %p41_p9 }
  0x35   : > { %s9362_s18 = smul.u32 6912, %s9604_s30  ;;  %s9766_s14 = scalar_lea.sflag [#allocation5], %s283_s19 }
  0x36   : > { %s287_s25 = scalar_lea.vmem [#allocation4], %s9361_s22  ;;  %p9510_p0 = pneg %p9755_p11 }
  0x37   : > { %s9762_s24 = scalar_lea.hbm %s14203_s0, %s9362_s18  ;;  %s294_s26 = sshll.u32 %s287_s25, 4  ;;  %s9764_s26 = int_to_ptr.vmem [resolvable:$true] %s294_s26 }
  0x38   : > { %s9508_s15 = scalar_lea.hbm %s9762_s24, 6912  ;;  %s9513_s18 = scalar_lea.hbm %s14203_s0, 13824 }
  0x39   : > { %p9509_p13 = scmp.ne.s32.totalorder %s9762_s24, %s9508_s15  ;;  %p9514_p1 = scmp.lt.s32.totalorder %s9762_s24, %s14203_s0 }
  0x3a   : > { %p9515_p2 = scmp.lt.s32.totalorder %s9513_s18, %s9508_s15 }
  0x3b   : > { %p9511_p5 = pnand %p9510_p0, %p9509_p13 }
  0x3c   : > { %p9516_p6 = por %p9515_p2, %p9514_p1 }
  0x3d   : > { %p9512_p10 = pneg %p9511_p5 }
  0x3f   : > { %p9517_p12 = pnand %p9516_p6, %p9512_p10 }
  0x41   : > { %9520 = shalt.err (!%p9517_p12)
}
  0x42   : > { %s9521_s19 = scalar_lea.vmem %s9764_s26, 6912  ;;  %s9610_s22 = smov [#allocation4]  }
  0x43   : > { %p9522_p7 = scmp.ne.s32.totalorder %s9764_s26, %s9521_s19  ;;  %s9526_s25 = sshll.u32 %s9610_s22, 4  ;;  %s9527_s25 = int_to_ptr.vmem [resolvable:$false] %s9526_s25 }
  0x44   : > { %s9528_s1 = scalar_lea.vmem %s9527_s25, 13824  ;;  %p9529_p5 = scmp.lt.s32.totalorder %s9764_s26, %s9527_s25 }
  0x45   : > { %p9524_p9 = pnand %p9522_p7, %p9510_p0  ;;  %p9530_p3 = scmp.lt.s32.totalorder %s9528_s1, %s9521_s19 }
  0x47   : > { %p9525_p13 = pneg %p9524_p9  ;;  %p9531_p4 = por %p9530_p3, %p9529_p5 }
  0x49   : > { %p9532_p8 = pnand %p9531_p4, %p9525_p13 }
  0x4b   : > { %9535 = shalt.err (!%p9532_p8)
}
  0x4c   : > { %s9611_s4 = smov 128   ;;  %s9612_s15 = smov 8  }
  0x4d   : > { %9388 = dma.hbm_to_vmem [thread:$0]  (!%p9755_p11), %s9762_s24, 6912, %s9764_s26, %s9766_s14, %s9611_s4, %s9611_s4, %s9612_s15  }
  0x4e   : > { %p14309_p0 = scmp.ne.s32.totalorder %s14302_s13, 0 }
  0x50   : > { %306 = sbr.rel (%p14309_p0) target bundleno = 1502 (0x5de), region = 52 }
  0x55   : > { %s9790_s21 = sand.u32 1, %s9596_s28   ;;  %p14310_p4 = scmp.ne.s32.totalorder %s14300_s11, 0 }
  0x56   : > { %s9363_s18 = smul.u32 432, %s9790_s21  ;;  %s309_s23 = scalar_lea.sflag [#allocation5], %s9790_s21 }
  0x58   : > { %s9794_s19 = scalar_lea.vmem [#allocation4], %s9363_s18 }
  0x59   : > { %9579 = dma.done.wait (%p14310_p4), %s309_s23, 6912  }
  0x5a   : > { %9581 = vsyncadd (%p14310_p4), %s309_s23, 4294960384  ;;  %p14311_p8 = scmp.eq.s32.totalorder %s9684_s9, 0 }
  0x5c   : > { %9583 = dma.done.wait (%p14311_p8), [#allocation8], 36864   ;;  %p14312_p3 = pmov %p14311_p8 }
  0x5d   : > { %v14218_v0 = vmov 0.0   ;;  %v447_v1 = vld [vmem:[#allocation7 + $0x170] sm:$0xff]  ;;  %v448_v2 = vld [vmem:[#allocation7 + $0x178] sm:$0xff]  ;;  %v446_v3 = vld [vmem:[#allocation7 + $0x168] sm:$0xff]  ;;  %s9364_s26 = smul.u32 384, %s9790_s21  ;;  %p14696_p10 = scmp.ne.s32.totalorder %s14307_s16, 0 }
  0x5e   : > { %9585 = vsyncadd (%p14312_p3), [#allocation8], 4294930432  ;;  %513 = vmatprep.mubr.f32.mxu0 %v14218_v0  ;;  %449 = vmatprep.subr.mxu0 %v447_v1  ;;  %v444_v4 = vld [vmem:[#allocation7 + $0x158] sm:$0xff]  ;;  %v445_v5 = vld [vmem:[#allocation7 + $0x160] sm:$0xff]  ;;  %s9365_s15 = smul.u32 6144, %s9684_s9  ;;  %s8232_s9 = scalar_lea.sflag [#allocation6], %s9790_s21 }
  0x5f   : > { %8737 = vmatprep.subr.mxu1 %v448_v2  ;;  %v443_v6 = vld [vmem:[#allocation7 + $0x150] sm:$0xff]  ;;  %450 = vmatpush1.msra.mxu0 %v446_v3  ;;  %v441_v7 = vld [vmem:[#allocation7 + $0x140] sm:$0xff]  ;;  %v442_v8 = vld [vmem:[#allocation7 + $0x148] sm:$0xff]  ;;  %s13686_s14 = scalar_lea.vmem [#allocation10], %s9364_s26  ;;  %s9615_s20 = smov [#allocation10]  }
  0x60   : > { %8738 = vmatpush3.msra.mxu1 %v448_v2  ;;  %451 = vmatprep.subr.mxu0 %v444_v4  ;;  %v440_v9 = vld [vmem:[#allocation7 + $0x138] sm:$0xff]  ;;  %v438_v10 = vld [vmem:[#allocation7 + $0x128] sm:$0xff]  ;;  %v439_v11 = vld [vmem:[#allocation7 + $0x130] sm:$0xff]  ;;  %s8245_s18 = sshll.u32 %s13686_s14, 4  ;;  %s14156_s13 = scalar_lea.hbm %s14211_s8, %s9365_s15  ;;  %s14158_s18 = int_to_ptr.vmem [resolvable:$true] %s8245_s18 }
  0x61   : > { %8739 = vmatprep.subr.mxu1 %v445_v5  ;;  %452 = vmatpush1.msra.mxu0 %v443_v6  ;;  %v437_v12 = vld [vmem:[#allocation7 + $0x120] sm:$0xff]  ;;  %v435_v13 = vld [vmem:[#allocation7 + $0x110] sm:$0xff]  ;;  %v436_v14 = vld [vmem:[#allocation7 + $0x118] sm:$0xff]  ;;  %s9540_s24 = sshll.u32 %s9615_s20, 4  ;;  %s9541_s24 = int_to_ptr.vmem [resolvable:$false] %s9540_s24 }
  0x62   : > { %8740 = vmatpush3.msra.mxu1 %v445_v5  ;;  %453 = vmatprep.subr.mxu0 %v441_v7  ;;  %v434_v15 = vld [vmem:[#allocation7 + $0x108] sm:$0xff]  ;;  %v432_v16 = vld [vmem:[#allocation7 + $0xf8] sm:$0xff]  ;;  %v433_v17 = vld [vmem:[#allocation7 + $0x100] sm:$0xff]  ;;  %s9542_s26 = scalar_lea.vmem %s9541_s24, 12288  ;;  %p9543_p6 = scmp.lt.s32.totalorder %s14158_s18, %s9541_s24 }
  0x63   : > { %8741 = vmatprep.subr.mxu1 %v442_v8  ;;  %454 = vmatpush1.msra.mxu0 %v440_v9  ;;  %v431_v18 = vld [vmem:[#allocation7 + $0xf0] sm:$0xff]  ;;  %v429_v19 = vld [vmem:[#allocation7 + $0xe0] sm:$0xff]  ;;  %v430_v20 = vld [vmem:[#allocation7 + $0xe8] sm:$0xff] }
  0x64   : > { %8742 = vmatpush3.msra.mxu1 %v442_v8  ;;  %455 = vmatprep.subr.mxu0 %v438_v10  ;;  %v428_v21 = vld [vmem:[#allocation7 + $0xd8] sm:$0xff]  ;;  %v426_v22 = vld [vmem:[#allocation7 + $0xc8] sm:$0xff]  ;;  %v427_v23 = vld [vmem:[#allocation7 + $0xd0] sm:$0xff] }
  0x65   : > { %8743 = vmatprep.subr.mxu1 %v439_v11  ;;  %456 = vmatpush1.msra.mxu0 %v437_v12  ;;  %v425_v24 = vld [vmem:[#allocation7 + $0xc0] sm:$0xff]  ;;  %v423_v25 = vld [vmem:[#allocation7 + $0xb0] sm:$0xff]  ;;  %v424_v26 = vld [vmem:[#allocation7 + $0xb8] sm:$0xff] }
  0x66   : > { %8744 = vmatpush3.msra.mxu1 %v439_v11  ;;  %457 = vmatprep.subr.mxu0 %v435_v13  ;;  %v422_v27 = vld [vmem:[#allocation7 + $0xa8] sm:$0xff]  ;;  %v420_v28 = vld [vmem:[#allocation7 + $0x98] sm:$0xff]  ;;  %v421_v29 = vld [vmem:[#allocation7 + $0xa0] sm:$0xff] }
  0x67   : > { %8745 = vmatprep.subr.mxu1 %v436_v14  ;;  %458 = vmatpush1.msra.mxu0 %v434_v15  ;;  %v419_v30 = vld [vmem:[#allocation7 + $0x90] sm:$0xff]  ;;  %v417_v31 = vld [vmem:[#allocation7 + $0x80] sm:$0xff]  ;;  %v418_v32 = vld [vmem:[#allocation7 + $0x88] sm:$0xff] }
  0x68   : > { %8746 = vmatpush3.msra.mxu1 %v436_v14  ;;  %459 = vmatprep.subr.mxu0 %v432_v16  ;;  %v416_v33 = vld [vmem:[#allocation7 + $0x78] sm:$0xff]  ;;  %v414_v34 = vld [vmem:[#allocation7 + $0x68] sm:$0xff]  ;;  %v415_v35 = vld [vmem:[#allocation7 + $0x70] sm:$0xff] }
  0x69   : > { %8747 = vmatprep.subr.mxu1 %v433_v17  ;;  %460 = vmatpush1.msra.mxu0 %v431_v18  ;;  %v413_v36 = vld [vmem:[#allocation7 + $0x60] sm:$0xff]  ;;  %v411_v37 = vld [vmem:[#allocation7 + $0x50] sm:$0xff]  ;;  %v412_v38 = vld [vmem:[#allocation7 + $0x58] sm:$0xff] }
  0x6a   : > { %8748 = vmatpush3.msra.mxu1 %v433_v17  ;;  %461 = vmatprep.subr.mxu0 %v429_v19  ;;  %v410_v39 = vld [vmem:[#allocation7 + $0x48] sm:$0xff]  ;;  %v408_v40 = vld [vmem:[#allocation7 + $0x38] sm:$0xff]  ;;  %v409_v41 = vld [vmem:[#allocation7 + $0x40] sm:$0xff] }
  0x6b   : > { %8749 = vmatprep.subr.mxu1 %v430_v20  ;;  %462 = vmatpush1.msra.mxu0 %v428_v21  ;;  %v407_v42 = vld [vmem:[#allocation7 + $0x30] sm:$0xff]  ;;  %v405_v43 = vld [vmem:[#allocation7 + $0x20] sm:$0xff]  ;;  %v406_v44 = vld [vmem:[#allocation7 + $0x28] sm:$0xff] }
  0x6c   : > { %8750 = vmatpush3.msra.mxu1 %v430_v20  ;;  %463 = vmatprep.subr.mxu0 %v426_v22  ;;  %v404_v45 = vld [vmem:[#allocation7 + $0x18] sm:$0xff]  ;;  %v402_v46 = vld [vmem:[#allocation7 + $0x8] sm:$0xff]  ;;  %v403_v47 = vld [vmem:[#allocation7 + $0x10] sm:$0xff] }
  0x6d   : > { %8751 = vmatprep.subr.mxu1 %v427_v23  ;;  %464 = vmatpush1.msra.mxu0 %v425_v24  ;;  %v401_v48 = vld [vmem:[#allocation7] sm:$0xff]  ;;  %v354_v50 = vld [vmem:[%s9794_s19 + $0x8] sm:$0xff]  ;;  %v1542_v54 = vld [vmem:[#allocation7 + $0x2f0] sm:$0xff] }
  0x6e   : > { %8752 = vmatpush3.msra.mxu1 %v427_v23  ;;  %465 = vmatprep.subr.mxu0 %v423_v25  ;;  %v353_v49 = vld [vmem:[%s9794_s19] sm:$0xff]  ;;  %v1543_v51 = vld [vmem:[#allocation7 + $0x2f8] sm:$0xff]  ;;  %v355_v52 = vld [vmem:[%s9794_s19 + $0x10] sm:$0xff] }
  0x6f   : > { %8753 = vmatprep.subr.mxu1 %v424_v26  ;;  %466 = vmatpush1.msra.mxu0 %v422_v27  ;;  %v1540_v53 = vld [vmem:[#allocation7 + $0x2e0] sm:$0xff]  ;;  %v9810_v55 = vld [vmem:[%s9794_s19 + $0x18] sm:$0xff]  ;;  %v9819_v60 = vld [vmem:[%s9794_s19 + $0x28] sm:$0xff] }
  0x70   : > { %8754 = vmatpush3.msra.mxu1 %v424_v26  ;;  %467 = vmatprep.subr.mxu0 %v420_v28  ;;  %v9813_v56 = vld [vmem:[%s9794_s19 + $0x20] sm:$0xff]  ;;  %v1537_v57 = vld [vmem:[#allocation7 + $0x2c8] sm:$0xff]  ;;  %v1539_v59 = vld [vmem:[#allocation7 + $0x2d8] sm:$0xff] }
  0x71   : > { %8755 = vmatprep.subr.mxu1 %v421_v29  ;;  %468 = vmatpush1.msra.mxu0 %v419_v30  ;;  %v1541_v58 = vld [vmem:[#allocation7 + $0x2e8] sm:$0xff]  ;;  %v9822_v61 = vld [vmem:[%s9794_s19 + $0x30] sm:$0xff]  ;;  %v9831_v3 = vld [vmem:[%s9794_s19 + $0x40] sm:$0xff] }
  0x72   : > { %8756 = vmatpush3.msra.mxu1 %v421_v29  ;;  %469 = vmatprep.subr.mxu0 %v417_v31  ;;  %v1534_v62 = vld [vmem:[#allocation7 + $0x2b0] sm:$0xff]  ;;  %v1536_v1 = vld [vmem:[#allocation7 + $0x2c0] sm:$0xff]  ;;  %v9828_v2 = vld [vmem:[%s9794_s19 + $0x38] sm:$0xff] }
  0x73   : > { %8757 = vmatprep.subr.mxu1 %v418_v32  ;;  %470 = vmatpush1.msra.mxu0 %v416_v33  ;;  %v1538_v63 = vld [vmem:[#allocation7 + $0x2d0] sm:$0xff]  ;;  %v1531_v4 = vld [vmem:[#allocation7 + $0x298] sm:$0xff]  ;;  %v1533_v6 = vld [vmem:[#allocation7 + $0x2a8] sm:$0xff] }
  0x74   : > { %8758 = vmatpush3.msra.mxu1 %v418_v32  ;;  %471 = vmatprep.subr.mxu0 %v414_v34  ;;  %v1535_v5 = vld [vmem:[#allocation7 + $0x2b8] sm:$0xff]  ;;  %v9841_v8 = vld [vmem:[%s9794_s19 + $0x50] sm:$0xff]  ;;  %v9851_v13 = vld [vmem:[%s9794_s19 + $0x60] sm:$0xff] }
  0x75   : > { %8759 = vmatprep.subr.mxu1 %v415_v35  ;;  %472 = vmatpush1.msra.mxu0 %v413_v36  ;;  %v9838_v7 = vld [vmem:[%s9794_s19 + $0x48] sm:$0xff]  ;;  %v1528_v9 = vld [vmem:[#allocation7 + $0x280] sm:$0xff]  ;;  %v1530_v11 = vld [vmem:[#allocation7 + $0x290] sm:$0xff] }
  0x76   : > { %8760 = vmatpush3.msra.mxu1 %v415_v35  ;;  %473 = vmatprep.subr.mxu0 %v411_v37  ;;  %v1532_v10 = vld [vmem:[#allocation7 + $0x2a0] sm:$0xff]  ;;  %v9848_v12 = vld [vmem:[%s9794_s19 + $0x58] sm:$0xff]  ;;  %v9858_v17 = vld [vmem:[%s9794_s19 + $0x68] sm:$0xff] }
  0x77   : > { %8761 = vmatprep.subr.mxu1 %v412_v38  ;;  %474 = vmatpush1.msra.mxu0 %v410_v39  ;;  %v1525_v14 = vld [vmem:[#allocation7 + $0x268] sm:$0xff]  ;;  %v1527_v16 = vld [vmem:[#allocation7 + $0x278] sm:$0xff]  ;;  %v9861_v18 = vld [vmem:[%s9794_s19 + $0x70] sm:$0xff] }
  0x78   : > { %8762 = vmatpush3.msra.mxu1 %v412_v38  ;;  %475 = vmatprep.subr.mxu0 %v408_v40  ;;  %v1529_v15 = vld [vmem:[#allocation7 + $0x288] sm:$0xff]  ;;  %v1526_v19 = vld [vmem:[#allocation7 + $0x270] sm:$0xff]  ;;  %v1524_v21 = vld [vmem:[#allocation7 + $0x260] sm:$0xff] }
  0x79   : > { %8763 = vmatprep.subr.mxu1 %v409_v41  ;;  %476 = vmatpush1.msra.mxu0 %v407_v42  ;;  %v1522_v20 = vld [vmem:[#allocation7 + $0x250] sm:$0xff]  ;;  %v9868_v22 = vld [vmem:[%s9794_s19 + $0x78] sm:$0xff]  ;;  %v1520_v26 = vld [vmem:[#allocation7 + $0x240] sm:$0xff] }
  0x7a   : > { %8764 = vmatpush3.msra.mxu1 %v409_v41  ;;  %477 = vmatprep.subr.mxu0 %v405_v43  ;;  %v9871_v23 = vld [vmem:[%s9794_s19 + $0x80] sm:$0xff]  ;;  %v1523_v24 = vld [vmem:[#allocation7 + $0x258] sm:$0xff]  ;;  %v1521_v25 = vld [vmem:[#allocation7 + $0x248] sm:$0xff] }
  0x7b   : > { %8765 = vmatprep.subr.mxu1 %v406_v44  ;;  %478 = vmatpush1.msra.mxu0 %v404_v45  ;;  %v9878_v27 = vld [vmem:[%s9794_s19 + $0x88] sm:$0xff]  ;;  %v9881_v28 = vld [vmem:[%s9794_s19 + $0x90] sm:$0xff]  ;;  %v9888_v33 = vld [vmem:[%s9794_s19 + $0x98] sm:$0xff] }
  0x7c   : > { %8766 = vmatpush3.msra.mxu1 %v406_v44  ;;  %479 = vmatprep.subr.mxu0 %v402_v46  ;;  %v1518_v29 = vld [vmem:[#allocation7 + $0x230] sm:$0xff]  ;;  %v1517_v30 = vld [vmem:[#allocation7 + $0x228] sm:$0xff]  ;;  %v1519_v31 = vld [vmem:[#allocation7 + $0x238] sm:$0xff] }
  0x7d   : > { %8767 = vmatprep.subr.mxu1 %v403_v47  ;;  %480 = vmatpush1.msra.mxu0 %v401_v48  ;;  %v1515_v32 = vld [vmem:[#allocation7 + $0x218] sm:$0xff]  ;;  %v9891_v34 = vld [vmem:[%s9794_s19 + $0xa0] sm:$0xff]  ;;  %v9901_v39 = vld [vmem:[%s9794_s19 + $0xb0] sm:$0xff] }
  0x7e   : > { %8768 = vmatpush3.msra.mxu1 %v403_v47  ;;  %8769 = vmatprep.mubr.f32.mxu1 %v353_v49  ;;  %v1514_v35 = vld [vmem:[#allocation7 + $0x210] sm:$0xff]  ;;  %v1512_v36 = vld [vmem:[#allocation7 + $0x200] sm:$0xff]  ;;  %v1511_v37 = vld [vmem:[#allocation7 + $0x1f8] sm:$0xff] }
  0x7f   : > { %514 = vmatmul.mubr.f32.vlgmr.msra.gmra.mxu0 %v353_v49  ;;  %8770 = vmatmul.mubr.f32.vlgmr.msra.gmra.mxu1 %v354_v50  ;;  %v9898_v38 = vld [vmem:[%s9794_s19 + $0xa8] sm:$0xff]  ;;  %v1508_v41 = vld [vmem:[#allocation7 + $0x1e0] sm:$0xff]  ;;  %v1506_v43 = vld [vmem:[#allocation7 + $0x1d0] sm:$0xff] }
  0x80   : > { %8841 = vmatprep.subr.mxu0 %v1543_v51  ;;  %519 = vmatprep.mubr.f32.mxu0 %v14218_v0  ;;  %v1509_v40 = vld [vmem:[#allocation7 + $0x1e8] sm:$0xff]  ;;  %v1516_v42 = vld [vmem:[#allocation7 + $0x220] sm:$0xff]  ;;  %v1503_v47 = vld [vmem:[#allocation7 + $0x1b8] sm:$0xff] }
  0x81   : > { %8842 = vmatpush3.msra.mxu0 %v1543_v51  ;;  %8772 = vmatprep.mubr.f32.mxu1 %v355_v52  ;;  %v9908_v44 = vld [vmem:[%s9794_s19 + $0xb8] sm:$0xff]  ;;  %v9911_v45 = vld [vmem:[%s9794_s19 + $0xc0] sm:$0xff]  ;;  %v9918_v49 = vld [vmem:[%s9794_s19 + $0xc8] sm:$0xff] }
  0x82   : > { %8843 = vmatprep.subr.mxu0 %v1540_v53  ;;  %1544 = vmatprep.subr.mxu1 %v1542_v54  ;;  %v1505_v46 = vld [vmem:[#allocation7 + $0x1c8] sm:$0xff]  ;;  %v1502_v48 = vld [vmem:[#allocation7 + $0x1b0] sm:$0xff]  ;;  %v1500_v51 = vld [vmem:[#allocation7 + $0x1a0] sm:$0xff] }
  0x83   : > { %520 = vmatmul.mubr.f32.gmra.mxu0 %v354_v50  ;;  %8773 = vmatmul.mubr.f32.gmra.mxu1 %v9810_v55  ;;  %v9921_v50 = vld [vmem:[%s9794_s19 + $0xd0] sm:$0xff]  ;;  %v1497_v54 = vld [vmem:[#allocation7 + $0x188] sm:$0xff] }
  0x84   : > { %525 = vmatprep.mubr.f32.mxu0 %v14218_v0  ;;  %8775 = vmatprep.mubr.f32.mxu1 %v9813_v56 }
  0x85   : > { %8844 = vmatpush3.msra.mxu0 %v1540_v53  ;;  %1545 = vmatpush1.msra.mxu1 %v1541_v58  ;;  %v1513_v53 = vld [vmem:[#allocation7 + $0x208] sm:$0xff]  ;;  %v9931_v58 = vld [vmem:[%s9794_s19 + $0xe0] sm:$0xff] }
  0x86   : > { %8845 = vmatprep.subr.mxu0 %v1537_v57  ;;  %1546 = vmatprep.subr.mxu1 %v1539_v59  ;;  %v1496_v59 = vld [vmem:[#allocation7 + $0x180] sm:$0xff] }
  0x87   : > { %526 = vmatmul.mubr.f32.gmra.mxu0 %v355_v52  ;;  %8776 = vmatmul.mubr.f32.gmra.mxu1 %v9819_v60  ;;  %v1499_v52 = vld [vmem:[#allocation7 + $0x198] sm:$0xff] }
  0x88   : > { %531 = vmatprep.mubr.f32.mxu0 %v14218_v0  ;;  %8778 = vmatprep.mubr.f32.mxu1 %v9822_v61 }
  0x89   : > { %8846 = vmatpush3.msra.mxu0 %v1537_v57  ;;  %1547 = vmatpush1.msra.mxu1 %v1538_v63  ;;  %v9928_v57 = vld [vmem:[%s9794_s19 + $0xd8] sm:$0xff]  ;;  %v9938_v63 = vld [vmem:[%s9794_s19 + $0xe8] sm:$0xff] }
  0x8a   : > { %8847 = vmatprep.subr.mxu0 %v1534_v62  ;;  %1548 = vmatprep.subr.mxu1 %v1536_v1  ;;  %v9941_v1 = vld [vmem:[%s9794_s19 + $0xf0] sm:$0xff] }
  0x8b   : > { %532 = vmatmul.mubr.f32.gmra.mxu0 %v9810_v55  ;;  %8779 = vmatmul.mubr.f32.gmra.mxu1 %v9828_v2 }
  0x8c   : > { %537 = vmatprep.mubr.f32.mxu0 %v14218_v0  ;;  %8781 = vmatprep.mubr.f32.mxu1 %v9831_v3 }
  0x8d   : > { %8848 = vmatpush3.msra.mxu0 %v1534_v62  ;;  %1549 = vmatpush1.msra.mxu1 %v1535_v5  ;;  %v1510_v62 = vld [vmem:[#allocation7 + $0x1f0] sm:$0xff]  ;;  %v9948_v5 = vld [vmem:[%s9794_s19 + $0xf8] sm:$0xff] }
  0x8e   : > { %8849 = vmatprep.subr.mxu0 %v1531_v4  ;;  %1550 = vmatprep.subr.mxu1 %v1533_v6  ;;  %v9951_v6 = vld [vmem:[%s9794_s19 + $0x100] sm:$0xff] }
  0x8f   : > { %538 = vmatmul.mubr.f32.gmra.mxu0 %v9813_v56  ;;  %8782 = vmatmul.mubr.f32.gmra.mxu1 %v9838_v7 }
  0x90   : > { %543 = vmatprep.mubr.f32.mxu0 %v14218_v0  ;;  %8784 = vmatprep.mubr.f32.mxu1 %v9841_v8 }
  0x91   : > { %8850 = vmatpush3.msra.mxu0 %v1531_v4  ;;  %1551 = vmatpush1.msra.mxu1 %v1532_v10  ;;  %v1507_v4 = vld [vmem:[#allocation7 + $0x1d8] sm:$0xff] }
  0x92   : > { %8851 = vmatprep.subr.mxu0 %v1528_v9  ;;  %1552 = vmatprep.subr.mxu1 %v1530_v11  ;;  %v9958_v10 = vld [vmem:[%s9794_s19 + $0x108] sm:$0xff]  ;;  %v9961_v11 = vld [vmem:[%s9794_s19 + $0x110] sm:$0xff] }
  0x93   : > { %544 = vmatmul.mubr.f32.gmra.mxu0 %v9819_v60  ;;  %8785 = vmatmul.mubr.f32.gmra.mxu1 %v9848_v12 }
  0x94   : > { %549 = vmatprep.mubr.f32.mxu0 %v14218_v0  ;;  %8787 = vmatprep.mubr.f32.mxu1 %v9851_v13 }
  0x95   : > { %8852 = vmatpush3.msra.mxu0 %v1528_v9  ;;  %1553 = vmatpush1.msra.mxu1 %v1529_v15  ;;  %v1504_v9 = vld [vmem:[#allocation7 + $0x1c0] sm:$0xff]  ;;  %v9968_v15 = vld [vmem:[%s9794_s19 + $0x118] sm:$0xff] }
  0x96   : > { %8853 = vmatprep.subr.mxu0 %v1525_v14  ;;  %1554 = vmatprep.subr.mxu1 %v1527_v16  ;;  %v9971_v16 = vld [vmem:[%s9794_s19 + $0x120] sm:$0xff] }
  0x97   : > { %550 = vmatmul.mubr.f32.gmra.mxu0 %v9822_v61  ;;  %8788 = vmatmul.mubr.f32.gmra.mxu1 %v9858_v17 }
  0x98   : > { %555 = vmatprep.mubr.f32.mxu0 %v14218_v0  ;;  %8790 = vmatprep.mubr.f32.mxu1 %v9861_v18 }
  0x99   : > { %8854 = vmatpush3.msra.mxu0 %v1525_v14  ;;  %1555 = vmatpush1.msra.mxu1 %v1526_v19  ;;  %v1501_v14 = vld [vmem:[#allocation7 + $0x1a8] sm:$0xff]  ;;  %v1498_v19 = vld [vmem:[#allocation7 + $0x190] sm:$0xff] }
  0x9a   : > { %8855 = vmatprep.subr.mxu0 %v1522_v20  ;;  %1556 = vmatprep.subr.mxu1 %v1524_v21  ;;  %v9981_v21 = vld [vmem:[%s9794_s19 + $0x130] sm:$0xff] }
  0x9b   : > { %556 = vmatmul.mubr.f32.gmra.mxu0 %v9828_v2  ;;  %8791 = vmatmul.mubr.f32.gmra.mxu1 %v9868_v22 }
  0x9c   : > { %561 = vmatprep.mubr.f32.mxu0 %v14218_v0  ;;  %8793 = vmatprep.mubr.f32.mxu1 %v9871_v23 }
  0x9d   : > { %1557 = vmatpush1.msra.mxu1 %v1523_v24  ;;  %8856 = vmatpush3.msra.mxu0 %v1522_v20  ;;  %v9978_v20 = vld [vmem:[%s9794_s19 + $0x128] sm:$0xff]  ;;  %v2729_v24 = vld [vmem:[#allocation7 + $0x470] sm:$0xff] }
  0x9e   : > { %1558 = vmatprep.subr.mxu1 %v1521_v25  ;;  %8857 = vmatprep.subr.mxu0 %v1519_v31  ;;  %v9988_v25 = vld [vmem:[%s9794_s19 + $0x138] sm:$0xff] }
  0x9f   : > { %562 = vmatmul.mubr.f32.gmra.mxu0 %v9831_v3  ;;  %1559 = vmatpush1.msra.mxu1 %v1520_v26  ;;  %v9991_v26 = vld [vmem:[%s9794_s19 + $0x140] sm:$0xff] }
  0xa0   : > { %8794 = vmatmul.mubr.f32.gmra.mxu1 %v9878_v27  ;;  %567 = vmatprep.mubr.f32.mxu0 %v14218_v0 }
  0xa1   : > { %8796 = vmatprep.mubr.f32.mxu1 %v9881_v28  ;;  %1560 = vmatprep.subr.mxu1 %v1518_v29  ;;  %v9998_v29 = vld [vmem:[%s9794_s19 + $0x148] sm:$0xff] }
  0xa2   : > { %1561 = vmatpush1.msra.mxu1 %v1517_v30  ;;  %8858 = vmatpush3.msra.mxu0 %v1519_v31  ;;  %v10001_v30 = vld [vmem:[%s9794_s19 + $0x150] sm:$0xff]  ;;  %v10008_v31 = vld [vmem:[%s9794_s19 + $0x158] sm:$0xff] }
  0xa3   : > { %568 = vmatmul.mubr.f32.gmra.mxu0 %v9838_v7  ;;  %1562 = vmatprep.subr.mxu1 %v1515_v32  ;;  %v10011_v32 = vld [vmem:[%s9794_s19 + $0x160] sm:$0xff] }
  0xa4   : > { %8797 = vmatmul.mubr.f32.gmra.mxu1 %v9888_v33  ;;  %573 = vmatprep.mubr.f32.mxu0 %v14218_v0 }
  0xa5   : > { %8799 = vmatprep.mubr.f32.mxu1 %v9891_v34  ;;  %1563 = vmatpush1.msra.mxu1 %v1514_v35  ;;  %v10018_v35 = vld [vmem:[%s9794_s19 + $0x168] sm:$0xff] }
  0xa6   : > { %1564 = vmatprep.subr.mxu1 %v1512_v36  ;;  %8859 = vmatprep.subr.mxu0 %v1516_v42  ;;  %v10021_v36 = vld [vmem:[%s9794_s19 + $0x170] sm:$0xff] }
  0xa7   : > { %574 = vmatmul.mubr.f32.gmra.mxu0 %v9841_v8  ;;  %1565 = vmatpush1.msra.mxu1 %v1511_v37  ;;  %v10028_v37 = vld [vmem:[%s9794_s19 + $0x178] sm:$0xff] }
  0xa8   : > { %8800 = vmatmul.mubr.f32.gmra.mxu1 %v9898_v38  ;;  %579 = vmatprep.mubr.f32.mxu0 %v14218_v0 }
  0xa9   : > { %8802 = vmatprep.mubr.f32.mxu1 %v9901_v39  ;;  %1566 = vmatprep.subr.mxu1 %v1509_v40  ;;  %v2730_v40 = vld [vmem:[#allocation7 + $0x478] sm:$0xff] }
  0xaa   : > { %1567 = vmatpush1.msra.mxu1 %v1508_v41  ;;  %8860 = vmatpush3.msra.mxu0 %v1516_v42  ;;  %v2727_v41 = vld [vmem:[#allocation7 + $0x460] sm:$0xff]  ;;  %v2724_v42 = vld [vmem:[#allocation7 + $0x448] sm:$0xff] }
  0xab   : > { %580 = vmatmul.mubr.f32.gmra.mxu0 %v9848_v12  ;;  %1568 = vmatprep.subr.mxu1 %v1506_v43  ;;  %v2721_v43 = vld [vmem:[#allocation7 + $0x430] sm:$0xff] }
  0xac   : > { %8803 = vmatmul.mubr.f32.gmra.mxu1 %v9908_v44  ;;  %585 = vmatprep.mubr.f32.mxu0 %v14218_v0 }
  0xad   : > { %8805 = vmatprep.mubr.f32.mxu1 %v9911_v45  ;;  %1569 = vmatpush1.msra.mxu1 %v1505_v46  ;;  %v2718_v46 = vld [vmem:[#allocation7 + $0x418] sm:$0xff] }
  0xae   : > { %1570 = vmatprep.subr.mxu1 %v1503_v47  ;;  %8861 = vmatprep.subr.mxu0 %v1513_v53  ;;  %v2715_v47 = vld [vmem:[#allocation7 + $0x400] sm:$0xff] }
  0xaf   : > { %586 = vmatmul.mubr.f32.gmra.mxu0 %v9851_v13  ;;  %1571 = vmatpush1.msra.mxu1 %v1502_v48  ;;  %v2712_v48 = vld [vmem:[#allocation7 + $0x3e8] sm:$0xff] }
  0xb0   : > { %8806 = vmatmul.mubr.f32.gmra.mxu1 %v9918_v49  ;;  %591 = vmatprep.mubr.f32.mxu0 %v14218_v0 }
  0xb1   : > { %8808 = vmatprep.mubr.f32.mxu1 %v9921_v50  ;;  %1572 = vmatprep.subr.mxu1 %v1500_v51  ;;  %v2709_v51 = vld [vmem:[#allocation7 + $0x3d0] sm:$0xff] }
  0xb2   : > { %1573 = vmatpush1.msra.mxu1 %v1499_v52  ;;  %8862 = vmatpush3.msra.mxu0 %v1513_v53  ;;  %v2706_v52 = vld [vmem:[#allocation7 + $0x3b8] sm:$0xff]  ;;  %v2703_v53 = vld [vmem:[#allocation7 + $0x3a0] sm:$0xff] }
  0xb3   : > { %592 = vmatmul.mubr.f32.gmra.mxu0 %v9858_v17  ;;  %1574 = vmatprep.subr.mxu1 %v1497_v54  ;;  %v2700_v54 = vld [vmem:[#allocation7 + $0x388] sm:$0xff] }
  0xb4   : > { %8809 = vmatmul.mubr.f32.gmra.mxu1 %v9928_v57  ;;  %597 = vmatprep.mubr.f32.mxu0 %v14218_v0 }
  0xb5   : > { %8811 = vmatprep.mubr.f32.mxu1 %v9931_v58  ;;  %1575 = vmatpush1.msra.mxu1 %v1496_v59  ;;  %v2697_v59 = vld [vmem:[#allocation7 + $0x370] sm:$0xff] }
  0xb6   : > { %8863 = vmatprep.subr.mxu0 %v1510_v62  ;;  %8945 = vmatprep.subr.mxu1 %v2730_v40 }
  0xb7   : > { %598 = vmatmul.mubr.f32.gmra.mxu0 %v9861_v18 }
  0xb8   : > { %8812 = vmatmul.mubr.f32.gmra.mxu1 %v9938_v63  ;;  %603 = vmatprep.mubr.f32.mxu0 %v14218_v0 }
  0xb9   : > { %8814 = vmatprep.mubr.f32.mxu1 %v9941_v1  ;;  %8864 = vmatpush3.msra.mxu0 %v1510_v62  ;;  %v2694_v62 = vld [vmem:[#allocation7 + $0x358] sm:$0xff] }
  0xba   : > { %8865 = vmatprep.subr.mxu0 %v1507_v4 }
  0xbb   : > { %604 = vmatmul.mubr.f32.gmra.mxu0 %v9868_v22 }
  0xbc   : > { %8815 = vmatmul.mubr.f32.gmra.mxu1 %v9948_v5  ;;  %609 = vmatprep.mubr.f32.mxu0 %v14218_v0 }
  0xbd   : > { %8817 = vmatprep.mubr.f32.mxu1 %v9951_v6  ;;  %8866 = vmatpush3.msra.mxu0 %v1507_v4  ;;  %v2691_v4 = vld [vmem:[#allocation7 + $0x340] sm:$0xff] }
  0xbe   : > { %8867 = vmatprep.subr.mxu0 %v1504_v9 }
  0xbf   : > { %610 = vmatmul.mubr.f32.gmra.mxu0 %v9871_v23 }
  0xc0   : > { %8818 = vmatmul.mubr.f32.gmra.mxu1 %v9958_v10  ;;  %615 = vmatprep.mubr.f32.mxu0 %v14218_v0 }
  0xc1   : > { %8820 = vmatprep.mubr.f32.mxu1 %v9961_v11  ;;  %8868 = vmatpush3.msra.mxu0 %v1504_v9  ;;  %v2688_v9 = vld [vmem:[#allocation7 + $0x328] sm:$0xff] }
  0xc2   : > { %8869 = vmatprep.subr.mxu0 %v1501_v14 }
  0xc3   : > { %616 = vmatmul.mubr.f32.gmra.mxu0 %v9878_v27 }
  0xc4   : > { %8821 = vmatmul.mubr.f32.gmra.mxu1 %v9968_v15  ;;  %621 = vmatprep.mubr.f32.mxu0 %v14218_v0 }
  0xc5   : > { %8823 = vmatprep.mubr.f32.mxu1 %v9971_v16  ;;  %8870 = vmatpush3.msra.mxu0 %v1501_v14  ;;  %v2685_v14 = vld [vmem:[#allocation7 + $0x310] sm:$0xff] }
  0xc6   : > { %8871 = vmatprep.subr.mxu0 %v1498_v19 }
  0xc7   : > { %622 = vmatmul.mubr.f32.gmra.mxu0 %v9881_v28 }
  0xc8   : > { %8824 = vmatmul.mubr.f32.gmra.mxu1 %v9978_v20  ;;  %627 = vmatprep.mubr.f32.mxu0 %v14218_v0 }
  0xc9   : > { %8826 = vmatprep.mubr.f32.mxu1 %v9981_v21  ;;  %8872 = vmatpush3.msra.mxu0 %v1498_v19  ;;  %v1155_v19 = vlaneseq }
  0xca   : > { %2731 = vmatprep.subr.mxu0 %v2729_v24  ;;  %v2728_v24 = vld [vmem:[#allocation7 + $0x468] sm:$0xff] }
  0xcb   : > { %628 = vmatmul.mubr.f32.gmra.mxu0 %v9888_v33 }
  0xcc   : > { %8827 = vmatmul.mubr.f32.gmra.mxu1 %v9988_v25  ;;  %633 = vmatprep.mubr.f32.mxu0 %v14218_v0 }
  0xcd   : > { %8829 = vmatprep.mubr.f32.mxu1 %v9991_v26 }
  0xcf   : > { %634 = vmatmul.mubr.f32.gmra.mxu0 %v9891_v34 }
  0xd0   : > { %8830 = vmatmul.mubr.f32.gmra.mxu1 %v9998_v29  ;;  %639 = vmatprep.mubr.f32.mxu0 %v14218_v0 }
  0xd1   : > { %8832 = vmatprep.mubr.f32.mxu1 %v10001_v30 }
  0xd3   : > { %640 = vmatmul.mubr.f32.gmra.mxu0 %v9898_v38 }
  0xd4   : > { %8833 = vmatmul.mubr.f32.gmra.mxu1 %v10008_v31  ;;  %645 = vmatprep.mubr.f32.mxu0 %v14218_v0 }
  0xd5   : > { %8835 = vmatprep.mubr.f32.mxu1 %v10011_v32 }
  0xd7   : > { %646 = vmatmul.mubr.f32.gmra.mxu0 %v9901_v39 }
  0xd8   : > { %8836 = vmatmul.mubr.f32.gmra.mxu1 %v10018_v35  ;;  %651 = vmatprep.mubr.f32.mxu0 %v14218_v0 }
  0xd9   : > { %8838 = vmatprep.mubr.f32.mxu1 %v10021_v36 }
  0xdb   : > { %652 = vmatmul.mubr.f32.gmra.mxu0 %v9908_v44 }
  0xdc   : > { %8839 = vmatmul.mubr.f32.gmra.mxu1 %v10028_v37  ;;  %657 = vmatprep.mubr.f32.mxu0 %v14218_v0 }
  0xdd   : > { %1608 = vmatprep.mubr.f32.mxu1 %v14218_v0 }
  0xdf   : > { %658 = vmatmul.mubr.f32.gmra.mxu0 %v9911_v45 }
  0xe0   : > { %1609 = vmatmul.mubr.f32.vlgmr.msra.gmra.mxu1 %v9810_v55  ;;  %663 = vmatprep.mubr.f32.mxu0 %v14218_v0 }
  0xe1   : > { %1614 = vmatprep.mubr.f32.mxu1 %v14218_v0  ;;  %8946 = vmatpush3.msra.mxu1 %v2730_v40  ;;  %v2726_v40 = vld [vmem:[#allocation7 + $0x458] sm:$0xff] }
  0xe2   : > { %8947 = vmatprep.subr.mxu1 %v2727_v41 }
  0xe3   : > { %664 = vmatmul.mubr.f32.gmra.mxu0 %v9918_v49  ;;  %8948 = vmatpush3.msra.mxu1 %v2727_v41 }
  0xe4   : > { %1615 = vmatmul.mubr.f32.gmra.mxu1 %v9813_v56  ;;  %669 = vmatprep.mubr.f32.mxu0 %v14218_v0 }
  0xe5   : > { %1620 = vmatprep.mubr.f32.mxu1 %v14218_v0  ;;  %8949 = vmatprep.subr.mxu1 %v2724_v42 }
  0xe6   : > { %8950 = vmatpush3.msra.mxu1 %v2724_v42  ;;  %v2725_v42 = vld [vmem:[#allocation7 + $0x450] sm:$0xff] }
  0xe7   : > { %670 = vmatmul.mubr.f32.gmra.mxu0 %v9921_v50  ;;  %8951 = vmatprep.subr.mxu1 %v2721_v43 }
  0xe8   : > { %1621 = vmatmul.mubr.f32.gmra.mxu1 %v9819_v60  ;;  %675 = vmatprep.mubr.f32.mxu0 %v14218_v0 }
  0xe9   : > { %1626 = vmatprep.mubr.f32.mxu1 %v14218_v0  ;;  %8952 = vmatpush3.msra.mxu1 %v2721_v43 }
  0xea   : > { %8953 = vmatprep.subr.mxu1 %v2718_v46 }
  0xeb   : > { %676 = vmatmul.mubr.f32.gmra.mxu0 %v9928_v57  ;;  %8954 = vmatpush3.msra.mxu1 %v2718_v46 }
  0xec   : > { %1627 = vmatmul.mubr.f32.gmra.mxu1 %v9822_v61  ;;  %681 = vmatprep.mubr.f32.mxu0 %v14218_v0 }
  0xed   : > { %1632 = vmatprep.mubr.f32.mxu1 %v14218_v0  ;;  %8955 = vmatprep.subr.mxu1 %v2715_v47 }
  0xee   : > { %8956 = vmatpush3.msra.mxu1 %v2715_v47 }
  0xef   : > { %682 = vmatmul.mubr.f32.gmra.mxu0 %v9931_v58  ;;  %8957 = vmatprep.subr.mxu1 %v2712_v48 }
  0xf0   : > { %1633 = vmatmul.mubr.f32.gmra.mxu1 %v9828_v2  ;;  %687 = vmatprep.mubr.f32.mxu0 %v14218_v0 }
  0xf1   : > { %1638 = vmatprep.mubr.f32.mxu1 %v14218_v0  ;;  %8958 = vmatpush3.msra.mxu1 %v2712_v48 }
  0xf2   : > { %8959 = vmatprep.subr.mxu1 %v2709_v51 }
  0xf3   : > { %688 = vmatmul.mubr.f32.gmra.mxu0 %v9938_v63  ;;  %8960 = vmatpush3.msra.mxu1 %v2709_v51 }
  0xf4   : > { %1639 = vmatmul.mubr.f32.gmra.mxu1 %v9831_v3  ;;  %693 = vmatprep.mubr.f32.mxu0 %v14218_v0 }
  0xf5   : > { %1644 = vmatprep.mubr.f32.mxu1 %v14218_v0  ;;  %8961 = vmatprep.subr.mxu1 %v2706_v52 }
  0xf6   : > { %8962 = vmatpush3.msra.mxu1 %v2706_v52 }
  0xf7   : > { %694 = vmatmul.mubr.f32.gmra.mxu0 %v9941_v1  ;;  %8963 = vmatprep.subr.mxu1 %v2703_v53 }
  0xf8   : > { %1645 = vmatmul.mubr.f32.gmra.mxu1 %v9838_v7  ;;  %699 = vmatprep.mubr.f32.mxu0 %v14218_v0 }
  0xf9   : > { %1650 = vmatprep.mubr.f32.mxu1 %v14218_v0  ;;  %8964 = vmatpush3.msra.mxu1 %v2703_v53 }
  0xfa   : > { %8965 = vmatprep.subr.mxu1 %v2700_v54 }
  0xfb   : > { %700 = vmatmul.mubr.f32.gmra.mxu0 %v9948_v5  ;;  %8966 = vmatpush3.msra.mxu1 %v2700_v54  ;;  %v2722_v54 = vld [vmem:[#allocation7 + $0x438] sm:$0xff] }
  0xfc   : > { %1651 = vmatmul.mubr.f32.gmra.mxu1 %v9841_v8  ;;  %705 = vmatprep.mubr.f32.mxu0 %v14218_v0 }
  0xfd   : > { %1656 = vmatprep.mubr.f32.mxu1 %v14218_v0  ;;  %8967 = vmatprep.subr.mxu1 %v2697_v59 }
  0xfe   : > { %8968 = vmatpush3.msra.mxu1 %v2697_v59 }
  0xff   : > { %706 = vmatmul.mubr.f32.gmra.mxu0 %v9951_v6  ;;  %8969 = vmatprep.subr.mxu1 %v2694_v62 }
 0x100   : > { %1657 = vmatmul.mubr.f32.gmra.mxu1 %v9848_v12  ;;  %711 = vmatprep.mubr.f32.mxu0 %v14218_v0 }
 0x101   : > { %1662 = vmatprep.mubr.f32.mxu1 %v14218_v0  ;;  %8970 = vmatpush3.msra.mxu1 %v2694_v62 }
 0x102   : > { %8971 = vmatprep.subr.mxu1 %v2691_v4 }
 0x103   : > { %712 = vmatmul.mubr.f32.gmra.mxu0 %v9958_v10  ;;  %8972 = vmatpush3.msra.mxu1 %v2691_v4  ;;  %v2720_v4 = vld [vmem:[#allocation7 + $0x428] sm:$0xff] }
 0x104   : > { %1663 = vmatmul.mubr.f32.gmra.mxu1 %v9851_v13  ;;  %717 = vmatprep.mubr.f32.mxu0 %v14218_v0 }
 0x105   : > { %1668 = vmatprep.mubr.f32.mxu1 %v14218_v0  ;;  %8973 = vmatprep.subr.mxu1 %v2688_v9 }
 0x106   : > { %8974 = vmatpush3.msra.mxu1 %v2688_v9 }
 0x107   : > { %718 = vmatmul.mubr.f32.gmra.mxu0 %v9961_v11  ;;  %8975 = vmatprep.subr.mxu1 %v2685_v14 }
 0x108   : > { %1669 = vmatmul.mubr.f32.gmra.mxu1 %v9858_v17  ;;  %723 = vmatprep.mubr.f32.mxu0 %v14218_v0 }
 0x109   : > { %1674 = vmatprep.mubr.f32.mxu1 %v14218_v0  ;;  %8976 = vmatpush3.msra.mxu1 %v2685_v14 }
 0x10b   : > { %724 = vmatmul.mubr.f32.gmra.mxu0 %v9968_v15 }
 0x10c   : > { %1675 = vmatmul.mubr.f32.gmra.mxu1 %v9861_v18  ;;  %729 = vmatprep.mubr.f32.mxu0 %v14218_v0 }
 0x10d   : > { %1680 = vmatprep.mubr.f32.mxu1 %v14218_v0 }
 0x10f   : > { %730 = vmatmul.mubr.f32.gmra.mxu0 %v9971_v16 }
 0x110   : > { %1681 = vmatmul.mubr.f32.gmra.mxu1 %v9868_v22  ;;  %735 = vmatprep.mubr.f32.mxu0 %v14218_v0 }
 0x111   : > { %1686 = vmatprep.mubr.f32.mxu1 %v14218_v0 }
 0x113   : > { %736 = vmatmul.mubr.f32.gmra.mxu0 %v9978_v20 }
 0x114   : > { %1687 = vmatmul.mubr.f32.gmra.mxu1 %v9871_v23  ;;  %741 = vmatprep.mubr.f32.mxu0 %v14218_v0 }
 0x115   : > { %1692 = vmatprep.mubr.f32.mxu1 %v14218_v0 }
 0x117   : > { %742 = vmatmul.mubr.f32.gmra.mxu0 %v9981_v21 }
 0x118   : > { %1693 = vmatmul.mubr.f32.gmra.mxu1 %v9878_v27  ;;  %747 = vmatprep.mubr.f32.mxu0 %v14218_v0 }
 0x119   : > { %1698 = vmatprep.mubr.f32.mxu1 %v14218_v0 }
 0x11b   : > { %748 = vmatmul.mubr.f32.gmra.mxu0 %v9988_v25 }
 0x11c   : > { %1699 = vmatmul.mubr.f32.gmra.mxu1 %v9881_v28  ;;  %753 = vmatprep.mubr.f32.mxu0 %v14218_v0 }
 0x11d   : > { %1704 = vmatprep.mubr.f32.mxu1 %v14218_v0 }
 0x11f   : > { %754 = vmatmul.mubr.f32.gmra.mxu0 %v9991_v26 }
 0x120   : > { %1705 = vmatmul.mubr.f32.gmra.mxu1 %v9888_v33  ;;  %759 = vmatprep.mubr.f32.mxu0 %v14218_v0 }
 0x121   : > { %1710 = vmatprep.mubr.f32.mxu1 %v14218_v0 }
 0x123   : > { %760 = vmatmul.mubr.f32.gmra.mxu0 %v9998_v29 }
 0x124   : > { %1711 = vmatmul.mubr.f32.gmra.mxu1 %v9891_v34  ;;  %765 = vmatprep.mubr.f32.mxu0 %v14218_v0 }
 0x125   : > { %1716 = vmatprep.mubr.f32.mxu1 %v14218_v0 }
 0x127   : > { %766 = vmatmul.mubr.f32.gmra.mxu0 %v10001_v30 }
 0x128   : > { %1717 = vmatmul.mubr.f32.gmra.mxu1 %v9898_v38  ;;  %771 = vmatprep.mubr.f32.mxu0 %v14218_v0 }
 0x129   : > { %1722 = vmatprep.mubr.f32.mxu1 %v14218_v0 }
 0x12b   : > { %772 = vmatmul.mubr.f32.gmra.mxu0 %v10008_v31 }
 0x12c   : > { %1723 = vmatmul.mubr.f32.gmra.mxu1 %v9901_v39  ;;  %777 = vmatprep.mubr.f32.mxu0 %v14218_v0 }
 0x12d   : > { %1728 = vmatprep.mubr.f32.mxu1 %v14218_v0 }
 0x12f   : > { %778 = vmatmul.mubr.f32.gmra.mxu0 %v10011_v32 }
 0x130   : > { %1729 = vmatmul.mubr.f32.gmra.mxu1 %v9908_v44  ;;  %783 = vmatprep.mubr.f32.mxu0 %v14218_v0 }
 0x131   : > { %1734 = vmatprep.mubr.f32.mxu1 %v14218_v0 }
 0x133   : > { %784 = vmatmul.mubr.f32.gmra.mxu0 %v10018_v35 }
 0x134   : > { %1735 = vmatmul.mubr.f32.gmra.mxu1 %v9911_v45  ;;  %789 = vmatprep.mubr.f32.mxu0 %v14218_v0 }
 0x135   : > { %1740 = vmatprep.mubr.f32.mxu1 %v14218_v0 }
 0x137   : > { %790 = vmatmul.mubr.f32.gmra.mxu0 %v10021_v36  ;;  %v10133_v36 = vshrl.u32 %v1155_v19, 7 }
 0x138   : > { %1741 = vmatmul.mubr.f32.gmra.mxu1 %v9918_v49  ;;  %795 = vmatprep.mubr.f32.mxu0 %v14218_v0 }
 0x139   : > { %1746 = vmatprep.mubr.f32.mxu1 %v14218_v0  ;;  %vm1157_vm0 = vcmp.lt.s32.totalorder %v10133_v36, 1  ;;  %vm1302_vm1 = vcmp.lt.s32.totalorder %v10133_v36, 7 }
 0x13b   : > { %796 = vmatmul.mubr.f32.gmra.mxu0 %v10028_v37 }
 0x13c   : > { %1747 = vmatmul.mubr.f32.gmra.mxu1 %v9921_v50  ;;  %8873 = vmatprep.mubr.f32.mxu0 %v9810_v55 }
 0x13d   : > { %1752 = vmatprep.mubr.f32.mxu1 %v14218_v0 }
 0x13f   : > { %v10130_v35 = vpop.f32.mrf.mxu0  ;;  %8874 = vmatmul.mubr.f32.vlgmr.msra.gmra.mxu0 %v9813_v56  ;;  %v10135_v41 = vpop.f32.mrf.mxu1  ;;  %v2723_v56 = vld [vmem:[#allocation7 + $0x440] sm:$0xff] }
 0x140   : > { %1753 = vmatmul.mubr.f32.gmra.mxu1 %v9928_v57  ;;  %2732 = vmatpush1.msra.mxu0 %v2728_v24  ;;  %v14217_v46 = vrot.slane %v10130_v35, 7 }
 0x141   : > { %v10138_v37 = vpop.f32.mrf.mxu0  ;;  %1758 = vmatprep.mubr.f32.mxu1 %v14218_v0  ;;  %8876 = vmatprep.mubr.f32.mxu0 %v9819_v60  ;;  %v10142_v55 = vpop.f32.mrf.mxu1  ;;  %v14216_v60 = vrot.slane %v10135_v41, 1 }
 0x142   : > { %2733 = vmatprep.subr.mxu0 %v2726_v40 }
 0x143   : > { %v521_v43 = vpop.f32.mrf.mxu0  ;;  %8877 = vmatmul.mubr.f32.gmra.mxu0 %v9822_v61  ;;  %v8774_v48 = vpop.f32.mrf.mxu1 }
 0x144   : > { %v1108_v47 = vrot.slane %v521_v43, 7  ;;  %1759 = vmatmul.mubr.f32.gmra.mxu1 %v9931_v58  ;;  %8879 = vmatprep.mubr.f32.mxu0 %v9828_v2  ;;  %v1257_v51 = vrot.slane %v8774_v48, 1 }
 0x145   : > { %v523_v52 = vpop.f32.mrf.mxu0  ;;  %1764 = vmatprep.mubr.f32.mxu1 %v14218_v0  ;;  %2734 = vmatpush1.msra.mxu0 %v2725_v42  ;;  %v878_v53 = vpop.f32.mrf.mxu1 }
 0x146   : > { %v1204_v61 = vsel %vm1157_vm0, %v14217_v46, %v1108_v47  ;;  %2735 = vmatprep.subr.mxu0 %v2723_v56  ;;  %v1256_v62 = vrot.slane %v878_v53, 1  ;;  %v2717_v53 = vld [vmem:[#allocation7 + $0x410] sm:$0xff] }
 0x147   : > { %v1207_v59 = vadd.f32 %v1204_v61, %v523_v52  ;;  %v527_v2 = vpop.f32.mrf.mxu0  ;;  %8880 = vmatmul.mubr.f32.gmra.mxu0 %v9831_v3  ;;  %v8777_v14 = vpop.f32.mrf.mxu1 }
 0x148   : > { %v1109_v9 = vrot.slane %v527_v2, 7  ;;  %1765 = vmatmul.mubr.f32.gmra.mxu1 %v9938_v63  ;;  %8882 = vmatprep.mubr.f32.mxu0 %v9838_v7  ;;  %v1348_v19 = vsel %vm1302_vm1, %v14216_v60, %v1256_v62  ;;  %v1259_v24 = vrot.slane %v8777_v14, 1  ;;  %v1347_v42 = vsel %vm1302_vm1, %v1256_v62, %v1257_v51  ;;  %v2719_v7 = vld [vmem:[#allocation7 + $0x420] sm:$0xff] }
 0x149   : > { %v529_v40 = vpop.f32.mrf.mxu0  ;;  %1770 = vmatprep.mubr.f32.mxu1 %v14218_v0  ;;  %2736 = vmatpush1.msra.mxu0 %v2722_v54  ;;  %v10166_v3 = vadd.f32 %v1348_v19, %v1207_v59  ;;  %v888_v56 = vpop.f32.mrf.mxu1 }
 0x14a   : > { %v1203_v43 = vsel %vm1157_vm0, %v1108_v47, %v1109_v9  ;;  %2737 = vmatprep.subr.mxu0 %v2720_v4  ;;  %v1258_v52 = vrot.slane %v888_v56, 1  ;;  %v2714_v56 = vld [vmem:[#allocation7 + $0x3f8] sm:$0xff] }
 0x14b   : > { %v1208_v48 = vadd.f32 %v1203_v43, %v529_v40  ;;  %v533_v61 = vpop.f32.mrf.mxu0  ;;  %8883 = vmatmul.mubr.f32.gmra.mxu0 %v9841_v8  ;;  %v8780_v14 = vpop.f32.mrf.mxu1  ;;  %v2716_v40 = vld [vmem:[#allocation7 + $0x408] sm:$0xff] }
 0x14c   : > { %v1110_v2 = vrot.slane %v533_v61, 7  ;;  %1771 = vmatmul.mubr.f32.gmra.mxu1 %v9941_v1  ;;  %8885 = vmatprep.mubr.f32.mxu0 %v9848_v12  ;;  %v1261_v59 = vrot.slane %v8780_v14, 1  ;;  %v1346_v47 = vsel %vm1302_vm1, %v1257_v51, %v1258_v52  ;;  %v1345_v4 = vsel %vm1302_vm1, %v1258_v52, %v1259_v24 }
 0x14d   : > { %v10173_v54 = vadd.f32 %v1347_v42, %v1208_v48  ;;  %v535_v62 = vpop.f32.mrf.mxu0  ;;  %1776 = vmatprep.mubr.f32.mxu1 %v14218_v0  ;;  %2738 = vmatpush1.msra.mxu0 %v2719_v7  ;;  %v898_v19 = vpop.f32.mrf.mxu1 }
 0x14e   : > { %v1202_v8 = vsel %vm1157_vm0, %v1109_v9, %v1110_v2  ;;  %2739 = vmatprep.subr.mxu0 %v2717_v53  ;;  %v1260_v42 = vrot.slane %v898_v19, 1  ;;  %v2711_v19 = vld [vmem:[#allocation7 + $0x3e0] sm:$0xff] }
 0x14f   : > { %v1209_v12 = vadd.f32 %v1202_v8, %v535_v62  ;;  %v539_v43 = vpop.f32.mrf.mxu0  ;;  %8886 = vmatmul.mubr.f32.gmra.mxu0 %v9851_v13  ;;  %v8783_v51 = vpop.f32.mrf.mxu1  ;;  %v2713_v62 = vld [vmem:[#allocation7 + $0x3f0] sm:$0xff] }
 0x150   : > { %v1111_v48 = vrot.slane %v539_v43, 7  ;;  %1777 = vmatmul.mubr.f32.gmra.mxu1 %v9948_v5  ;;  %8888 = vmatprep.mubr.f32.mxu0 %v9858_v17  ;;  %v1263_v7 = vrot.slane %v8783_v51, 1  ;;  %v1344_v9 = vsel %vm1302_vm1, %v1259_v24, %v1260_v42  ;;  %v1343_v13 = vsel %vm1302_vm1, %v1260_v42, %v1261_v59 }
 0x151   : > { %v10185_v52 = vadd.f32 %v1346_v47, %v1209_v12  ;;  %v541_v61 = vpop.f32.mrf.mxu0  ;;  %1782 = vmatprep.mubr.f32.mxu1 %v14218_v0  ;;  %2740 = vmatpush1.msra.mxu0 %v2716_v40  ;;  %v908_v14 = vpop.f32.mrf.mxu1 }
 0x152   : > { %v1201_v53 = vsel %vm1157_vm0, %v1110_v2, %v1111_v48  ;;  %2741 = vmatprep.subr.mxu0 %v2714_v56  ;;  %v1262_v47 = vrot.slane %v908_v14, 1  ;;  %v2708_v14 = vld [vmem:[#allocation7 + $0x3c8] sm:$0xff] }
 0x153   : > { %v1210_v17 = vadd.f32 %v1201_v53, %v541_v61  ;;  %v545_v8 = vpop.f32.mrf.mxu0  ;;  %8889 = vmatmul.mubr.f32.gmra.mxu0 %v9861_v18  ;;  %v8786_v43 = vpop.f32.mrf.mxu1 }
 0x154   : > { %v1112_v12 = vrot.slane %v545_v8, 7  ;;  %1783 = vmatmul.mubr.f32.gmra.mxu1 %v9951_v6  ;;  %8891 = vmatprep.mubr.f32.mxu0 %v9868_v22  ;;  %v1265_v40 = vrot.slane %v8786_v43, 1  ;;  %v1342_v2 = vsel %vm1302_vm1, %v1261_v59, %v1262_v47  ;;  %v10204_v18 = vsel %vm1302_vm1, %v1262_v47, %v1263_v7  ;;  %v2710_v22 = vld [vmem:[#allocation7 + $0x3d8] sm:$0xff] }
 0x155   : > { %v10197_v24 = vadd.f32 %v1345_v4, %v1210_v17  ;;  %v547_v42 = vpop.f32.mrf.mxu0  ;;  %1788 = vmatprep.mubr.f32.mxu1 %v14218_v0  ;;  %2742 = vmatpush1.msra.mxu0 %v2713_v62  ;;  %v918_v51 = vpop.f32.mrf.mxu1 }
 0x156   : > { %v1200_v56 = vsel %vm1157_vm0, %v1111_v48, %v1112_v12  ;;  %2743 = vmatprep.subr.mxu0 %v2711_v19  ;;  %v1264_v61 = vrot.slane %v918_v51, 1  ;;  %v2705_v51 = vld [vmem:[#allocation7 + $0x3b0] sm:$0xff] }
 0x157   : > { %v1211_v4 = vadd.f32 %v1200_v56, %v547_v42  ;;  %v551_v53 = vpop.f32.mrf.mxu0  ;;  %8892 = vmatmul.mubr.f32.gmra.mxu0 %v9871_v23  ;;  %v8789_v8 = vpop.f32.mrf.mxu1 }
 0x158   : > { %v1113_v17 = vrot.slane %v551_v53, 7  ;;  %1789 = vmatmul.mubr.f32.gmra.mxu1 %v9958_v10  ;;  %8894 = vmatprep.mubr.f32.mxu0 %v9878_v27  ;;  %v1267_v62 = vrot.slane %v8789_v8, 1  ;;  %v10216_v48 = vsel %vm1302_vm1, %v1263_v7, %v1264_v61  ;;  %v10220_v23 = vsel %vm1302_vm1, %v1264_v61, %v1265_v40  ;;  %v2707_v27 = vld [vmem:[#allocation7 + $0x3c0] sm:$0xff] }
 0x159   : > { %v10211_v59 = vadd.f32 %v1344_v9, %v1211_v4  ;;  %v553_v47 = vpop.f32.mrf.mxu0  ;;  %1794 = vmatprep.mubr.f32.mxu1 %v14218_v0  ;;  %2744 = vmatpush1.msra.mxu0 %v2710_v22  ;;  %v928_v43 = vpop.f32.mrf.mxu1 }
 0x15a   : > { %v1199_v19 = vsel %vm1157_vm0, %v1112_v12, %v1113_v17  ;;  %2745 = vmatprep.subr.mxu0 %v2708_v14  ;;  %v1266_v42 = vrot.slane %v928_v43, 1  ;;  %v2702_v43 = vld [vmem:[#allocation7 + $0x398] sm:$0xff] }
 0x15b   : > { %v1212_v9 = vadd.f32 %v1199_v19, %v553_v47  ;;  %v557_v56 = vpop.f32.mrf.mxu0  ;;  %8895 = vmatmul.mubr.f32.gmra.mxu0 %v9881_v28  ;;  %v8792_v4 = vpop.f32.mrf.mxu1 }
 0x15c   : > { %v1114_v22 = vrot.slane %v557_v56, 7  ;;  %1795 = vmatmul.mubr.f32.gmra.mxu1 %v9961_v11  ;;  %8897 = vmatprep.mubr.f32.mxu0 %v9888_v33  ;;  %v1269_v61 = vrot.slane %v8792_v4, 1  ;;  %v10232_v12 = vsel %vm1302_vm1, %v1265_v40, %v1266_v42  ;;  %v10236_v28 = vsel %vm1302_vm1, %v1266_v42, %v1267_v62  ;;  %v2704_v33 = vld [vmem:[#allocation7 + $0x3a8] sm:$0xff] }
 0x15d   : > { %v10227_v7 = vadd.f32 %v1343_v13, %v1212_v9  ;;  %v559_v53 = vpop.f32.mrf.mxu0  ;;  %1800 = vmatprep.mubr.f32.mxu1 %v14218_v0  ;;  %2746 = vmatpush1.msra.mxu0 %v2707_v27  ;;  %v938_v8 = vpop.f32.mrf.mxu1 }
 0x15e   : > { %v1198_v14 = vsel %vm1157_vm0, %v1113_v17, %v1114_v22  ;;  %2747 = vmatprep.subr.mxu0 %v2705_v51  ;;  %v1268_v47 = vrot.slane %v938_v8, 1  ;;  %v2699_v8 = vld [vmem:[#allocation7 + $0x380] sm:$0xff] }
 0x15f   : > { %v1213_v13 = vadd.f32 %v1198_v14, %v559_v53  ;;  %v563_v19 = vpop.f32.mrf.mxu0  ;;  %8898 = vmatmul.mubr.f32.gmra.mxu0 %v9891_v34 }
 0x160   : > { %v1115_v27 = vrot.slane %v563_v19, 7  ;;  %v8795_v9 = vpop.f32.mrf.mxu1  ;;  %1801 = vmatmul.mubr.f32.gmra.mxu1 %v9968_v15  ;;  %8900 = vmatprep.mubr.f32.mxu0 %v9898_v38  ;;  %v10248_v17 = vsel %vm1302_vm1, %v1267_v62, %v1268_v47  ;;  %v10252_v34 = vsel %vm1302_vm1, %v1268_v47, %v1269_v61  ;;  %v2701_v38 = vld [vmem:[#allocation7 + $0x390] sm:$0xff] }
 0x161   : > { %v10243_v40 = vadd.f32 %v1342_v2, %v1213_v13  ;;  %v1271_v42 = vrot.slane %v8795_v9, 1  ;;  %v565_v56 = vpop.f32.mrf.mxu0  ;;  %1806 = vmatprep.mubr.f32.mxu1 %v14218_v0  ;;  %2748 = vmatpush1.msra.mxu0 %v2704_v33 }
 0x162   : > { %v1197_v51 = vsel %vm1157_vm0, %v1114_v22, %v1115_v27  ;;  %v948_v4 = vpop.f32.mrf.mxu1  ;;  %2749 = vmatprep.subr.mxu0 %v2702_v43 }
 0x163   : > { %v1214_v2 = vadd.f32 %v1197_v51, %v565_v56  ;;  %v1270_v53 = vrot.slane %v948_v4, 1  ;;  %v569_v14 = vpop.f32.mrf.mxu0  ;;  %8901 = vmatmul.mubr.f32.gmra.mxu0 %v9901_v39  ;;  %v2696_v51 = vld [vmem:[#allocation7 + $0x368] sm:$0xff] }
 0x164   : > { %v1116_v33 = vrot.slane %v569_v14, 7  ;;  %v8798_v13 = vpop.f32.mrf.mxu1  ;;  %1807 = vmatmul.mubr.f32.gmra.mxu1 %v9971_v16  ;;  %8903 = vmatprep.mubr.f32.mxu0 %v9908_v44 }
 0x165   : > { %v10260_v62 = vadd.f32 %v10204_v18, %v1214_v2  ;;  %v1273_v47 = vrot.slane %v8798_v13, 1  ;;  %v571_v22 = vpop.f32.mrf.mxu0  ;;  %1812 = vmatprep.mubr.f32.mxu1 %v14218_v0  ;;  %2750 = vmatpush1.msra.mxu0 %v2701_v38  ;;  %v10265_v19 = vsel %vm1302_vm1, %v1269_v61, %v1270_v53  ;;  %v10269_v39 = vsel %vm1302_vm1, %v1270_v53, %v1271_v42  ;;  %v2698_v18 = vld [vmem:[#allocation7 + $0x378] sm:$0xff] }
 0x166   : > { %v1196_v16 = vsel %vm1157_vm0, %v1115_v27, %v1116_v33  ;;  %v958_v44 = vpop.f32.mrf.mxu1  ;;  %2751 = vmatprep.subr.mxu0 %v2699_v8 }
 0x167   : > { %v1215_v43 = vadd.f32 %v1196_v16, %v571_v22  ;;  %v1272_v9 = vrot.slane %v958_v44, 1  ;;  %v575_v56 = vpop.f32.mrf.mxu0  ;;  %8904 = vmatmul.mubr.f32.gmra.mxu0 %v9911_v45  ;;  %v2693_v22 = vld [vmem:[#allocation7 + $0x350] sm:$0xff] }
 0x168   : > { %v1117_v4 = vrot.slane %v575_v56, 7  ;;  %v8801_v38 = vpop.f32.mrf.mxu1  ;;  %1813 = vmatmul.mubr.f32.gmra.mxu1 %v9978_v20  ;;  %8906 = vmatprep.mubr.f32.mxu0 %v9918_v49 }
 0x169   : > { %v10277_v61 = vadd.f32 %v10216_v48, %v1215_v43  ;;  %v1275_v2 = vrot.slane %v8801_v38, 1  ;;  %v577_v27 = vpop.f32.mrf.mxu0  ;;  %1818 = vmatprep.mubr.f32.mxu1 %v14218_v0  ;;  %2752 = vmatpush1.msra.mxu0 %v2698_v18  ;;  %v10282_v53 = vsel %vm1302_vm1, %v1271_v42, %v1272_v9  ;;  %v10286_v45 = vsel %vm1302_vm1, %v1272_v9, %v1273_v47  ;;  %v2695_v48 = vld [vmem:[#allocation7 + $0x360] sm:$0xff]  ;;  %v2690_v38 = vld [vmem:[#allocation7 + $0x338] sm:$0xff] }
 0x16a   : > { %v1195_v20 = vsel %vm1157_vm0, %v1116_v33, %v1117_v4  ;;  %v968_v49 = vpop.f32.mrf.mxu1  ;;  %2753 = vmatprep.subr.mxu0 %v2696_v51 }
 0x16b   : > { %14313 = vst [vmem:[#allocation14_spill] sm:$0xff] %v10277_v61  ;;  %v1216_v14 = vadd.f32 %v1195_v20, %v577_v27  ;;  %v1274_v8 = vrot.slane %v968_v49, 1  ;;  %v581_v13 = vpop.f32.mrf.mxu0  ;;  %8907 = vmatmul.mubr.f32.gmra.mxu0 %v9921_v50 }
 0x16c   : > { %v1118_v16 = vrot.slane %v581_v13, 7  ;;  %v8804_v44 = vpop.f32.mrf.mxu1  ;;  %1819 = vmatmul.mubr.f32.gmra.mxu1 %v9981_v21  ;;  %8909 = vmatprep.mubr.f32.mxu0 %v9928_v57 }
 0x16d   : > { %v10294_v42 = vadd.f32 %v10220_v23, %v1216_v14  ;;  %v1277_v18 = vrot.slane %v8804_v44, 1  ;;  %v583_v33 = vpop.f32.mrf.mxu0  ;;  %1824 = vmatprep.mubr.f32.mxu1 %v14218_v0  ;;  %2754 = vmatpush1.msra.mxu0 %v2695_v48  ;;  %v10299_v43 = vsel %vm1302_vm1, %v1273_v47, %v1274_v8  ;;  %v10303_v50 = vsel %vm1302_vm1, %v1274_v8, %v1275_v2  ;;  %v2692_v23 = vld [vmem:[#allocation7 + $0x348] sm:$0xff] }
 0x16e   : > { %v1194_v21 = vsel %vm1157_vm0, %v1117_v4, %v1118_v16  ;;  %v978_v57 = vpop.f32.mrf.mxu1  ;;  %2755 = vmatprep.subr.mxu0 %v2693_v22  ;;  %v2687_v22 = vld [vmem:[#allocation7 + $0x320] sm:$0xff]  ;;  %v9614_v44 = vmov 0  }
 0x16f   : > { %14314 = vst [vmem:[#allocation15_spill] sm:$0xff] %v10294_v42  ;;  %v1217_v9 = vadd.f32 %v1194_v21, %v583_v33  ;;  %v1276_v56 = vrot.slane %v978_v57, 1  ;;  %v587_v51 = vpop.f32.mrf.mxu0  ;;  %8910 = vmatmul.mubr.f32.gmra.mxu0 %v9931_v58  ;;  %9441 = vset.pattern.permute.xlu0 %v9614_v44 }
 0x170   : > { %v1119_v27 = vrot.slane %v587_v51, 7  ;;  %v8807_v20 = vpop.f32.mrf.mxu1  ;;  %1825 = vmatmul.mubr.f32.gmra.mxu1 %v9988_v25  ;;  %8912 = vmatprep.mubr.f32.mxu0 %v9938_v63 }
 0x171   : > { %v10311_v47 = vadd.f32 %v10232_v12, %v1217_v9  ;;  %v1279_v49 = vrot.slane %v8807_v20, 1  ;;  %v589_v4 = vpop.f32.mrf.mxu0  ;;  %1830 = vmatprep.mubr.f32.mxu1 %v14218_v0  ;;  %2756 = vmatpush1.msra.mxu0 %v2692_v23  ;;  %v10316_v48 = vsel %vm1302_vm1, %v1275_v2, %v1276_v56  ;;  %v10320_v58 = vsel %vm1302_vm1, %v1276_v56, %v1277_v18  ;;  %v2689_v12 = vld [vmem:[#allocation7 + $0x330] sm:$0xff]  ;;  %v4027_v2 = vld [vmem:[%s14210_s7] sm:$0xff]  ;;  %v2684_v20 = vld [vmem:[#allocation7 + $0x308] sm:$0xff] }
 0x172   : > { %v1193_v25 = vsel %vm1157_vm0, %v1118_v16, %v1119_v27  ;;  %v988_v63 = vpop.f32.mrf.mxu1  ;;  %2757 = vmatprep.subr.mxu0 %v2690_v38  ;;  %4077 = vperm.xlu0 %9441, %v4027_v2  }
 0x173   : > { %14315 = vst [vmem:[#allocation16_spill] sm:$0xff] %v10311_v47  ;;  %v1218_v14 = vadd.f32 %v1193_v25, %v589_v4  ;;  %v1278_v8 = vrot.slane %v988_v63, 1  ;;  %v593_v13 = vpop.f32.mrf.mxu0  ;;  %8913 = vmatmul.mubr.f32.gmra.mxu0 %v9941_v1  ;;  %9442 = vset.pattern.permute.xlu1 %v9614_v44 }
 0x174   : > { %v1120_v33 = vrot.slane %v593_v13, 7  ;;  %v8810_v21 = vpop.f32.mrf.mxu1  ;;  %1831 = vmatmul.mubr.f32.gmra.mxu1 %v9991_v26  ;;  %8915 = vmatprep.mubr.f32.mxu0 %v9948_v5 }
 0x175   : > { %v10331_v16 = vadd.f32 %v10236_v28, %v1218_v14  ;;  %v1281_v57 = vrot.slane %v8810_v21, 1  ;;  %v595_v23 = vpop.f32.mrf.mxu0  ;;  %1836 = vmatprep.mubr.f32.mxu1 %v14218_v0  ;;  %2758 = vmatpush1.msra.mxu0 %v2689_v12  ;;  %v10336_v1 = vsel %vm1302_vm1, %v1277_v18, %v1278_v8  ;;  %v10340_v9 = vsel %vm1302_vm1, %v1278_v8, %v1279_v49  ;;  %v2686_v28 = vld [vmem:[#allocation7 + $0x318] sm:$0xff]  ;;  %v4028_v18 = vld [vmem:[%s14210_s7 + $0x8] sm:$0xff] }
 0x176   : > { %v1192_v26 = vsel %vm1157_vm0, %v1119_v27, %v1120_v33  ;;  %v998_v5 = vpop.f32.mrf.mxu1  ;;  %2759 = vmatprep.subr.mxu0 %v2687_v22  ;;  %4082 = vperm.xlu0 %9441, %v4028_v18  }
 0x177   : > { %14316 = vst [vmem:[#allocation17_spill] sm:$0xff] %v10331_v16  ;;  %v1219_v56 = vadd.f32 %v1192_v26, %v595_v23  ;;  %v1280_v51 = vrot.slane %v998_v5, 1  ;;  %v599_v38 = vpop.f32.mrf.mxu0  ;;  %8916 = vmatmul.mubr.f32.gmra.mxu0 %v9951_v6 }
 0x178   : > { %v1121_v4 = vrot.slane %v599_v38, 7  ;;  %v8813_v25 = vpop.f32.mrf.mxu1  ;;  %1837 = vmatmul.mubr.f32.gmra.mxu1 %v9998_v29  ;;  %8918 = vmatprep.mubr.f32.mxu0 %v9958_v10 }
 0x179   : > { %v10351_v27 = vadd.f32 %v10248_v17, %v1219_v56  ;;  %v1283_v63 = vrot.slane %v8813_v25, 1  ;;  %v601_v12 = vpop.f32.mrf.mxu0  ;;  %1842 = vmatprep.mubr.f32.mxu1 %v14218_v0  ;;  %2760 = vmatpush1.msra.mxu0 %v2686_v28  ;;  %v10356_v6 = vsel %vm1302_vm1, %v1279_v49, %v1280_v51  ;;  %v10360_v14 = vsel %vm1302_vm1, %v1280_v51, %v1281_v57  ;;  %v2683_v17 = vld [vmem:[#allocation7 + $0x300] sm:$0xff]  ;;  %v4029_v49 = vld [vmem:[%s14210_s7 + $0x10] sm:$0xff]  ;;  %v4030_v51 = vld [vmem:[%s14210_s7 + $0x18] sm:$0xff] }
 0x17a   : > { %v1191_v29 = vsel %vm1157_vm0, %v1120_v33, %v1121_v4  ;;  %v1008_v10 = vpop.f32.mrf.mxu1  ;;  %2761 = vmatprep.subr.mxu0 %v2684_v20  ;;  %4087 = vperm.xlu1 %9442, %v4029_v49   ;;  %v9443_v56 = vld [vmem:[%s9794_s19 + $0x120] sm:$0xff]  ;;  %v9444_v20 = vld [vmem:[%s9794_s19 + $0x128] sm:$0xff] }
 0x17b   : > { %14317 = vst [vmem:[#allocation18_spill] sm:$0xff] %v10351_v27  ;;  %v1220_v8 = vadd.f32 %v1191_v29, %v601_v12  ;;  %v1282_v13 = vrot.slane %v1008_v10, 1  ;;  %v605_v22 = vpop.f32.mrf.mxu0  ;;  %8919 = vmatmul.mubr.f32.gmra.mxu0 %v9961_v11 }
 0x17c   : > { %v1122_v44 = vrot.slane %v605_v22, 7  ;;  %v8816_v2 = vpop.f32.mrf.mxu1  ;;  %1843 = vmatmul.mubr.f32.gmra.mxu1 %v10001_v30  ;;  %8921 = vmatprep.mubr.f32.mxu0 %v9968_v15 }
 0x17d   : > { %v10371_v33 = vadd.f32 %v10252_v34, %v1220_v8  ;;  %v1285_v21 = vrot.slane %v8816_v2, 1  ;;  %v607_v23 = vpop.f32.mrf.mxu0  ;;  %1848 = vmatprep.mubr.f32.mxu1 %v14218_v0  ;;  %2762 = vmatpush1.msra.mxu0 %v2683_v17  ;;  %v10376_v11 = vsel %vm1302_vm1, %v1281_v57, %v1282_v13  ;;  %v10380_v26 = vsel %vm1302_vm1, %v1282_v13, %v1283_v63  ;;  %v9445_v13 = vld [vmem:[%s9794_s19 + $0x130] sm:$0xff]  ;;  %v9446_v2 = vld [vmem:[%s9794_s19 + $0x138] sm:$0xff] }
 0x17e   : > { %v1190_v15 = vsel %vm1157_vm0, %v1121_v4, %v1122_v44  ;;  %v1018_v30 = vpop.f32.mrf.mxu1  ;;  %4092 = vperm.xlu1 %9442, %v4030_v51  }
 0x17f   : > { %14318 = vst [vmem:[#allocation19_spill] sm:$0xff] %v10371_v33  ;;  %v1221_v34 = vadd.f32 %v1190_v15, %v607_v23  ;;  %v1284_v5 = vrot.slane %v1018_v30, 1  ;;  %v611_v28 = vpop.f32.mrf.mxu0  ;;  %8922 = vmatmul.mubr.f32.gmra.mxu0 %v9443_v56  ;;  %v1489_v30 = vld [vmem:[%s9794_s19 + $0x168] sm:$0xff] }
 0x180   : > { %v1123_v57 = vrot.slane %v611_v28, 7  ;;  %v8819_v38 = vpop.f32.mrf.mxu1  ;;  %1849 = vmatmul.mubr.f32.gmra.mxu1 %v10008_v31  ;;  %8924 = vmatprep.mubr.f32.mxu0 %v9444_v20 }
 0x181   : > { %v10391_v18 = vadd.f32 %v10265_v19, %v1221_v34  ;;  %v1287_v4 = vrot.slane %v8819_v38, 1  ;;  %v613_v25 = vpop.f32.mrf.mxu0  ;;  %1854 = vmatprep.mubr.f32.mxu1 %v14218_v0  ;;  %v10396_v12 = vsel %vm1302_vm1, %v1283_v63, %v1284_v5  ;;  %v10400_v29 = vsel %vm1302_vm1, %v1284_v5, %v1285_v21  ;;  %v4031_v63 = vld [vmem:[%s14210_s7 + $0x20] sm:$0xff] }
 0x182   : > { %v1189_v31 = vsel %vm1157_vm0, %v1122_v44, %v1123_v57  ;;  %v1028_v10 = vpop.f32.mrf.mxu1  ;;  %4097 = vperm.xlu0 %9441, %v4031_v63   ;;  %v9447_v38 = vld [vmem:[%s9794_s19 + $0x140] sm:$0xff] }
 0x183   : > { %14319 = vst [vmem:[#allocation20_spill] sm:$0xff] %v10391_v18  ;;  %v1222_v19 = vadd.f32 %v1189_v31, %v613_v25  ;;  %v1286_v17 = vrot.slane %v1028_v10, 1  ;;  %v617_v8 = vpop.f32.mrf.mxu0  ;;  %8925 = vmatmul.mubr.f32.gmra.mxu0 %v9445_v13  ;;  %v9448_v31 = vld [vmem:[%s9794_s19 + $0x148] sm:$0xff] }
 0x184   : > { %v1124_v22 = vrot.slane %v617_v8, 7  ;;  %v8822_v49 = vpop.f32.mrf.mxu1  ;;  %1855 = vmatmul.mubr.f32.gmra.mxu1 %v10011_v32  ;;  %8927 = vmatprep.mubr.f32.mxu0 %v9446_v2 }
 0x185   : > { %v10411_v44 = vadd.f32 %v10269_v39, %v1222_v19  ;;  %v1289_v23 = vrot.slane %v8822_v49, 1  ;;  %v619_v15 = vpop.f32.mrf.mxu0  ;;  %1860 = vmatprep.mubr.f32.mxu1 %v14218_v0  ;;  %v10417_v34 = vsel %vm1302_vm1, %v1285_v21, %v1286_v17  ;;  %v10421_v5 = vsel %vm1302_vm1, %v1286_v17, %v1287_v4  ;;  %v4032_v21 = vld [vmem:[%s14210_s7 + $0x28] sm:$0xff]  ;;  %v1490_v17 = vld [vmem:[%s9794_s19 + $0x170] sm:$0xff] }
 0x186   : > { %v1188_v32 = vsel %vm1157_vm0, %v1123_v57, %v1124_v22  ;;  %v1038_v39 = vpop.f32.mrf.mxu1  ;;  %4102 = vperm.xlu1 %9442, %v4032_v21   ;;  %v1491_v21 = vld [vmem:[%s9794_s19 + $0x178] sm:$0xff] }
 0x187   : > { %14320 = vst [vmem:[#allocation21_spill] sm:$0xff] %v10411_v44  ;;  %v1223_v28 = vadd.f32 %v1188_v32, %v619_v15  ;;  %v1288_v56 = vrot.slane %v1038_v39, 1  ;;  %v623_v51 = vpop.f32.mrf.mxu0  ;;  %8928 = vmatmul.mubr.f32.gmra.mxu0 %v9447_v38  ;;  %v9449_v32 = vld [vmem:[%s9794_s19 + $0x150] sm:$0xff] }
 0x188   : > { %v1125_v20 = vrot.slane %v623_v51, 7  ;;  %v8825_v25 = vpop.f32.mrf.mxu1  ;;  %1861 = vmatmul.mubr.f32.gmra.mxu1 %v1489_v30  ;;  %8930 = vmatprep.mubr.f32.mxu0 %v9448_v31 }
 0x189   : > { %v10431_v10 = vadd.f32 %v10282_v53, %v1223_v28  ;;  %v1291_v57 = vrot.slane %v8825_v25, 1  ;;  %v625_v19 = vpop.f32.mrf.mxu0  ;;  %1866 = vmatprep.mubr.f32.mxu1 %v14218_v0  ;;  %v10437_v8 = vsel %vm1302_vm1, %v1287_v4, %v1288_v56  ;;  %v10441_v13 = vsel %vm1302_vm1, %v1288_v56, %v1289_v23  ;;  %v4033_v4 = vld [vmem:[%s14210_s7 + $0x30] sm:$0xff]  ;;  %v9450_v56 = vld [vmem:[%s9794_s19 + $0x158] sm:$0xff] }
 0x18a   : > { %v1187_v63 = vsel %vm1157_vm0, %v1124_v22, %v1125_v20  ;;  %v1048_v53 = vpop.f32.mrf.mxu1  ;;  %4107 = vperm.xlu0 %9441, %v4033_v4  }
 0x18b   : > { %14321 = vst [vmem:[#allocation22_spill] sm:$0xff] %v10431_v10  ;;  %v1224_v49 = vadd.f32 %v1187_v63, %v625_v19  ;;  %v1290_v2 = vrot.slane %v1048_v53, 1  ;;  %v629_v15 = vpop.f32.mrf.mxu0  ;;  %8931 = vmatmul.mubr.f32.gmra.mxu0 %v9449_v32  ;;  %v4039_v10 = vld [vmem:[%s14210_s7 + $0x60] sm:$0xff] }
 0x18c   : > { %v1126_v39 = vrot.slane %v629_v15, 7  ;;  %v8828_v28 = vpop.f32.mrf.mxu1  ;;  %1867 = vmatmul.mubr.f32.gmra.mxu1 %v1490_v17  ;;  %8933 = vmatprep.mubr.f32.mxu0 %v9450_v56  ;;  %v9451_v15 = vld [vmem:[%s9794_s19 + $0x160] sm:$0xff] }
 0x18d   : > { %v10451_v51 = vadd.f32 %v10286_v45, %v1224_v49  ;;  %v1293_v22 = vrot.slane %v8828_v28, 1  ;;  %v631_v38 = vpop.f32.mrf.mxu0  ;;  %1872 = vmatprep.mubr.f32.mxu1 %v14218_v0  ;;  %v10457_v25 = vsel %vm1302_vm1, %v1289_v23, %v1290_v2  ;;  %v10461_v31 = vsel %vm1302_vm1, %v1290_v2, %v1291_v57  ;;  %v4034_v23 = vld [vmem:[%s14210_s7 + $0x38] sm:$0xff]  ;;  %v1492_v56 = vld [vmem:[%s9794_s19 + $0x180] sm:$0xff] }
 0x18e   : > { %v1186_v19 = vsel %vm1157_vm0, %v1125_v20, %v1126_v39  ;;  %v1058_v45 = vpop.f32.mrf.mxu1  ;;  %4112 = vperm.xlu1 %9442, %v4034_v23  }
 0x18f   : > { %14322 = vst [vmem:[#allocation23_spill] sm:$0xff] %v10451_v51  ;;  %v1225_v63 = vadd.f32 %v1186_v19, %v631_v38  ;;  %v1292_v53 = vrot.slane %v1058_v45, 1  ;;  %v635_v49 = vpop.f32.mrf.mxu0  ;;  %8934 = vmatmul.mubr.f32.gmra.mxu0 %v9451_v15  ;;  %v4035_v15 = vld [vmem:[%s14210_s7 + $0x40] sm:$0xff] }
 0x190   : > { %v1127_v32 = vrot.slane %v635_v49, 7  ;;  %v8831_v28 = vpop.f32.mrf.mxu1  ;;  %1873 = vmatmul.mubr.f32.gmra.mxu1 %v1491_v21  ;;  %8936 = vmatprep.mubr.f32.mxu0 %v1489_v30 }
 0x191   : > { %v10470_v2 = vadd.f32 %v10299_v43, %v1225_v63  ;;  %v1295_v4 = vrot.slane %v8831_v28, 1  ;;  %v637_v20 = vpop.f32.mrf.mxu0  ;;  %1878 = vmatprep.mubr.f32.mxu1 %v14218_v0  ;;  %v10476_v38 = vsel %vm1302_vm1, %v1291_v57, %v1292_v53  ;;  %v10480_v19 = vsel %vm1302_vm1, %v1292_v53, %v1293_v22  ;;  %4117 = vperm.xlu0 %9441, %v4035_v15  }
 0x192   : > { %v1185_v30 = vsel %vm1157_vm0, %v1126_v39, %v1127_v32  ;;  %v1068_v43 = vpop.f32.mrf.mxu1  ;;  %v1493_v39 = vld [vmem:[%s9794_s19 + $0x188] sm:$0xff] }
 0x193   : > { %14323 = vst [vmem:[#allocation24_spill] sm:$0xff] %v10470_v2  ;;  %v1226_v45 = vadd.f32 %v1185_v30, %v637_v20  ;;  %v1294_v63 = vrot.slane %v1068_v43, 1  ;;  %v641_v49 = vpop.f32.mrf.mxu0  ;;  %8937 = vmatmul.mubr.f32.gmra.mxu0 %v1490_v17 }
 0x194   : > { %v1128_v57 = vrot.slane %v641_v49, 7  ;;  %v8834_v28 = vpop.f32.mrf.mxu1  ;;  %1879 = vmatmul.mubr.f32.gmra.mxu1 %v1492_v56  ;;  %8939 = vmatprep.mubr.f32.mxu0 %v1491_v21  ;;  %v4036_v49 = vld [vmem:[%s14210_s7 + $0x48] sm:$0xff] }
 0x195   : > { %v10488_v53 = vadd.f32 %v10303_v50, %v1226_v45  ;;  %v1297_v23 = vrot.slane %v8834_v28, 1  ;;  %v643_v60 = vpop.f32.mrf.mxu0  ;;  %1884 = vmatprep.mubr.f32.mxu1 %v14218_v0  ;;  %v10494_v17 = vsel %vm1302_vm1, %v1293_v22, %v1294_v63  ;;  %v10498_v20 = vsel %vm1302_vm1, %v1294_v63, %v1295_v4  ;;  %v1494_v63 = vld [vmem:[%s9794_s19 + $0x190] sm:$0xff]  ;;  %4122 = vperm.xlu1 %9442, %v4036_v49  }
 0x196   : > { %v1184_v21 = vsel %vm1157_vm0, %v1127_v32, %v1128_v57  ;;  %v1078_v50 = vpop.f32.mrf.mxu1 }
 0x197   : > { %14324 = vst [vmem:[#allocation25_spill] sm:$0xff] %v10488_v53  ;;  %v1227_v30 = vadd.f32 %v1184_v21, %v643_v60  ;;  %v1296_v43 = vrot.slane %v1078_v50, 1  ;;  %v647_v45 = vpop.f32.mrf.mxu0  ;;  %8940 = vmatmul.mubr.f32.gmra.mxu0 %v1492_v56 }
 0x198   : > { %v1129_v22 = vrot.slane %v647_v45, 7  ;;  %v8837_v28 = vpop.f32.mrf.mxu1  ;;  %1885 = vmatmul.mubr.f32.gmra.mxu1 %v1493_v39  ;;  %8942 = vmatprep.mubr.f32.mxu0 %v1493_v39 }
 0x199   : > { %v10507_v15 = vadd.f32 %v10316_v48, %v1227_v30  ;;  %v1299_v46 = vrot.slane %v8837_v28, 1  ;;  %v649_v32 = vpop.f32.mrf.mxu0  ;;  %1890 = vmatprep.mubr.f32.mxu1 %v14218_v0  ;;  %v10512_v60 = vsel %vm1302_vm1, %v1295_v4, %v1296_v43  ;;  %v10516_v56 = vsel %vm1302_vm1, %v1296_v43, %v1297_v23  ;;  %v2634_v48 = vld [vmem:[%s9794_s19 + $0x30] sm:$0xff] }
 0x19a   : > { %v1183_v39 = vsel %vm1157_vm0, %v1128_v57, %v1129_v22  ;;  %v1088_v21 = vpop.f32.mrf.mxu1  ;;  %v4037_v4 = vld [vmem:[%s14210_s7 + $0x50] sm:$0xff]  ;;  %v14326_v43 = vmov 0.0  }
 0x19b   : > { %14325 = vst [vmem:[#allocation26_spill] sm:$0xff] %v10507_v15  ;;  %v1228_v50 = vadd.f32 %v1183_v39, %v649_v32  ;;  %v1298_v30 = vrot.slane %v1088_v21, 1  ;;  %v653_v45 = vpop.f32.mrf.mxu0  ;;  %8943 = vmatmul.mubr.f32.gmra.mxu0 %v1494_v63  ;;  %v2635_v39 = vld [vmem:[%s9794_s19 + $0x38] sm:$0xff]  ;;  %4127 = vperm.xlu0 %9441, %v4037_v4   ;;  %v2637_v4 = vld [vmem:[%s9794_s19 + $0x48] sm:$0xff] }
 0x19c   : > { %v1130_v28 = vrot.slane %v653_v45, 7  ;;  %v10524_v0 = vpop.f32.mrf.mxu1  ;;  %1891 = vmatmul.mubr.f32.gmra.mxu1 %v1494_v63  ;;  %2795 = vmatprep.mubr.f32.mxu0 %v14326_v43 }
 0x19d   : > { %v10528_v57 = vadd.f32 %v10320_v58, %v1228_v50  ;;  %v655_v32 = vpop.f32.mrf.mxu0  ;;  %8977 = vmatprep.mubr.f32.mxu1 %v2634_v48  ;;  %v10534_v21 = vsel %vm1302_vm1, %v1297_v23, %v1298_v30  ;;  %v10538_v45 = vsel %vm1302_vm1, %v1298_v30, %v1299_v46  ;;  %v2636_v50 = vld [vmem:[%s9794_s19 + $0x40] sm:$0xff]  ;;  %v4038_v23 = vld [vmem:[%s14210_s7 + $0x58] sm:$0xff] }
 0x19e   : > { %v1182_v63 = vsel %vm1157_vm0, %v1129_v22, %v1130_v28  ;;  %v1098_v58 = vpop.f32.mrf.mxu1  ;;  %4132 = vperm.xlu1 %9442, %v4038_v23  }
 0x19f   : > { %14327 = vst [vmem:[#allocation27_spill] sm:$0xff] %v10528_v57  ;;  %v1229_v15 = vadd.f32 %v1182_v63, %v655_v32  ;;  %v1300_v49 = vrot.slane %v1098_v58, 1  ;;  %v659_v57 = vpop.f32.mrf.mxu0  ;;  %2796 = vmatmul.mubr.f32.vlgmr.msra.gmra.mxu0 %v2634_v48  ;;  %v14330_v48 = vrot.slane %v10524_v0, 1  ;;  %v10577_v58 = vld [vmem:[%s9794_s19 + $0x58] sm:$0xff]  ;;  %4137 = vperm.xlu0 %9441, %v4039_v10  }
 0x1a0   : > { %v1131_v2 = vrot.slane %v659_v57, 7  ;;  %v10546_v53 = vpop.f32.mrf.mxu1  ;;  %8978 = vmatmul.mubr.f32.vlgmr.msra.gmra.mxu1 %v2635_v39  ;;  %2801 = vmatprep.mubr.f32.mxu0 %v14326_v43  ;;  %v4040_v10 = vld [vmem:[%s14210_s7 + $0x68] sm:$0xff] }
 0x1a1   : > { %14328 = vst [vmem:[#allocation28_spill] sm:$0xff] %v10546_v53  ;;  %v10550_v30 = vadd.f32 %v10336_v1, %v1229_v15  ;;  %v661_v22 = vpop.f32.mrf.mxu0  ;;  %8980 = vmatprep.mubr.f32.mxu1 %v2636_v50  ;;  %v10555_v32 = vsel %vm1302_vm1, %v1299_v46, %v1300_v49  ;;  %v10561_v57 = vsel %vm1302_vm1, %v1300_v49, %v14330_v48  ;;  %v2638_v15 = vld [vmem:[%s9794_s19 + $0x50] sm:$0xff]  ;;  %v14333_v51 = vrot.slane %v10546_v53, 7 }
 0x1a2   : > { %v1181_v63 = vsel %vm1157_vm0, %v1130_v28, %v1131_v2  ;;  %v10565_v1 = vpop.f32.mrf.mxu1  ;;  %4142 = vperm.xlu1 %9442, %v4040_v10  }
 0x1a3   : > { %14329 = vst [vmem:[#allocation29_spill] sm:$0xff] %v10550_v30  ;;  %14331 = vst [vmem:[#allocation30_spill] sm:$0xff] %v10565_v1  ;;  %v1230_v30 = vadd.f32 %v1181_v63, %v661_v22  ;;  %v665_v46 = vpop.f32.mrf.mxu0  ;;  %2802 = vmatmul.mubr.f32.gmra.mxu0 %v2635_v39  ;;  %v10582_v63 = vld [vmem:[%s9794_s19 + $0x60] sm:$0xff] }
 0x1a4   : > { %v1132_v49 = vrot.slane %v665_v46, 7  ;;  %v1616_v48 = vpop.f32.mrf.mxu1  ;;  %8981 = vmatmul.mubr.f32.gmra.mxu1 %v2637_v4  ;;  %2807 = vmatprep.mubr.f32.mxu0 %v14326_v43 }
 0x1a5   : > { %v10574_v28 = vadd.f32 %v10340_v9, %v1230_v30  ;;  %v2203_v23 = vrot.slane %v1616_v48, 7  ;;  %v667_v1 = vpop.f32.mrf.mxu0  ;;  %8983 = vmatprep.mubr.f32.mxu1 %v2638_v15 }
 0x1a6   : > { %v1180_v39 = vsel %vm1157_vm0, %v1131_v2, %v1132_v49  ;;  %v1618_v22 = vpop.f32.mrf.mxu1 }
 0x1a7   : > { %14332 = vst [vmem:[#allocation31_spill] sm:$0xff] %v10574_v28  ;;  %v1231_v46 = vadd.f32 %v1180_v39, %v667_v1  ;;  %v2296_v9 = vsel %vm1157_vm0, %v14333_v51, %v2203_v23  ;;  %v671_v30 = vpop.f32.mrf.mxu0  ;;  %2808 = vmatmul.mubr.f32.gmra.mxu0 %v2636_v50  ;;  %v10600_v50 = vld [vmem:[%s9794_s19 + $0x68] sm:$0xff] }
 0x1a8   : > { %v10591_v48 = vadd.f32 %v2296_v9, %v1618_v22  ;;  %v1133_v2 = vrot.slane %v671_v30, 7  ;;  %v1622_v28 = vpop.f32.mrf.mxu1  ;;  %2813 = vmatprep.mubr.f32.mxu0 %v14326_v43  ;;  %8984 = vmatmul.mubr.f32.gmra.mxu1 %v10577_v58  ;;  %v10605_v30 = vld [vmem:[%s9794_s19 + $0x70] sm:$0xff] }
 0x1a9   : > { %v10596_v1 = vadd.f32 %v10356_v6, %v1231_v46  ;;  %v2204_v39 = vrot.slane %v1622_v28, 7  ;;  %v673_v51 = vpop.f32.mrf.mxu0  ;;  %8986 = vmatprep.mubr.f32.mxu1 %v10582_v63  ;;  %v4041_v28 = vld [vmem:[%s14210_s7 + $0x70] sm:$0xff] }
 0x1aa   : > { %v1179_v22 = vsel %vm1157_vm0, %v1132_v49, %v1133_v2  ;;  %v1624_v9 = vpop.f32.mrf.mxu1  ;;  %4147 = vperm.xlu0 %9441, %v4041_v28  }
 0x1ab   : > { %14334 = vst [vmem:[#allocation32_spill] sm:$0xff] %v10596_v1  ;;  %v1232_v53 = vadd.f32 %v1179_v22, %v673_v51  ;;  %v2295_v18 = vsel %vm1157_vm0, %v2203_v23, %v2204_v39  ;;  %v677_v6 = vpop.f32.mrf.mxu0  ;;  %2814 = vmatmul.mubr.f32.gmra.mxu0 %v2637_v4  ;;  %v10621_v4 = vld [vmem:[%s9794_s19 + $0x78] sm:$0xff] }
 0x1ac   : > { %v10612_v46 = vadd.f32 %v2295_v18, %v1624_v9  ;;  %v1134_v10 = vrot.slane %v677_v6, 7  ;;  %v1628_v1 = vpop.f32.mrf.mxu1  ;;  %2819 = vmatprep.mubr.f32.mxu0 %v14326_v43  ;;  %8987 = vmatmul.mubr.f32.gmra.mxu1 %v10600_v50  ;;  %v10626_v9 = vld [vmem:[%s9794_s19 + $0x80] sm:$0xff] }
 0x1ad   : > { %v10617_v49 = vadd.f32 %v10360_v14, %v1232_v53  ;;  %v2205_v51 = vrot.slane %v1628_v1, 7  ;;  %v679_v23 = vpop.f32.mrf.mxu0  ;;  %8989 = vmatprep.mubr.f32.mxu1 %v10605_v30  ;;  %v4042_v53 = vld [vmem:[%s14210_s7 + $0x78] sm:$0xff] }
 0x1ae   : > { %v1178_v18 = vsel %vm1157_vm0, %v1133_v2, %v1134_v10  ;;  %v1630_v22 = vpop.f32.mrf.mxu1  ;;  %4152 = vperm.xlu1 %9442, %v4042_v53  }
 0x1af   : > { %14335 = vst [vmem:[#allocation33_spill] sm:$0xff] %v10617_v49  ;;  %v1233_v6 = vadd.f32 %v1178_v18, %v679_v23  ;;  %v2294_v44 = vsel %vm1157_vm0, %v2204_v39, %v2205_v51  ;;  %v683_v14 = vpop.f32.mrf.mxu0  ;;  %2820 = vmatmul.mubr.f32.gmra.mxu0 %v2638_v15  ;;  %v10642_v15 = vld [vmem:[%s9794_s19 + $0x88] sm:$0xff] }
 0x1b0   : > { %v10633_v1 = vadd.f32 %v2294_v44, %v1630_v22  ;;  %v1135_v28 = vrot.slane %v683_v14, 7  ;;  %v1634_v49 = vpop.f32.mrf.mxu1  ;;  %2825 = vmatprep.mubr.f32.mxu0 %v14326_v43  ;;  %8990 = vmatmul.mubr.f32.gmra.mxu1 %v10621_v4  ;;  %v10647_v22 = vld [vmem:[%s9794_s19 + $0x90] sm:$0xff] }
 0x1b1   : > { %v10638_v2 = vadd.f32 %v10376_v11, %v1233_v6  ;;  %v2206_v23 = vrot.slane %v1634_v49, 7  ;;  %v685_v39 = vpop.f32.mrf.mxu0  ;;  %8992 = vmatprep.mubr.f32.mxu1 %v10626_v9  ;;  %v4043_v49 = vld [vmem:[%s14210_s7 + $0x80] sm:$0xff] }
 0x1b2   : > { %v1177_v44 = vsel %vm1157_vm0, %v1134_v10, %v1135_v28  ;;  %v1636_v18 = vpop.f32.mrf.mxu1  ;;  %4157 = vperm.xlu0 %9441, %v4043_v49  }
 0x1b3   : > { %14336 = vst [vmem:[#allocation34_spill] sm:$0xff] %v10638_v2  ;;  %v1234_v14 = vadd.f32 %v1177_v44, %v685_v39  ;;  %v2293_v27 = vsel %vm1157_vm0, %v2205_v51, %v2206_v23  ;;  %v689_v11 = vpop.f32.mrf.mxu0  ;;  %2826 = vmatmul.mubr.f32.gmra.mxu0 %v10577_v58  ;;  %v10664_v58 = vld [vmem:[%s9794_s19 + $0x98] sm:$0xff] }
 0x1b4   : > { %v10655_v6 = vadd.f32 %v2293_v27, %v1636_v18  ;;  %v1136_v53 = vrot.slane %v689_v11, 7  ;;  %v1640_v10 = vpop.f32.mrf.mxu1  ;;  %2831 = vmatprep.mubr.f32.mxu0 %v14326_v43  ;;  %8993 = vmatmul.mubr.f32.gmra.mxu1 %v10642_v15  ;;  %v10669_v11 = vld [vmem:[%s9794_s19 + $0xa0] sm:$0xff] }
 0x1b5   : > { %v10660_v39 = vadd.f32 %v10380_v26, %v1234_v14  ;;  %v2207_v51 = vrot.slane %v1640_v10, 7  ;;  %v691_v44 = vpop.f32.mrf.mxu0  ;;  %8995 = vmatprep.mubr.f32.mxu1 %v10647_v22  ;;  %v4044_v14 = vld [vmem:[%s14210_s7 + $0x88] sm:$0xff] }
 0x1b6   : > { %v1176_v27 = vsel %vm1157_vm0, %v1135_v28, %v1136_v53  ;;  %v1642_v18 = vpop.f32.mrf.mxu1  ;;  %4162 = vperm.xlu1 %9442, %v4044_v14  }
 0x1b7   : > { %14337 = vst [vmem:[#allocation35_spill] sm:$0xff] %v10660_v39  ;;  %v1235_v2 = vadd.f32 %v1176_v27, %v691_v44  ;;  %v2292_v33 = vsel %vm1157_vm0, %v2206_v23, %v2207_v51  ;;  %v695_v26 = vpop.f32.mrf.mxu0  ;;  %2832 = vmatmul.mubr.f32.gmra.mxu0 %v10582_v63  ;;  %v10686_v63 = vld [vmem:[%s9794_s19 + $0xa8] sm:$0xff] }
 0x1b8   : > { %v10677_v49 = vadd.f32 %v2292_v33, %v1642_v18  ;;  %v1137_v10 = vrot.slane %v695_v26, 7  ;;  %v1646_v28 = vpop.f32.mrf.mxu1  ;;  %2837 = vmatprep.mubr.f32.mxu0 %v14326_v43  ;;  %8996 = vmatmul.mubr.f32.gmra.mxu1 %v10664_v58  ;;  %v10691_v26 = vld [vmem:[%s9794_s19 + $0xb0] sm:$0xff] }
 0x1b9   : > { %v10682_v44 = vadd.f32 %v10396_v12, %v1235_v2  ;;  %v2208_v23 = vrot.slane %v1646_v28, 7  ;;  %v697_v27 = vpop.f32.mrf.mxu0  ;;  %8998 = vmatprep.mubr.f32.mxu1 %v10669_v11  ;;  %v4045_v2 = vld [vmem:[%s14210_s7 + $0x90] sm:$0xff] }
 0x1ba   : > { %v1175_v33 = vsel %vm1157_vm0, %v1136_v53, %v1137_v10  ;;  %v1648_v18 = vpop.f32.mrf.mxu1  ;;  %4167 = vperm.xlu0 %9441, %v4045_v2  }
 0x1bb   : > { %14338 = vst [vmem:[#allocation36_spill] sm:$0xff] %v10682_v44  ;;  %v1236_v39 = vadd.f32 %v1175_v33, %v697_v27  ;;  %v2291_v47 = vsel %vm1157_vm0, %v2207_v51, %v2208_v23  ;;  %v701_v12 = vpop.f32.mrf.mxu0  ;;  %2838 = vmatmul.mubr.f32.gmra.mxu0 %v10600_v50  ;;  %v10708_v50 = vld [vmem:[%s9794_s19 + $0xb8] sm:$0xff] }
 0x1bc   : > { %v10699_v14 = vadd.f32 %v2291_v47, %v1648_v18  ;;  %v1138_v28 = vrot.slane %v701_v12, 7  ;;  %v1652_v53 = vpop.f32.mrf.mxu1  ;;  %2843 = vmatprep.mubr.f32.mxu0 %v14326_v43  ;;  %8999 = vmatmul.mubr.f32.gmra.mxu1 %v10686_v63  ;;  %v10713_v12 = vld [vmem:[%s9794_s19 + $0xc0] sm:$0xff] }
 0x1bd   : > { %v10704_v27 = vadd.f32 %v10400_v29, %v1236_v39  ;;  %v2209_v51 = vrot.slane %v1652_v53, 7  ;;  %v703_v33 = vpop.f32.mrf.mxu0  ;;  %9001 = vmatprep.mubr.f32.mxu1 %v10691_v26  ;;  %v4046_v39 = vld [vmem:[%s14210_s7 + $0x98] sm:$0xff] }
 0x1be   : > { %v1174_v47 = vsel %vm1157_vm0, %v1137_v10, %v1138_v28  ;;  %v1654_v18 = vpop.f32.mrf.mxu1  ;;  %4172 = vperm.xlu1 %9442, %v4046_v39  }
 0x1bf   : > { %14339 = vst [vmem:[#allocation37_spill] sm:$0xff] %v10704_v27  ;;  %v1237_v44 = vadd.f32 %v1174_v47, %v703_v33  ;;  %v2290_v16 = vsel %vm1157_vm0, %v2208_v23, %v2209_v51  ;;  %v707_v29 = vpop.f32.mrf.mxu0  ;;  %2844 = vmatmul.mubr.f32.gmra.mxu0 %v10605_v30  ;;  %v10730_v30 = vld [vmem:[%s9794_s19 + $0xc8] sm:$0xff] }
 0x1c0   : > { %v10721_v2 = vadd.f32 %v2290_v16, %v1654_v18  ;;  %v1139_v53 = vrot.slane %v707_v29, 7  ;;  %v1658_v10 = vpop.f32.mrf.mxu1  ;;  %2849 = vmatprep.mubr.f32.mxu0 %v14326_v43  ;;  %9002 = vmatmul.mubr.f32.gmra.mxu1 %v10708_v50  ;;  %v10735_v29 = vld [vmem:[%s9794_s19 + $0xd0] sm:$0xff] }
 0x1c1   : > { %v10726_v33 = vadd.f32 %v10417_v34, %v1237_v44  ;;  %v2210_v23 = vrot.slane %v1658_v10, 7  ;;  %v709_v47 = vpop.f32.mrf.mxu0  ;;  %9004 = vmatprep.mubr.f32.mxu1 %v10713_v12  ;;  %v4047_v44 = vld [vmem:[%s14210_s7 + $0xa0] sm:$0xff] }
 0x1c2   : > { %v1173_v16 = vsel %vm1157_vm0, %v1138_v28, %v1139_v53  ;;  %v1660_v18 = vpop.f32.mrf.mxu1  ;;  %4177 = vperm.xlu0 %9441, %v4047_v44  }
 0x1c3   : > { %14340 = vst [vmem:[#allocation38_spill] sm:$0xff] %v10726_v33  ;;  %v1238_v27 = vadd.f32 %v1173_v16, %v709_v47  ;;  %v2289_v61 = vsel %vm1157_vm0, %v2209_v51, %v2210_v23  ;;  %v713_v34 = vpop.f32.mrf.mxu0  ;;  %2850 = vmatmul.mubr.f32.gmra.mxu0 %v10621_v4  ;;  %v10752_v4 = vld [vmem:[%s9794_s19 + $0xd8] sm:$0xff] }
 0x1c4   : > { %v10743_v39 = vadd.f32 %v2289_v61, %v1660_v18  ;;  %v1140_v10 = vrot.slane %v713_v34, 7  ;;  %v1664_v28 = vpop.f32.mrf.mxu1  ;;  %2855 = vmatprep.mubr.f32.mxu0 %v14326_v43  ;;  %9005 = vmatmul.mubr.f32.gmra.mxu1 %v10730_v30  ;;  %v10757_v34 = vld [vmem:[%s9794_s19 + $0xe0] sm:$0xff] }
 0x1c5   : > { %v10748_v47 = vadd.f32 %v10421_v5, %v1238_v27  ;;  %v2211_v51 = vrot.slane %v1664_v28, 7  ;;  %v715_v16 = vpop.f32.mrf.mxu0  ;;  %9007 = vmatprep.mubr.f32.mxu1 %v10735_v29  ;;  %v4048_v27 = vld [vmem:[%s14210_s7 + $0xa8] sm:$0xff] }
 0x1c6   : > { %v1172_v61 = vsel %vm1157_vm0, %v1139_v53, %v1140_v10  ;;  %v1666_v18 = vpop.f32.mrf.mxu1  ;;  %4182 = vperm.xlu1 %9442, %v4048_v27  }
 0x1c7   : > { %14341 = vst [vmem:[#allocation39_spill] sm:$0xff] %v10748_v47  ;;  %v1239_v33 = vadd.f32 %v1172_v61, %v715_v16  ;;  %v2288_v42 = vsel %vm1157_vm0, %v2210_v23, %v2211_v51  ;;  %v719_v5 = vpop.f32.mrf.mxu0  ;;  %2856 = vmatmul.mubr.f32.gmra.mxu0 %v10626_v9  ;;  %v10774_v9 = vld [vmem:[%s9794_s19 + $0xe8] sm:$0xff] }
 0x1c8   : > { %v10765_v44 = vadd.f32 %v2288_v42, %v1666_v18  ;;  %v1141_v28 = vrot.slane %v719_v5, 7  ;;  %v1670_v53 = vpop.f32.mrf.mxu1  ;;  %2861 = vmatprep.mubr.f32.mxu0 %v14326_v43  ;;  %9008 = vmatmul.mubr.f32.gmra.mxu1 %v10752_v4  ;;  %v10779_v5 = vld [vmem:[%s9794_s19 + $0xf0] sm:$0xff] }
 0x1c9   : > { %v10770_v16 = vadd.f32 %v10437_v8, %v1239_v33  ;;  %v2212_v23 = vrot.slane %v1670_v53, 7  ;;  %v721_v61 = vpop.f32.mrf.mxu0  ;;  %9010 = vmatprep.mubr.f32.mxu1 %v10757_v34  ;;  %v4049_v33 = vld [vmem:[%s14210_s7 + $0xb0] sm:$0xff] }
 0x1ca   : > { %14342 = vst [vmem:[#allocation40_spill] sm:$0xff] %v10765_v44  ;;  %v1171_v42 = vsel %vm1157_vm0, %v1140_v10, %v1141_v28  ;;  %v1672_v18 = vpop.f32.mrf.mxu1  ;;  %4187 = vperm.xlu0 %9441, %v4049_v33  }
 0x1cb   : > { %14343 = vst [vmem:[#allocation41_spill] sm:$0xff] %v10770_v16  ;;  %v1240_v47 = vadd.f32 %v1171_v42, %v721_v61  ;;  %v2287_v44 = vsel %vm1157_vm0, %v2211_v51, %v2212_v23  ;;  %v725_v8 = vpop.f32.mrf.mxu0  ;;  %2862 = vmatmul.mubr.f32.gmra.mxu0 %v10642_v15  ;;  %v10796_v15 = vld [vmem:[%s9794_s19 + $0xf8] sm:$0xff] }
 0x1cc   : > { %v10787_v27 = vadd.f32 %v2287_v44, %v1672_v18  ;;  %v1142_v53 = vrot.slane %v725_v8, 7  ;;  %v1676_v10 = vpop.f32.mrf.mxu1  ;;  %2867 = vmatprep.mubr.f32.mxu0 %v14326_v43  ;;  %9011 = vmatmul.mubr.f32.gmra.mxu1 %v10774_v9  ;;  %v10801_v8 = vld [vmem:[%s9794_s19 + $0x100] sm:$0xff] }
 0x1cd   : > { %v10792_v61 = vadd.f32 %v10441_v13, %v1240_v47  ;;  %v2213_v51 = vrot.slane %v1676_v10, 7  ;;  %v727_v42 = vpop.f32.mrf.mxu0  ;;  %9013 = vmatprep.mubr.f32.mxu1 %v10779_v5  ;;  %v4050_v47 = vld [vmem:[%s14210_s7 + $0xb8] sm:$0xff] }
 0x1ce   : > { %14344 = vst [vmem:[#allocation42_spill] sm:$0xff] %v10787_v27  ;;  %v1170_v44 = vsel %vm1157_vm0, %v1141_v28, %v1142_v53  ;;  %v1678_v18 = vpop.f32.mrf.mxu1  ;;  %4192 = vperm.xlu1 %9442, %v4050_v47  }
 0x1cf   : > { %14345 = vst [vmem:[#allocation43_spill] sm:$0xff] %v10792_v61  ;;  %v1241_v16 = vadd.f32 %v1170_v44, %v727_v42  ;;  %v2286_v27 = vsel %vm1157_vm0, %v2212_v23, %v2213_v51  ;;  %v731_v13 = vpop.f32.mrf.mxu0  ;;  %2868 = vmatmul.mubr.f32.gmra.mxu0 %v10647_v22  ;;  %v10818_v22 = vld [vmem:[%s9794_s19 + $0x108] sm:$0xff] }
 0x1d0   : > { %v10809_v33 = vadd.f32 %v2286_v27, %v1678_v18  ;;  %v1143_v10 = vrot.slane %v731_v13, 7  ;;  %v1682_v28 = vpop.f32.mrf.mxu1  ;;  %2873 = vmatprep.mubr.f32.mxu0 %v14326_v43  ;;  %9014 = vmatmul.mubr.f32.gmra.mxu1 %v10796_v15  ;;  %v10823_v13 = vld [vmem:[%s9794_s19 + $0x110] sm:$0xff] }
 0x1d1   : > { %v10814_v42 = vadd.f32 %v10457_v25, %v1241_v16  ;;  %v2214_v23 = vrot.slane %v1682_v28, 7  ;;  %v733_v44 = vpop.f32.mrf.mxu0  ;;  %9016 = vmatprep.mubr.f32.mxu1 %v10801_v8  ;;  %v4051_v16 = vld [vmem:[%s14210_s7 + $0xc0] sm:$0xff] }
 0x1d2   : > { %14346 = vst [vmem:[#allocation44_spill] sm:$0xff] %v10809_v33  ;;  %v1169_v27 = vsel %vm1157_vm0, %v1142_v53, %v1143_v10  ;;  %v1684_v18 = vpop.f32.mrf.mxu1  ;;  %4197 = vperm.xlu0 %9441, %v4051_v16  }
 0x1d3   : > { %14347 = vst [vmem:[#allocation45_spill] sm:$0xff] %v10814_v42  ;;  %v1242_v61 = vadd.f32 %v1169_v27, %v733_v44  ;;  %v2285_v33 = vsel %vm1157_vm0, %v2213_v51, %v2214_v23  ;;  %v737_v25 = vpop.f32.mrf.mxu0  ;;  %2874 = vmatmul.mubr.f32.gmra.mxu0 %v10664_v58  ;;  %v10840_v58 = vld [vmem:[%s9794_s19 + $0x118] sm:$0xff] }
 0x1d4   : > { %v10831_v47 = vadd.f32 %v2285_v33, %v1684_v18  ;;  %v1144_v28 = vrot.slane %v737_v25, 7  ;;  %v1688_v53 = vpop.f32.mrf.mxu1  ;;  %2879 = vmatprep.mubr.f32.mxu0 %v14326_v43  ;;  %9017 = vmatmul.mubr.f32.gmra.mxu1 %v10818_v22  ;;  %v10845_v25 = vld [vmem:[%s9794_s19 + $0x120] sm:$0xff] }
 0x1d5   : > { %v10836_v44 = vadd.f32 %v10461_v31, %v1242_v61  ;;  %v2215_v51 = vrot.slane %v1688_v53, 7  ;;  %v739_v27 = vpop.f32.mrf.mxu0  ;;  %9019 = vmatprep.mubr.f32.mxu1 %v10823_v13  ;;  %v4052_v61 = vld [vmem:[%s14210_s7 + $0xc8] sm:$0xff] }
 0x1d6   : > { %14348 = vst [vmem:[#allocation46_spill] sm:$0xff] %v10831_v47  ;;  %v1168_v33 = vsel %vm1157_vm0, %v1143_v10, %v1144_v28  ;;  %v1690_v18 = vpop.f32.mrf.mxu1  ;;  %4202 = vperm.xlu1 %9442, %v4052_v61  }
 0x1d7   : > { %14349 = vst [vmem:[#allocation47_spill] sm:$0xff] %v10836_v44  ;;  %v1243_v42 = vadd.f32 %v1168_v33, %v739_v27  ;;  %v2284_v47 = vsel %vm1157_vm0, %v2214_v23, %v2215_v51  ;;  %v743_v31 = vpop.f32.mrf.mxu0  ;;  %2880 = vmatmul.mubr.f32.gmra.mxu0 %v10669_v11  ;;  %v10862_v11 = vld [vmem:[%s9794_s19 + $0x128] sm:$0xff] }
 0x1d8   : > { %v10853_v16 = vadd.f32 %v2284_v47, %v1690_v18  ;;  %v1145_v53 = vrot.slane %v743_v31, 7  ;;  %v1694_v10 = vpop.f32.mrf.mxu1  ;;  %2885 = vmatprep.mubr.f32.mxu0 %v14326_v43  ;;  %9020 = vmatmul.mubr.f32.gmra.mxu1 %v10840_v58  ;;  %v10867_v31 = vld [vmem:[%s9794_s19 + $0x130] sm:$0xff] }
 0x1d9   : > { %v10858_v27 = vadd.f32 %v10476_v38, %v1243_v42  ;;  %v2216_v23 = vrot.slane %v1694_v10, 7  ;;  %v745_v33 = vpop.f32.mrf.mxu0  ;;  %9022 = vmatprep.mubr.f32.mxu1 %v10845_v25  ;;  %v4053_v42 = vld [vmem:[%s14210_s7 + $0xd0] sm:$0xff] }
 0x1da   : > { %14350 = vst [vmem:[#allocation48_spill] sm:$0xff] %v10853_v16  ;;  %v1167_v47 = vsel %vm1157_vm0, %v1144_v28, %v1145_v53  ;;  %v1696_v18 = vpop.f32.mrf.mxu1  ;;  %4207 = vperm.xlu0 %9441, %v4053_v42  }
 0x1db   : > { %14351 = vst [vmem:[#allocation49_spill] sm:$0xff] %v10858_v27  ;;  %v1244_v44 = vadd.f32 %v1167_v47, %v745_v33  ;;  %v2283_v16 = vsel %vm1157_vm0, %v2215_v51, %v2216_v23  ;;  %v749_v38 = vpop.f32.mrf.mxu0  ;;  %2886 = vmatmul.mubr.f32.gmra.mxu0 %v10686_v63  ;;  %v10884_v63 = vld [vmem:[%s9794_s19 + $0x138] sm:$0xff] }
 0x1dc   : > { %v10875_v61 = vadd.f32 %v2283_v16, %v1696_v18  ;;  %v1146_v10 = vrot.slane %v749_v38, 7  ;;  %v1700_v28 = vpop.f32.mrf.mxu1  ;;  %2891 = vmatprep.mubr.f32.mxu0 %v14326_v43  ;;  %9023 = vmatmul.mubr.f32.gmra.mxu1 %v10862_v11  ;;  %v10889_v38 = vld [vmem:[%s9794_s19 + $0x140] sm:$0xff] }
 0x1dd   : > { %v10880_v33 = vadd.f32 %v10480_v19, %v1244_v44  ;;  %v2217_v51 = vrot.slane %v1700_v28, 7  ;;  %v751_v47 = vpop.f32.mrf.mxu0  ;;  %9025 = vmatprep.mubr.f32.mxu1 %v10867_v31  ;;  %14354 = vst [vmem:[#allocation52_spill] sm:$0xff] %v10889_v38  ;;  %v4054_v44 = vld [vmem:[%s14210_s7 + $0xd8] sm:$0xff] }
 0x1de   : > { %14352 = vst [vmem:[#allocation50_spill] sm:$0xff] %v10875_v61  ;;  %v1166_v16 = vsel %vm1157_vm0, %v1145_v53, %v1146_v10  ;;  %v1702_v18 = vpop.f32.mrf.mxu1  ;;  %4212 = vperm.xlu1 %9442, %v4054_v44   ;;  %v4055_v44 = vld [vmem:[%s14210_s7 + $0xe0] sm:$0xff] }
 0x1df   : > { %14353 = vst [vmem:[#allocation51_spill] sm:$0xff] %v10880_v33  ;;  %v1245_v27 = vadd.f32 %v1166_v16, %v751_v47  ;;  %v2282_v61 = vsel %vm1157_vm0, %v2216_v23, %v2217_v51  ;;  %v755_v19 = vpop.f32.mrf.mxu0  ;;  %2892 = vmatmul.mubr.f32.gmra.mxu0 %v10691_v26  ;;  %v10906_v26 = vld [vmem:[%s9794_s19 + $0x148] sm:$0xff]  ;;  %4217 = vperm.xlu0 %9441, %v4055_v44  }
 0x1e0   : > { %v10897_v42 = vadd.f32 %v2282_v61, %v1702_v18  ;;  %v1147_v28 = vrot.slane %v755_v19, 7  ;;  %v1706_v53 = vpop.f32.mrf.mxu1  ;;  %2897 = vmatprep.mubr.f32.mxu0 %v14326_v43  ;;  %9026 = vmatmul.mubr.f32.gmra.mxu1 %v10884_v63  ;;  %14357 = vst [vmem:[#allocation55_spill] sm:$0xff] %v10906_v26  ;;  %v10913_v19 = vld [vmem:[%s9794_s19 + $0x150] sm:$0xff]  ;;  %v4056_v44 = vld [vmem:[%s14210_s7 + $0xe8] sm:$0xff] }
 0x1e1   : > { %v10902_v47 = vadd.f32 %v10494_v17, %v1245_v27  ;;  %v2218_v23 = vrot.slane %v1706_v53, 7  ;;  %v757_v16 = vpop.f32.mrf.mxu0  ;;  %9028 = vmatprep.mubr.f32.mxu1 %v10889_v38  ;;  %14358 = vst [vmem:[#allocation56_spill] sm:$0xff] %v10913_v19  ;;  %v10937_v38 = vld [vmem:[%s9794_s19 + $0x160] sm:$0xff] }
 0x1e2   : > { %14355 = vst [vmem:[#allocation53_spill] sm:$0xff] %v10897_v42  ;;  %v1165_v61 = vsel %vm1157_vm0, %v1146_v10, %v1147_v28  ;;  %v10910_v18 = vpop.f32.mrf.mxu1  ;;  %14361 = vst [vmem:[#allocation59_spill] sm:$0xff] %v10937_v38  ;;  %4222 = vperm.xlu1 %9442, %v4056_v44   ;;  %v4057_v44 = vld [vmem:[%s14210_s7 + $0xf0] sm:$0xff] }
 0x1e3   : > { %14356 = vst [vmem:[#allocation54_spill] sm:$0xff] %v10902_v47  ;;  %v1246_v33 = vadd.f32 %v1165_v61, %v757_v16  ;;  %v10917_v17 = vsel %vm1157_vm0, %v2217_v51, %v2218_v23  ;;  %v761_v27 = vpop.f32.mrf.mxu0  ;;  %2898 = vmatmul.mubr.f32.gmra.mxu0 %v10708_v50  ;;  %v10930_v47 = vld [vmem:[%s9794_s19 + $0x158] sm:$0xff]  ;;  %4227 = vperm.xlu0 %9441, %v4057_v44  }
 0x1e4   : > { %v1148_v53 = vrot.slane %v761_v27, 7  ;;  %v1712_v10 = vpop.f32.mrf.mxu1  ;;  %2903 = vmatprep.mubr.f32.mxu0 %v14326_v43  ;;  %9029 = vmatmul.mubr.f32.gmra.mxu1 %v10906_v26  ;;  %14360 = vst [vmem:[#allocation58_spill] sm:$0xff] %v10930_v47  ;;  %v4058_v44 = vld [vmem:[%s14210_s7 + $0xf8] sm:$0xff] }
 0x1e5   : > { %v10926_v16 = vadd.f32 %v10498_v20, %v1246_v33  ;;  %v2219_v61 = vrot.slane %v1712_v10, 7  ;;  %v763_v51 = vpop.f32.mrf.mxu0  ;;  %9031 = vmatprep.mubr.f32.mxu1 %v10913_v19  ;;  %v10961_v19 = vld [vmem:[%s9794_s19 + $0x170] sm:$0xff] }
 0x1e6   : > { %v1164_v50 = vsel %vm1157_vm0, %v1147_v28, %v1148_v53  ;;  %v10934_v27 = vpop.f32.mrf.mxu1  ;;  %14364 = vst [vmem:[#allocation62_spill] sm:$0xff] %v10961_v19  ;;  %4232 = vperm.xlu1 %9442, %v4058_v44   ;;  %v4059_v44 = vld [vmem:[%s14210_s7 + $0x100] sm:$0xff] }
 0x1e7   : > { %14359 = vst [vmem:[#allocation57_spill] sm:$0xff] %v10926_v16  ;;  %v1247_v42 = vadd.f32 %v1164_v50, %v763_v51  ;;  %v10941_v20 = vsel %vm1157_vm0, %v2218_v23, %v2219_v61  ;;  %v767_v33 = vpop.f32.mrf.mxu0  ;;  %2904 = vmatmul.mubr.f32.gmra.mxu0 %v10713_v12  ;;  %v10954_v16 = vld [vmem:[%s9794_s19 + $0x168] sm:$0xff]  ;;  %4237 = vperm.xlu0 %9441, %v4059_v44  }
 0x1e8   : > { %v1149_v10 = vrot.slane %v767_v33, 7  ;;  %v1718_v28 = vpop.f32.mrf.mxu1  ;;  %2909 = vmatprep.mubr.f32.mxu0 %v14326_v43  ;;  %9032 = vmatmul.mubr.f32.gmra.mxu1 %v10930_v47  ;;  %14363 = vst [vmem:[#allocation61_spill] sm:$0xff] %v10954_v16  ;;  %v4060_v44 = vld [vmem:[%s14210_s7 + $0x108] sm:$0xff] }
 0x1e9   : > { %v10950_v51 = vadd.f32 %v10512_v60, %v1247_v42  ;;  %v2220_v50 = vrot.slane %v1718_v28, 7  ;;  %v769_v23 = vpop.f32.mrf.mxu0  ;;  %9034 = vmatprep.mubr.f32.mxu1 %v10937_v38  ;;  %v10985_v38 = vld [vmem:[%s9794_s19 + $0x180] sm:$0xff] }
 0x1ea   : > { %v1163_v12 = vsel %vm1157_vm0, %v1148_v53, %v1149_v10  ;;  %v10958_v33 = vpop.f32.mrf.mxu1  ;;  %14367 = vst [vmem:[#allocation65_spill] sm:$0xff] %v10985_v38  ;;  %4242 = vperm.xlu1 %9442, %v4060_v44  }
 0x1eb   : > { %14362 = vst [vmem:[#allocation60_spill] sm:$0xff] %v10950_v51  ;;  %v1248_v26 = vadd.f32 %v1163_v12, %v769_v23  ;;  %v10965_v60 = vsel %vm1157_vm0, %v2219_v61, %v2220_v50  ;;  %v773_v42 = vpop.f32.mrf.mxu0  ;;  %2910 = vmatmul.mubr.f32.gmra.mxu0 %v10730_v30  ;;  %v10978_v51 = vld [vmem:[%s9794_s19 + $0x178] sm:$0xff] }
 0x1ec   : > { %v1150_v28 = vrot.slane %v773_v42, 7  ;;  %v1724_v53 = vpop.f32.mrf.mxu1  ;;  %2915 = vmatprep.mubr.f32.mxu0 %v14326_v43  ;;  %9035 = vmatmul.mubr.f32.gmra.mxu1 %v10954_v16  ;;  %14366 = vst [vmem:[#allocation64_spill] sm:$0xff] %v10978_v51 }
 0x1ed   : > { %v10974_v23 = vadd.f32 %v10516_v56, %v1248_v26  ;;  %v2221_v12 = vrot.slane %v1724_v53, 7  ;;  %v775_v61 = vpop.f32.mrf.mxu0  ;;  %9037 = vmatprep.mubr.f32.mxu1 %v10961_v19  ;;  %v11009_v19 = vld [vmem:[%s9794_s19 + $0x190] sm:$0xff] }
 0x1ee   : > { %v1162_v30 = vsel %vm1157_vm0, %v1149_v10, %v1150_v28  ;;  %v10982_v42 = vpop.f32.mrf.mxu1  ;;  %14370 = vst [vmem:[#allocation68_spill] sm:$0xff] %v11009_v19 }
 0x1ef   : > { %14365 = vst [vmem:[#allocation63_spill] sm:$0xff] %v10974_v23  ;;  %v1249_v47 = vadd.f32 %v1162_v30, %v775_v61  ;;  %v10989_v56 = vsel %vm1157_vm0, %v2220_v50, %v2221_v12  ;;  %v779_v26 = vpop.f32.mrf.mxu0  ;;  %2916 = vmatmul.mubr.f32.gmra.mxu0 %v10735_v29  ;;  %v11002_v23 = vld [vmem:[%s9794_s19 + $0x188] sm:$0xff] }
 0x1f0   : > { %v1151_v53 = vrot.slane %v779_v26, 7  ;;  %v1730_v10 = vpop.f32.mrf.mxu1  ;;  %2921 = vmatprep.mubr.f32.mxu0 %v14326_v43  ;;  %9038 = vmatmul.mubr.f32.gmra.mxu1 %v10978_v51  ;;  %14369 = vst [vmem:[#allocation67_spill] sm:$0xff] %v11002_v23 }
 0x1f1   : > { %v10998_v61 = vadd.f32 %v10534_v21, %v1249_v47  ;;  %v2222_v30 = vrot.slane %v1730_v10, 7  ;;  %v781_v50 = vpop.f32.mrf.mxu0  ;;  %9040 = vmatprep.mubr.f32.mxu1 %v10985_v38  ;;  %v11033_v38 = vld [vmem:[%s9794_s19 + $0x1a0] sm:$0xff] }
 0x1f2   : > { %v1161_v29 = vsel %vm1157_vm0, %v1150_v28, %v1151_v53  ;;  %v11006_v26 = vpop.f32.mrf.mxu1 }
 0x1f3   : > { %14368 = vst [vmem:[#allocation66_spill] sm:$0xff] %v10998_v61  ;;  %v1250_v16 = vadd.f32 %v1161_v29, %v781_v50  ;;  %v11013_v21 = vsel %vm1157_vm0, %v2221_v12, %v2222_v30  ;;  %v785_v47 = vpop.f32.mrf.mxu0  ;;  %2922 = vmatmul.mubr.f32.gmra.mxu0 %v10752_v4  ;;  %v11026_v61 = vld [vmem:[%s9794_s19 + $0x198] sm:$0xff] }
 0x1f4   : > { %v1152_v10 = vrot.slane %v785_v47, 7  ;;  %v1736_v28 = vpop.f32.mrf.mxu1  ;;  %2927 = vmatprep.mubr.f32.mxu0 %v14326_v43  ;;  %9041 = vmatmul.mubr.f32.gmra.mxu1 %v11002_v23  ;;  %14372 = vst [vmem:[#allocation70_spill] sm:$0xff] %v11026_v61 }
 0x1f5   : > { %v11022_v50 = vadd.f32 %v10538_v45, %v1250_v16  ;;  %v2223_v29 = vrot.slane %v1736_v28, 7  ;;  %v787_v12 = vpop.f32.mrf.mxu0  ;;  %9043 = vmatprep.mubr.f32.mxu1 %v11009_v19 }
 0x1f6   : > { %v1160_v4 = vsel %vm1157_vm0, %v1151_v53, %v1152_v10  ;;  %v11030_v47 = vpop.f32.mrf.mxu1 }
 0x1f7   : > { %14371 = vst [vmem:[#allocation69_spill] sm:$0xff] %v11022_v50  ;;  %v1251_v51 = vadd.f32 %v1160_v4, %v787_v12  ;;  %v11037_v45 = vsel %vm1157_vm0, %v2222_v30, %v2223_v29  ;;  %v791_v16 = vpop.f32.mrf.mxu0  ;;  %2928 = vmatmul.mubr.f32.gmra.mxu0 %v10757_v34  ;;  %v11050_v30 = vld [vmem:[%s9794_s19 + $0x1a8] sm:$0xff] }
 0x1f8   : > { %v1153_v28 = vrot.slane %v791_v16, 7  ;;  %v1742_v50 = vpop.f32.mrf.mxu1  ;;  %2933 = vmatprep.mubr.f32.mxu0 %v14326_v43  ;;  %9044 = vmatmul.mubr.f32.gmra.mxu1 %v11026_v61  ;;  %14374 = vst [vmem:[#allocation72_spill] sm:$0xff] %v11050_v30 }
 0x1f9   : > { %v11046_v53 = vadd.f32 %v10555_v32, %v1251_v51  ;;  %v2224_v12 = vrot.slane %v1742_v50, 7  ;;  %v793_v4 = vpop.f32.mrf.mxu0  ;;  %9046 = vmatprep.mubr.f32.mxu1 %v11033_v38  ;;  %v4061_v32 = vld [vmem:[%s14210_s7 + $0x110] sm:$0xff]  ;;  %v1254_v51 = vrot.slane %v10142_v55, 1 }
 0x1fa   : > { %v1159_v34 = vsel %vm1157_vm0, %v1152_v10, %v1153_v28  ;;  %v11054_v19 = vpop.f32.mrf.mxu1  ;;  %4247 = vperm.xlu0 %9441, %v4061_v32   ;;  %v14378_v32 = vrot.slane %v10135_v41, 1 }
 0x1fb   : > { %14373 = vst [vmem:[#allocation71_spill] sm:$0xff] %v11046_v53  ;;  %v1252_v16 = vadd.f32 %v1159_v34, %v793_v4  ;;  %v11058_v23 = vsel %vm1157_vm0, %v2223_v29, %v2224_v12  ;;  %v797_v61 = vpop.f32.mrf.mxu0  ;;  %2934 = vmatmul.mubr.f32.gmra.mxu0 %v10774_v9  ;;  %v14376_v9 = vrot.slane %v10130_v35, 7  ;;  %v4062_v35 = vld [vmem:[%s14210_s7 + $0x118] sm:$0xff] }
 0x1fc   : > { %v1154_v50 = vrot.slane %v797_v61, 7  ;;  %v1748_v44 = vpop.f32.mrf.mxu1  ;;  %2939 = vmatprep.mubr.f32.mxu0 %v14326_v43  ;;  %9047 = vmatmul.mubr.f32.gmra.mxu1 %v11050_v30 }
 0x1fd   : > { %v11068_v10 = vadd.f32 %v10561_v57, %v1252_v16  ;;  %v2225_v29 = vrot.slane %v1748_v44, 7  ;;  %v799_v4 = vpop.f32.mrf.mxu0  ;;  %4577 = vmatprep.mubr.f32.mxu1 %v14326_v43  ;;  %4252 = vperm.xlu1 %9442, %v4062_v35  }
 0x1fe   : > { %v1205_v34 = vsel %vm1157_vm0, %v1154_v50, %v14376_v9  ;;  %v1158_v55 = vsel %vm1157_vm0, %v1153_v28, %v1154_v50  ;;  %v11077_v61 = vpop.f32.mrf.mxu1  ;;  %v1349_v28 = vsel %vm1302_vm1, %v1254_v51, %v14378_v32 }
 0x1ff   : > { %14375 = vst [vmem:[#allocation73_spill] sm:$0xff] %v11068_v10  ;;  %v1206_v53 = vadd.f32 %v1205_v34, %v10138_v37  ;;  %v1253_v30 = vadd.f32 %v1158_v55, %v799_v4  ;;  %v11082_v57 = vsel %vm1157_vm0, %v2224_v12, %v2225_v29  ;;  %v11084_v16 = vpop.f32.mrf.mxu0  ;;  %2940 = vmatmul.mubr.f32.gmra.mxu0 %v10779_v5  ;;  %v14379_v37 = vrot.slane %v10524_v0, 1 }
 0x200   : > { %14377 = vst [vmem:[#allocation74_spill] sm:$0xff] %v11084_v16  ;;  %v1754_v12 = vpop.f32.mrf.mxu1  ;;  %2945 = vmatprep.mubr.f32.mxu0 %v14326_v43  ;;  %v14235_v35 = vrot.slane %v11084_v16, 1 }
 0x201   : > { %v1350_v50 = vsel %vm1302_vm1, %v14379_v37, %v1254_v51  ;;  %v11099_v44 = vadd.f32 %v1349_v28, %v1206_v53  ;;  %v2226_v4 = vrot.slane %v1754_v12, 7  ;;  %v11103_v9 = vpop.f32.mrf.mxu0  ;;  %v4063_v51 = vld [vmem:[%s14210_s7 + $0x120] sm:$0xff] }
 0x202   : > { %v11101_v5 = vadd.f32 %v1350_v50, %v1253_v30  ;;  %14382 = vst [vmem:[#allocation77_spill] sm:$0xff] %v11103_v9  ;;  %v11105_v41 = vpop.f32.mrf.mxu1  ;;  %4257 = vperm.xlu0 %9441, %v4063_v51   ;;  %v4064_v50 = vld [vmem:[%s14210_s7 + $0x128] sm:$0xff] }
 0x203   : > { %14380 = vst [vmem:[#allocation75_spill] sm:$0xff] %v11099_v44  ;;  %v11109_v34 = vsel %vm1157_vm0, %v2225_v29, %v2226_v4  ;;  %v8878_v0 = vpop.f32.mrf.mxu0  ;;  %2946 = vmatmul.mubr.f32.gmra.mxu0 %v10796_v15  ;;  %4262 = vperm.xlu1 %9442, %v4064_v50  }
 0x204   : > { %14381 = vst [vmem:[#allocation76_spill] sm:$0xff] %v11101_v5  ;;  %v1760_v53 = vpop.f32.mrf.mxu1  ;;  %2951 = vmatprep.mubr.f32.mxu0 %v14326_v43  ;;  %v2349_v32 = vrot.slane %v8878_v0, 1 }
 0x205   : > { %v2227_v30 = vrot.slane %v1760_v53, 7  ;;  %v1973_v55 = vpop.f32.mrf.mxu0 }
 0x206   : > { %v11117_v28 = vpop.f32.mrf.mxu1  ;;  %v2348_v29 = vrot.slane %v1973_v55, 1 }
 0x207   : > { %v11121_v37 = vsel %vm1157_vm0, %v2226_v4, %v2227_v30  ;;  %v8881_v15 = vpop.f32.mrf.mxu0  ;;  %2952 = vmatmul.mubr.f32.gmra.mxu0 %v10801_v8 }
 0x208   : > { %v2438_v12 = vsel %vm1302_vm1, %v2348_v29, %v2349_v32  ;;  %v2439_v0 = vsel %vm1302_vm1, %v14235_v35, %v2348_v29  ;;  %v1766_v51 = vpop.f32.mrf.mxu1  ;;  %2957 = vmatprep.mubr.f32.mxu0 %v14326_v43  ;;  %v2351_v5 = vrot.slane %v8881_v15, 1 }
 0x209   : > { %v2443_v4 = vadd.f32 %v2439_v0, %v10591_v48  ;;  %v2444_v8 = vadd.f32 %v2438_v12, %v10612_v46  ;;  %v2228_v53 = vrot.slane %v1766_v51, 7  ;;  %v1983_v55 = vpop.f32.mrf.mxu0  ;;  %v4065_v46 = vld [vmem:[%s14210_s7 + $0x130] sm:$0xff] }
 0x20a   : > { %v11136_v44 = vpop.f32.mrf.mxu1  ;;  %v2350_v10 = vrot.slane %v1983_v55, 1  ;;  %4267 = vperm.xlu0 %9441, %v4065_v46  }
 0x20b   : > { %v11140_v16 = vsel %vm1157_vm0, %v2227_v30, %v2228_v53  ;;  %v8884_v9 = vpop.f32.mrf.mxu0  ;;  %2958 = vmatmul.mubr.f32.gmra.mxu0 %v10818_v22  ;;  %v11144_v29 = vadd.f32 %v2444_v8, %v10173_v54  ;;  %v11147_v48 = vadd.f32 %v2443_v4, %v10166_v3 }
 0x20c   : > { %v2436_v15 = vsel %vm1302_vm1, %v2350_v10, %v2351_v5  ;;  %v2437_v30 = vsel %vm1302_vm1, %v2349_v32, %v2350_v10  ;;  %v1772_v50 = vpop.f32.mrf.mxu1  ;;  %2963 = vmatprep.mubr.f32.mxu0 %v14326_v43  ;;  %v2353_v0 = vrot.slane %v8884_v9, 1 }
 0x20d   : > { %v2445_v54 = vadd.f32 %v2437_v30, %v10633_v1  ;;  %v2446_v22 = vadd.f32 %v2436_v15, %v10655_v6  ;;  %v2229_v3 = vrot.slane %v1772_v50, 7  ;;  %v1993_v12 = vpop.f32.mrf.mxu0  ;;  %v4066_v6 = vld [vmem:[%s14210_s7 + $0x138] sm:$0xff] }
 0x20e   : > { %v11159_v51 = vpop.f32.mrf.mxu1  ;;  %v2352_v4 = vrot.slane %v1993_v12, 1  ;;  %4272 = vperm.xlu1 %9442, %v4066_v6  }
 0x20f   : > { %v11163_v8 = vsel %vm1157_vm0, %v2228_v53, %v2229_v3  ;;  %v8887_v55 = vpop.f32.mrf.mxu0  ;;  %2964 = vmatmul.mubr.f32.gmra.mxu0 %v10823_v13  ;;  %v11167_v10 = vadd.f32 %v2446_v22, %v10197_v24  ;;  %v11170_v1 = vadd.f32 %v2445_v54, %v10185_v52 }
 0x210   : > { %v2434_v9 = vsel %vm1302_vm1, %v2352_v4, %v2353_v0  ;;  %v2435_v32 = vsel %vm1302_vm1, %v2351_v5, %v2352_v4  ;;  %v1778_v53 = vpop.f32.mrf.mxu1  ;;  %2969 = vmatprep.mubr.f32.mxu0 %v14326_v43  ;;  %v2355_v15 = vrot.slane %v8887_v55, 1 }
 0x211   : > { %v2447_v24 = vadd.f32 %v2435_v32, %v10677_v49  ;;  %v2448_v13 = vadd.f32 %v2434_v9, %v10699_v14  ;;  %v2230_v52 = vrot.slane %v1778_v53, 7  ;;  %v2003_v46 = vpop.f32.mrf.mxu0  ;;  %v4067_v14 = vld [vmem:[%s14210_s7 + $0x140] sm:$0xff] }
 0x212   : > { %v11182_v30 = vpop.f32.mrf.mxu1  ;;  %v2354_v50 = vrot.slane %v2003_v46, 1  ;;  %4277 = vperm.xlu0 %9441, %v4067_v14  }
 0x213   : > { %v11186_v54 = vsel %vm1157_vm0, %v2229_v3, %v2230_v52  ;;  %v8890_v22 = vpop.f32.mrf.mxu0  ;;  %2970 = vmatmul.mubr.f32.gmra.mxu0 %v10840_v58  ;;  %v11190_v5 = vadd.f32 %v2448_v13, %v10227_v7  ;;  %v11193_v49 = vadd.f32 %v2447_v24, %v10211_v59 }
 0x214   : > { %v2432_v12 = vsel %vm1302_vm1, %v2354_v50, %v2355_v15  ;;  %v2433_v3 = vsel %vm1302_vm1, %v2353_v0, %v2354_v50  ;;  %v1784_v4 = vpop.f32.mrf.mxu1  ;;  %2975 = vmatprep.mubr.f32.mxu0 %v14326_v43  ;;  %v2357_v6 = vrot.slane %v8890_v22, 1  ;;  %v14384_v50 = vld [vmem:[#allocation42_spill] sm:$0xff] }
 0x215   : > { %v2449_v7 = vadd.f32 %v2433_v3, %v10721_v2  ;;  %v2450_v58 = vadd.f32 %v2432_v12, %v10743_v39  ;;  %v2231_v59 = vrot.slane %v1784_v4, 7  ;;  %v2013_v55 = vpop.f32.mrf.mxu0  ;;  %v4068_v39 = vld [vmem:[%s14210_s7 + $0x148] sm:$0xff] }
 0x216   : > { %v11205_v9 = vpop.f32.mrf.mxu1  ;;  %v2356_v32 = vrot.slane %v2013_v55, 1  ;;  %4282 = vperm.xlu1 %9442, %v4068_v39  }
 0x217   : > { %v11209_v53 = vsel %vm1157_vm0, %v2230_v52, %v2231_v59  ;;  %v8893_v24 = vpop.f32.mrf.mxu0  ;;  %2976 = vmatmul.mubr.f32.gmra.mxu0 %v10845_v25  ;;  %v11213_v0 = vadd.f32 %v2450_v58, %v10260_v62  ;;  %v11216_v2 = vadd.f32 %v2449_v7, %v10243_v40  ;;  %v14383_v25 = vld [vmem:[#allocation40_spill] sm:$0xff] }
 0x218   : > { %v2430_v13 = vsel %vm1302_vm1, %v2356_v32, %v2357_v6  ;;  %v2431_v52 = vsel %vm1302_vm1, %v2355_v15, %v2356_v32  ;;  %v1790_v46 = vpop.f32.mrf.mxu1  ;;  %2981 = vmatprep.mubr.f32.mxu0 %v14326_v43  ;;  %v2359_v12 = vrot.slane %v8893_v24, 1  ;;  %v14385_v15 = vld [vmem:[#allocation15_spill] sm:$0xff]  ;;  %v14387_v32 = vld [vmem:[#allocation14_spill] sm:$0xff]  ;;  %v4069_v24 = vld [vmem:[%s14210_s7 + $0x150] sm:$0xff] }
 0x219   : > { %v2451_v62 = vadd.f32 %v2431_v52, %v14383_v25  ;;  %v2452_v22 = vadd.f32 %v2430_v13, %v14384_v50  ;;  %v2232_v40 = vrot.slane %v1790_v46, 7  ;;  %v2023_v14 = vpop.f32.mrf.mxu0  ;;  %4287 = vperm.xlu0 %9441, %v4069_v24   ;;  %v14390_v25 = vld [vmem:[#allocation46_spill] sm:$0xff]  ;;  %v14393_v24 = vld [vmem:[#allocation16_spill] sm:$0xff] }
 0x21a   : > { %v11228_v3 = vpop.f32.mrf.mxu1  ;;  %v2358_v4 = vrot.slane %v2023_v14, 1 }
 0x21b   : > { %v11232_v7 = vsel %vm1157_vm0, %v2231_v59, %v2232_v40  ;;  %v8896_v58 = vpop.f32.mrf.mxu0  ;;  %2982 = vmatmul.mubr.f32.gmra.mxu0 %v10862_v11  ;;  %v11236_v55 = vadd.f32 %v2452_v22, %v14385_v15  ;;  %v11239_v39 = vadd.f32 %v2451_v62, %v14387_v32  ;;  %v14389_v11 = vld [vmem:[#allocation44_spill] sm:$0xff] }
 0x21c   : > { %v2428_v13 = vsel %vm1302_vm1, %v2358_v4, %v2359_v12  ;;  %v2429_v59 = vsel %vm1302_vm1, %v2357_v6, %v2358_v4  ;;  %v1796_v52 = vpop.f32.mrf.mxu1  ;;  %2987 = vmatprep.mubr.f32.mxu0 %v14326_v43  ;;  %v2361_v14 = vrot.slane %v8896_v58, 1  ;;  %v14391_v6 = vld [vmem:[#allocation17_spill] sm:$0xff] }
 0x21d   : > { %14386 = vst [vmem:[#allocation40_spill] sm:$0xff] %v11236_v55  ;;  %14388 = vst [vmem:[#allocation42_spill] sm:$0xff] %v11239_v39  ;;  %v2453_v46 = vadd.f32 %v2429_v59, %v14389_v11  ;;  %v2454_v50 = vadd.f32 %v2428_v13, %v14390_v25  ;;  %v2233_v62 = vrot.slane %v1796_v52, 7  ;;  %v2033_v22 = vpop.f32.mrf.mxu0  ;;  %v4070_v58 = vld [vmem:[%s14210_s7 + $0x158] sm:$0xff]  ;;  %v14395_v11 = vld [vmem:[#allocation48_spill] sm:$0xff] }
 0x21e   : > { %v11251_v15 = vpop.f32.mrf.mxu1  ;;  %v2360_v32 = vrot.slane %v2033_v22, 1  ;;  %4292 = vperm.xlu1 %9442, %v4070_v58   ;;  %v14396_v25 = vld [vmem:[#allocation50_spill] sm:$0xff]  ;;  %v14397_v58 = vld [vmem:[#allocation19_spill] sm:$0xff] }
 0x21f   : > { %v11255_v35 = vsel %vm1157_vm0, %v2232_v40, %v2233_v62  ;;  %v8899_v55 = vpop.f32.mrf.mxu0  ;;  %2988 = vmatmul.mubr.f32.gmra.mxu0 %v10867_v31  ;;  %v11259_v4 = vadd.f32 %v2454_v50, %v14391_v6  ;;  %v11262_v59 = vadd.f32 %v2453_v46, %v14393_v24  ;;  %v2314_v31 = vadd.f32 %v10917_v17, %v10910_v18  ;;  %v14399_v18 = vld [vmem:[#allocation18_spill] sm:$0xff] }
 0x220   : > { %v2426_v13 = vsel %vm1302_vm1, %v2360_v32, %v2361_v14  ;;  %v2427_v40 = vsel %vm1302_vm1, %v2359_v12, %v2360_v32  ;;  %v1802_v52 = vpop.f32.mrf.mxu1  ;;  %2993 = vmatprep.mubr.f32.mxu0 %v14326_v43  ;;  %v2363_v24 = vrot.slane %v8899_v55, 1  ;;  %v4071_v55 = vld [vmem:[%s14210_s7 + $0x160] sm:$0xff] }
 0x221   : > { %14392 = vst [vmem:[#allocation15_spill] sm:$0xff] %v11259_v4  ;;  %14394 = vst [vmem:[#allocation14_spill] sm:$0xff] %v11262_v59  ;;  %v2455_v46 = vadd.f32 %v2427_v40, %v14395_v11  ;;  %v2456_v50 = vadd.f32 %v2426_v13, %v14396_v25  ;;  %v2234_v22 = vrot.slane %v1802_v52, 7  ;;  %v2043_v6 = vpop.f32.mrf.mxu0  ;;  %v2315_v13 = vadd.f32 %v10941_v20, %v10934_v27  ;;  %v14400_v11 = vld [vmem:[#allocation53_spill] sm:$0xff] }
 0x222   : > { %v11276_v4 = vpop.f32.mrf.mxu1  ;;  %v2362_v59 = vrot.slane %v2043_v6, 1  ;;  %4297 = vperm.xlu0 %9441, %v4071_v55   ;;  %v2316_v52 = vadd.f32 %v10965_v60, %v10958_v33  ;;  %v14402_v55 = vld [vmem:[#allocation21_spill] sm:$0xff]  ;;  %v4072_v33 = vld [vmem:[%s14210_s7 + $0x168] sm:$0xff]  ;;  %v14403_v60 = vld [vmem:[#allocation20_spill] sm:$0xff] }
 0x223   : > { %v11280_v12 = vsel %vm1157_vm0, %v2233_v62, %v2234_v22  ;;  %v8902_v32 = vpop.f32.mrf.mxu0  ;;  %2994 = vmatmul.mubr.f32.gmra.mxu0 %v10884_v63  ;;  %v11284_v39 = vadd.f32 %v2456_v50, %v14397_v58  ;;  %v11287_v17 = vadd.f32 %v2455_v46, %v14399_v18  ;;  %4302 = vperm.xlu1 %9442, %v4072_v33  }
 0x224   : > { %v2424_v62 = vsel %vm1302_vm1, %v2362_v59, %v2363_v24  ;;  %v2425_v40 = vsel %vm1302_vm1, %v2361_v14, %v2362_v59  ;;  %v1808_v63 = vpop.f32.mrf.mxu1  ;;  %2999 = vmatprep.mubr.f32.mxu0 %v14326_v43  ;;  %v2365_v58 = vrot.slane %v8902_v32, 1  ;;  %v14401_v59 = vld [vmem:[#allocation52_spill] sm:$0xff]  ;;  %v2317_v32 = vadd.f32 %v10989_v56, %v10982_v42 }
 0x225   : > { %14398 = vst [vmem:[#allocation44_spill] sm:$0xff] %v11284_v39  ;;  %v2457_v46 = vadd.f32 %v2425_v40, %v14400_v11  ;;  %v2458_v25 = vadd.f32 %v2424_v62, %v2314_v31  ;;  %v2235_v50 = vrot.slane %v1808_v63, 7  ;;  %v2053_v6 = vpop.f32.mrf.mxu0  ;;  %v2318_v63 = vadd.f32 %v11013_v21, %v11006_v26  ;;  %v4073_v26 = vld [vmem:[%s14210_s7 + $0x170] sm:$0xff]  ;;  %v14406_v21 = vld [vmem:[#allocation22_spill] sm:$0xff] }
 0x226   : > { %v11302_v27 = vpop.f32.mrf.mxu1  ;;  %v2364_v20 = vrot.slane %v2053_v6, 1  ;;  %4307 = vperm.xlu0 %9441, %v4073_v26   ;;  %v4074_v26 = vld [vmem:[%s14210_s7 + $0x178] sm:$0xff] }
 0x227   : > { %v11306_v18 = vsel %vm1157_vm0, %v2234_v22, %v2235_v50  ;;  %v8905_v14 = vpop.f32.mrf.mxu0  ;;  %3000 = vmatmul.mubr.f32.gmra.mxu0 %v14401_v59  ;;  %v11310_v39 = vadd.f32 %v2458_v25, %v14402_v55  ;;  %v11316_v31 = vadd.f32 %v2457_v46, %v14403_v60  ;;  %v14405_v60 = vld [vmem:[#allocation23_spill] sm:$0xff]  ;;  %4312 = vperm.xlu1 %9442, %v4074_v26  }
 0x228   : > { %v2422_v22 = vsel %vm1302_vm1, %v2364_v20, %v2365_v58  ;;  %v2423_v62 = vsel %vm1302_vm1, %v2363_v24, %v2364_v20  ;;  %v1814_v40 = vpop.f32.mrf.mxu1  ;;  %3005 = vmatprep.mubr.f32.mxu0 %v14326_v43  ;;  %v2367_v59 = vrot.slane %v8905_v14, 1  ;;  %v14404_v20 = vld [vmem:[#allocation55_spill] sm:$0xff] }
 0x229   : > { %v2459_v11 = vadd.f32 %v2423_v62, %v2315_v13  ;;  %v2460_v25 = vadd.f32 %v2422_v22, %v2316_v52  ;;  %v2236_v46 = vrot.slane %v1814_v40, 7  ;;  %v2063_v6 = vpop.f32.mrf.mxu0  ;;  %v2319_v52 = vadd.f32 %v11037_v45, %v11030_v47 }
 0x22a   : > { %v11327_v55 = vpop.f32.mrf.mxu1  ;;  %v2366_v42 = vrot.slane %v2063_v6, 1  ;;  %v2320_v62 = vadd.f32 %v11058_v23, %v11054_v19  ;;  %v14408_v19 = vld [vmem:[#allocation25_spill] sm:$0xff] }
 0x22b   : > { %v11331_v56 = vsel %vm1157_vm0, %v2235_v50, %v2236_v46  ;;  %v8908_v24 = vpop.f32.mrf.mxu0  ;;  %3006 = vmatmul.mubr.f32.gmra.mxu0 %v14404_v20  ;;  %v11335_v33 = vadd.f32 %v2460_v25, %v14405_v60  ;;  %v11341_v13 = vadd.f32 %v2459_v11, %v14406_v21 }
 0x22c   : > { %v2420_v50 = vsel %vm1302_vm1, %v2366_v42, %v2367_v59  ;;  %v2421_v14 = vsel %vm1302_vm1, %v2365_v58, %v2366_v42  ;;  %v1820_v22 = vpop.f32.mrf.mxu1  ;;  %3011 = vmatprep.mubr.f32.mxu0 %v14326_v43  ;;  %v2369_v20 = vrot.slane %v8908_v24, 1  ;;  %v14407_v42 = vld [vmem:[#allocation56_spill] sm:$0xff]  ;;  %v2321_v24 = vadd.f32 %v11082_v57, %v11077_v61 }
 0x22d   : > { %v2461_v40 = vadd.f32 %v2421_v14, %v2317_v32  ;;  %v2462_v25 = vadd.f32 %v2420_v50, %v2318_v63  ;;  %v2237_v11 = vrot.slane %v1820_v22, 7  ;;  %v2073_v6 = vpop.f32.mrf.mxu0  ;;  %v14410_v32 = vld [vmem:[#allocation24_spill] sm:$0xff]  ;;  %v2322_v14 = vadd.f32 %v11109_v34, %v11105_v41 }
 0x22e   : > { %v11352_v60 = vpop.f32.mrf.mxu1  ;;  %v2368_v47 = vrot.slane %v2073_v6, 1  ;;  %v2323_v34 = vadd.f32 %v11121_v37, %v11117_v28 }
 0x22f   : > { %v11356_v45 = vsel %vm1157_vm0, %v2236_v46, %v2237_v11  ;;  %v8911_v58 = vpop.f32.mrf.mxu0  ;;  %3012 = vmatmul.mubr.f32.gmra.mxu0 %v14407_v42  ;;  %v11363_v23 = vadd.f32 %v2462_v25, %v14408_v19  ;;  %v11366_v63 = vadd.f32 %v2461_v40, %v14410_v32  ;;  %v14412_v32 = vld [vmem:[#allocation27_spill] sm:$0xff] }
 0x230   : > { %v2418_v46 = vsel %vm1302_vm1, %v2368_v47, %v2369_v20  ;;  %v2419_v21 = vsel %vm1302_vm1, %v2367_v59, %v2368_v47  ;;  %v1826_v50 = vpop.f32.mrf.mxu1  ;;  %3017 = vmatprep.mubr.f32.mxu0 %v14326_v43  ;;  %v2371_v42 = vrot.slane %v8911_v58, 1  ;;  %v14411_v47 = vld [vmem:[#allocation58_spill] sm:$0xff]  ;;  %v2324_v58 = vadd.f32 %v11140_v16, %v11136_v44 }
 0x231   : > { %14409 = vst [vmem:[#allocation46_spill] sm:$0xff] %v11363_v23  ;;  %v2463_v22 = vadd.f32 %v2419_v21, %v2319_v52  ;;  %v2464_v25 = vadd.f32 %v2418_v46, %v2320_v62  ;;  %v2238_v40 = vrot.slane %v1826_v50, 7  ;;  %v2083_v6 = vpop.f32.mrf.mxu0  ;;  %v14413_v23 = vld [vmem:[#allocation26_spill] sm:$0xff]  ;;  %v2325_v44 = vadd.f32 %v11163_v8, %v11159_v51 }
 0x232   : > { %v11377_v19 = vpop.f32.mrf.mxu1  ;;  %v2370_v61 = vrot.slane %v2083_v6, 1 }
 0x233   : > { %v11381_v57 = vsel %vm1157_vm0, %v2237_v11, %v2238_v40  ;;  %v8914_v59 = vpop.f32.mrf.mxu0  ;;  %3018 = vmatmul.mubr.f32.gmra.mxu0 %v14411_v47  ;;  %v11385_v26 = vadd.f32 %v2464_v25, %v14412_v32  ;;  %v11388_v41 = vadd.f32 %v2463_v22, %v14413_v23  ;;  %v14416_v32 = vld [vmem:[#allocation29_spill] sm:$0xff] }
 0x234   : > { %v2416_v52 = vsel %vm1302_vm1, %v2370_v61, %v2371_v42  ;;  %v2417_v62 = vsel %vm1302_vm1, %v2369_v20, %v2370_v61  ;;  %v1832_v11 = vpop.f32.mrf.mxu1  ;;  %3023 = vmatprep.mubr.f32.mxu0 %v14326_v43  ;;  %v2373_v22 = vrot.slane %v8914_v59, 1  ;;  %v14414_v20 = vld [vmem:[#allocation59_spill] sm:$0xff]  ;;  %v2326_v59 = vadd.f32 %v11186_v54, %v11182_v30 }
 0x235   : > { %v2465_v46 = vadd.f32 %v2417_v62, %v2321_v24  ;;  %v2466_v21 = vadd.f32 %v2416_v52, %v2322_v14  ;;  %v2239_v50 = vrot.slane %v1832_v11, 7  ;;  %v2093_v23 = vpop.f32.mrf.mxu0  ;;  %v14415_v61 = vld [vmem:[#allocation31_spill] sm:$0xff]  ;;  %v2327_v54 = vadd.f32 %v11209_v53, %v11205_v9 }
 0x236   : > { %v11399_v25 = vpop.f32.mrf.mxu1  ;;  %v2372_v28 = vrot.slane %v2093_v23, 1 }
 0x237   : > { %v11403_v37 = vsel %vm1157_vm0, %v2238_v40, %v2239_v50  ;;  %v8917_v6 = vpop.f32.mrf.mxu0  ;;  %3024 = vmatmul.mubr.f32.gmra.mxu0 %v14414_v20  ;;  %v11407_v47 = vadd.f32 %v2466_v21, %v14415_v61  ;;  %v11410_v16 = vadd.f32 %v2465_v46, %v14416_v32  ;;  %v14419_v32 = vld [vmem:[#allocation32_spill] sm:$0xff] }
 0x238   : > { %v2414_v24 = vsel %vm1302_vm1, %v2372_v28, %v2373_v22  ;;  %v2415_v14 = vsel %vm1302_vm1, %v2371_v42, %v2372_v28  ;;  %v1838_v40 = vpop.f32.mrf.mxu1  ;;  %3029 = vmatprep.mubr.f32.mxu0 %v14326_v43  ;;  %v2375_v21 = vrot.slane %v8917_v6, 1  ;;  %v14417_v42 = vld [vmem:[#allocation61_spill] sm:$0xff]  ;;  %v2328_v6 = vadd.f32 %v11232_v7, %v11228_v3 }
 0x239   : > { %v2467_v52 = vadd.f32 %v2415_v14, %v2323_v34  ;;  %v2468_v62 = vadd.f32 %v2414_v24, %v2324_v58  ;;  %v2240_v11 = vrot.slane %v1838_v40, 7  ;;  %v2103_v46 = vpop.f32.mrf.mxu0  ;;  %v14418_v28 = vld [vmem:[#allocation33_spill] sm:$0xff]  ;;  %v2329_v7 = vadd.f32 %v11255_v35, %v11251_v15 }
 0x23a   : > { %v11421_v23 = vpop.f32.mrf.mxu1  ;;  %v2374_v51 = vrot.slane %v2103_v46, 1 }
 0x23b   : > { %v11425_v8 = vsel %vm1157_vm0, %v2239_v50, %v2240_v11  ;;  %v8920_v20 = vpop.f32.mrf.mxu0  ;;  %3030 = vmatmul.mubr.f32.gmra.mxu0 %v14417_v42  ;;  %v11429_v61 = vadd.f32 %v2468_v62, %v14418_v28  ;;  %v11432_v30 = vadd.f32 %v2467_v52, %v14419_v32  ;;  %v14422_v32 = vld [vmem:[#allocation34_spill] sm:$0xff] }
 0x23c   : > { %v2412_v34 = vsel %vm1302_vm1, %v2374_v51, %v2375_v21  ;;  %v2413_v58 = vsel %vm1302_vm1, %v2373_v22, %v2374_v51  ;;  %v1844_v50 = vpop.f32.mrf.mxu1  ;;  %3035 = vmatprep.mubr.f32.mxu0 %v14326_v43  ;;  %v2377_v62 = vrot.slane %v8920_v20, 1  ;;  %v14420_v22 = vld [vmem:[#allocation62_spill] sm:$0xff]  ;;  %v14421_v51 = vld [vmem:[#allocation35_spill] sm:$0xff]  ;;  %v2330_v20 = vadd.f32 %v11280_v12, %v11276_v4 }
 0x23d   : > { %v2469_v24 = vadd.f32 %v2413_v58, %v2325_v44  ;;  %v2470_v14 = vadd.f32 %v2412_v34, %v2326_v59  ;;  %v2241_v40 = vrot.slane %v1844_v50, 7  ;;  %v2113_v52 = vpop.f32.mrf.mxu0  ;;  %v2331_v12 = vadd.f32 %v11306_v18, %v11302_v27 }
 0x23e   : > { %v11443_v46 = vpop.f32.mrf.mxu1  ;;  %v2376_v9 = vrot.slane %v2113_v52, 1 }
 0x23f   : > { %v11447_v53 = vsel %vm1157_vm0, %v2240_v11, %v2241_v40  ;;  %v8923_v42 = vpop.f32.mrf.mxu0  ;;  %3036 = vmatmul.mubr.f32.gmra.mxu0 %v14420_v22  ;;  %v11451_v28 = vadd.f32 %v2470_v14, %v14421_v51  ;;  %v11454_v3 = vadd.f32 %v2469_v24, %v14422_v32  ;;  %v14426_v32 = vld [vmem:[#allocation36_spill] sm:$0xff] }
 0x240   : > { %v2410_v44 = vsel %vm1302_vm1, %v2376_v9, %v2377_v62  ;;  %v2411_v59 = vsel %vm1302_vm1, %v2375_v21, %v2376_v9  ;;  %v1850_v11 = vpop.f32.mrf.mxu1  ;;  %3041 = vmatprep.mubr.f32.mxu0 %v14326_v43  ;;  %v2379_v14 = vrot.slane %v8923_v42, 1  ;;  %v14423_v21 = vld [vmem:[#allocation64_spill] sm:$0xff]  ;;  %v14424_v9 = vld [vmem:[#allocation37_spill] sm:$0xff]  ;;  %v2332_v42 = vadd.f32 %v11331_v56, %v11327_v55  ;;  %v14429_v56 = vld [vmem:[#allocation38_spill] sm:$0xff] }
 0x241   : > { %v2471_v34 = vadd.f32 %v2411_v59, %v2327_v54  ;;  %v2472_v58 = vadd.f32 %v2410_v44, %v2328_v6  ;;  %v2242_v50 = vrot.slane %v1850_v11, 7  ;;  %v2123_v24 = vpop.f32.mrf.mxu0 }
 0x242   : > { %v11465_v52 = vpop.f32.mrf.mxu1  ;;  %v2378_v35 = vrot.slane %v2123_v24, 1 }
 0x243   : > { %v11469_v15 = vsel %vm1157_vm0, %v2241_v40, %v2242_v50  ;;  %v8926_v22 = vpop.f32.mrf.mxu0  ;;  %3042 = vmatmul.mubr.f32.gmra.mxu0 %v14423_v21  ;;  %v11473_v51 = vadd.f32 %v2472_v58, %v14424_v9  ;;  %v11476_v4 = vadd.f32 %v2471_v34, %v14426_v32  ;;  %v4512_v9 = vld [vmem:[#allocation9 + $0x178] sm:$0xff]  ;;  %v4510_v32 = vld [vmem:[#allocation9 + $0x168] sm:$0xff] }
 0x244   : > { %v2408_v54 = vsel %vm1302_vm1, %v2378_v35, %v2379_v14  ;;  %v2409_v6 = vsel %vm1302_vm1, %v2377_v62, %v2378_v35  ;;  %v1856_v40 = vpop.f32.mrf.mxu1  ;;  %3047 = vmatprep.mubr.f32.mxu0 %v14326_v43  ;;  %v2381_v58 = vrot.slane %v8926_v22, 1  ;;  %v14427_v62 = vld [vmem:[#allocation65_spill] sm:$0xff]  ;;  %v4511_v35 = vld [vmem:[#allocation9 + $0x170] sm:$0xff]  ;;  %9049 = vmatprep.subr.mxu0 %v4512_v9 }
 0x245   : > { %14425 = vst [vmem:[#allocation17_spill] sm:$0xff] %v11473_v51  ;;  %v2473_v44 = vadd.f32 %v2409_v6, %v2329_v7  ;;  %v2474_v59 = vadd.f32 %v2408_v54, %v2330_v20  ;;  %v2243_v11 = vrot.slane %v1856_v40, 7  ;;  %v2133_v34 = vpop.f32.mrf.mxu0  ;;  %v14428_v51 = vld [vmem:[#allocation39_spill] sm:$0xff]  ;;  %v2333_v20 = vadd.f32 %v11356_v45, %v11352_v60  ;;  %4513 = vmatprep.subr.mxu1 %v4511_v35  ;;  %v4508_v60 = vld [vmem:[#allocation9 + $0x158] sm:$0xff]  ;;  %v4507_v45 = vld [vmem:[#allocation9 + $0x150] sm:$0xff] }
 0x246   : > { %v11487_v24 = vpop.f32.mrf.mxu1  ;;  %v2380_v27 = vrot.slane %v2133_v34, 1  ;;  %4514 = vmatpush1.msra.mxu1 %v4510_v32  ;;  %9050 = vmatpush3.msra.mxu0 %v4512_v9  ;;  %v14430_v35 = vld [vmem:[#allocation67_spill] sm:$0xff] }
 0x247   : > { %v11491_v18 = vsel %vm1157_vm0, %v2242_v50, %v2243_v11  ;;  %v8929_v21 = vpop.f32.mrf.mxu0  ;;  %3048 = vmatmul.mubr.f32.gmra.mxu0 %v14427_v62  ;;  %v11495_v55 = vadd.f32 %v2474_v59, %v14428_v51  ;;  %v11498_v7 = vadd.f32 %v2473_v44, %v14429_v56  ;;  %v2334_v51 = vadd.f32 %v11381_v57, %v11377_v19  ;;  %v14431_v19 = vld [vmem:[#allocation43_spill] sm:$0xff] }
 0x248   : > { %v2406_v22 = vsel %vm1302_vm1, %v2380_v27, %v2381_v58  ;;  %v2407_v50 = vsel %vm1302_vm1, %v2379_v14, %v2380_v27  ;;  %v1862_v54 = vpop.f32.mrf.mxu1  ;;  %3053 = vmatprep.mubr.f32.mxu0 %v14326_v43  ;;  %v2383_v34 = vrot.slane %v8929_v21, 1  ;;  %4515 = vmatprep.subr.mxu1 %v4508_v60  ;;  %v2335_v21 = vadd.f32 %v11403_v37, %v11399_v25 }
 0x249   : > { %v2475_v6 = vadd.f32 %v2407_v50, %v2331_v12  ;;  %v2476_v40 = vadd.f32 %v2406_v22, %v2332_v42  ;;  %v2244_v44 = vrot.slane %v1862_v54, 7  ;;  %v2143_v59 = vpop.f32.mrf.mxu0  ;;  %4516 = vmatpush1.msra.mxu1 %v4507_v45  ;;  %v14432_v12 = vld [vmem:[#allocation41_spill] sm:$0xff]  ;;  %v2336_v22 = vadd.f32 %v11425_v8, %v11421_v23 }
 0x24a   : > { %v1864_v62 = vpop.f32.mrf.mxu1  ;;  %v2382_v56 = vrot.slane %v2143_v59, 1  ;;  %v2337_v23 = vadd.f32 %v11447_v53, %v11443_v46 }
 0x24b   : > { %v2255_v14 = vsel %vm1157_vm0, %v2243_v11, %v2244_v44  ;;  %v8932_v27 = vpop.f32.mrf.mxu0  ;;  %3054 = vmatmul.mubr.f32.gmra.mxu0 %v14430_v35  ;;  %v11513_v57 = vadd.f32 %v2476_v40, %v14431_v19  ;;  %v11516_v42 = vadd.f32 %v2475_v6, %v14432_v12  ;;  %v14433_v35 = vld [vmem:[#allocation68_spill] sm:$0xff]  ;;  %v14435_v19 = vld [vmem:[#allocation45_spill] sm:$0xff] }
 0x24c   : > { %v2404_v9 = vsel %vm1302_vm1, %v2382_v56, %v2383_v34  ;;  %v2405_v32 = vsel %vm1302_vm1, %v2381_v58, %v2382_v56  ;;  %v1868_v11 = vpop.f32.mrf.mxu1  ;;  %3059 = vmatprep.mubr.f32.mxu0 %v14326_v43  ;;  %v2385_v59 = vrot.slane %v8932_v27, 1  ;;  %v14434_v58 = vld [vmem:[#allocation47_spill] sm:$0xff] }
 0x24d   : > { %v2477_v50 = vadd.f32 %v2405_v32, %v2333_v20  ;;  %v2478_v54 = vadd.f32 %v2404_v9, %v2334_v51  ;;  %v2245_v40 = vrot.slane %v1868_v11, 7  ;;  %v2153_v6 = vpop.f32.mrf.mxu0 }
 0x24e   : > { %v1870_v60 = vpop.f32.mrf.mxu1  ;;  %v2384_v45 = vrot.slane %v2153_v6, 1  ;;  %v4504_v6 = vld [vmem:[#allocation9 + $0x138] sm:$0xff] }
 0x24f   : > { %v2254_v25 = vsel %vm1157_vm0, %v2244_v44, %v2245_v40  ;;  %v8935_v37 = vpop.f32.mrf.mxu0  ;;  %3060 = vmatmul.mubr.f32.gmra.mxu0 %v14433_v35  ;;  %v11531_v56 = vadd.f32 %v2478_v54, %v14434_v58  ;;  %v11534_v12 = vadd.f32 %v2477_v50, %v14435_v19  ;;  %v2338_v44 = vadd.f32 %v11469_v15, %v11465_v52  ;;  %v4505_v50 = vld [vmem:[#allocation9 + $0x140] sm:$0xff]  ;;  %v14437_v52 = vld [vmem:[#allocation51_spill] sm:$0xff] }
 0x250   : > { %v2402_v8 = vsel %vm1302_vm1, %v2384_v45, %v2385_v59  ;;  %v2403_v20 = vsel %vm1302_vm1, %v2383_v34, %v2384_v45  ;;  %v1874_v51 = vpop.f32.mrf.mxu1  ;;  %3065 = vmatprep.mubr.f32.mxu0 %v14326_v43  ;;  %v4509_v54 = vld [vmem:[#allocation9 + $0x160] sm:$0xff]  ;;  %v2387_v46 = vrot.slane %v8935_v37, 1  ;;  %4517 = vmatprep.subr.mxu1 %v4505_v50  ;;  %v2339_v37 = vadd.f32 %v11491_v18, %v11487_v24 }
 0x251   : > { %v2479_v27 = vadd.f32 %v2403_v20, %v2335_v21  ;;  %v2480_v9 = vadd.f32 %v2402_v8, %v2336_v22  ;;  %v2246_v32 = vrot.slane %v1874_v51, 7  ;;  %v2163_v11 = vpop.f32.mrf.mxu0  ;;  %9051 = vmatprep.subr.mxu0 %v4509_v54  ;;  %v14436_v58 = vld [vmem:[#allocation70_spill] sm:$0xff]  ;;  %4518 = vmatpush1.msra.mxu1 %v4504_v6  ;;  %v14438_v21 = vld [vmem:[#allocation49_spill] sm:$0xff]  ;;  %v2340_v20 = vadd.f32 %v2255_v14, %v1864_v62 }
 0x252   : > { %v1876_v53 = vpop.f32.mrf.mxu1  ;;  %v2386_v35 = vrot.slane %v2163_v11, 1  ;;  %9052 = vmatpush3.msra.mxu0 %v4509_v54  ;;  %v14441_v54 = vld [vmem:[#allocation54_spill] sm:$0xff]  ;;  %v2341_v14 = vadd.f32 %v2254_v25, %v1870_v60 }
 0x253   : > { %v2253_v34 = vsel %vm1157_vm0, %v2245_v40, %v2246_v32  ;;  %v8938_v45 = vpop.f32.mrf.mxu0  ;;  %3066 = vmatmul.mubr.f32.gmra.mxu0 %v14436_v58  ;;  %v11549_v15 = vadd.f32 %v2480_v9, %v14437_v52  ;;  %v11552_v22 = vadd.f32 %v2479_v27, %v14438_v21  ;;  %v4502_v52 = vld [vmem:[#allocation9 + $0x128] sm:$0xff] }
 0x254   : > { %v2400_v19 = vsel %vm1302_vm1, %v2386_v35, %v2387_v46  ;;  %v2401_v8 = vsel %vm1302_vm1, %v2385_v59, %v2386_v35  ;;  %v1880_v40 = vpop.f32.mrf.mxu1  ;;  %3071 = vmatprep.mubr.f32.mxu0 %v14326_v43  ;;  %v2389_v27 = vrot.slane %v8938_v45, 1  ;;  %v4501_v59 = vld [vmem:[#allocation9 + $0x120] sm:$0xff]  ;;  %v14439_v35 = vld [vmem:[#allocation57_spill] sm:$0xff]  ;;  %4519 = vmatprep.subr.mxu1 %v4502_v52 }
 0x255   : > { %v2481_v51 = vadd.f32 %v2401_v8, %v2337_v23  ;;  %v2482_v9 = vadd.f32 %v2400_v19, %v2338_v44  ;;  %v2247_v11 = vrot.slane %v1880_v40, 7  ;;  %v2173_v50 = vpop.f32.mrf.mxu0  ;;  %4520 = vmatpush1.msra.mxu1 %v4501_v59 }
 0x256   : > { %v1882_v6 = vpop.f32.mrf.mxu1  ;;  %v2388_v58 = vrot.slane %v2173_v50, 1 }
 0x257   : > { %v2252_v24 = vsel %vm1157_vm0, %v2246_v32, %v2247_v11  ;;  %v8941_v18 = vpop.f32.mrf.mxu0  ;;  %3072 = vmatmul.mubr.f32.gmra.mxu0 %v11033_v38  ;;  %v11565_v21 = vadd.f32 %v2482_v9, %v14439_v35  ;;  %v11568_v62 = vadd.f32 %v2481_v51, %v14441_v54  ;;  %v2342_v38 = vadd.f32 %v2253_v34, %v1876_v53  ;;  %v14442_v9 = vld [vmem:[#allocation77_spill] sm:$0xff]  ;;  %v14445_v53 = vld [vmem:[#allocation60_spill] sm:$0xff] }
 0x258   : > { %v2398_v23 = vsel %vm1302_vm1, %v2388_v58, %v2389_v27  ;;  %v2399_v44 = vsel %vm1302_vm1, %v2387_v46, %v2388_v58  ;;  %v1886_v45 = vpop.f32.mrf.mxu1  ;;  %3077 = vmatprep.mubr.f32.mxu0 %v14326_v43  ;;  %v2346_v51 = vrot.slane %v14442_v9, 1  ;;  %v2391_v50 = vrot.slane %v8941_v18, 1  ;;  %v14443_v46 = vld [vmem:[#allocation72_spill] sm:$0xff]  ;;  %v14444_v58 = vld [vmem:[#allocation63_spill] sm:$0xff] }
 0x259   : > { %14440 = vst [vmem:[#allocation16_spill] sm:$0xff] %v11565_v21  ;;  %v2483_v32 = vadd.f32 %v2399_v44, %v2339_v37  ;;  %v2484_v19 = vadd.f32 %v2398_v23, %v2340_v20  ;;  %v2248_v8 = vrot.slane %v1886_v45, 7  ;;  %v2183_v40 = vpop.f32.mrf.mxu0  ;;  %v2343_v37 = vadd.f32 %v2252_v24, %v1882_v6 }
 0x25a   : > { %v1888_v60 = vpop.f32.mrf.mxu1  ;;  %v2390_v25 = vrot.slane %v2183_v40, 1  ;;  %v14446_v40 = vld [vmem:[#allocation74_spill] sm:$0xff] }
 0x25b   : > { %v2251_v35 = vsel %vm1157_vm0, %v2247_v11, %v2248_v8  ;;  %v8944_v54 = vpop.f32.mrf.mxu0  ;;  %3078 = vmatmul.mubr.f32.gmra.mxu0 %v14443_v46  ;;  %v11580_v21 = vadd.f32 %v2484_v19, %v14444_v58  ;;  %v11583_v34 = vadd.f32 %v2483_v32, %v14445_v53  ;;  %v14447_v9 = vrot.slane %v14446_v40, 1  ;;  %v4498_v46 = vld [vmem:[#allocation9 + $0x108] sm:$0xff]  ;;  %v14450_v58 = vld [vmem:[#allocation69_spill] sm:$0xff] }
 0x25c   : > { %v2344_v20 = vadd.f32 %v2251_v35, %v1888_v60  ;;  %v2396_v52 = vsel %vm1302_vm1, %v2390_v25, %v2391_v50  ;;  %v2397_v18 = vsel %vm1302_vm1, %v2389_v27, %v2390_v25  ;;  %v1892_v59 = vpop.f32.mrf.mxu1  ;;  %9081 = vmatprep.mubr.f32.mxu0 %v14326_v43  ;;  %v2393_v45 = vrot.slane %v8944_v54, 1  ;;  %v14448_v60 = vld [vmem:[#allocation28_spill] sm:$0xff]  ;;  %v4506_v54 = vld [vmem:[#allocation9 + $0x148] sm:$0xff] }
 0x25d   : > { %v2485_v11 = vadd.f32 %v2397_v18, %v2341_v14  ;;  %v2486_v23 = vadd.f32 %v2396_v52, %v2342_v38  ;;  %v2249_v44 = vrot.slane %v1892_v59, 7  ;;  %v2193_v19 = vpop.f32.mrf.mxu0  ;;  %v2440_v6 = vsel %vm1302_vm1, %v2346_v51, %v14447_v9  ;;  %v4499_v38 = vld [vmem:[#allocation9 + $0x110] sm:$0xff]  ;;  %v14451_v52 = vld [vmem:[#allocation66_spill] sm:$0xff]  ;;  %9053 = vmatprep.subr.mxu0 %v4506_v54 }
 0x25e   : > { %v1894_v24 = vpop.f32.mrf.mxu1  ;;  %v2392_v32 = vrot.slane %v2193_v19, 1  ;;  %v14449_v35 = vrot.slane %v14448_v60, 7  ;;  %v14452_v59 = vld [vmem:[#allocation30_spill] sm:$0xff]  ;;  %4521 = vmatprep.subr.mxu1 %v4499_v38  ;;  %v2441_v60 = vsel %vm1302_vm1, %v2393_v45, %v2346_v51  ;;  %9054 = vmatpush3.msra.mxu0 %v4506_v54  ;;  %v14456_v51 = vld [vmem:[#allocation71_spill] sm:$0xff] }
 0x25f   : > { %v2250_v25 = vsel %vm1157_vm0, %v2248_v8, %v2249_v44  ;;  %v11600_v14 = vpop.f32.mrf.mxu0  ;;  %v11603_v53 = vadd.f32 %v2486_v23, %v14450_v58  ;;  %v11606_v18 = vadd.f32 %v2485_v11, %v14451_v52  ;;  %4522 = vmatpush1.msra.mxu1 %v4498_v46  ;;  %v4496_v11 = vld [vmem:[#allocation9 + $0xf8] sm:$0xff]  ;;  %v14459_v46 = vld [vmem:[#allocation76_spill] sm:$0xff] }
 0x260   : > { %v2297_v27 = vsel %vm1157_vm0, %v2249_v44, %v14449_v35  ;;  %v2345_v40 = vadd.f32 %v2250_v25, %v1894_v24  ;;  %v2394_v9 = vsel %vm1302_vm1, %v2392_v32, %v2393_v45  ;;  %v2395_v8 = vsel %vm1302_vm1, %v2391_v50, %v2392_v32  ;;  %v11613_v44 = vpop.f32.mrf.mxu1  ;;  %v4495_v24 = vld [vmem:[#allocation9 + $0xf0] sm:$0xff]  ;;  %4523 = vmatprep.subr.mxu1 %v4496_v11  ;;  %v14455_v32 = vld [vmem:[#allocation73_spill] sm:$0xff] }
 0x261   : > { %v2298_v19 = vadd.f32 %v2297_v27, %v14452_v59  ;;  %14453 = vst [vmem:[#allocation48_spill] sm:$0xff] %v11613_v44  ;;  %v2487_v23 = vadd.f32 %v2395_v8, %v2343_v37  ;;  %v2488_v35 = vadd.f32 %v2394_v9, %v2344_v20  ;;  %v11617_v58 = vpop.f32.mrf.mxu0  ;;  %4524 = vmatpush1.msra.mxu1 %v4495_v24  ;;  %v14457_v20 = vld [vmem:[#allocation75_spill] sm:$0xff]  ;;  %v14237_v54 = vrot.slane %v11613_v44, 1 }
 0x262   : > { %14454 = vst [vmem:[#allocation50_spill] sm:$0xff] %v11617_v58  ;;  %v2489_v25 = vadd.f32 %v2441_v60, %v2345_v40  ;;  %v11619_v52 = vpop.f32.mrf.mxu1 }
 0x263   : > { %v2442_v27 = vadd.f32 %v2440_v6, %v2298_v19  ;;  %v2803_v50 = vpop.f32.mrf.mxu0  ;;  %v11622_v38 = vadd.f32 %v2488_v35, %v14455_v32  ;;  %v11625_v37 = vadd.f32 %v2487_v23, %v14456_v51  ;;  %v14236_v6 = vrot.slane %v11600_v14, 7  ;;  %v4493_v51 = vld [vmem:[#allocation9 + $0xe0] sm:$0xff] }
 0x264   : > { %v11631_v59 = vadd.f32 %v2489_v25, %v14459_v46  ;;  %v3390_v19 = vrot.slane %v2803_v50, 7  ;;  %v8982_v40 = vpop.f32.mrf.mxu1  ;;  %v4492_v46 = vld [vmem:[#allocation9 + $0xd8] sm:$0xff]  ;;  %4525 = vmatprep.subr.mxu1 %v4493_v51 }
 0x265   : > { %v11628_v45 = vadd.f32 %v2442_v27, %v14457_v20  ;;  %v2805_v9 = vpop.f32.mrf.mxu0  ;;  %v3536_v8 = vrot.slane %v8982_v40, 1  ;;  %v4503_v20 = vld [vmem:[#allocation9 + $0x130] sm:$0xff]  ;;  %4526 = vmatpush1.msra.mxu1 %v4492_v46  ;;  %v4490_v46 = vld [vmem:[#allocation9 + $0xc8] sm:$0xff] }
 0x266   : > { %14460 = vst [vmem:[#allocation18_spill] sm:$0xff] %v11631_v59  ;;  %v3483_v60 = vsel %vm1157_vm0, %v14236_v6, %v3390_v19  ;;  %v3160_v23 = vpop.f32.mrf.mxu1  ;;  %9055 = vmatprep.subr.mxu0 %v4503_v20  ;;  %4527 = vmatprep.subr.mxu1 %v4490_v46 }
 0x267   : > { %14458 = vst [vmem:[#allocation19_spill] sm:$0xff] %v11628_v45  ;;  %v3486_v35 = vadd.f32 %v3483_v60, %v2805_v9  ;;  %v3535_v11 = vrot.slane %v3160_v23, 1  ;;  %v2809_v24 = vpop.f32.mrf.mxu0  ;;  %9056 = vmatpush3.msra.mxu0 %v4503_v20 }
 0x268   : > { %v3391_v27 = vrot.slane %v2809_v24, 7  ;;  %v8985_v25 = vpop.f32.mrf.mxu1 }
 0x269   : > { %v3626_v50 = vsel %vm1302_vm1, %v14237_v54, %v3535_v11  ;;  %v2811_v32 = vpop.f32.mrf.mxu0  ;;  %v3625_v9 = vsel %vm1302_vm1, %v3535_v11, %v3536_v8  ;;  %v3538_v58 = vrot.slane %v8985_v25, 1 }
 0x26a   : > { %v3630_v40 = vadd.f32 %v3626_v50, %v3486_v35  ;;  %v3482_v59 = vsel %vm1157_vm0, %v3390_v19, %v3391_v27  ;;  %v3170_v60 = vpop.f32.mrf.mxu1 }
 0x26b   : > { %v3487_v23 = vadd.f32 %v3482_v59, %v2811_v32  ;;  %v2815_v24 = vpop.f32.mrf.mxu0  ;;  %v3537_v6 = vrot.slane %v3170_v60, 1  ;;  %v4489_v60 = vld [vmem:[#allocation9 + $0xc0] sm:$0xff] }
 0x26c   : > { %v3392_v54 = vrot.slane %v2815_v24, 7  ;;  %v11648_v45 = vadd.f32 %v3630_v40, %v11147_v48  ;;  %v8988_v44 = vpop.f32.mrf.mxu1  ;;  %4528 = vmatpush1.msra.mxu1 %v4489_v60 }
 0x26d   : > { %v3631_v35 = vadd.f32 %v3625_v9, %v3487_v23  ;;  %v2817_v50 = vpop.f32.mrf.mxu0  ;;  %v3624_v11 = vsel %vm1302_vm1, %v3536_v8, %v3537_v6 }
 0x26e   : > { %v3481_v19 = vsel %vm1157_vm0, %v3391_v27, %v3392_v54  ;;  %v3180_v20 = vpop.f32.mrf.mxu1  ;;  %v3623_v27 = vsel %vm1302_vm1, %v3537_v6, %v3538_v58 }
 0x26f   : > { %v11655_v59 = vadd.f32 %v3631_v35, %v11144_v29  ;;  %v3488_v32 = vadd.f32 %v3481_v19, %v2817_v50  ;;  %v2821_v51 = vpop.f32.mrf.mxu0  ;;  %v3539_v8 = vrot.slane %v3180_v20, 1 }
 0x270   : > { %v3393_v48 = vrot.slane %v2821_v51, 7  ;;  %v11664_v35 = vpop.f32.mrf.mxu1 }
 0x271   : > { %v3632_v40 = vadd.f32 %v3624_v11, %v3488_v32  ;;  %v2823_v9 = vpop.f32.mrf.mxu0  ;;  %v3540_v11 = vrot.slane %v8988_v44, 1 }
 0x272   : > { %v3480_v25 = vsel %vm1157_vm0, %v3392_v54, %v3393_v48  ;;  %v3622_v54 = vsel %vm1302_vm1, %v3538_v58, %v3539_v8  ;;  %v3190_v60 = vpop.f32.mrf.mxu1 }
 0x273   : > { %v3489_v23 = vadd.f32 %v3480_v25, %v2823_v9  ;;  %v2827_v29 = vpop.f32.mrf.mxu0  ;;  %v11662_v24 = vadd.f32 %v3632_v40, %v11170_v1  ;;  %v4487_v1 = vld [vmem:[#allocation9 + $0xb0] sm:$0xff]  ;;  %v4500_v40 = vld [vmem:[#allocation9 + $0x118] sm:$0xff]  ;;  %v4486_v9 = vld [vmem:[#allocation9 + $0xa8] sm:$0xff] }
 0x274   : > { %v3394_v50 = vrot.slane %v2827_v29, 7  ;;  %4529 = vmatprep.subr.mxu1 %v4487_v1  ;;  %9057 = vmatprep.subr.mxu0 %v4500_v40  ;;  %v3541_v29 = vrot.slane %v3190_v60, 1 }
 0x275   : > { %v3633_v19 = vadd.f32 %v3623_v27, %v3489_v23  ;;  %v2829_v51 = vpop.f32.mrf.mxu0  ;;  %4530 = vmatpush1.msra.mxu1 %v4486_v9  ;;  %9058 = vmatpush3.msra.mxu0 %v4500_v40  ;;  %v4483_v23 = vld [vmem:[#allocation9 + $0x90] sm:$0xff]  ;;  %v3542_v40 = vrot.slane %v11664_v35, 1 }
 0x276   : > { %v3479_v32 = vsel %vm1157_vm0, %v3393_v48, %v3394_v50  ;;  %v4484_v48 = vld [vmem:[#allocation9 + $0x98] sm:$0xff] }
 0x277   : > { %v11671_v6 = vadd.f32 %v3633_v19, %v11167_v10  ;;  %v3490_v20 = vadd.f32 %v3479_v32, %v2829_v51  ;;  %v2833_v46 = vpop.f32.mrf.mxu0  ;;  %v3621_v10 = vsel %vm1302_vm1, %v3539_v8, %v3540_v11  ;;  %4531 = vmatprep.subr.mxu1 %v4484_v48  ;;  %v3620_v8 = vsel %vm1302_vm1, %v3540_v11, %v3541_v29 }
 0x278   : > { %v3395_v25 = vrot.slane %v2833_v46, 7  ;;  %v8994_v46 = vpop.f32.mrf.mxu1  ;;  %4532 = vmatpush1.msra.mxu1 %v4483_v23 }
 0x279   : > { %v3634_v27 = vadd.f32 %v3622_v54, %v3490_v20  ;;  %v2835_v44 = vpop.f32.mrf.mxu0 }
 0x27a   : > { %v3478_v58 = vsel %vm1157_vm0, %v3394_v50, %v3395_v25 }
 0x27b   : > { %v3491_v19 = vadd.f32 %v3478_v58, %v2835_v44  ;;  %v2839_v51 = vpop.f32.mrf.mxu0  ;;  %v11678_v32 = vadd.f32 %v3634_v27, %v11193_v49  ;;  %v3200_v49 = vpop.f32.mrf.mxu1  ;;  %v4481_v58 = vld [vmem:[#allocation9 + $0x80] sm:$0xff] }
 0x27c   : > { %v3396_v54 = vrot.slane %v2839_v51, 7  ;;  %v3543_v51 = vrot.slane %v3200_v49, 1  ;;  %4533 = vmatprep.subr.mxu1 %v4481_v58  ;;  %v4478_v58 = vld [vmem:[#allocation9 + $0x68] sm:$0xff] }
 0x27d   : > { %v3635_v20 = vadd.f32 %v3621_v10, %v3491_v19  ;;  %v2841_v1 = vpop.f32.mrf.mxu0  ;;  %v4497_v10 = vld [vmem:[#allocation9 + $0x100] sm:$0xff]  ;;  %v4480_v19 = vld [vmem:[#allocation9 + $0x78] sm:$0xff] }
 0x27e   : > { %v3477_v50 = vsel %vm1157_vm0, %v3395_v25, %v3396_v54  ;;  %v3619_v25 = vsel %vm1302_vm1, %v3541_v29, %v3542_v40  ;;  %9059 = vmatprep.subr.mxu0 %v4497_v10  ;;  %4534 = vmatpush1.msra.mxu1 %v4480_v19  ;;  %v3618_v29 = vsel %vm1302_vm1, %v3542_v40, %v3543_v51 }
 0x27f   : > { %v11686_v60 = vadd.f32 %v3635_v20, %v11190_v5  ;;  %v3492_v9 = vadd.f32 %v3477_v50, %v2841_v1  ;;  %v2845_v44 = vpop.f32.mrf.mxu0  ;;  %v11695_v1 = vpop.f32.mrf.mxu1  ;;  %9060 = vmatpush3.msra.mxu0 %v4497_v10  ;;  %4535 = vmatprep.subr.mxu1 %v4478_v58 }
 0x280   : > { %v3397_v27 = vrot.slane %v2845_v44, 7  ;;  %v3544_v44 = vrot.slane %v8994_v46, 1 }
 0x281   : > { %v3636_v48 = vadd.f32 %v3620_v8, %v3492_v9  ;;  %v2847_v23 = vpop.f32.mrf.mxu0 }
 0x282   : > { %v3476_v35 = vsel %vm1157_vm0, %v3396_v54, %v3397_v27 }
 0x283   : > { %v3493_v5 = vadd.f32 %v3476_v35, %v2847_v23  ;;  %v2851_v11 = vpop.f32.mrf.mxu0  ;;  %v11693_v20 = vadd.f32 %v3636_v48, %v11216_v2  ;;  %v3210_v48 = vpop.f32.mrf.mxu1  ;;  %v4477_v35 = vld [vmem:[#allocation9 + $0x60] sm:$0xff] }
 0x284   : > { %v3398_v50 = vrot.slane %v2851_v11, 7  ;;  %4536 = vmatpush1.msra.mxu1 %v4477_v35  ;;  %v3545_v40 = vrot.slane %v3210_v48, 1  ;;  %v14462_v11 = vld [vmem:[#allocation42_spill] sm:$0xff] }
 0x285   : > { %v3637_v8 = vadd.f32 %v3619_v25, %v3493_v5  ;;  %v2853_v9 = vpop.f32.mrf.mxu0 }
 0x286   : > { %v3475_v54 = vsel %vm1157_vm0, %v3397_v27, %v3398_v50  ;;  %v3617_v27 = vsel %vm1302_vm1, %v3543_v51, %v3544_v44  ;;  %v14464_v51 = vld [vmem:[#allocation40_spill] sm:$0xff] }
 0x287   : > { %v11702_v49 = vadd.f32 %v3637_v8, %v11213_v0  ;;  %v3494_v23 = vadd.f32 %v3475_v54, %v2853_v9  ;;  %v2857_v2 = vpop.f32.mrf.mxu0  ;;  %v11711_v9 = vpop.f32.mrf.mxu1 }
 0x288   : > { %v3399_v19 = vrot.slane %v2857_v2, 7 }
 0x289   : > { %14461 = vst [vmem:[#allocation53_spill] sm:$0xff] %v11702_v49  ;;  %v3638_v10 = vadd.f32 %v3618_v29, %v3494_v23  ;;  %v2859_v25 = vpop.f32.mrf.mxu0  ;;  %v3546_v29 = vrot.slane %v11695_v1, 1 }
 0x28a   : > { %v3474_v46 = vsel %vm1157_vm0, %v3398_v50, %v3399_v19  ;;  %v3616_v50 = vsel %vm1302_vm1, %v3544_v44, %v3545_v40 }
 0x28b   : > { %v3495_v5 = vadd.f32 %v3474_v46, %v2859_v25  ;;  %v2863_v0 = vpop.f32.mrf.mxu0  ;;  %v11709_v8 = vadd.f32 %v3638_v10, %v14462_v11  ;;  %v3220_v10 = vpop.f32.mrf.mxu1  ;;  %v4475_v46 = vld [vmem:[#allocation9 + $0x50] sm:$0xff]  ;;  %v4494_v11 = vld [vmem:[#allocation9 + $0xe8] sm:$0xff] }
 0x28c   : > { %v3400_v54 = vrot.slane %v2863_v0, 7  ;;  %4537 = vmatprep.subr.mxu1 %v4475_v46  ;;  %9061 = vmatprep.subr.mxu0 %v4494_v11 }
 0x28d   : > { %14463 = vst [vmem:[#allocation52_spill] sm:$0xff] %v11709_v8  ;;  %v3639_v2 = vadd.f32 %v3617_v27, %v3495_v5  ;;  %v2865_v58 = vpop.f32.mrf.mxu0  ;;  %v4474_v8 = vld [vmem:[#allocation9 + $0x48] sm:$0xff]  ;;  %9062 = vmatpush3.msra.mxu0 %v4494_v11  ;;  %v4471_v5 = vld [vmem:[#allocation9 + $0x30] sm:$0xff]  ;;  %v11728_v46 = vpop.f32.mrf.mxu1  ;;  %v3548_v11 = vrot.slane %v11711_v9, 1  ;;  %v4488_v9 = vld [vmem:[#allocation9 + $0xb8] sm:$0xff] }
 0x28e   : > { %v3473_v23 = vsel %vm1157_vm0, %v3399_v19, %v3400_v54  ;;  %4538 = vmatpush1.msra.mxu1 %v4474_v8  ;;  %v4472_v19 = vld [vmem:[#allocation9 + $0x38] sm:$0xff] }
 0x28f   : > { %v11719_v48 = vadd.f32 %v3639_v2, %v14464_v51  ;;  %v3496_v35 = vadd.f32 %v3473_v23, %v2865_v58  ;;  %v2869_v25 = vpop.f32.mrf.mxu0  ;;  %v3615_v2 = vsel %vm1302_vm1, %v3545_v40, %v3546_v29  ;;  %v3547_v58 = vrot.slane %v3220_v10, 1  ;;  %4539 = vmatprep.subr.mxu1 %v4472_v19  ;;  %v14468_v10 = vld [vmem:[#allocation15_spill] sm:$0xff] }
 0x290   : > { %v3401_v0 = vrot.slane %v2869_v25, 7  ;;  %4540 = vmatpush1.msra.mxu1 %v4471_v5 }
 0x291   : > { %14465 = vst [vmem:[#allocation21_spill] sm:$0xff] %v11719_v48  ;;  %v3640_v27 = vadd.f32 %v3616_v50, %v3496_v35  ;;  %v2871_v1 = vpop.f32.mrf.mxu0  ;;  %v14466_v48 = vld [vmem:[#allocation14_spill] sm:$0xff]  ;;  %v3614_v40 = vsel %vm1302_vm1, %v3546_v29, %v3547_v58  ;;  %v3613_v29 = vsel %vm1302_vm1, %v3547_v58, %v3548_v11  ;;  %v4482_v58 = vld [vmem:[#allocation9 + $0x88] sm:$0xff] }
 0x292   : > { %v3472_v44 = vsel %vm1157_vm0, %v3400_v54, %v3401_v0 }
 0x293   : > { %v3497_v23 = vadd.f32 %v3472_v44, %v2871_v1  ;;  %v2875_v51 = vpop.f32.mrf.mxu0  ;;  %v11726_v25 = vadd.f32 %v3640_v27, %v14466_v48  ;;  %v3230_v27 = vpop.f32.mrf.mxu1  ;;  %v4491_v44 = vld [vmem:[#allocation9 + $0xd0] sm:$0xff] }
 0x294   : > { %v3402_v8 = vrot.slane %v2875_v51, 7  ;;  %9063 = vmatprep.subr.mxu0 %v4491_v44  ;;  %v4468_v51 = vld [vmem:[#allocation9 + $0x18] sm:$0xff] }
 0x295   : > { %14467 = vst [vmem:[#allocation20_spill] sm:$0xff] %v11726_v25  ;;  %v3641_v50 = vadd.f32 %v3615_v2, %v3497_v23  ;;  %v2877_v35 = vpop.f32.mrf.mxu0  ;;  %v4469_v23 = vld [vmem:[#allocation9 + $0x20] sm:$0xff]  ;;  %9064 = vmatpush3.msra.mxu0 %v4491_v44 }
 0x296   : > { %v3471_v54 = vsel %vm1157_vm0, %v3401_v0, %v3402_v8  ;;  %4541 = vmatprep.subr.mxu1 %v4469_v23  ;;  %9065 = vmatprep.subr.mxu0 %v4488_v9 }
 0x297   : > { %v11736_v1 = vadd.f32 %v3641_v50, %v14468_v10  ;;  %v3498_v19 = vadd.f32 %v3471_v54, %v2877_v35  ;;  %v2881_v48 = vpop.f32.mrf.mxu0  ;;  %v3549_v50 = vrot.slane %v3230_v27, 1  ;;  %4542 = vmatpush1.msra.mxu1 %v4468_v51  ;;  %9066 = vmatpush3.msra.mxu0 %v4488_v9  ;;  %v3550_v27 = vrot.slane %v11728_v46, 1 }
 0x298   : > { %v3403_v25 = vrot.slane %v2881_v48, 7  ;;  %v4485_v48 = vld [vmem:[#allocation9 + $0xa0] sm:$0xff] }
 0x299   : > { %14469 = vst [vmem:[#allocation55_spill] sm:$0xff] %v11736_v1  ;;  %v3642_v5 = vadd.f32 %v3614_v40, %v3498_v19  ;;  %v2883_v2 = vpop.f32.mrf.mxu0  ;;  %v11745_v40 = vpop.f32.mrf.mxu1  ;;  %v4466_v19 = vld [vmem:[#allocation9 + $0x8] sm:$0xff]  ;;  %9067 = vmatprep.subr.mxu0 %v4485_v48 }
 0x29a   : > { %v3470_v0 = vsel %vm1157_vm0, %v3402_v8, %v3403_v25  ;;  %4543 = vmatprep.subr.mxu1 %v4466_v19  ;;  %v4465_v8 = vld [vmem:[#allocation9] sm:$0xff]  ;;  %9068 = vmatpush3.msra.mxu0 %v4485_v48 }
 0x29b   : > { %v3499_v35 = vadd.f32 %v3470_v0, %v2883_v2  ;;  %v2887_v54 = vpop.f32.mrf.mxu0  ;;  %v11743_v10 = vadd.f32 %v3642_v5, %v11287_v17  ;;  %4544 = vmatpush1.msra.mxu1 %v4465_v8  ;;  %v3612_v5 = vsel %vm1302_vm1, %v3548_v11, %v3549_v50  ;;  %v14470_v2 = vld [vmem:[#allocation44_spill] sm:$0xff]  ;;  %v3240_v0 = vpop.f32.mrf.mxu1  ;;  %9069 = vmatprep.subr.mxu0 %v4482_v58 }
 0x29c   : > { %v3404_v44 = vrot.slane %v2887_v54, 7  ;;  %4578 = vmatmul.mubr.f32.vlgmr.msra.gmra.mxu1 %v14326_v43  ;;  %9070 = vmatpush3.msra.mxu0 %v4482_v58  ;;  %v4476_v54 = vld [vmem:[#allocation9 + $0x58] sm:$0xff]  ;;  %v3551_v19 = vrot.slane %v3240_v0, 1 }
 0x29d   : > { %v3643_v1 = vadd.f32 %v3613_v29, %v3499_v35  ;;  %v2889_v49 = vpop.f32.mrf.mxu0  ;;  %v4479_v29 = vld [vmem:[#allocation9 + $0x70] sm:$0xff]  ;;  %4583 = vmatprep.mubr.f32.mxu1 %v14326_v43  ;;  %v11765_v58 = vpop.f32.mrf.mxu1 }
 0x29e   : > { %v3469_v17 = vsel %vm1157_vm0, %v3403_v25, %v3404_v44  ;;  %9071 = vmatprep.subr.mxu0 %v4479_v29 }
 0x29f   : > { %v11754_v23 = vadd.f32 %v3643_v1, %v14470_v2  ;;  %v3500_v51 = vadd.f32 %v3469_v17, %v2889_v49  ;;  %v2893_v9 = vpop.f32.mrf.mxu0  ;;  %v3611_v1 = vsel %vm1302_vm1, %v3549_v50, %v3550_v27  ;;  %9072 = vmatpush3.msra.mxu0 %v4479_v29  ;;  %v5603_v17 = vld [vmem:[#allocation9 + $0x2f8] sm:$0xff] }
 0x2a0   : > { %v3405_v35 = vrot.slane %v2893_v9, 7  ;;  %4584 = vmatmul.mubr.f32.gmra.mxu1 %v14326_v43  ;;  %9073 = vmatprep.subr.mxu0 %v4476_v54  ;;  %v3552_v9 = vrot.slane %v11745_v40, 1 }
 0x2a1   : > { %v3644_v46 = vadd.f32 %v3612_v5, %v3500_v51  ;;  %v2895_v25 = vpop.f32.mrf.mxu0  ;;  %v4473_v5 = vld [vmem:[#allocation9 + $0x40] sm:$0xff]  ;;  %9153 = vmatprep.subr.mxu1 %v5603_v17  ;;  %9074 = vmatpush3.msra.mxu0 %v4476_v54  ;;  %v3250_v54 = vpop.f32.mrf.mxu1 }
 0x2a2   : > { %v3468_v11 = vsel %vm1157_vm0, %v3404_v44, %v3405_v35  ;;  %v4470_v44 = vld [vmem:[#allocation9 + $0x28] sm:$0xff]  ;;  %9154 = vmatpush3.msra.mxu1 %v5603_v17  ;;  %9075 = vmatprep.subr.mxu0 %v4473_v5 }
 0x2a3   : > { %v3501_v49 = vadd.f32 %v3468_v11, %v2895_v25  ;;  %v2899_v48 = vpop.f32.mrf.mxu0  ;;  %v11763_v8 = vadd.f32 %v3644_v46, %v11316_v31  ;;  %v3610_v31 = vsel %vm1302_vm1, %v3550_v27, %v3551_v19  ;;  %9076 = vmatpush3.msra.mxu0 %v4473_v5  ;;  %4589 = vmatprep.mubr.f32.mxu1 %v14326_v43  ;;  %v4467_v11 = vld [vmem:[#allocation9 + $0x10] sm:$0xff] }
 0x2a4   : > { %v3406_v2 = vrot.slane %v2899_v48, 7  ;;  %9077 = vmatprep.subr.mxu0 %v4470_v44  ;;  %4590 = vmatmul.mubr.f32.gmra.mxu1 %v14326_v43 }
 0x2a5   : > { %v3645_v51 = vadd.f32 %v3611_v1, %v3501_v49  ;;  %v2901_v50 = vpop.f32.mrf.mxu0  ;;  %9078 = vmatpush3.msra.mxu0 %v4470_v44  ;;  %4595 = vmatprep.mubr.f32.mxu1 %v14326_v43  ;;  %v3553_v49 = vrot.slane %v3250_v54, 1 }
 0x2a6   : > { %v3467_v0 = vsel %vm1157_vm0, %v3405_v35, %v3406_v2  ;;  %9079 = vmatprep.subr.mxu0 %v4467_v11 }
 0x2a7   : > { %v11774_v29 = vadd.f32 %v3645_v51, %v11310_v39  ;;  %v3502_v46 = vadd.f32 %v3467_v0, %v2901_v50  ;;  %v2905_v25 = vpop.f32.mrf.mxu0  ;;  %v3609_v39 = vsel %vm1302_vm1, %v3551_v19, %v3552_v9  ;;  %9080 = vmatpush3.msra.mxu0 %v4467_v11  ;;  %v9012_v51 = vpop.f32.mrf.mxu1 }
 0x2a8   : > { %v3407_v1 = vrot.slane %v2905_v25, 7  ;;  %9082 = vmatmul.mubr.f32.vlgmr.msra.gmra.mxu0 %v14326_v43 }
 0x2a9   : > { %v3646_v40 = vadd.f32 %v3610_v31, %v3502_v46  ;;  %v2907_v35 = vpop.f32.mrf.mxu0  ;;  %9084 = vmatprep.mubr.f32.mxu0 %v14326_v43  ;;  %v5600_v31 = vld [vmem:[#allocation9 + $0x2e0] sm:$0xff]  ;;  %v3608_v46 = vsel %vm1302_vm1, %v3552_v9, %v3553_v49  ;;  %v3260_v11 = vpop.f32.mrf.mxu1 }
 0x2aa   : > { %v3466_v27 = vsel %vm1157_vm0, %v3406_v2, %v3407_v1  ;;  %v3554_v2 = vrot.slane %v11765_v58, 1  ;;  %9155 = vmatprep.subr.mxu1 %v5600_v31 }
 0x2ab   : > { %v3503_v48 = vadd.f32 %v3466_v27, %v2907_v35  ;;  %v2911_v17 = vpop.f32.mrf.mxu0  ;;  %v11783_v5 = vadd.f32 %v3646_v40, %v11341_v13  ;;  %9156 = vmatpush3.msra.mxu1 %v5600_v31  ;;  %v3556_v31 = vrot.slane %v9012_v51, 1 }
 0x2ac   : > { %v3408_v44 = vrot.slane %v2911_v17, 7 }
 0x2ad   : > { %v3647_v50 = vadd.f32 %v3609_v39, %v3503_v48  ;;  %v2913_v0 = vpop.f32.mrf.mxu0  ;;  %v3555_v39 = vrot.slane %v3260_v11, 1 }
 0x2ae   : > { %v3465_v19 = vsel %vm1157_vm0, %v3407_v1, %v3408_v44  ;;  %v3607_v1 = vsel %vm1302_vm1, %v3553_v49, %v3554_v2 }
 0x2af   : > { %v11793_v13 = vadd.f32 %v3647_v50, %v11335_v33  ;;  %v3504_v25 = vadd.f32 %v3465_v19, %v2913_v0  ;;  %v2917_v54 = vpop.f32.mrf.mxu0  ;;  %v9015_v33 = vpop.f32.mrf.mxu1  ;;  %v3605_v51 = vsel %vm1302_vm1, %v3555_v39, %v3556_v31 }
 0x2b0   : > { %v3409_v40 = vrot.slane %v2917_v54, 7 }
 0x2b1   : > { %v3648_v35 = vadd.f32 %v3608_v46, %v3504_v25  ;;  %v2919_v27 = vpop.f32.mrf.mxu0  ;;  %v14472_v25 = vld [vmem:[#allocation46_spill] sm:$0xff] }
 0x2b2   : > { %v3464_v58 = vsel %vm1157_vm0, %v3408_v44, %v3409_v40  ;;  %v3606_v44 = vsel %vm1302_vm1, %v3554_v2, %v3555_v39 }
 0x2b3   : > { %v3505_v48 = vadd.f32 %v3464_v58, %v2919_v27  ;;  %v2923_v9 = vpop.f32.mrf.mxu0  ;;  %v11800_v17 = vadd.f32 %v3648_v35, %v11366_v63  ;;  %v3270_v27 = vpop.f32.mrf.mxu1 }
 0x2b4   : > { %v3410_v50 = vrot.slane %v2923_v9, 7 }
 0x2b5   : > { %14471 = vst [vmem:[#allocation23_spill] sm:$0xff] %v11800_v17  ;;  %v3649_v0 = vadd.f32 %v3607_v1, %v3505_v48  ;;  %v2925_v19 = vpop.f32.mrf.mxu0  ;;  %v5597_v17 = vld [vmem:[#allocation9 + $0x2c8] sm:$0xff] }
 0x2b6   : > { %v3463_v46 = vsel %vm1157_vm0, %v3409_v40, %v3410_v50  ;;  %v3557_v40 = vrot.slane %v3270_v27, 1  ;;  %9157 = vmatprep.subr.mxu1 %v5597_v17 }
 0x2b7   : > { %v11807_v54 = vadd.f32 %v3649_v0, %v14472_v25  ;;  %v3506_v49 = vadd.f32 %v3463_v46, %v2925_v19  ;;  %v2929_v11 = vpop.f32.mrf.mxu0  ;;  %v9018_v0 = vpop.f32.mrf.mxu1  ;;  %9158 = vmatpush3.msra.mxu1 %v5597_v17  ;;  %v3558_v25 = vrot.slane %v9015_v33, 1 }
 0x2b8   : > { %v3411_v58 = vrot.slane %v2929_v11, 7 }
 0x2b9   : > { %v3650_v63 = vadd.f32 %v3606_v44, %v3506_v49  ;;  %v2931_v35 = vpop.f32.mrf.mxu0  ;;  %v3603_v33 = vsel %vm1302_vm1, %v3557_v40, %v3558_v25 }
 0x2ba   : > { %v3462_v1 = vsel %vm1157_vm0, %v3410_v50, %v3411_v58  ;;  %v3604_v50 = vsel %vm1302_vm1, %v3556_v31, %v3557_v40 }
 0x2bb   : > { %v3507_v48 = vadd.f32 %v3462_v1, %v2931_v35  ;;  %v2935_v2 = vpop.f32.mrf.mxu0  ;;  %v11814_v9 = vadd.f32 %v3650_v63, %v11388_v41  ;;  %v3280_v35 = vpop.f32.mrf.mxu1 }
 0x2bc   : > { %v3412_v19 = vrot.slane %v2935_v2, 7 }
 0x2bd   : > { %v3651_v46 = vadd.f32 %v3605_v51, %v3507_v48  ;;  %v2937_v44 = vpop.f32.mrf.mxu0  ;;  %v3559_v51 = vrot.slane %v3280_v35, 1 }
 0x2be   : > { %v3461_v49 = vsel %vm1157_vm0, %v3411_v58, %v3412_v19 }
 0x2bf   : > { %v11821_v39 = vadd.f32 %v3651_v46, %v11385_v26  ;;  %v3508_v11 = vadd.f32 %v3461_v49, %v2937_v44  ;;  %v2941_v27 = vpop.f32.mrf.mxu0  ;;  %v9021_v26 = vpop.f32.mrf.mxu1  ;;  %v5594_v49 = vld [vmem:[#allocation9 + $0x2b0] sm:$0xff] }
 0x2c0   : > { %v3413_v41 = vrot.slane %v2941_v27, 7  ;;  %v3560_v27 = vrot.slane %v9018_v0, 1  ;;  %9159 = vmatprep.subr.mxu1 %v5594_v49 }
 0x2c1   : > { %v3652_v63 = vadd.f32 %v3604_v50, %v3508_v11  ;;  %v2943_v1 = vpop.f32.mrf.mxu0  ;;  %9160 = vmatpush3.msra.mxu1 %v5594_v49  ;;  %v3562_v49 = vrot.slane %v9021_v26, 1 }
 0x2c2   : > { %v3460_v17 = vsel %vm1157_vm0, %v3412_v19, %v3413_v41  ;;  %v3602_v19 = vsel %vm1302_vm1, %v3558_v25, %v3559_v51 }
 0x2c3   : > { %v3509_v58 = vadd.f32 %v3460_v17, %v2943_v1  ;;  %v2947_v48 = vpop.f32.mrf.mxu0  ;;  %v11828_v31 = vadd.f32 %v3652_v63, %v11410_v16  ;;  %v3290_v16 = vpop.f32.mrf.mxu1 }
 0x2c4   : > { %v3414_v2 = vrot.slane %v2947_v48, 7 }
 0x2c5   : > { %v3653_v46 = vadd.f32 %v3603_v33, %v3509_v58  ;;  %v2949_v44 = vpop.f32.mrf.mxu0  ;;  %v3561_v33 = vrot.slane %v3290_v16, 1 }
 0x2c6   : > { %v3459_v50 = vsel %vm1157_vm0, %v3413_v41, %v3414_v2  ;;  %v3601_v41 = vsel %vm1302_vm1, %v3559_v51, %v3560_v27 }
 0x2c7   : > { %v11835_v40 = vadd.f32 %v3653_v46, %v11407_v47  ;;  %v3510_v11 = vadd.f32 %v3459_v50, %v2949_v44  ;;  %v2953_v35 = vpop.f32.mrf.mxu0  ;;  %v9024_v47 = vpop.f32.mrf.mxu1  ;;  %v3599_v26 = vsel %vm1302_vm1, %v3561_v33, %v3562_v49 }
 0x2c8   : > { %v3415_v63 = vrot.slane %v2953_v35, 7 }
 0x2c9   : > { %v3654_v1 = vadd.f32 %v3602_v19, %v3510_v11  ;;  %v2955_v17 = vpop.f32.mrf.mxu0  ;;  %v3300_v16 = vpop.f32.mrf.mxu1 }
 0x2ca   : > { %v3458_v0 = vsel %vm1157_vm0, %v3414_v2, %v3415_v63  ;;  %v3600_v2 = vsel %vm1302_vm1, %v3560_v27, %v3561_v33 }
 0x2cb   : > { %v3511_v58 = vadd.f32 %v3458_v0, %v2955_v17  ;;  %v2959_v25 = vpop.f32.mrf.mxu0  ;;  %v11842_v48 = vadd.f32 %v3654_v1, %v11432_v30  ;;  %v5591_v0 = vld [vmem:[#allocation9 + $0x298] sm:$0xff] }
 0x2cc   : > { %v3416_v46 = vrot.slane %v2959_v25, 7  ;;  %9161 = vmatprep.subr.mxu1 %v5591_v0  ;;  %v9027_v25 = vpop.f32.mrf.mxu1 }
 0x2cd   : > { %v3655_v44 = vadd.f32 %v3601_v41, %v3511_v58  ;;  %v2961_v50 = vpop.f32.mrf.mxu0  ;;  %9162 = vmatpush3.msra.mxu1 %v5591_v0 }
 0x2ce   : > { %v3457_v19 = vsel %vm1157_vm0, %v3415_v63, %v3416_v46  ;;  %v3563_v63 = vrot.slane %v3300_v16, 1 }
 0x2cf   : > { %v11849_v11 = vadd.f32 %v3655_v44, %v11429_v61  ;;  %v3512_v51 = vadd.f32 %v3457_v19, %v2961_v50  ;;  %v2965_v35 = vpop.f32.mrf.mxu0 }
 0x2d0   : > { %v3417_v17 = vrot.slane %v2965_v35, 7 }
 0x2d1   : > { %v3656_v30 = vadd.f32 %v3600_v2, %v3512_v51  ;;  %v2967_v1 = vpop.f32.mrf.mxu0  ;;  %v3564_v2 = vrot.slane %v9024_v47, 1 }
 0x2d2   : > { %v3456_v41 = vsel %vm1157_vm0, %v3416_v46, %v3417_v17  ;;  %v3598_v46 = vsel %vm1302_vm1, %v3562_v49, %v3563_v63 }
 0x2d3   : > { %v3513_v58 = vadd.f32 %v3456_v41, %v2967_v1  ;;  %v2971_v27 = vpop.f32.mrf.mxu0  ;;  %v11856_v61 = vadd.f32 %v3656_v30, %v11454_v3  ;;  %v3310_v1 = vpop.f32.mrf.mxu1  ;;  %v3597_v47 = vsel %vm1302_vm1, %v3563_v63, %v3564_v2  ;;  %v14474_v63 = vld [vmem:[#allocation17_spill] sm:$0xff] }
 0x2d4   : > { %v3418_v44 = vrot.slane %v2971_v27, 7 }
 0x2d5   : > { %v3657_v50 = vadd.f32 %v3599_v26, %v3513_v58  ;;  %v2973_v19 = vpop.f32.mrf.mxu0  ;;  %v3565_v26 = vrot.slane %v3310_v1, 1 }
 0x2d6   : > { %v3455_v51 = vsel %vm1157_vm0, %v3417_v17, %v3418_v44 }
 0x2d7   : > { %v11863_v33 = vadd.f32 %v3657_v50, %v11451_v28  ;;  %v3514_v35 = vadd.f32 %v3455_v51, %v2973_v19  ;;  %v2977_v16 = vpop.f32.mrf.mxu0  ;;  %v11872_v28 = vpop.f32.mrf.mxu1  ;;  %v5588_v51 = vld [vmem:[#allocation9 + $0x280] sm:$0xff] }
 0x2d8   : > { %v3419_v3 = vrot.slane %v2977_v16, 7  ;;  %9163 = vmatprep.subr.mxu1 %v5588_v51 }
 0x2d9   : > { %v3658_v30 = vadd.f32 %v3598_v46, %v3514_v35  ;;  %v2979_v41 = vpop.f32.mrf.mxu0  ;;  %v3566_v46 = vrot.slane %v9027_v25, 1  ;;  %9164 = vmatpush3.msra.mxu1 %v5588_v51 }
 0x2da   : > { %v3454_v0 = vsel %vm1157_vm0, %v3418_v44, %v3419_v3  ;;  %v3596_v44 = vsel %vm1302_vm1, %v3564_v2, %v3565_v26 }
 0x2db   : > { %v3515_v17 = vadd.f32 %v3454_v0, %v2979_v41  ;;  %v2983_v58 = vpop.f32.mrf.mxu0  ;;  %v11870_v49 = vadd.f32 %v3658_v30, %v11476_v4  ;;  %v3320_v30 = vpop.f32.mrf.mxu1 }
 0x2dc   : > { %v3420_v27 = vrot.slane %v2983_v58, 7 }
 0x2dd   : > { %14473 = vst [vmem:[#allocation22_spill] sm:$0xff] %v11870_v49  ;;  %v3659_v50 = vadd.f32 %v3597_v47, %v3515_v17  ;;  %v2985_v19 = vpop.f32.mrf.mxu0  ;;  %v3567_v17 = vrot.slane %v3320_v30, 1 }
 0x2de   : > { %v3453_v35 = vsel %vm1157_vm0, %v3419_v3, %v3420_v27  ;;  %v3595_v3 = vsel %vm1302_vm1, %v3565_v26, %v3566_v46 }
 0x2df   : > { %v11879_v16 = vadd.f32 %v3659_v50, %v14474_v63  ;;  %v3516_v1 = vadd.f32 %v3453_v35, %v2985_v19  ;;  %v2989_v4 = vpop.f32.mrf.mxu0  ;;  %v11888_v50 = vpop.f32.mrf.mxu1 }
 0x2e0   : > { %v3421_v41 = vrot.slane %v2989_v4, 7 }
 0x2e1   : > { %v3660_v0 = vadd.f32 %v3596_v44, %v3516_v1  ;;  %v2991_v47 = vpop.f32.mrf.mxu0  ;;  %v3568_v44 = vrot.slane %v11872_v28, 1 }
 0x2e2   : > { %v3452_v25 = vsel %vm1157_vm0, %v3420_v27, %v3421_v41  ;;  %v3594_v27 = vsel %vm1302_vm1, %v3566_v46, %v3567_v17  ;;  %v5601_v46 = vld [vmem:[#allocation9 + $0x2e8] sm:$0xff] }
 0x2e3   : > { %v3517_v58 = vadd.f32 %v3452_v25, %v2991_v47  ;;  %v2995_v2 = vpop.f32.mrf.mxu0  ;;  %v11886_v49 = vadd.f32 %v3660_v0, %v11498_v7  ;;  %v3330_v7 = vpop.f32.mrf.mxu1  ;;  %v5602_v25 = vld [vmem:[#allocation9 + $0x2f0] sm:$0xff] }
 0x2e4   : > { %v3422_v19 = vrot.slane %v2995_v2, 7  ;;  %5604 = vmatprep.subr.mxu0 %v5602_v25  ;;  %v5598_v2 = vld [vmem:[#allocation9 + $0x2d0] sm:$0xff] }
 0x2e5   : > { %v3661_v35 = vadd.f32 %v3595_v3, %v3517_v58  ;;  %v2997_v51 = vpop.f32.mrf.mxu0  ;;  %v5585_v3 = vld [vmem:[#allocation9 + $0x268] sm:$0xff]  ;;  %v3569_v58 = vrot.slane %v3330_v7, 1  ;;  %5605 = vmatpush1.msra.mxu0 %v5601_v46  ;;  %v3570_v7 = vrot.slane %v11888_v50, 1 }
 0x2e6   : > { %v3451_v63 = vsel %vm1157_vm0, %v3421_v41, %v3422_v19  ;;  %v3593_v41 = vsel %vm1302_vm1, %v3567_v17, %v3568_v44  ;;  %9165 = vmatprep.subr.mxu1 %v5585_v3  ;;  %v5596_v17 = vld [vmem:[#allocation9 + $0x2c0] sm:$0xff] }
 0x2e7   : > { %v11896_v26 = vadd.f32 %v3661_v35, %v11495_v55  ;;  %v3518_v1 = vadd.f32 %v3451_v63, %v2997_v51  ;;  %v3001_v4 = vpop.f32.mrf.mxu0  ;;  %v5599_v55 = vld [vmem:[#allocation9 + $0x2d8] sm:$0xff]  ;;  %9166 = vmatpush3.msra.mxu1 %v5585_v3 }
 0x2e8   : > { %v3423_v30 = vrot.slane %v3001_v4, 7  ;;  %5606 = vmatprep.subr.mxu0 %v5599_v55 }
 0x2e9   : > { %v3662_v0 = vadd.f32 %v3594_v27, %v3518_v1  ;;  %v3003_v47 = vpop.f32.mrf.mxu0  ;;  %v11905_v27 = vpop.f32.mrf.mxu1  ;;  %5607 = vmatpush1.msra.mxu0 %v5598_v2 }
 0x2ea   : > { %v3450_v28 = vsel %vm1157_vm0, %v3422_v19, %v3423_v30  ;;  %5608 = vmatprep.subr.mxu0 %v5596_v17 }
 0x2eb   : > { %v3519_v35 = vadd.f32 %v3450_v28, %v3003_v47  ;;  %v3007_v51 = vpop.f32.mrf.mxu0  ;;  %v11903_v63 = vadd.f32 %v3662_v0, %v11516_v42  ;;  %v3592_v47 = vsel %vm1302_vm1, %v3568_v44, %v3569_v58  ;;  %v5595_v42 = vld [vmem:[#allocation9 + $0x2b8] sm:$0xff]  ;;  %v5593_v0 = vld [vmem:[#allocation9 + $0x2a8] sm:$0xff]  ;;  %v5592_v28 = vld [vmem:[#allocation9 + $0x2a0] sm:$0xff]  ;;  %v3340_v55 = vpop.f32.mrf.mxu1 }
 0x2ec   : > { %v3424_v1 = vrot.slane %v3007_v51, 7  ;;  %5609 = vmatpush1.msra.mxu0 %v5595_v42  ;;  %v3591_v51 = vsel %vm1302_vm1, %v3569_v58, %v3570_v7  ;;  %v3571_v17 = vrot.slane %v3340_v55, 1  ;;  %v5582_v58 = vld [vmem:[#allocation9 + $0x250] sm:$0xff] }
 0x2ed   : > { %v3663_v19 = vadd.f32 %v3593_v41, %v3519_v35  ;;  %v3009_v4 = vpop.f32.mrf.mxu0  ;;  %5610 = vmatprep.subr.mxu0 %v5593_v0  ;;  %9167 = vmatprep.subr.mxu1 %v5582_v58 }
 0x2ee   : > { %v3449_v25 = vsel %vm1157_vm0, %v3423_v30, %v3424_v1  ;;  %5611 = vmatpush1.msra.mxu0 %v5592_v28  ;;  %v5590_v30 = vld [vmem:[#allocation9 + $0x290] sm:$0xff]  ;;  %9168 = vmatpush3.msra.mxu1 %v5582_v58 }
 0x2ef   : > { %v11913_v46 = vadd.f32 %v3663_v19, %v11513_v57  ;;  %v3520_v3 = vadd.f32 %v3449_v25, %v3009_v4  ;;  %v3013_v41 = vpop.f32.mrf.mxu0  ;;  %5612 = vmatprep.subr.mxu0 %v5590_v30  ;;  %v5589_v57 = vld [vmem:[#allocation9 + $0x288] sm:$0xff]  ;;  %v5587_v19 = vld [vmem:[#allocation9 + $0x278] sm:$0xff]  ;;  %v5586_v4 = vld [vmem:[#allocation9 + $0x270] sm:$0xff] }
 0x2f0   : > { %v3425_v2 = vrot.slane %v3013_v41, 7  ;;  %5613 = vmatpush1.msra.mxu0 %v5589_v57  ;;  %v3572_v41 = vrot.slane %v11905_v27, 1  ;;  %v5580_v30 = vld [vmem:[#allocation9 + $0x240] sm:$0xff] }
 0x2f1   : > { %14475 = vst [vmem:[#allocation56_spill] sm:$0xff] %v11913_v46  ;;  %v3664_v50 = vadd.f32 %v3592_v47, %v3520_v3  ;;  %v3015_v35 = vpop.f32.mrf.mxu0  ;;  %v11922_v47 = vpop.f32.mrf.mxu1  ;;  %5614 = vmatprep.subr.mxu0 %v5587_v19  ;;  %v5584_v3 = vld [vmem:[#allocation9 + $0x260] sm:$0xff] }
 0x2f2   : > { %v3448_v44 = vsel %vm1157_vm0, %v3424_v1, %v3425_v2  ;;  %5615 = vmatpush1.msra.mxu0 %v5586_v4  ;;  %v5578_v4 = vld [vmem:[#allocation9 + $0x230] sm:$0xff] }
 0x2f3   : > { %v3521_v25 = vadd.f32 %v3448_v44, %v3015_v35  ;;  %v3019_v46 = vpop.f32.mrf.mxu0  ;;  %v11920_v42 = vadd.f32 %v3664_v50, %v11534_v12  ;;  %v3590_v35 = vsel %vm1302_vm1, %v3570_v7, %v3571_v17  ;;  %5616 = vmatprep.subr.mxu0 %v5584_v3  ;;  %v5583_v12 = vld [vmem:[#allocation9 + $0x258] sm:$0xff]  ;;  %v5581_v50 = vld [vmem:[#allocation9 + $0x248] sm:$0xff]  ;;  %v3350_v57 = vpop.f32.mrf.mxu1 }
 0x2f4   : > { %v3426_v0 = vrot.slane %v3019_v46, 7  ;;  %5617 = vmatpush1.msra.mxu0 %v5583_v12  ;;  %v3573_v3 = vrot.slane %v3350_v57, 1 }
 0x2f5   : > { %v3665_v28 = vadd.f32 %v3591_v51, %v3521_v25  ;;  %v3021_v1 = vpop.f32.mrf.mxu0  ;;  %5618 = vmatprep.subr.mxu0 %v5581_v50  ;;  %v3589_v25 = vsel %vm1302_vm1, %v3571_v17, %v3572_v41  ;;  %v3574_v17 = vrot.slane %v11922_v47, 1 }
 0x2f6   : > { %v3447_v55 = vsel %vm1157_vm0, %v3425_v2, %v3426_v0  ;;  %5619 = vmatpush1.msra.mxu0 %v5580_v30  ;;  %v3588_v57 = vsel %vm1302_vm1, %v3572_v41, %v3573_v3 }
 0x2f7   : > { %v11930_v46 = vadd.f32 %v3665_v28, %v11531_v56  ;;  %v3522_v44 = vadd.f32 %v3447_v55, %v3021_v1  ;;  %v3025_v51 = vpop.f32.mrf.mxu0  ;;  %5620 = vmatprep.subr.mxu0 %v5578_v4  ;;  %v5577_v56 = vld [vmem:[#allocation9 + $0x228] sm:$0xff]  ;;  %v5575_v28 = vld [vmem:[#allocation9 + $0x218] sm:$0xff]  ;;  %v5574_v1 = vld [vmem:[#allocation9 + $0x210] sm:$0xff] }
 0x2f8   : > { %v3427_v19 = vrot.slane %v3025_v51, 7  ;;  %5621 = vmatpush1.msra.mxu0 %v5577_v56 }
 0x2f9   : > { %v3666_v27 = vadd.f32 %v3590_v35, %v3522_v44  ;;  %v3027_v2 = vpop.f32.mrf.mxu0  ;;  %v11939_v35 = vpop.f32.mrf.mxu1  ;;  %5622 = vmatprep.subr.mxu0 %v5575_v28  ;;  %v5572_v44 = vld [vmem:[#allocation9 + $0x200] sm:$0xff] }
 0x2fa   : > { %v3446_v7 = vsel %vm1157_vm0, %v3426_v0, %v3427_v19  ;;  %5623 = vmatpush1.msra.mxu0 %v5574_v1 }
 0x2fb   : > { %v3523_v55 = vadd.f32 %v3446_v7, %v3027_v2  ;;  %v3031_v12 = vpop.f32.mrf.mxu0  ;;  %v11937_v58 = vadd.f32 %v3666_v27, %v11552_v22  ;;  %5624 = vmatprep.subr.mxu0 %v5572_v44  ;;  %v5571_v22 = vld [vmem:[#allocation9 + $0x1f8] sm:$0xff]  ;;  %v5569_v27 = vld [vmem:[#allocation9 + $0x1e8] sm:$0xff]  ;;  %v5568_v2 = vld [vmem:[#allocation9 + $0x1e0] sm:$0xff]  ;;  %v3360_v56 = vpop.f32.mrf.mxu1 }
 0x2fc   : > { %v3428_v50 = vrot.slane %v3031_v12, 7  ;;  %5625 = vmatpush1.msra.mxu0 %v5571_v22  ;;  %v3587_v12 = vsel %vm1302_vm1, %v3573_v3, %v3574_v17  ;;  %v3575_v44 = vrot.slane %v3360_v56, 1  ;;  %v5560_v3 = vld [vmem:[#allocation9 + $0x1a0] sm:$0xff]  ;;  %v5557_v56 = vld [vmem:[#allocation9 + $0x188] sm:$0xff] }
 0x2fd   : > { %v3667_v30 = vadd.f32 %v3589_v25, %v3523_v55  ;;  %v3033_v0 = vpop.f32.mrf.mxu0  ;;  %5626 = vmatprep.subr.mxu0 %v5569_v27  ;;  %v5579_v55 = vld [vmem:[#allocation9 + $0x238] sm:$0xff]  ;;  %v9045_v27 = vpop.f32.mrf.mxu1 }
 0x2fe   : > { %v3445_v51 = vsel %vm1157_vm0, %v3427_v19, %v3428_v50  ;;  %5627 = vmatpush1.msra.mxu0 %v5568_v2  ;;  %v5566_v19 = vld [vmem:[#allocation9 + $0x1d0] sm:$0xff]  ;;  %9169 = vmatprep.subr.mxu1 %v5579_v55 }
 0x2ff   : > { %v11947_v4 = vadd.f32 %v3667_v30, %v11549_v15  ;;  %v3524_v7 = vadd.f32 %v3445_v51, %v3033_v0  ;;  %v3037_v25 = vpop.f32.mrf.mxu0  ;;  %5628 = vmatprep.subr.mxu0 %v5566_v19  ;;  %v5565_v15 = vld [vmem:[#allocation9 + $0x1c8] sm:$0xff]  ;;  %v5563_v30 = vld [vmem:[#allocation9 + $0x1b8] sm:$0xff]  ;;  %v5562_v0 = vld [vmem:[#allocation9 + $0x1b0] sm:$0xff]  ;;  %9170 = vmatpush3.msra.mxu1 %v5579_v55  ;;  %v3576_v19 = vrot.slane %v11939_v35, 1 }
 0x300   : > { %v3429_v28 = vrot.slane %v3037_v25, 7  ;;  %5629 = vmatpush1.msra.mxu0 %v5565_v15  ;;  %v5559_v25 = vld [vmem:[#allocation9 + $0x198] sm:$0xff] }
 0x301   : > { %v3668_v47 = vadd.f32 %v3588_v57, %v3524_v7  ;;  %v3039_v1 = vpop.f32.mrf.mxu0  ;;  %5630 = vmatprep.subr.mxu0 %v5563_v30  ;;  %v3370_v30 = vpop.f32.mrf.mxu1 }
 0x302   : > { %v3444_v41 = vsel %vm1157_vm0, %v3428_v50, %v3429_v28  ;;  %5631 = vmatpush1.msra.mxu0 %v5562_v0 }
 0x303   : > { %v3525_v51 = vadd.f32 %v3444_v41, %v3039_v1  ;;  %v3043_v22 = vpop.f32.mrf.mxu0  ;;  %v11954_v57 = vadd.f32 %v3668_v47, %v11568_v62  ;;  %v3586_v62 = vsel %vm1302_vm1, %v3574_v17, %v3575_v44  ;;  %5632 = vmatprep.subr.mxu0 %v5560_v3  ;;  %v5556_v47 = vld [vmem:[#allocation9 + $0x180] sm:$0xff]  ;;  %v14477_v41 = vld [vmem:[#allocation16_spill] sm:$0xff]  ;;  %v3585_v17 = vsel %vm1302_vm1, %v3575_v44, %v3576_v19 }
 0x304   : > { %v3430_v2 = vrot.slane %v3043_v22, 7  ;;  %5633 = vmatpush1.msra.mxu0 %v5559_v25 }
 0x305   : > { %14476 = vst [vmem:[#allocation25_spill] sm:$0xff] %v11954_v57  ;;  %v3669_v50 = vadd.f32 %v3587_v12, %v3525_v51  ;;  %v3045_v7 = vpop.f32.mrf.mxu0  ;;  %5634 = vmatprep.subr.mxu0 %v5557_v56  ;;  %v5576_v56 = vld [vmem:[#allocation9 + $0x220] sm:$0xff] }
 0x306   : > { %v3443_v1 = vsel %vm1157_vm0, %v3429_v28, %v3430_v2  ;;  %5635 = vmatpush1.msra.mxu0 %v5556_v47  ;;  %v3577_v28 = vrot.slane %v3370_v30, 1  ;;  %9171 = vmatprep.subr.mxu1 %v5576_v56 }
 0x307   : > { %v11962_v15 = vadd.f32 %v3669_v50, %v14477_v41  ;;  %v3526_v55 = vadd.f32 %v3443_v1, %v3045_v7  ;;  %v3049_v12 = vpop.f32.mrf.mxu0  ;;  %v9048_v7 = vpop.f32.mrf.mxu1  ;;  %9172 = vmatpush3.msra.mxu1 %v5576_v56 }
 0x308   : > { %v3431_v0 = vrot.slane %v3049_v12, 7 }
 0x309   : > { %v3670_v51 = vadd.f32 %v3586_v62, %v3526_v55  ;;  %v3051_v22 = vpop.f32.mrf.mxu0  ;;  %v3578_v62 = vrot.slane %v9045_v27, 1 }
 0x30a   : > { %v3442_v35 = vsel %vm1157_vm0, %v3430_v2, %v3431_v0  ;;  %v3584_v2 = vsel %vm1302_vm1, %v3576_v19, %v3577_v28 }
 0x30b   : > { %v3527_v3 = vadd.f32 %v3442_v35, %v3051_v22  ;;  %v3055_v57 = vpop.f32.mrf.mxu0  ;;  %v11969_v50 = vadd.f32 %v3670_v51, %v11583_v34  ;;  %v3380_v34 = vpop.f32.mrf.mxu1 }
 0x30c   : > { %v3432_v1 = vrot.slane %v3055_v57, 7  ;;  %v3579_v22 = vrot.slane %v3380_v34, 1 }
 0x30d   : > { %v3671_v25 = vadd.f32 %v3585_v17, %v3527_v3  ;;  %v3057_v41 = vpop.f32.mrf.mxu0 }
 0x30e   : > { %v3441_v47 = vsel %vm1157_vm0, %v3431_v0, %v3432_v1  ;;  %v3583_v0 = vsel %vm1302_vm1, %v3577_v28, %v3578_v62 }
 0x30f   : > { %v11976_v44 = vadd.f32 %v3671_v25, %v11580_v21  ;;  %v3528_v55 = vadd.f32 %v3441_v47, %v3057_v41  ;;  %v3061_v12 = vpop.f32.mrf.mxu0  ;;  %v3580_v41 = vrot.slane %v9048_v7, 1  ;;  %v3582_v47 = vsel %vm1302_vm1, %v3578_v62, %v3579_v22 }
 0x310   : > { %v3433_v30 = vrot.slane %v3061_v12, 7 }
 0x311   : > { %v3672_v57 = vadd.f32 %v3584_v2, %v3528_v55  ;;  %v3063_v51 = vpop.f32.mrf.mxu0  ;;  %v3581_v7 = vsel %vm1302_vm1, %v3579_v22, %v3580_v41 }
 0x312   : > { %v3440_v27 = vsel %vm1157_vm0, %v3432_v1, %v3433_v30 }
 0x313   : > { %v3529_v35 = vadd.f32 %v3440_v27, %v3063_v51  ;;  %v3067_v19 = vpop.f32.mrf.mxu0  ;;  %v11983_v17 = vadd.f32 %v3672_v57, %v11606_v18  ;;  %v5573_v18 = vld [vmem:[#allocation9 + $0x208] sm:$0xff] }
 0x314   : > { %v3434_v21 = vrot.slane %v3067_v19, 7  ;;  %9173 = vmatprep.subr.mxu1 %v5573_v18 }
 0x315   : > { %v3673_v3 = vadd.f32 %v3583_v0, %v3529_v35  ;;  %v3069_v25 = vpop.f32.mrf.mxu0  ;;  %9174 = vmatpush3.msra.mxu1 %v5573_v18  ;;  %v12003_v0 = vld [vmem:[%s14205_s2] ss:$0 sm:$0xff]  ;;  %v4078_v18 = vpop.permute.xlu0 %4077 }
 0x316   : > { %v3439_v56 = vsel %vm1157_vm0, %v3433_v30, %v3434_v21 }
 0x317   : > { %v11990_v1 = vadd.f32 %v3673_v3, %v11603_v53  ;;  %v3530_v28 = vadd.f32 %v3439_v56, %v3069_v25  ;;  %v3073_v2 = vpop.f32.mrf.mxu0  ;;  %v3533_v53 = vrot.slane %v11619_v52, 1  ;;  %v14481_v52 = vld [vmem:[#allocation50_spill] sm:$0xff] }
 0x318   : > { %v3435_v55 = vrot.slane %v3073_v2, 7 }
 0x319   : > { %v3674_v12 = vadd.f32 %v3582_v47, %v3530_v28  ;;  %v3075_v34 = vpop.f32.mrf.mxu0  ;;  %v14482_v47 = vld [vmem:[#allocation48_spill] sm:$0xff] }
 0x31a   : > { %v3438_v57 = vsel %vm1157_vm0, %v3434_v21, %v3435_v55  ;;  %v14479_v21 = vrot.slane %v11600_v14, 7  ;;  %v14483_v28 = vrot.slane %v14482_v47, 1  ;;  %v3877_v14 = vmul.f32 %v12003_v0, %v11648_v45 }
 0x31b   : > { %v3531_v30 = vadd.f32 %v3438_v57, %v3075_v34  ;;  %v3079_v51 = vpop.f32.mrf.mxu0  ;;  %v11997_v62 = vadd.f32 %v3674_v12, %v11625_v37  ;;  %v3628_v12 = vsel %vm1302_vm1, %v3580_v41, %v3533_v53  ;;  %v3878_v57 = vmul.f32 %v12003_v0, %v11655_v59 }
 0x31c   : > { %v3436_v27 = vrot.slane %v3079_v51, 7  ;;  %v3627_v2 = vsel %vm1302_vm1, %v3533_v53, %v14483_v28  ;;  %v14485_v51 = vld [vmem:[#allocation18_spill] sm:$0xff]  ;;  %v3879_v41 = vmul.f32 %v12003_v0, %v11662_v24  ;;  %v3880_v59 = vmul.f32 %v12003_v0, %v11671_v6  ;;  %v4083_v24 = vpop.permute.xlu0 %4082 }
 0x31d   : > { %14478 = vst [vmem:[#allocation24_spill] sm:$0xff] %v11997_v62  ;;  %v3675_v35 = vadd.f32 %v3581_v7, %v3531_v30  ;;  %v3081_v19 = vpop.f32.mrf.mxu0  ;;  %v14484_v7 = vld [vmem:[#allocation19_spill] sm:$0xff] }
 0x31e   : > { %v3484_v22 = vsel %vm1157_vm0, %v3436_v27, %v14479_v21  ;;  %v3437_v37 = vsel %vm1157_vm0, %v3435_v55, %v3436_v27  ;;  %v12026_v55 = vld [vmem:[%s14206_s3] ss:$0 sm:$0xff] }
 0x31f   : > { %v12012_v3 = vadd.f32 %v3675_v35, %v11622_v38  ;;  %v3485_v25 = vadd.f32 %v3484_v22, %v14481_v52  ;;  %v3532_v56 = vadd.f32 %v3437_v37, %v3081_v19  ;;  %v3932_v45 = vadd.f32 %v12026_v55, %v3877_v14  ;;  %v5570_v35 = vld [vmem:[#allocation9 + $0x1f0] sm:$0xff]  ;;  %v4088_v19 = vpop.permute.xlu1 %4087 }
 0x320   : > { %9175 = vmatprep.subr.mxu1 %v5570_v35  ;;  %v3933_v21 = vadd.f32 %v12026_v55, %v3878_v57  ;;  %v3934_v52 = vadd.f32 %v12026_v55, %v3879_v41  ;;  %v3935_v28 = vadd.f32 %v12026_v55, %v3880_v59 }
 0x321   : > { %14480 = vst [vmem:[#allocation58_spill] sm:$0xff] %v12012_v3  ;;  %v3629_v38 = vadd.f32 %v3627_v2, %v3485_v25  ;;  %v3676_v34 = vadd.f32 %v3628_v12, %v3532_v56  ;;  %9176 = vmatpush3.msra.mxu1 %v5570_v35  ;;  %v3980_v37 = vmax.f32 %v3932_v45, 0.0  ;;  %v3881_v25 = vmul.f32 %v12003_v0, %v11678_v32 }
 0x322   : > { %v3981_v47 = vmax.f32 %v3933_v21, 0.0  ;;  %v3882_v2 = vmul.f32 %v12003_v0, %v11686_v60  ;;  %v3982_v12 = vmax.f32 %v3934_v52, 0.0  ;;  %v4098_v60 = vpop.permute.xlu0 %4097 }
 0x323   : > { %v3725_v30 = vadd.f32 %v3629_v38, %v14484_v7  ;;  %v12032_v27 = vadd.f32 %v3676_v34, %v14485_v51  ;;  %v12050_v6 = vmul.f32 %v4083_v24, %v3980_v37  ;;  %v3936_v38 = vadd.f32 %v12026_v55, %v3881_v25  ;;  %v4093_v57 = vpop.permute.xlu1 %4092  ;;  %v14489_v25 = vld [vmem:[#allocation21_spill] sm:$0xff] }
 0x324   : > { %v3883_v34 = vmul.f32 %v12003_v0, %v11693_v20  ;;  %v12059_v32 = vmul.f32 %v4088_v19, %v3981_v47  ;;  %v3937_v7 = vadd.f32 %v12026_v55, %v3882_v2  ;;  %v12064_v45 = vmul.f32 %v4093_v57, %v3982_v12  ;;  %v5567_v19 = vld [vmem:[#allocation9 + $0x1d8] sm:$0xff]  ;;  %v14490_v2 = vld [vmem:[#allocation20_spill] sm:$0xff] }
 0x325   : > { %14486 = vst [vmem:[#allocation27_spill] sm:$0xff] %v12032_v27  ;;  %v3876_v53 = vmul.f32 %v12003_v0, %v3725_v30  ;;  %v14487_v30 = vld [vmem:[#allocation53_spill] sm:$0xff]  ;;  %v3984_v20 = vmax.f32 %v3936_v38, 0.0  ;;  %v3886_v24 = vmul.f32 %v12003_v0, %v14489_v25  ;;  %9177 = vmatprep.subr.mxu1 %v5567_v19  ;;  %v3887_v12 = vmul.f32 %v12003_v0, %v14490_v2  ;;  %v5564_v2 = vld [vmem:[#allocation9 + $0x1c0] sm:$0xff] }
 0x326   : > { %v3884_v51 = vmul.f32 %v12003_v0, %v14487_v30  ;;  %v3938_v41 = vadd.f32 %v12026_v55, %v3883_v34  ;;  %v3985_v37 = vmax.f32 %v3937_v7, 0.0  ;;  %9178 = vmatpush3.msra.mxu1 %v5567_v19  ;;  %v14491_v7 = vld [vmem:[#allocation55_spill] sm:$0xff]  ;;  %v3911_v27 = vmul.f32 %v12003_v0, %v11920_v42 }
 0x327   : > { %v3931_v22 = vadd.f32 %v12026_v55, %v3876_v53  ;;  %v14488_v53 = vld [vmem:[#allocation52_spill] sm:$0xff]  ;;  %v4103_v21 = vpop.permute.xlu1 %4102  ;;  %v3888_v30 = vmul.f32 %v12003_v0, %v14491_v7  ;;  %9179 = vmatprep.subr.mxu1 %v5564_v2  ;;  %v3912_v42 = vmul.f32 %v12003_v0, %v11930_v46 }
 0x328   : > { %v3885_v35 = vmul.f32 %v12003_v0, %v14488_v53  ;;  %v3939_v52 = vadd.f32 %v12026_v55, %v3884_v51  ;;  %v3986_v47 = vmax.f32 %v3938_v41, 0.0  ;;  %v3942_v41 = vadd.f32 %v12026_v55, %v3887_v12  ;;  %9180 = vmatpush3.msra.mxu1 %v5564_v2 }
 0x329   : > { %v3979_v56 = vmax.f32 %v3931_v22, 0.0  ;;  %v4108_v22 = vpop.permute.xlu0 %4107  ;;  %v3889_v53 = vmul.f32 %v12003_v0, %v11743_v10 }
 0x32a   : > { %v12087_v34 = vmul.f32 %v4108_v22, %v3985_v37  ;;  %v3943_v37 = vadd.f32 %v12026_v55, %v3888_v30  ;;  %v3990_v10 = vmax.f32 %v3942_v41, 0.0  ;;  %v3893_v30 = vmul.f32 %v12003_v0, %v11783_v5 }
 0x32b   : > { %v12048_v14 = vmul.f32 %v4078_v18, %v3979_v56  ;;  %v3983_v18 = vmax.f32 %v3935_v28, 0.0  ;;  %v12078_v56 = vmul.f32 %v4103_v21, %v3984_v20  ;;  %v3940_v28 = vadd.f32 %v12026_v55, %v3885_v35  ;;  %v4113_v38 = vpop.permute.xlu1 %4112 }
 0x32c   : > { %v12092_v51 = vmul.f32 %v4113_v38, %v3986_v47  ;;  %v3891_v47 = vmul.f32 %v12003_v0, %v11763_v8  ;;  %v3991_v38 = vmax.f32 %v3943_v37, 0.0  ;;  %v3948_v37 = vadd.f32 %v12026_v55, %v3893_v30  ;;  %v5561_v30 = vld [vmem:[#allocation9 + $0x1a8] sm:$0xff] }
 0x32d   : > { %4596 = vmatmul.mubr.f32.gmra.mxu1 %v12048_v14  ;;  %9085 = vmatmul.mubr.f32.gmra.mxu0 %v12048_v14  ;;  %v12073_v59 = vmul.f32 %v4098_v60, %v3983_v18  ;;  %v4118_v57 = vpop.permute.xlu0 %4117  ;;  %v3987_v60 = vmax.f32 %v3939_v52, 0.0  ;;  %v3941_v18 = vadd.f32 %v12026_v55, %v3886_v24  ;;  %v3988_v20 = vmax.f32 %v3940_v28, 0.0 }
 0x32e   : > { %9087 = vmatprep.mubr.f32.mxu0 %v12050_v6  ;;  %4601 = vmatprep.mubr.f32.mxu1 %v14326_v43  ;;  %14492 = vst [vmem:[#allocation26_spill] sm:$0xff] %v12092_v51  ;;  %v3890_v52 = vmul.f32 %v12003_v0, %v11754_v23  ;;  %v3944_v24 = vadd.f32 %v12026_v55, %v3889_v53 }
 0x32f   : > { %v4123_v35 = vpop.permute.xlu1 %4122  ;;  %v12101_v21 = vmul.f32 %v4118_v57, %v3987_v60  ;;  %v3989_v22 = vmax.f32 %v3941_v18, 0.0  ;;  %v3892_v60 = vmul.f32 %v12003_v0, %v11774_v29  ;;  %v3946_v7 = vadd.f32 %v12026_v55, %v3891_v47  ;;  %9181 = vmatprep.subr.mxu1 %v5561_v30 }
 0x330   : > { %v12106_v25 = vmul.f32 %v4123_v35, %v3988_v20  ;;  %v3945_v57 = vadd.f32 %v12026_v55, %v3890_v52  ;;  %v3992_v18 = vmax.f32 %v3944_v24, 0.0  ;;  %v14494_v52 = vld [vmem:[#allocation23_spill] sm:$0xff]  ;;  %9182 = vmatpush3.msra.mxu1 %v5561_v30 }
 0x331   : > { %4602 = vmatmul.mubr.f32.gmra.mxu1 %v12050_v6  ;;  %9088 = vmatmul.mubr.f32.gmra.mxu0 %v12059_v32  ;;  %14493 = vst [vmem:[#allocation59_spill] sm:$0xff] %v12101_v21  ;;  %v4128_v19 = vpop.permute.xlu0 %4127  ;;  %v3947_v35 = vadd.f32 %v12026_v55, %v3892_v60 }
 0x332   : > { %9090 = vmatprep.mubr.f32.mxu0 %v12064_v45  ;;  %4607 = vmatprep.mubr.f32.mxu1 %v14326_v43  ;;  %v12115_v12 = vmul.f32 %v4128_v19, %v3989_v22  ;;  %v3993_v53 = vmax.f32 %v3945_v57, 0.0  ;;  %v3894_v19 = vmul.f32 %v12003_v0, %v11793_v13  ;;  %v3994_v22 = vmax.f32 %v3946_v7, 0.0 }
 0x333   : > { %v4133_v28 = vpop.permute.xlu1 %4132  ;;  %v3996_v57 = vmax.f32 %v3948_v37, 0.0  ;;  %v3899_v37 = vmul.f32 %v12003_v0, %v11828_v31 }
 0x334   : > { %v12120_v8 = vmul.f32 %v4133_v28, %v3990_v10  ;;  %v3895_v10 = vmul.f32 %v12003_v0, %v14494_v52  ;;  %v3995_v28 = vmax.f32 %v3947_v35, 0.0  ;;  %v3949_v2 = vadd.f32 %v12026_v55, %v3894_v19 }
 0x335   : > { %4608 = vmatmul.mubr.f32.gmra.mxu1 %v12059_v32  ;;  %9091 = vmatmul.mubr.f32.gmra.mxu0 %v12073_v59  ;;  %v4138_v23 = vpop.permute.xlu0 %4137  ;;  %v3898_v35 = vmul.f32 %v12003_v0, %v11821_v39 }
 0x336   : > { %9093 = vmatprep.mubr.f32.mxu0 %v12078_v56  ;;  %4613 = vmatprep.mubr.f32.mxu1 %v14326_v43  ;;  %v12129_v29 = vmul.f32 %v4138_v23, %v3991_v38  ;;  %v3896_v23 = vmul.f32 %v12003_v0, %v11807_v54  ;;  %v3950_v60 = vadd.f32 %v12026_v55, %v3895_v10 }
 0x337   : > { %v4143_v20 = vpop.permute.xlu1 %4142 }
 0x338   : > { %v12134_v5 = vmul.f32 %v4143_v20, %v3992_v18  ;;  %v3897_v18 = vmul.f32 %v12003_v0, %v11814_v9  ;;  %v3998_v19 = vmax.f32 %v3950_v60, 0.0 }
 0x339   : > { %4614 = vmatmul.mubr.f32.gmra.mxu1 %v12064_v45  ;;  %9094 = vmatmul.mubr.f32.gmra.mxu0 %v12087_v34  ;;  %v4148_v41 = vpop.permute.xlu0 %4147 }
 0x33a   : > { %9096 = vmatprep.mubr.f32.mxu0 %v12092_v51  ;;  %4619 = vmatprep.mubr.f32.mxu1 %v14326_v43  ;;  %v12143_v47 = vmul.f32 %v4148_v41, %v3993_v53  ;;  %v3997_v41 = vmax.f32 %v3949_v2, 0.0  ;;  %v3951_v53 = vadd.f32 %v12026_v55, %v3896_v23  ;;  %v3954_v23 = vadd.f32 %v12026_v55, %v3899_v37 }
 0x33b   : > { %v4153_v24 = vpop.permute.xlu1 %4152 }
 0x33c   : > { %v12148_v38 = vmul.f32 %v4153_v24, %v3994_v22  ;;  %v3952_v22 = vadd.f32 %v12026_v55, %v3897_v18  ;;  %v3999_v24 = vmax.f32 %v3951_v53, 0.0 }
 0x33d   : > { %4620 = vmatmul.mubr.f32.gmra.mxu1 %v12073_v59  ;;  %9097 = vmatmul.mubr.f32.gmra.mxu0 %v12101_v21  ;;  %v4158_v13 = vpop.permute.xlu0 %4157 }
 0x33e   : > { %9099 = vmatprep.mubr.f32.mxu0 %v12106_v25  ;;  %4625 = vmatprep.mubr.f32.mxu1 %v14326_v43  ;;  %v12157_v20 = vmul.f32 %v4158_v13, %v3995_v28  ;;  %v3953_v13 = vadd.f32 %v12026_v55, %v3898_v35  ;;  %v3900_v28 = vmul.f32 %v12003_v0, %v11835_v40  ;;  %v4000_v2 = vmax.f32 %v3952_v22, 0.0  ;;  %v5558_v22 = vld [vmem:[#allocation9 + $0x190] sm:$0xff] }
 0x33f   : > { %v4163_v7 = vpop.permute.xlu1 %4162  ;;  %v3903_v35 = vmul.f32 %v12003_v0, %v11856_v61  ;;  %9183 = vmatprep.subr.mxu1 %v5558_v22 }
 0x340   : > { %v12162_v9 = vmul.f32 %v4163_v7, %v3996_v57  ;;  %v3901_v57 = vmul.f32 %v12003_v0, %v11842_v48  ;;  %v4001_v7 = vmax.f32 %v3953_v13, 0.0  ;;  %v3955_v30 = vadd.f32 %v12026_v55, %v3900_v28  ;;  %9184 = vmatpush3.msra.mxu1 %v5558_v22 }
 0x341   : > { %4626 = vmatmul.mubr.f32.gmra.mxu1 %v12078_v56  ;;  %9100 = vmatmul.mubr.f32.gmra.mxu0 %v12115_v12  ;;  %v4168_v54 = vpop.permute.xlu0 %4167  ;;  %v4002_v48 = vmax.f32 %v3954_v23, 0.0  ;;  %v3958_v28 = vadd.f32 %v12026_v55, %v3903_v35  ;;  %v3907_v35 = vmul.f32 %v12003_v0, %v11886_v49  ;;  %v3908_v22 = vmul.f32 %v12003_v0, %v11896_v26 }
 0x342   : > { %9102 = vmatprep.mubr.f32.mxu0 %v12120_v8  ;;  %4631 = vmatprep.mubr.f32.mxu1 %v14326_v43  ;;  %v12171_v39 = vmul.f32 %v4168_v54, %v3997_v41  ;;  %v3902_v54 = vmul.f32 %v12003_v0, %v11849_v11  ;;  %v3956_v53 = vadd.f32 %v12026_v55, %v3901_v57 }
 0x343   : > { %v4173_v52 = vpop.permute.xlu1 %4172  ;;  %v3909_v26 = vmul.f32 %v12003_v0, %v11903_v63 }
 0x344   : > { %14495 = vst [vmem:[#allocation31_spill] sm:$0xff] %v12171_v39  ;;  %v12176_v31 = vmul.f32 %v4173_v52, %v3998_v19  ;;  %v4003_v52 = vmax.f32 %v3955_v30, 0.0  ;;  %v4004_v13 = vmax.f32 %v3956_v53, 0.0  ;;  %v3906_v30 = vmul.f32 %v12003_v0, %v11879_v16 }
 0x345   : > { %4632 = vmatmul.mubr.f32.gmra.mxu1 %v12087_v34  ;;  %9103 = vmatmul.mubr.f32.gmra.mxu0 %v12129_v29  ;;  %v4178_v10 = vpop.permute.xlu0 %4177 }
 0x346   : > { %9105 = vmatprep.mubr.f32.mxu0 %v12134_v5  ;;  %4637 = vmatprep.mubr.f32.mxu1 %v14326_v43  ;;  %v12185_v18 = vmul.f32 %v4178_v10, %v3999_v24  ;;  %v3957_v10 = vadd.f32 %v12026_v55, %v3902_v54  ;;  %v3904_v24 = vmul.f32 %v12003_v0, %v11863_v33 }
 0x347   : > { %v4183_v60 = vpop.permute.xlu1 %4182  ;;  %v3961_v49 = vadd.f32 %v12026_v55, %v3906_v30 }
 0x348   : > { %v12190_v41 = vmul.f32 %v4183_v60, %v4000_v2  ;;  %v14497_v2 = vld [vmem:[#allocation22_spill] sm:$0xff] }
 0x349   : > { %4638 = vmatmul.mubr.f32.gmra.mxu1 %v12092_v51  ;;  %9106 = vmatmul.mubr.f32.gmra.mxu0 %v12143_v47  ;;  %v4188_v40 = vpop.permute.xlu0 %4187  ;;  %v3905_v23 = vmul.f32 %v12003_v0, %v14497_v2 }
 0x34a   : > { %9108 = vmatprep.mubr.f32.mxu0 %v12148_v38  ;;  %4643 = vmatprep.mubr.f32.mxu1 %v14326_v43  ;;  %v12199_v37 = vmul.f32 %v4188_v40, %v4001_v7  ;;  %v4005_v40 = vmax.f32 %v3957_v10, 0.0  ;;  %v3959_v7 = vadd.f32 %v12026_v55, %v3904_v24 }
 0x34b   : > { %v4193_v19 = vpop.permute.xlu1 %4192  ;;  %v3960_v53 = vadd.f32 %v12026_v55, %v3905_v23 }
 0x34c   : > { %14496 = vst [vmem:[#allocation29_spill] sm:$0xff] %v12199_v37  ;;  %v12204_v61 = vmul.f32 %v4193_v19, %v4002_v48  ;;  %v4006_v48 = vmax.f32 %v3958_v28, 0.0  ;;  %v4007_v10 = vmax.f32 %v3959_v7, 0.0  ;;  %v3962_v28 = vadd.f32 %v12026_v55, %v3907_v35 }
 0x34d   : > { %4644 = vmatmul.mubr.f32.gmra.mxu1 %v12101_v21  ;;  %9109 = vmatmul.mubr.f32.gmra.mxu0 %v12157_v20  ;;  %v4198_v11 = vpop.permute.xlu0 %4197 }
 0x34e   : > { %9111 = vmatprep.mubr.f32.mxu0 %v12162_v9  ;;  %4649 = vmatprep.mubr.f32.mxu1 %v14326_v43  ;;  %v12213_v33 = vmul.f32 %v4198_v11, %v4003_v52 }
 0x34f   : > { %v4203_v57 = vpop.permute.xlu1 %4202 }
 0x350   : > { %14498 = vst [vmem:[#allocation61_spill] sm:$0xff] %v12213_v33  ;;  %v12218_v54 = vmul.f32 %v4203_v57, %v4004_v13  ;;  %v4008_v13 = vmax.f32 %v3960_v53, 0.0  ;;  %v6789_v57 = vld [vmem:[#allocation9 + $0x470] sm:$0xff] }
 0x351   : > { %4650 = vmatmul.mubr.f32.gmra.mxu1 %v12106_v25  ;;  %9112 = vmatmul.mubr.f32.gmra.mxu0 %v12171_v39  ;;  %v4208_v60 = vpop.permute.xlu0 %4207  ;;  %v14503_v53 = vld [vmem:[#allocation56_spill] sm:$0xff] }
 0x352   : > { %9114 = vmatprep.mubr.f32.mxu0 %v12176_v31  ;;  %4655 = vmatprep.mubr.f32.mxu1 %v14326_v43  ;;  %v12231_v11 = vmul.f32 %v4208_v60, %v4005_v40  ;;  %v12243_v60 = vld [vmem:[#allocation9 + $0x478] sm:$0xff]  ;;  %v3963_v40 = vadd.f32 %v12026_v55, %v3908_v22  ;;  %v3910_v35 = vmul.f32 %v12003_v0, %v14503_v53 }
 0x353   : > { %v4213_v19 = vpop.permute.xlu1 %4212  ;;  %6791 = vmatprep.subr.mxu1 %v6789_v57  ;;  %9257 = vmatprep.subr.mxu0 %v12243_v60  ;;  %v3964_v22 = vadd.f32 %v12026_v55, %v3909_v26  ;;  %v3966_v57 = vadd.f32 %v12026_v55, %v3911_v27 }
 0x354   : > { %14500 = vst [vmem:[#allocation32_spill] sm:$0xff] %v12231_v11  ;;  %v12234_v24 = vmul.f32 %v4213_v19, %v4006_v48  ;;  %v4009_v48 = vmax.f32 %v3961_v49, 0.0 }
 0x355   : > { %4656 = vmatmul.mubr.f32.gmra.mxu1 %v12115_v12  ;;  %9115 = vmatmul.mubr.f32.gmra.mxu0 %v12185_v18  ;;  %v4218_v52 = vpop.permute.xlu0 %4217 }
 0x356   : > { %9117 = vmatprep.mubr.f32.mxu0 %v12190_v41  ;;  %4661 = vmatprep.mubr.f32.mxu1 %v14326_v43  ;;  %v12250_v30 = vmul.f32 %v4218_v52, %v4007_v10  ;;  %v4011_v10 = vmax.f32 %v3963_v40, 0.0  ;;  %v3913_v40 = vmul.f32 %v12003_v0, %v11937_v58  ;;  %v3967_v58 = vadd.f32 %v12026_v55, %v3912_v42 }
 0x357   : > { %v4223_v23 = vpop.permute.xlu1 %4222 }
 0x358   : > { %14502 = vst [vmem:[#allocation35_spill] sm:$0xff] %v12250_v30  ;;  %v12255_v19 = vmul.f32 %v4223_v23, %v4008_v13  ;;  %v4012_v23 = vmax.f32 %v3964_v22, 0.0 }
 0x359   : > { %4662 = vmatmul.mubr.f32.gmra.mxu1 %v12120_v8  ;;  %9118 = vmatmul.mubr.f32.gmra.mxu0 %v12199_v37  ;;  %v4228_v63 = vpop.permute.xlu0 %4227 }
 0x35a   : > { %9120 = vmatprep.mubr.f32.mxu0 %v12204_v61  ;;  %4667 = vmatprep.mubr.f32.mxu1 %v14326_v43  ;;  %v12266_v49 = vmul.f32 %v4228_v63, %v4009_v48 }
 0x35b   : > { %v4233_v52 = vpop.permute.xlu1 %4232 }
 0x35c   : > { %v12229_v16 = vpop.f32.mrf.mxu1  ;;  %14505 = vst [vmem:[#allocation64_spill] sm:$0xff] %v12266_v49 }
 0x35d   : > { %4668 = vmatmul.mubr.f32.gmra.mxu1 %v12129_v29  ;;  %9121 = vmatmul.mubr.f32.gmra.mxu0 %v12213_v33  ;;  %14499 = vst [vmem:[#allocation33_spill] sm:$0xff] %v12229_v16  ;;  %v4238_v13 = vpop.permute.xlu0 %4237 }
 0x35e   : > { %9123 = vmatprep.mubr.f32.mxu0 %v12218_v54  ;;  %4673 = vmatprep.mubr.f32.mxu1 %v14326_v43  ;;  %v12239_v2 = vpop.f32.mrf.mxu1  ;;  %v12282_v46 = vmul.f32 %v4238_v13, %v4011_v10  ;;  %v4014_v10 = vmax.f32 %v3966_v57, 0.0  ;;  %v3968_v13 = vadd.f32 %v12026_v55, %v3913_v40  ;;  %v3916_v57 = vmul.f32 %v12003_v0, %v11962_v15 }
 0x35f   : > { %14501 = vst [vmem:[#allocation62_spill] sm:$0xff] %v12239_v2  ;;  %v4010_v2 = vmax.f32 %v3962_v28, 0.0  ;;  %v3965_v28 = vadd.f32 %v12026_v55, %v3910_v35  ;;  %v4243_v62 = vpop.permute.xlu1 %4242 }
 0x360   : > { %v12248_v7 = vpop.f32.mrf.mxu1  ;;  %14508 = vst [vmem:[#allocation65_spill] sm:$0xff] %v12282_v46  ;;  %v12297_v22 = vmul.f32 %v4243_v62, %v4012_v23  ;;  %v4015_v62 = vmax.f32 %v3967_v58, 0.0  ;;  %v3918_v58 = vmul.f32 %v12003_v0, %v11976_v44 }
 0x361   : > { %4674 = vmatmul.mubr.f32.gmra.mxu1 %v12134_v5  ;;  %9124 = vmatmul.mubr.f32.gmra.mxu0 %v12231_v11  ;;  %v12271_v26 = vmul.f32 %v4233_v52, %v4010_v2  ;;  %v14240_v63 = vrot.slane %v12248_v7, 7  ;;  %v4013_v27 = vmax.f32 %v3965_v28, 0.0  ;;  %v3914_v2 = vmul.f32 %v12003_v0, %v11947_v4  ;;  %v4248_v52 = vpop.permute.xlu0 %4247  ;;  %v14511_v28 = vld [vmem:[#allocation25_spill] sm:$0xff] }
 0x362   : > { %9126 = vmatprep.mubr.f32.mxu0 %v12234_v24  ;;  %4679 = vmatprep.mubr.f32.mxu1 %v14326_v43  ;;  %v12260_v3 = vpop.f32.mrf.mxu1  ;;  %14510 = vst [vmem:[#allocation38_spill] sm:$0xff] %v12297_v22  ;;  %v3915_v42 = vmul.f32 %v12003_v0, %v14511_v28 }
 0x363   : > { %14504 = vst [vmem:[#allocation34_spill] sm:$0xff] %v12260_v3  ;;  %14506 = vst [vmem:[#allocation37_spill] sm:$0xff] %v12271_v26  ;;  %v4253_v3 = vpop.permute.xlu1 %4252  ;;  %v12306_v4 = vmul.f32 %v4248_v52, %v4013_v27  ;;  %v3969_v23 = vadd.f32 %v12026_v55, %v3914_v2 }
 0x364   : > { %v12276_v53 = vpop.f32.mrf.mxu1  ;;  %v12311_v40 = vmul.f32 %v4253_v3, %v4014_v10  ;;  %v3971_v3 = vadd.f32 %v12026_v55, %v3916_v57 }
 0x365   : > { %4680 = vmatmul.mubr.f32.gmra.mxu1 %v12143_v47  ;;  %9127 = vmatmul.mubr.f32.gmra.mxu0 %v12250_v30  ;;  %14507 = vst [vmem:[#allocation36_spill] sm:$0xff] %v12276_v53  ;;  %v14239_v48 = vrot.slane %v12276_v53, 7  ;;  %14512 = vst [vmem:[#allocation67_spill] sm:$0xff] %v12306_v4  ;;  %v4258_v28 = vpop.permute.xlu0 %4257  ;;  %v4017_v15 = vmax.f32 %v3969_v23, 0.0 }
 0x366   : > { %9129 = vmatprep.mubr.f32.mxu0 %v12255_v19  ;;  %4685 = vmatprep.mubr.f32.mxu1 %v14326_v43  ;;  %14513 = vst [vmem:[#allocation43_spill] sm:$0xff] %v12311_v40  ;;  %v12320_v27 = vmul.f32 %v4258_v28, %v4015_v62  ;;  %v4019_v44 = vmax.f32 %v3971_v3, 0.0 }
 0x367   : > { %v12295_v35 = vsel %vm1157_vm0, %v14240_v63, %v14239_v48  ;;  %v4016_v48 = vmax.f32 %v3968_v13, 0.0  ;;  %v3970_v63 = vadd.f32 %v12026_v55, %v3915_v42  ;;  %v4263_v53 = vpop.permute.xlu1 %4262  ;;  %v3919_v13 = vmul.f32 %v12003_v0, %v11983_v17 }
 0x368   : > { %14509 = vst [vmem:[#allocation39_spill] sm:$0xff] %v12295_v35  ;;  %v3917_v35 = vmul.f32 %v12003_v0, %v11969_v50  ;;  %14514 = vst [vmem:[#allocation41_spill] sm:$0xff] %v12320_v27 }
 0x369   : > { %4686 = vmatmul.mubr.f32.gmra.mxu1 %v12148_v38  ;;  %9130 = vmatmul.mubr.f32.gmra.mxu0 %v12266_v49  ;;  %v12325_v2 = vmul.f32 %v4263_v53, %v4016_v48  ;;  %v4268_v50 = vpop.permute.xlu0 %4267  ;;  %v4018_v52 = vmax.f32 %v3970_v63, 0.0  ;;  %v3973_v53 = vadd.f32 %v12026_v55, %v3918_v58  ;;  %v3920_v63 = vmul.f32 %v12003_v0, %v11990_v1 }
 0x36a   : > { %9132 = vmatprep.mubr.f32.mxu0 %v12271_v26  ;;  %4691 = vmatprep.mubr.f32.mxu1 %v14326_v43  ;;  %v3972_v10 = vadd.f32 %v12026_v55, %v3917_v35  ;;  %v12334_v62 = vmul.f32 %v4268_v50, %v4017_v15  ;;  %v3974_v23 = vadd.f32 %v12026_v55, %v3919_v13 }
 0x36b   : > { %14515 = vst [vmem:[#allocation68_spill] sm:$0xff] %v12325_v2  ;;  %v4273_v42 = vpop.permute.xlu1 %4272  ;;  %v4021_v15 = vmax.f32 %v3973_v53, 0.0  ;;  %v3975_v1 = vadd.f32 %v12026_v55, %v3920_v63  ;;  %v6784_v53 = vld [vmem:[#allocation9 + $0x448] sm:$0xff]  ;;  %v6781_v63 = vld [vmem:[#allocation9 + $0x430] sm:$0xff] }
 0x36c   : > { %14516 = vst [vmem:[#allocation47_spill] sm:$0xff] %v12334_v62  ;;  %v12339_v48 = vmul.f32 %v4273_v42, %v4018_v52  ;;  %v4020_v35 = vmax.f32 %v3972_v10, 0.0  ;;  %v4022_v58 = vmax.f32 %v3974_v23, 0.0  ;;  %v6769_v23 = vld [vmem:[#allocation9 + $0x3d0] sm:$0xff] }
 0x36d   : > { %4692 = vmatmul.mubr.f32.gmra.mxu1 %v12157_v20  ;;  %9133 = vmatmul.mubr.f32.gmra.mxu0 %v12282_v46  ;;  %v4278_v17 = vpop.permute.xlu0 %4277  ;;  %v4023_v10 = vmax.f32 %v3975_v1, 0.0  ;;  %v6760_v1 = vld [vmem:[#allocation9 + $0x388] sm:$0xff] }
 0x36e   : > { %9135 = vmatprep.mubr.f32.mxu0 %v12297_v22  ;;  %4697 = vmatprep.mubr.f32.mxu1 %v14326_v43  ;;  %14517 = vst [vmem:[#allocation45_spill] sm:$0xff] %v12339_v48  ;;  %v12346_v28 = vmul.f32 %v4278_v17, %v4019_v44  ;;  %v6787_v44 = vld [vmem:[#allocation9 + $0x460] sm:$0xff] }
 0x36f   : > { %v4283_v57 = vpop.permute.xlu1 %4282  ;;  %v6775_v17 = vld [vmem:[#allocation9 + $0x400] sm:$0xff] }
 0x370   : > { %14518 = vst [vmem:[#allocation70_spill] sm:$0xff] %v12346_v28  ;;  %v12349_v0 = vmul.f32 %v4283_v57, %v4020_v35  ;;  %v6772_v35 = vld [vmem:[#allocation9 + $0x3e8] sm:$0xff]  ;;  %v6766_v57 = vld [vmem:[#allocation9 + $0x3b8] sm:$0xff] }
 0x371   : > { %4698 = vmatmul.mubr.f32.gmra.mxu1 %v12162_v9  ;;  %9136 = vmatmul.mubr.f32.gmra.mxu0 %v12306_v4  ;;  %v4288_v3 = vpop.permute.xlu0 %4287 }
 0x372   : > { %9138 = vmatprep.mubr.f32.mxu0 %v12311_v40  ;;  %4703 = vmatprep.mubr.f32.mxu1 %v14326_v43  ;;  %14519 = vst [vmem:[#allocation51_spill] sm:$0xff] %v12349_v0  ;;  %v12355_v52 = vmul.f32 %v4288_v3, %v4021_v15  ;;  %v6763_v15 = vld [vmem:[#allocation9 + $0x3a0] sm:$0xff]  ;;  %v6757_v3 = vld [vmem:[#allocation9 + $0x370] sm:$0xff] }
 0x373   : > { %v4293_v50 = vpop.permute.xlu1 %4292 }
 0x374   : > { %14520 = vst [vmem:[#allocation49_spill] sm:$0xff] %v12355_v52  ;;  %v12357_v13 = vmul.f32 %v4293_v50, %v4022_v58  ;;  %v6754_v58 = vld [vmem:[#allocation9 + $0x358] sm:$0xff]  ;;  %v6751_v50 = vld [vmem:[#allocation9 + $0x340] sm:$0xff] }
 0x375   : > { %4704 = vmatmul.mubr.f32.gmra.mxu1 %v12171_v39  ;;  %9139 = vmatmul.mubr.f32.gmra.mxu0 %v12320_v27  ;;  %v4298_v42 = vpop.permute.xlu0 %4297 }
 0x376   : > { %9141 = vmatprep.mubr.f32.mxu0 %v12325_v2  ;;  %4709 = vmatprep.mubr.f32.mxu1 %v14326_v43  ;;  %v12363_v55 = vmul.f32 %v4298_v42, %v4023_v10  ;;  %v6748_v10 = vld [vmem:[#allocation9 + $0x328] sm:$0xff]  ;;  %v6745_v42 = vld [vmem:[#allocation9 + $0x310] sm:$0xff] }
 0x379   : > { %4710 = vmatmul.mubr.f32.gmra.mxu1 %v12176_v31  ;;  %9142 = vmatmul.mubr.f32.gmra.mxu0 %v12334_v62 }
 0x37a   : > { %9144 = vmatprep.mubr.f32.mxu0 %v12339_v48  ;;  %4715 = vmatprep.mubr.f32.mxu1 %v14326_v43 }
 0x37d   : > { %4716 = vmatmul.mubr.f32.gmra.mxu1 %v12185_v18  ;;  %9145 = vmatmul.mubr.f32.gmra.mxu0 %v12346_v28 }
 0x37e   : > { %9147 = vmatprep.mubr.f32.mxu0 %v12349_v0  ;;  %4721 = vmatprep.mubr.f32.mxu1 %v14326_v43 }
 0x381   : > { %4722 = vmatmul.mubr.f32.gmra.mxu1 %v12190_v41  ;;  %9148 = vmatmul.mubr.f32.gmra.mxu0 %v12355_v52 }
 0x382   : > { %9150 = vmatprep.mubr.f32.mxu0 %v12357_v13  ;;  %4727 = vmatprep.mubr.f32.mxu1 %v14326_v43 }
 0x385   : > { %4728 = vmatmul.mubr.f32.gmra.mxu1 %v12199_v37  ;;  %9151 = vmatmul.mubr.f32.gmra.mxu0 %v12363_v55 }
 0x386   : > { %4733 = vmatprep.mubr.f32.mxu1 %v14326_v43  ;;  %5668 = vmatprep.mubr.f32.mxu0 %v14326_v43 }
 0x389   : > { %4734 = vmatmul.mubr.f32.gmra.mxu1 %v12204_v61  ;;  %5669 = vmatmul.mubr.f32.vlgmr.msra.gmra.mxu0 %v12048_v14 }
 0x38a   : > { %4739 = vmatprep.mubr.f32.mxu1 %v14326_v43  ;;  %5674 = vmatprep.mubr.f32.mxu0 %v14326_v43 }
 0x38b   : > { %9258 = vmatpush3.msra.mxu0 %v12243_v60  ;;  %v6778_v60 = vld [vmem:[#allocation9 + $0x418] sm:$0xff] }
 0x38c   : > { %9259 = vmatprep.subr.mxu0 %v6787_v44 }
 0x38d   : > { %4740 = vmatmul.mubr.f32.gmra.mxu1 %v12213_v33  ;;  %5675 = vmatmul.mubr.f32.gmra.mxu0 %v12050_v6 }
 0x38e   : > { %4745 = vmatprep.mubr.f32.mxu1 %v14326_v43  ;;  %5680 = vmatprep.mubr.f32.mxu0 %v14326_v43 }
 0x38f   : > { %9260 = vmatpush3.msra.mxu0 %v6787_v44  ;;  %v6788_v44 = vld [vmem:[#allocation9 + $0x468] sm:$0xff] }
 0x390   : > { %9261 = vmatprep.subr.mxu0 %v6784_v53 }
 0x391   : > { %4746 = vmatmul.mubr.f32.gmra.mxu1 %v12218_v54  ;;  %5681 = vmatmul.mubr.f32.gmra.mxu0 %v12059_v32 }
 0x392   : > { %4751 = vmatprep.mubr.f32.mxu1 %v14326_v43  ;;  %5686 = vmatprep.mubr.f32.mxu0 %v14326_v43 }
 0x393   : > { %9262 = vmatpush3.msra.mxu0 %v6784_v53  ;;  %v6786_v53 = vld [vmem:[#allocation9 + $0x458] sm:$0xff] }
 0x394   : > { %9263 = vmatprep.subr.mxu0 %v6781_v63 }
 0x395   : > { %4752 = vmatmul.mubr.f32.gmra.mxu1 %v12231_v11  ;;  %5687 = vmatmul.mubr.f32.gmra.mxu0 %v12064_v45 }
 0x396   : > { %4757 = vmatprep.mubr.f32.mxu1 %v14326_v43  ;;  %5692 = vmatprep.mubr.f32.mxu0 %v14326_v43 }
 0x397   : > { %9264 = vmatpush3.msra.mxu0 %v6781_v63  ;;  %v6785_v63 = vld [vmem:[#allocation9 + $0x450] sm:$0xff] }
 0x398   : > { %9265 = vmatprep.subr.mxu0 %v6778_v60 }
 0x399   : > { %4758 = vmatmul.mubr.f32.gmra.mxu1 %v12234_v24  ;;  %5693 = vmatmul.mubr.f32.gmra.mxu0 %v12073_v59 }
 0x39a   : > { %4763 = vmatprep.mubr.f32.mxu1 %v14326_v43  ;;  %5698 = vmatprep.mubr.f32.mxu0 %v14326_v43 }
 0x39b   : > { %9266 = vmatpush3.msra.mxu0 %v6778_v60  ;;  %v6783_v60 = vld [vmem:[#allocation9 + $0x440] sm:$0xff] }
 0x39c   : > { %9267 = vmatprep.subr.mxu0 %v6775_v17 }
 0x39d   : > { %4764 = vmatmul.mubr.f32.gmra.mxu1 %v12250_v30  ;;  %5699 = vmatmul.mubr.f32.gmra.mxu0 %v12078_v56 }
 0x39e   : > { %4769 = vmatprep.mubr.f32.mxu1 %v14326_v43  ;;  %5704 = vmatprep.mubr.f32.mxu0 %v14326_v43 }
 0x39f   : > { %9268 = vmatpush3.msra.mxu0 %v6775_v17  ;;  %v6782_v17 = vld [vmem:[#allocation9 + $0x438] sm:$0xff] }
 0x3a0   : > { %9269 = vmatprep.subr.mxu0 %v6772_v35 }
 0x3a1   : > { %4770 = vmatmul.mubr.f32.gmra.mxu1 %v12255_v19  ;;  %5705 = vmatmul.mubr.f32.gmra.mxu0 %v12087_v34 }
 0x3a2   : > { %4775 = vmatprep.mubr.f32.mxu1 %v14326_v43  ;;  %5710 = vmatprep.mubr.f32.mxu0 %v14326_v43 }
 0x3a3   : > { %9270 = vmatpush3.msra.mxu0 %v6772_v35  ;;  %v6779_v35 = vld [vmem:[#allocation9 + $0x420] sm:$0xff] }
 0x3a4   : > { %9271 = vmatprep.subr.mxu0 %v6769_v23 }
 0x3a5   : > { %4776 = vmatmul.mubr.f32.gmra.mxu1 %v12266_v49  ;;  %5711 = vmatmul.mubr.f32.gmra.mxu0 %v12092_v51 }
 0x3a6   : > { %4781 = vmatprep.mubr.f32.mxu1 %v14326_v43  ;;  %5716 = vmatprep.mubr.f32.mxu0 %v14326_v43 }
 0x3a7   : > { %9272 = vmatpush3.msra.mxu0 %v6769_v23  ;;  %v14243_v23 = vrot.slane %v12229_v16, 7  ;;  %v6774_v16 = vld [vmem:[#allocation9 + $0x3f8] sm:$0xff] }
 0x3a8   : > { %9273 = vmatprep.subr.mxu0 %v6766_v57 }
 0x3a9   : > { %4782 = vmatmul.mubr.f32.gmra.mxu1 %v12271_v26  ;;  %5717 = vmatmul.mubr.f32.gmra.mxu0 %v12101_v21 }
 0x3aa   : > { %4787 = vmatprep.mubr.f32.mxu1 %v14326_v43  ;;  %5722 = vmatprep.mubr.f32.mxu0 %v14326_v43 }
 0x3ab   : > { %9274 = vmatpush3.msra.mxu0 %v6766_v57  ;;  %v4593_v57 = vpop.f32.mrf.mxu1 }
 0x3ac   : > { %9275 = vmatprep.subr.mxu0 %v6763_v15 }
 0x3ad   : > { %4788 = vmatmul.mubr.f32.gmra.mxu1 %v12282_v46  ;;  %5723 = vmatmul.mubr.f32.gmra.mxu0 %v12106_v25 }
 0x3ae   : > { %4793 = vmatprep.mubr.f32.mxu1 %v14326_v43  ;;  %5728 = vmatprep.mubr.f32.mxu0 %v14326_v43 }
 0x3af   : > { %9276 = vmatpush3.msra.mxu0 %v6763_v15  ;;  %v6777_v15 = vld [vmem:[#allocation9 + $0x410] sm:$0xff] }
 0x3b0   : > { %9277 = vmatprep.subr.mxu0 %v6760_v1 }
 0x3b1   : > { %4794 = vmatmul.mubr.f32.gmra.mxu1 %v12297_v22  ;;  %5729 = vmatmul.mubr.f32.gmra.mxu0 %v12115_v12 }
 0x3b2   : > { %4799 = vmatprep.mubr.f32.mxu1 %v14326_v43  ;;  %5734 = vmatprep.mubr.f32.mxu0 %v14326_v43 }
 0x3b3   : > { %9278 = vmatpush3.msra.mxu0 %v6760_v1 }
 0x3b4   : > { %9279 = vmatprep.subr.mxu0 %v6757_v3 }
 0x3b5   : > { %4800 = vmatmul.mubr.f32.gmra.mxu1 %v12306_v4  ;;  %5735 = vmatmul.mubr.f32.gmra.mxu0 %v12120_v8 }
 0x3b6   : > { %4805 = vmatprep.mubr.f32.mxu1 %v14326_v43  ;;  %5740 = vmatprep.mubr.f32.mxu0 %v14326_v43 }
 0x3b7   : > { %9280 = vmatpush3.msra.mxu0 %v6757_v3 }
 0x3b8   : > { %9281 = vmatprep.subr.mxu0 %v6754_v58 }
 0x3b9   : > { %4806 = vmatmul.mubr.f32.gmra.mxu1 %v12311_v40  ;;  %5741 = vmatmul.mubr.f32.gmra.mxu0 %v12129_v29 }
 0x3ba   : > { %4811 = vmatprep.mubr.f32.mxu1 %v14326_v43  ;;  %5746 = vmatprep.mubr.f32.mxu0 %v14326_v43 }
 0x3bb   : > { %9282 = vmatpush3.msra.mxu0 %v6754_v58  ;;  %v6776_v58 = vld [vmem:[#allocation9 + $0x408] sm:$0xff] }
 0x3bc   : > { %9283 = vmatprep.subr.mxu0 %v6751_v50 }
 0x3bd   : > { %4812 = vmatmul.mubr.f32.gmra.mxu1 %v12320_v27  ;;  %5747 = vmatmul.mubr.f32.gmra.mxu0 %v12134_v5 }
 0x3be   : > { %4817 = vmatprep.mubr.f32.mxu1 %v14326_v43  ;;  %5752 = vmatprep.mubr.f32.mxu0 %v14326_v43 }
 0x3bf   : > { %9284 = vmatpush3.msra.mxu0 %v6751_v50  ;;  %v14523_v50 = vrot.slane %v12248_v7, 7 }
 0x3c0   : > { %9285 = vmatprep.subr.mxu0 %v6748_v10 }
 0x3c1   : > { %4818 = vmatmul.mubr.f32.gmra.mxu1 %v12325_v2  ;;  %5753 = vmatmul.mubr.f32.gmra.mxu0 %v12143_v47 }
 0x3c2   : > { %4823 = vmatprep.mubr.f32.mxu1 %v14326_v43  ;;  %5758 = vmatprep.mubr.f32.mxu0 %v14326_v43 }
 0x3c3   : > { %9286 = vmatpush3.msra.mxu0 %v6748_v10  ;;  %v5265_v10 = vsel %vm1157_vm0, %v14243_v23, %v14523_v50  ;;  %v14526_v50 = vld [vmem:[#allocation34_spill] sm:$0xff] }
 0x3c4   : > { %9287 = vmatprep.subr.mxu0 %v6745_v42  ;;  %v5268_v23 = vadd.f32 %v5265_v10, %v14526_v50 }
 0x3c5   : > { %4824 = vmatmul.mubr.f32.gmra.mxu1 %v12334_v62  ;;  %5759 = vmatmul.mubr.f32.gmra.mxu0 %v12148_v38 }
 0x3c6   : > { %4829 = vmatprep.mubr.f32.mxu1 %v14326_v43  ;;  %5764 = vmatprep.mubr.f32.mxu0 %v14326_v43 }
 0x3c7   : > { %9288 = vmatpush3.msra.mxu0 %v6745_v42  ;;  %v14527_v42 = vld [vmem:[#allocation39_spill] sm:$0xff] }
 0x3c9   : > { %4830 = vmatmul.mubr.f32.gmra.mxu1 %v12339_v48  ;;  %5765 = vmatmul.mubr.f32.gmra.mxu0 %v12157_v20 }
 0x3ca   : > { %4835 = vmatprep.mubr.f32.mxu1 %v14326_v43  ;;  %5770 = vmatprep.mubr.f32.mxu0 %v14326_v43 }
 0x3cd   : > { %4836 = vmatmul.mubr.f32.gmra.mxu1 %v12346_v28  ;;  %5771 = vmatmul.mubr.f32.gmra.mxu0 %v12162_v9 }
 0x3ce   : > { %4841 = vmatprep.mubr.f32.mxu1 %v14326_v43  ;;  %5776 = vmatprep.mubr.f32.mxu0 %v14326_v43 }
 0x3d1   : > { %4842 = vmatmul.mubr.f32.gmra.mxu1 %v12349_v0  ;;  %5777 = vmatmul.mubr.f32.gmra.mxu0 %v12171_v39 }
 0x3d2   : > { %4847 = vmatprep.mubr.f32.mxu1 %v14326_v43  ;;  %5782 = vmatprep.mubr.f32.mxu0 %v14326_v43 }
 0x3d5   : > { %4848 = vmatmul.mubr.f32.gmra.mxu1 %v12355_v52  ;;  %5783 = vmatmul.mubr.f32.gmra.mxu0 %v12176_v31 }
 0x3d6   : > { %4853 = vmatprep.mubr.f32.mxu1 %v14326_v43  ;;  %5788 = vmatprep.mubr.f32.mxu0 %v14326_v43 }
 0x3d9   : > { %4854 = vmatmul.mubr.f32.gmra.mxu1 %v12357_v13  ;;  %5789 = vmatmul.mubr.f32.gmra.mxu0 %v12185_v18 }
 0x3da   : > { %4859 = vmatprep.mubr.f32.mxu1 %v14326_v43  ;;  %5794 = vmatprep.mubr.f32.mxu0 %v14326_v43 }
 0x3dd   : > { %4860 = vmatmul.mubr.f32.gmra.mxu1 %v12363_v55  ;;  %5795 = vmatmul.mubr.f32.gmra.mxu0 %v12190_v41 }
 0x3de   : > { %9185 = vmatprep.mubr.f32.mxu1 %v12048_v14  ;;  %5800 = vmatprep.mubr.f32.mxu0 %v14326_v43  ;;  %v12464_v14 = vpop.f32.mrf.mxu0 }
 0x3df   : > { %14521 = vst [vmem:[#allocation57_spill] sm:$0xff] %v12464_v14 }
 0x3e1   : > { %5801 = vmatmul.mubr.f32.gmra.mxu0 %v12199_v37  ;;  %9186 = vmatmul.mubr.f32.vlgmr.msra.gmra.mxu1 %v12050_v6  ;;  %v6780_v6 = vld [vmem:[#allocation9 + $0x428] sm:$0xff] }
 0x3e2   : > { %9188 = vmatprep.mubr.f32.mxu1 %v12059_v32  ;;  %6792 = vmatpush1.msra.mxu1 %v6788_v44  ;;  %v12470_v32 = vpop.f32.mrf.mxu0 }
 0x3e3   : > { %5806 = vmatprep.mubr.f32.mxu0 %v14326_v43  ;;  %6793 = vmatprep.subr.mxu1 %v6786_v53  ;;  %14522 = vst [vmem:[#allocation54_spill] sm:$0xff] %v12470_v32 }
 0x3e4   : > { %6794 = vmatpush1.msra.mxu1 %v6785_v63 }
 0x3e5   : > { %5807 = vmatmul.mubr.f32.gmra.mxu0 %v12204_v61  ;;  %9189 = vmatmul.mubr.f32.gmra.mxu1 %v12064_v45 }
 0x3e6   : > { %9191 = vmatprep.mubr.f32.mxu1 %v12073_v59  ;;  %5812 = vmatprep.mubr.f32.mxu0 %v14326_v43 }
 0x3e7   : > { %6795 = vmatprep.subr.mxu1 %v6783_v60 }
 0x3e8   : > { %6796 = vmatpush1.msra.mxu1 %v6782_v17  ;;  %v14524_v17 = vld [vmem:[#allocation36_spill] sm:$0xff] }
 0x3e9   : > { %5813 = vmatmul.mubr.f32.gmra.mxu0 %v12213_v33  ;;  %9192 = vmatmul.mubr.f32.gmra.mxu1 %v12078_v56 }
 0x3ea   : > { %9194 = vmatprep.mubr.f32.mxu1 %v12087_v34  ;;  %5818 = vmatprep.mubr.f32.mxu0 %v14326_v43 }
 0x3eb   : > { %6797 = vmatprep.subr.mxu1 %v6780_v6  ;;  %v14525_v6 = vrot.slane %v14524_v17, 7  ;;  %v14528_v17 = vrot.slane %v12464_v14, 1  ;;  %v6771_v14 = vld [vmem:[#allocation9 + $0x3e0] sm:$0xff] }
 0x3ec   : > { %6798 = vmatpush1.msra.mxu1 %v6779_v35 }
 0x3ed   : > { %v4597_v1 = vpop.f32.mrf.mxu1  ;;  %v9086_v3 = vpop.f32.mrf.mxu0  ;;  %5819 = vmatmul.mubr.f32.gmra.mxu0 %v12218_v54  ;;  %9195 = vmatmul.mubr.f32.gmra.mxu1 %v12092_v51 }
 0x3ee   : > { %v5174_v44 = vrot.slane %v4597_v1, 7  ;;  %9197 = vmatprep.mubr.f32.mxu1 %v12101_v21  ;;  %5824 = vmatprep.mubr.f32.mxu0 %v14326_v43  ;;  %v5318_v60 = vrot.slane %v9086_v3, 1  ;;  %v5269_v1 = vadd.f32 %v14527_v42, %v4593_v57 }
 0x3ef   : > { %v4599_v53 = vpop.f32.mrf.mxu1  ;;  %v4942_v63 = vpop.f32.mrf.mxu0  ;;  %6799 = vmatprep.subr.mxu1 %v6777_v15  ;;  %v6773_v15 = vld [vmem:[#allocation9 + $0x3f0] sm:$0xff] }
 0x3f0   : > { %v5263_v7 = vsel %vm1157_vm0, %v14525_v6, %v5174_v44  ;;  %v5317_v35 = vrot.slane %v4942_v63, 1  ;;  %6800 = vmatpush1.msra.mxu1 %v6776_v58 }
 0x3f1   : > { %v5270_v32 = vadd.f32 %v5263_v7, %v4599_v53  ;;  %v4603_v21 = vpop.f32.mrf.mxu1  ;;  %v9089_v51 = vpop.f32.mrf.mxu0  ;;  %5825 = vmatmul.mubr.f32.gmra.mxu0 %v12231_v11  ;;  %9198 = vmatmul.mubr.f32.gmra.mxu1 %v12106_v25 }
 0x3f2   : > { %v5407_v3 = vsel %vm1302_vm1, %v5317_v35, %v5318_v60  ;;  %v5408_v58 = vsel %vm1302_vm1, %v14528_v17, %v5317_v35  ;;  %v5175_v63 = vrot.slane %v4603_v21, 7  ;;  %9200 = vmatprep.mubr.f32.mxu1 %v12115_v12  ;;  %5830 = vmatprep.mubr.f32.mxu0 %v14326_v43  ;;  %v5320_v6 = vrot.slane %v9089_v51, 1 }
 0x3f3   : > { %v12502_v57 = vadd.f32 %v5408_v58, %v5268_v23  ;;  %v12504_v10 = vadd.f32 %v5407_v3, %v5269_v1  ;;  %v4605_v42 = vpop.f32.mrf.mxu1  ;;  %v4952_v53 = vpop.f32.mrf.mxu0  ;;  %6801 = vmatprep.subr.mxu1 %v6774_v16  ;;  %v6770_v23 = vld [vmem:[#allocation9 + $0x3d8] sm:$0xff] }
 0x3f4   : > { %v5262_v7 = vsel %vm1157_vm0, %v5174_v44, %v5175_v63  ;;  %v5319_v50 = vrot.slane %v4952_v53, 1  ;;  %6802 = vmatpush1.msra.mxu1 %v6773_v15 }
 0x3f5   : > { %14529 = vst [vmem:[#allocation77_spill] sm:$0xff] %v12502_v57  ;;  %14530 = vst [vmem:[#allocation72_spill] sm:$0xff] %v12504_v10  ;;  %v5271_v35 = vadd.f32 %v5262_v7, %v4605_v42  ;;  %v4609_v21 = vpop.f32.mrf.mxu1  ;;  %v9092_v17 = vpop.f32.mrf.mxu0  ;;  %5831 = vmatmul.mubr.f32.gmra.mxu0 %v12234_v24  ;;  %9201 = vmatmul.mubr.f32.gmra.mxu1 %v12120_v8  ;;  %v6768_v10 = vld [vmem:[#allocation9 + $0x3c8] sm:$0xff] }
 0x3f6   : > { %v5405_v1 = vsel %vm1302_vm1, %v5319_v50, %v5320_v6  ;;  %v5406_v51 = vsel %vm1302_vm1, %v5318_v60, %v5319_v50  ;;  %v5176_v16 = vrot.slane %v4609_v21, 7  ;;  %9203 = vmatprep.mubr.f32.mxu1 %v12129_v29  ;;  %5836 = vmatprep.mubr.f32.mxu0 %v14326_v43  ;;  %v5322_v42 = vrot.slane %v9092_v17, 1 }
 0x3f7   : > { %v12516_v44 = vadd.f32 %v5406_v51, %v5270_v32  ;;  %v12518_v15 = vadd.f32 %v5405_v1, %v5271_v35  ;;  %v4611_v3 = vpop.f32.mrf.mxu1  ;;  %v4962_v58 = vpop.f32.mrf.mxu0  ;;  %6803 = vmatprep.subr.mxu1 %v6771_v14  ;;  %v6767_v32 = vld [vmem:[#allocation9 + $0x3c0] sm:$0xff] }
 0x3f8   : > { %v5261_v53 = vsel %vm1157_vm0, %v5175_v63, %v5176_v16  ;;  %v5321_v7 = vrot.slane %v4962_v58, 1  ;;  %6804 = vmatpush1.msra.mxu1 %v6770_v23 }
 0x3f9   : > { %14531 = vst [vmem:[#allocation63_spill] sm:$0xff] %v12516_v44  ;;  %14532 = vst [vmem:[#allocation60_spill] sm:$0xff] %v12518_v15  ;;  %v5272_v60 = vadd.f32 %v5261_v53, %v4611_v3  ;;  %v4615_v50 = vpop.f32.mrf.mxu1  ;;  %v9095_v21 = vpop.f32.mrf.mxu0  ;;  %5837 = vmatmul.mubr.f32.gmra.mxu0 %v12250_v30  ;;  %9204 = vmatmul.mubr.f32.gmra.mxu1 %v12134_v5 }
 0x3fa   : > { %v5404_v35 = vsel %vm1302_vm1, %v5320_v6, %v5321_v7  ;;  %v5177_v1 = vrot.slane %v4615_v50, 7  ;;  %9206 = vmatprep.mubr.f32.mxu1 %v12143_v47  ;;  %v5403_v14 = vsel %vm1302_vm1, %v5321_v7, %v5322_v42  ;;  %5842 = vmatprep.mubr.f32.mxu0 %v14326_v43  ;;  %v5324_v51 = vrot.slane %v9095_v21, 1  ;;  %v6765_v6 = vld [vmem:[#allocation9 + $0x3b0] sm:$0xff]  ;;  %v6764_v7 = vld [vmem:[#allocation9 + $0x3a8] sm:$0xff] }
 0x3fb   : > { %v12530_v63 = vadd.f32 %v5404_v35, %v5272_v60  ;;  %v4617_v17 = vpop.f32.mrf.mxu1  ;;  %v4972_v23 = vpop.f32.mrf.mxu0  ;;  %6805 = vmatprep.subr.mxu1 %v6768_v10 }
 0x3fc   : > { %v5260_v3 = vsel %vm1157_vm0, %v5176_v16, %v5177_v1  ;;  %v5323_v58 = vrot.slane %v4972_v23, 1  ;;  %6806 = vmatpush1.msra.mxu1 %v6767_v32 }
 0x3fd   : > { %14533 = vst [vmem:[#allocation74_spill] sm:$0xff] %v12530_v63  ;;  %v5273_v53 = vadd.f32 %v5260_v3, %v4617_v17  ;;  %v4621_v50 = vpop.f32.mrf.mxu1  ;;  %v9098_v15 = vpop.f32.mrf.mxu0  ;;  %5843 = vmatmul.mubr.f32.gmra.mxu0 %v12255_v19  ;;  %9207 = vmatmul.mubr.f32.gmra.mxu1 %v12148_v38 }
 0x3fe   : > { %v5178_v60 = vrot.slane %v4621_v50, 7  ;;  %9209 = vmatprep.mubr.f32.mxu1 %v12157_v20  ;;  %v5402_v10 = vsel %vm1302_vm1, %v5322_v42, %v5323_v58  ;;  %5848 = vmatprep.mubr.f32.mxu0 %v14326_v43  ;;  %v5401_v16 = vsel %vm1302_vm1, %v5323_v58, %v5324_v51  ;;  %v5326_v17 = vrot.slane %v9098_v15, 1  ;;  %v6762_v50 = vld [vmem:[#allocation9 + $0x398] sm:$0xff]  ;;  %v6761_v58 = vld [vmem:[#allocation9 + $0x390] sm:$0xff] }
 0x3ff   : > { %v12542_v21 = vadd.f32 %v5403_v14, %v5273_v53  ;;  %v4623_v32 = vpop.f32.mrf.mxu1  ;;  %v4982_v35 = vpop.f32.mrf.mxu0  ;;  %6807 = vmatprep.subr.mxu1 %v6765_v6 }
 0x400   : > { %v5259_v23 = vsel %vm1157_vm0, %v5177_v1, %v5178_v60  ;;  %v5325_v3 = vrot.slane %v4982_v35, 1  ;;  %6808 = vmatpush1.msra.mxu1 %v6764_v7 }
 0x401   : > { %14534 = vst [vmem:[#allocation28_spill] sm:$0xff] %v12542_v21  ;;  %v5274_v63 = vadd.f32 %v5259_v23, %v4623_v32  ;;  %v4627_v44 = vpop.f32.mrf.mxu1  ;;  %v9101_v42 = vpop.f32.mrf.mxu0  ;;  %5849 = vmatmul.mubr.f32.gmra.mxu0 %v12266_v49  ;;  %9210 = vmatmul.mubr.f32.gmra.mxu1 %v12162_v9  ;;  %v6759_v23 = vld [vmem:[#allocation9 + $0x380] sm:$0xff] }
 0x402   : > { %v5179_v14 = vrot.slane %v4627_v44, 7  ;;  %9212 = vmatprep.mubr.f32.mxu1 %v12171_v39  ;;  %5854 = vmatprep.mubr.f32.mxu0 %v14326_v43  ;;  %v5400_v15 = vsel %vm1302_vm1, %v5324_v51, %v5325_v3  ;;  %v5399_v1 = vsel %vm1302_vm1, %v5325_v3, %v5326_v17  ;;  %v5328_v32 = vrot.slane %v9101_v42, 1  ;;  %v6758_v51 = vld [vmem:[#allocation9 + $0x378] sm:$0xff] }
 0x403   : > { %v12554_v6 = vadd.f32 %v5402_v10, %v5274_v63  ;;  %v4629_v53 = vpop.f32.mrf.mxu1  ;;  %v4992_v7 = vpop.f32.mrf.mxu0  ;;  %6809 = vmatprep.subr.mxu1 %v6762_v50 }
 0x404   : > { %v5258_v35 = vsel %vm1157_vm0, %v5178_v60, %v5179_v14  ;;  %v5327_v44 = vrot.slane %v4992_v7, 1  ;;  %6810 = vmatpush1.msra.mxu1 %v6761_v58  ;;  %v6756_v7 = vld [vmem:[#allocation9 + $0x368] sm:$0xff] }
 0x405   : > { %14535 = vst [vmem:[#allocation69_spill] sm:$0xff] %v12554_v6  ;;  %v5275_v21 = vadd.f32 %v5258_v35, %v4629_v53  ;;  %v4633_v57 = vpop.f32.mrf.mxu1  ;;  %v9104_v39 = vpop.f32.mrf.mxu0  ;;  %5855 = vmatmul.mubr.f32.gmra.mxu0 %v12271_v26  ;;  %9213 = vmatmul.mubr.f32.gmra.mxu1 %v12176_v31 }
 0x406   : > { %v5180_v63 = vrot.slane %v4633_v57, 7  ;;  %9215 = vmatprep.mubr.f32.mxu1 %v12185_v18  ;;  %5860 = vmatprep.mubr.f32.mxu0 %v14326_v43  ;;  %v12564_v10 = vsel %vm1302_vm1, %v5326_v17, %v5327_v44  ;;  %v12568_v60 = vsel %vm1302_vm1, %v5327_v44, %v5328_v32  ;;  %v5330_v58 = vrot.slane %v9104_v39, 1  ;;  %v6755_v44 = vld [vmem:[#allocation9 + $0x360] sm:$0xff] }
 0x407   : > { %v12570_v3 = vadd.f32 %v5401_v16, %v5275_v21  ;;  %v4635_v50 = vpop.f32.mrf.mxu1  ;;  %v5002_v42 = vpop.f32.mrf.mxu0  ;;  %6811 = vmatprep.subr.mxu1 %v6759_v23 }
 0x408   : > { %v5257_v57 = vsel %vm1157_vm0, %v5179_v14, %v5180_v63  ;;  %v5329_v53 = vrot.slane %v5002_v42, 1  ;;  %6812 = vmatpush1.msra.mxu1 %v6758_v51 }
 0x409   : > { %14536 = vst [vmem:[#allocation66_spill] sm:$0xff] %v12570_v3  ;;  %v5276_v35 = vadd.f32 %v5257_v57, %v4635_v50  ;;  %v4639_v6 = vpop.f32.mrf.mxu1  ;;  %v9107_v17 = vpop.f32.mrf.mxu0  ;;  %5861 = vmatmul.mubr.f32.gmra.mxu0 %v12282_v46  ;;  %9216 = vmatmul.mubr.f32.gmra.mxu1 %v12190_v41  ;;  %v6753_v57 = vld [vmem:[#allocation9 + $0x350] sm:$0xff] }
 0x40a   : > { %v5181_v16 = vrot.slane %v4639_v6, 7  ;;  %9218 = vmatprep.mubr.f32.mxu1 %v12199_v37  ;;  %5866 = vmatprep.mubr.f32.mxu0 %v14326_v43  ;;  %v12580_v39 = vsel %vm1302_vm1, %v5328_v32, %v5329_v53  ;;  %v12584_v21 = vsel %vm1302_vm1, %v5329_v53, %v5330_v58  ;;  %v5332_v50 = vrot.slane %v9107_v17, 1  ;;  %v6752_v53 = vld [vmem:[#allocation9 + $0x348] sm:$0xff] }
 0x40b   : > { %v12586_v14 = vadd.f32 %v5400_v15, %v5276_v35  ;;  %v4641_v23 = vpop.f32.mrf.mxu1  ;;  %v5012_v51 = vpop.f32.mrf.mxu0  ;;  %6813 = vmatprep.subr.mxu1 %v6756_v7 }
 0x40c   : > { %v5256_v6 = vsel %vm1157_vm0, %v5180_v63, %v5181_v16  ;;  %v5331_v42 = vrot.slane %v5012_v51, 1  ;;  %6814 = vmatpush1.msra.mxu1 %v6755_v44 }
 0x40d   : > { %14537 = vst [vmem:[#allocation30_spill] sm:$0xff] %v12586_v14  ;;  %v5277_v3 = vadd.f32 %v5256_v6, %v4641_v23  ;;  %v4645_v37 = vpop.f32.mrf.mxu1  ;;  %v9110_v32 = vpop.f32.mrf.mxu0  ;;  %5867 = vmatmul.mubr.f32.gmra.mxu0 %v12297_v22  ;;  %9219 = vmatmul.mubr.f32.gmra.mxu1 %v12204_v61  ;;  %v6750_v6 = vld [vmem:[#allocation9 + $0x338] sm:$0xff] }
 0x40e   : > { %v5182_v15 = vrot.slane %v4645_v37, 7  ;;  %9221 = vmatprep.mubr.f32.mxu1 %v12213_v33  ;;  %5872 = vmatprep.mubr.f32.mxu0 %v14326_v43  ;;  %v12596_v7 = vsel %vm1302_vm1, %v5330_v58, %v5331_v42  ;;  %v12600_v63 = vsel %vm1302_vm1, %v5331_v42, %v5332_v50  ;;  %v5334_v23 = vrot.slane %v9110_v32, 1  ;;  %v6749_v42 = vld [vmem:[#allocation9 + $0x330] sm:$0xff] }
 0x40f   : > { %v12602_v35 = vadd.f32 %v5399_v1, %v5277_v3  ;;  %v4647_v17 = vpop.f32.mrf.mxu1  ;;  %v5022_v44 = vpop.f32.mrf.mxu0  ;;  %6815 = vmatprep.subr.mxu1 %v6753_v57 }
 0x410   : > { %v5255_v37 = vsel %vm1157_vm0, %v5181_v16, %v5182_v15  ;;  %v5333_v51 = vrot.slane %v5022_v44, 1  ;;  %6816 = vmatpush1.msra.mxu1 %v6752_v53 }
 0x411   : > { %14538 = vst [vmem:[#allocation73_spill] sm:$0xff] %v12602_v35  ;;  %v5278_v14 = vadd.f32 %v5255_v37, %v4647_v17  ;;  %v4651_v33 = vpop.f32.mrf.mxu1  ;;  %v9113_v58 = vpop.f32.mrf.mxu0  ;;  %5873 = vmatmul.mubr.f32.gmra.mxu0 %v12306_v4  ;;  %9222 = vmatmul.mubr.f32.gmra.mxu1 %v12218_v54  ;;  %v6747_v37 = vld [vmem:[#allocation9 + $0x320] sm:$0xff] }
 0x412   : > { %v5183_v1 = vrot.slane %v4651_v33, 7  ;;  %9224 = vmatprep.mubr.f32.mxu1 %v12231_v11  ;;  %5878 = vmatprep.mubr.f32.mxu0 %v14326_v43  ;;  %v12612_v3 = vsel %vm1302_vm1, %v5332_v50, %v5333_v51  ;;  %v12616_v16 = vsel %vm1302_vm1, %v5333_v51, %v5334_v23  ;;  %v5336_v17 = vrot.slane %v9113_v58, 1  ;;  %v6746_v51 = vld [vmem:[#allocation9 + $0x318] sm:$0xff] }
 0x413   : > { %v12619_v57 = vadd.f32 %v12564_v10, %v5278_v14  ;;  %v4653_v32 = vpop.f32.mrf.mxu1  ;;  %v5032_v53 = vpop.f32.mrf.mxu0  ;;  %6817 = vmatprep.subr.mxu1 %v6750_v6 }
 0x414   : > { %v5254_v33 = vsel %vm1157_vm0, %v5182_v15, %v5183_v1  ;;  %v5335_v44 = vrot.slane %v5032_v53, 1  ;;  %6818 = vmatpush1.msra.mxu1 %v6749_v42 }
 0x415   : > { %14539 = vst [vmem:[#allocation71_spill] sm:$0xff] %v12619_v57  ;;  %v5279_v35 = vadd.f32 %v5254_v33, %v4653_v32  ;;  %v4657_v50 = vpop.f32.mrf.mxu1  ;;  %v9116_v11 = vpop.f32.mrf.mxu0  ;;  %5879 = vmatmul.mubr.f32.gmra.mxu0 %v12311_v40  ;;  %9225 = vmatmul.mubr.f32.gmra.mxu1 %v12234_v24 }
 0x416   : > { %v5184_v10 = vrot.slane %v4657_v50, 7  ;;  %9227 = vmatprep.mubr.f32.mxu1 %v12250_v30  ;;  %5884 = vmatprep.mubr.f32.mxu0 %v14326_v43  ;;  %v12629_v14 = vsel %vm1302_vm1, %v5334_v23, %v5335_v44  ;;  %v12633_v15 = vsel %vm1302_vm1, %v5335_v44, %v5336_v17  ;;  %v5338_v32 = vrot.slane %v9116_v11, 1  ;;  %v6744_v50 = vld [vmem:[#allocation9 + $0x308] sm:$0xff]  ;;  %v6743_v44 = vld [vmem:[#allocation9 + $0x300] sm:$0xff] }
 0x417   : > { %v12636_v6 = vadd.f32 %v12568_v60, %v5279_v35  ;;  %v4659_v58 = vpop.f32.mrf.mxu1  ;;  %v5042_v42 = vpop.f32.mrf.mxu0  ;;  %6819 = vmatprep.subr.mxu1 %v6747_v37 }
 0x418   : > { %v5253_v53 = vsel %vm1157_vm0, %v5183_v1, %v5184_v10  ;;  %v5337_v33 = vrot.slane %v5042_v42, 1  ;;  %6820 = vmatpush1.msra.mxu1 %v6746_v51 }
 0x419   : > { %14540 = vst [vmem:[#allocation75_spill] sm:$0xff] %v12636_v6  ;;  %v5280_v57 = vadd.f32 %v5253_v53, %v4659_v58  ;;  %v4663_v23 = vpop.f32.mrf.mxu1  ;;  %v9119_v30 = vpop.f32.mrf.mxu0  ;;  %5885 = vmatmul.mubr.f32.gmra.mxu0 %v12320_v27  ;;  %9228 = vmatmul.mubr.f32.gmra.mxu1 %v12255_v19 }
 0x41a   : > { %v5185_v60 = vrot.slane %v4663_v23, 7  ;;  %9230 = vmatprep.mubr.f32.mxu1 %v12266_v49  ;;  %5890 = vmatprep.mubr.f32.mxu0 %v14326_v43  ;;  %v12646_v11 = vsel %vm1302_vm1, %v5336_v17, %v5337_v33  ;;  %v12650_v35 = vsel %vm1302_vm1, %v5337_v33, %v5338_v32  ;;  %v5340_v58 = vrot.slane %v9119_v30, 1 }
 0x41b   : > { %v12653_v1 = vadd.f32 %v12580_v39, %v5280_v57  ;;  %v4665_v37 = vpop.f32.mrf.mxu1  ;;  %v5052_v51 = vpop.f32.mrf.mxu0  ;;  %6821 = vmatprep.subr.mxu1 %v6744_v50 }
 0x41c   : > { %v5252_v42 = vsel %vm1157_vm0, %v5184_v10, %v5185_v60  ;;  %v5339_v53 = vrot.slane %v5052_v51, 1  ;;  %6822 = vmatpush1.msra.mxu1 %v6743_v44 }
 0x41d   : > { %14541 = vst [vmem:[#allocation76_spill] sm:$0xff] %v12653_v1  ;;  %v5281_v23 = vadd.f32 %v5252_v42, %v4665_v37  ;;  %v4669_v6 = vpop.f32.mrf.mxu1  ;;  %v9122_v17 = vpop.f32.mrf.mxu0  ;;  %5891 = vmatmul.mubr.f32.gmra.mxu0 %v12325_v2  ;;  %9231 = vmatmul.mubr.f32.gmra.mxu1 %v12271_v26 }
 0x41e   : > { %v5186_v33 = vrot.slane %v4669_v6, 7  ;;  %9233 = vmatprep.mubr.f32.mxu1 %v12282_v46  ;;  %5896 = vmatprep.mubr.f32.mxu0 %v14326_v43  ;;  %v12663_v30 = vsel %vm1302_vm1, %v5338_v32, %v5339_v53  ;;  %v12667_v39 = vsel %vm1302_vm1, %v5339_v53, %v5340_v58  ;;  %v5342_v44 = vrot.slane %v9122_v17, 1 }
 0x41f   : > { %v12670_v57 = vadd.f32 %v12584_v21, %v5281_v23  ;;  %v4671_v10 = vpop.f32.mrf.mxu1  ;;  %v5062_v50 = vpop.f32.mrf.mxu0 }
 0x420   : > { %v5251_v6 = vsel %vm1157_vm0, %v5185_v60, %v5186_v33  ;;  %v5341_v37 = vrot.slane %v5062_v50, 1 }
 0x421   : > { %14542 = vst [vmem:[#allocation42_spill] sm:$0xff] %v12670_v57  ;;  %v5282_v51 = vadd.f32 %v5251_v6, %v4671_v10  ;;  %v4675_v42 = vpop.f32.mrf.mxu1  ;;  %v9125_v1 = vpop.f32.mrf.mxu0  ;;  %5897 = vmatmul.mubr.f32.gmra.mxu0 %v12334_v62  ;;  %9234 = vmatmul.mubr.f32.gmra.mxu1 %v12297_v22 }
 0x422   : > { %v5187_v32 = vrot.slane %v4675_v42, 7  ;;  %9236 = vmatprep.mubr.f32.mxu1 %v12306_v4  ;;  %5902 = vmatprep.mubr.f32.mxu0 %v14326_v43  ;;  %v12680_v21 = vsel %vm1302_vm1, %v5340_v58, %v5341_v37  ;;  %v12684_v60 = vsel %vm1302_vm1, %v5341_v37, %v5342_v44  ;;  %v5344_v10 = vrot.slane %v9125_v1, 1 }
 0x423   : > { %v12687_v53 = vadd.f32 %v12596_v7, %v5282_v51  ;;  %v4677_v23 = vpop.f32.mrf.mxu1  ;;  %v5072_v17 = vpop.f32.mrf.mxu0 }
 0x424   : > { %v5250_v50 = vsel %vm1157_vm0, %v5186_v33, %v5187_v32  ;;  %v5343_v6 = vrot.slane %v5072_v17, 1 }
 0x425   : > { %14543 = vst [vmem:[#allocation40_spill] sm:$0xff] %v12687_v53  ;;  %v5283_v42 = vadd.f32 %v5250_v50, %v4677_v23  ;;  %v4681_v57 = vpop.f32.mrf.mxu1  ;;  %v9128_v4 = vpop.f32.mrf.mxu0  ;;  %5903 = vmatmul.mubr.f32.gmra.mxu0 %v12339_v48  ;;  %9237 = vmatmul.mubr.f32.gmra.mxu1 %v12311_v40 }
 0x426   : > { %v5188_v58 = vrot.slane %v4681_v57, 7  ;;  %9239 = vmatprep.mubr.f32.mxu1 %v12320_v27  ;;  %5908 = vmatprep.mubr.f32.mxu0 %v14326_v43  ;;  %v12697_v7 = vsel %vm1302_vm1, %v5342_v44, %v5343_v6  ;;  %v12701_v1 = vsel %vm1302_vm1, %v5343_v6, %v5344_v10  ;;  %v5346_v23 = vrot.slane %v9128_v4, 1  ;;  %v14545_v6 = vld [vmem:[#allocation24_spill] sm:$0xff] }
 0x427   : > { %v12704_v33 = vadd.f32 %v12600_v63, %v5283_v42  ;;  %v4683_v37 = vpop.f32.mrf.mxu1  ;;  %v5082_v51 = vpop.f32.mrf.mxu0 }
 0x428   : > { %v5249_v57 = vsel %vm1157_vm0, %v5187_v32, %v5188_v58  ;;  %v5345_v17 = vrot.slane %v5082_v51, 1  ;;  %v9452_v32 = vld [vmem:[%s14205_s2] ss:$0 sm:$0xff] }
 0x429   : > { %14544 = vst [vmem:[#allocation14_spill] sm:$0xff] %v12704_v33  ;;  %v5284_v50 = vadd.f32 %v5249_v57, %v4683_v37  ;;  %v4687_v53 = vpop.f32.mrf.mxu1  ;;  %v9131_v27 = vpop.f32.mrf.mxu0  ;;  %5909 = vmatmul.mubr.f32.gmra.mxu0 %v12346_v28  ;;  %9240 = vmatmul.mubr.f32.gmra.mxu1 %v12325_v2  ;;  %v3921_v42 = vmul.f32 %v9452_v32, %v14545_v6  ;;  %v14547_v57 = vld [vmem:[#allocation58_spill] sm:$0xff] }
 0x42a   : > { %v5189_v44 = vrot.slane %v4687_v53, 7  ;;  %9242 = vmatprep.mubr.f32.mxu1 %v12334_v62  ;;  %5914 = vmatprep.mubr.f32.mxu0 %v14326_v43  ;;  %v12714_v63 = vsel %vm1302_vm1, %v5344_v10, %v5345_v17  ;;  %v12718_v4 = vsel %vm1302_vm1, %v5345_v17, %v5346_v23  ;;  %v3922_v33 = vmul.f32 %v9452_v32, %v14547_v57 }
 0x42b   : > { %v12725_v53 = vadd.f32 %v12612_v3, %v5284_v50  ;;  %v4689_v37 = vpop.f32.mrf.mxu1  ;;  %v5092_v51 = vpop.f32.mrf.mxu0  ;;  %v5348_v62 = vrot.slane %v9131_v27, 1 }
 0x42c   : > { %v5248_v10 = vsel %vm1157_vm0, %v5188_v58, %v5189_v44  ;;  %v5347_v2 = vrot.slane %v5092_v51, 1  ;;  %v9453_v58 = vld [vmem:[%s14206_s3] ss:$0 sm:$0xff] }
 0x42d   : > { %14546 = vst [vmem:[#allocation15_spill] sm:$0xff] %v12725_v53  ;;  %v5285_v17 = vadd.f32 %v5248_v10, %v4689_v37  ;;  %v4693_v40 = vpop.f32.mrf.mxu1  ;;  %v9134_v22 = vpop.f32.mrf.mxu0  ;;  %5915 = vmatmul.mubr.f32.gmra.mxu0 %v12349_v0  ;;  %9243 = vmatmul.mubr.f32.gmra.mxu1 %v12339_v48  ;;  %v3976_v50 = vadd.f32 %v9453_v58, %v3921_v42  ;;  %v14548_v37 = vld [vmem:[#allocation27_spill] sm:$0xff] }
 0x42e   : > { %v5190_v6 = vrot.slane %v4693_v40, 7  ;;  %9245 = vmatprep.mubr.f32.mxu1 %v12346_v28  ;;  %5920 = vmatprep.mubr.f32.mxu0 %v14326_v43  ;;  %v12736_v3 = vsel %vm1302_vm1, %v5346_v23, %v5347_v2  ;;  %v12740_v27 = vsel %vm1302_vm1, %v5347_v2, %v5348_v62  ;;  %v3923_v51 = vmul.f32 %v9452_v32, %v14548_v37 }
 0x42f   : > { %v12747_v40 = vadd.f32 %v12616_v16, %v5285_v17  ;;  %v4695_v57 = vpop.f32.mrf.mxu1  ;;  %v5102_v10 = vpop.f32.mrf.mxu0  ;;  %v3977_v53 = vadd.f32 %v9453_v58, %v3922_v33  ;;  %v5350_v28 = vrot.slane %v9134_v22, 1  ;;  %v4024_v33 = vmax.f32 %v3976_v50, 0.0 }
 0x430   : > { %v5247_v23 = vsel %vm1157_vm0, %v5189_v44, %v5190_v6  ;;  %v5349_v48 = vrot.slane %v5102_v10, 1  ;;  %v3978_v44 = vadd.f32 %v9453_v58, %v3923_v51 }
 0x431   : > { %14549 = vst [vmem:[#allocation44_spill] sm:$0xff] %v12747_v40  ;;  %v5286_v2 = vadd.f32 %v5247_v23, %v4695_v57  ;;  %v4699_v46 = vpop.f32.mrf.mxu1  ;;  %v9137_v26 = vpop.f32.mrf.mxu0  ;;  %5921 = vmatmul.mubr.f32.gmra.mxu0 %v12355_v52  ;;  %9246 = vmatmul.mubr.f32.gmra.mxu1 %v12349_v0  ;;  %v4025_v10 = vmax.f32 %v3977_v53, 0.0 }
 0x432   : > { %v5191_v42 = vrot.slane %v4699_v46, 7  ;;  %9248 = vmatprep.mubr.f32.mxu1 %v12355_v52  ;;  %5926 = vmatprep.mubr.f32.mxu0 %v14326_v43  ;;  %v12757_v16 = vsel %vm1302_vm1, %v5348_v62, %v5349_v48  ;;  %v12761_v22 = vsel %vm1302_vm1, %v5349_v48, %v5350_v28  ;;  %v4303_v46 = vpop.permute.xlu1 %4302  ;;  %v4308_v57 = vpop.permute.xlu0 %4307  ;;  %v5352_v23 = vrot.slane %v9137_v26, 1 }
 0x433   : > { %v12764_v32 = vadd.f32 %v12629_v14, %v5286_v2  ;;  %v4701_v17 = vpop.f32.mrf.mxu1  ;;  %v5112_v37 = vpop.f32.mrf.mxu0  ;;  %v12780_v53 = vmul.f32 %v4303_v46, %v4024_v33  ;;  %v12785_v51 = vmul.f32 %v4308_v57, %v4025_v10 }
 0x434   : > { %v5246_v40 = vsel %vm1157_vm0, %v5190_v6, %v5191_v42  ;;  %v5351_v62 = vrot.slane %v5112_v37, 1  ;;  %v4026_v6 = vmax.f32 %v3978_v44, 0.0 }
 0x435   : > { %14550 = vst [vmem:[#allocation46_spill] sm:$0xff] %v12764_v32  ;;  %v5287_v52 = vadd.f32 %v5246_v40, %v4701_v17  ;;  %v4705_v0 = vpop.f32.mrf.mxu1  ;;  %v9140_v49 = vpop.f32.mrf.mxu0  ;;  %5927 = vmatmul.mubr.f32.gmra.mxu0 %v12357_v13  ;;  %9249 = vmatmul.mubr.f32.gmra.mxu1 %v12357_v13 }
 0x436   : > { %v5192_v48 = vrot.slane %v4705_v0, 7  ;;  %9251 = vmatprep.mubr.f32.mxu1 %v12363_v55  ;;  %5932 = vmatprep.mubr.f32.mxu0 %v14326_v43  ;;  %v12774_v14 = vsel %vm1302_vm1, %v5350_v28, %v5351_v62  ;;  %v12778_v26 = vsel %vm1302_vm1, %v5351_v62, %v5352_v23  ;;  %v4313_v40 = vpop.permute.xlu1 %4312  ;;  %v5354_v2 = vrot.slane %v9140_v49, 1 }
 0x437   : > { %v12783_v58 = vadd.f32 %v12633_v15, %v5287_v52  ;;  %v4707_v50 = vpop.f32.mrf.mxu1  ;;  %v5122_v0 = vpop.f32.mrf.mxu0  ;;  %v12801_v15 = vmul.f32 %v4313_v40, %v4026_v6 }
 0x438   : > { %v5245_v28 = vsel %vm1157_vm0, %v5191_v42, %v5192_v48  ;;  %v5353_v17 = vrot.slane %v5122_v0, 1 }
 0x439   : > { %v5288_v37 = vadd.f32 %v5245_v28, %v4707_v50  ;;  %v4711_v32 = vpop.f32.mrf.mxu1  ;;  %v9143_v62 = vpop.f32.mrf.mxu0  ;;  %5933 = vmatmul.mubr.f32.gmra.mxu0 %v12363_v55  ;;  %9252 = vmatmul.mubr.f32.gmra.mxu1 %v12780_v53 }
 0x43a   : > { %v5193_v33 = vrot.slane %v4711_v32, 7  ;;  %9254 = vmatprep.mubr.f32.mxu1 %v12785_v51  ;;  %5938 = vmatprep.mubr.f32.mxu0 %v14326_v43  ;;  %v12795_v52 = vsel %vm1302_vm1, %v5352_v23, %v5353_v17  ;;  %v12799_v49 = vsel %vm1302_vm1, %v5353_v17, %v5354_v2  ;;  %v5356_v32 = vrot.slane %v9143_v62, 1 }
 0x43b   : > { %v12804_v42 = vadd.f32 %v12646_v11, %v5288_v37  ;;  %v4713_v44 = vpop.f32.mrf.mxu1  ;;  %v5132_v46 = vpop.f32.mrf.mxu0 }
 0x43c   : > { %v5244_v57 = vsel %vm1157_vm0, %v5192_v48, %v5193_v33  ;;  %v5355_v10 = vrot.slane %v5132_v46, 1 }
 0x43d   : > { %14551 = vst [vmem:[#allocation17_spill] sm:$0xff] %v12804_v42  ;;  %v5289_v50 = vadd.f32 %v5244_v57, %v4713_v44  ;;  %v4717_v0 = vpop.f32.mrf.mxu1  ;;  %v9146_v23 = vpop.f32.mrf.mxu0  ;;  %5939 = vmatmul.mubr.f32.gmra.mxu0 %v12780_v53  ;;  %9255 = vmatmul.mubr.f32.gmra.mxu1 %v12801_v15 }
 0x43e   : > { %v5194_v28 = vrot.slane %v4717_v0, 7  ;;  %5944 = vmatprep.mubr.f32.mxu0 %v14326_v43  ;;  %6855 = vmatprep.mubr.f32.mxu1 %v14326_v43  ;;  %v12814_v11 = vsel %vm1302_vm1, %v5354_v2, %v5355_v10  ;;  %v12818_v48 = vsel %vm1302_vm1, %v5355_v10, %v5356_v32  ;;  %v5358_v37 = vrot.slane %v9146_v23, 1 }
 0x43f   : > { %v12821_v6 = vadd.f32 %v12650_v35, %v5289_v50  ;;  %v4719_v40 = vpop.f32.mrf.mxu1  ;;  %v5142_v17 = vpop.f32.mrf.mxu0 }
 0x440   : > { %v5243_v62 = vsel %vm1157_vm0, %v5193_v33, %v5194_v28  ;;  %v5357_v44 = vrot.slane %v5142_v17, 1 }
 0x441   : > { %14552 = vst [vmem:[#allocation16_spill] sm:$0xff] %v12821_v6  ;;  %v5290_v46 = vadd.f32 %v5243_v62, %v4719_v40  ;;  %v4723_v57 = vpop.f32.mrf.mxu1  ;;  %v9149_v0 = vpop.f32.mrf.mxu0  ;;  %5945 = vmatmul.mubr.f32.gmra.mxu0 %v12785_v51  ;;  %6856 = vmatmul.mubr.f32.vlgmr.msra.gmra.mxu1 %v12064_v45 }
 0x442   : > { %v5195_v2 = vrot.slane %v4723_v57, 7  ;;  %5950 = vmatprep.mubr.f32.mxu0 %v14326_v43  ;;  %6861 = vmatprep.mubr.f32.mxu1 %v14326_v43  ;;  %v12831_v35 = vsel %vm1302_vm1, %v5356_v32, %v5357_v44  ;;  %v12835_v33 = vsel %vm1302_vm1, %v5357_v44, %v5358_v37  ;;  %v5360_v40 = vrot.slane %v9149_v0, 1 }
 0x443   : > { %v12838_v10 = vadd.f32 %v12663_v30, %v5290_v46  ;;  %v4725_v50 = vpop.f32.mrf.mxu1  ;;  %v5152_v23 = vpop.f32.mrf.mxu0 }
 0x444   : > { %v5242_v17 = vsel %vm1157_vm0, %v5194_v28, %v5195_v2  ;;  %v5359_v62 = vrot.slane %v5152_v23, 1 }
 0x445   : > { %14553 = vst [vmem:[#allocation50_spill] sm:$0xff] %v12838_v10  ;;  %v5291_v57 = vadd.f32 %v5242_v17, %v4725_v50  ;;  %v4729_v6 = vpop.f32.mrf.mxu1  ;;  %v12842_v42 = vpop.f32.mrf.mxu0  ;;  %5951 = vmatmul.mubr.f32.gmra.mxu0 %v12801_v15  ;;  %6862 = vmatmul.mubr.f32.gmra.mxu1 %v12073_v59 }
 0x446   : > { %v5196_v32 = vrot.slane %v4729_v6, 7  ;;  %9289 = vmatprep.mubr.f32.mxu0 %v12064_v45  ;;  %6867 = vmatprep.mubr.f32.mxu1 %v14326_v43  ;;  %v12850_v30 = vsel %vm1302_vm1, %v5358_v37, %v5359_v62  ;;  %v12854_v28 = vsel %vm1302_vm1, %v5359_v62, %v5360_v40  ;;  %v14286_v50 = vrot.slane %v12842_v42, 1 }
 0x447   : > { %v12857_v44 = vadd.f32 %v12667_v39, %v5291_v57  ;;  %v4731_v46 = vpop.f32.mrf.mxu1  ;;  %v5162_v0 = vpop.f32.mrf.mxu0 }
 0x448   : > { %v5241_v45 = vsel %vm1157_vm0, %v5195_v2, %v5196_v32  ;;  %v5361_v6 = vrot.slane %v5162_v0, 1 }
 0x449   : > { %14554 = vst [vmem:[#allocation48_spill] sm:$0xff] %v12857_v44  ;;  %v5292_v23 = vadd.f32 %v5241_v45, %v4731_v46  ;;  %v4735_v17 = vpop.f32.mrf.mxu1  ;;  %v12862_v10 = vpop.f32.mrf.mxu0  ;;  %6868 = vmatmul.mubr.f32.gmra.mxu1 %v12078_v56  ;;  %9290 = vmatmul.mubr.f32.vlgmr.msra.gmra.mxu0 %v12073_v59 }
 0x44a   : > { %14555 = vst [vmem:[#allocation19_spill] sm:$0xff] %v12862_v10  ;;  %v5197_v37 = vrot.slane %v4735_v17, 7  ;;  %9292 = vmatprep.mubr.f32.mxu0 %v12078_v56  ;;  %6873 = vmatprep.mubr.f32.mxu1 %v14326_v43  ;;  %v12870_v39 = vsel %vm1302_vm1, %v5360_v40, %v5361_v6  ;;  %v12876_v2 = vsel %vm1302_vm1, %v5361_v6, %v14286_v50  ;;  %v14288_v40 = vrot.slane %v12862_v10, 7  ;;  %v14558_v50 = vld [vmem:[#allocation26_spill] sm:$0xff] }
 0x44b   : > { %v12879_v62 = vadd.f32 %v12680_v21, %v5292_v23  ;;  %v4737_v57 = vpop.f32.mrf.mxu1  ;;  %v12881_v59 = vpop.f32.mrf.mxu0 }
 0x44c   : > { %14557 = vst [vmem:[#allocation53_spill] sm:$0xff] %v12881_v59  ;;  %v5240_v56 = vsel %vm1157_vm0, %v5196_v32, %v5197_v37 }
 0x44d   : > { %14556 = vst [vmem:[#allocation18_spill] sm:$0xff] %v12879_v62  ;;  %v5293_v46 = vadd.f32 %v5240_v56, %v4737_v57  ;;  %v4741_v0 = vpop.f32.mrf.mxu1  ;;  %v5676_v45 = vpop.f32.mrf.mxu0  ;;  %6874 = vmatmul.mubr.f32.gmra.mxu1 %v12087_v34  ;;  %9293 = vmatmul.mubr.f32.gmra.mxu0 %v12087_v34  ;;  %v14560_v62 = vld [vmem:[#allocation59_spill] sm:$0xff] }
 0x44e   : > { %v5198_v6 = vrot.slane %v4741_v0, 7  ;;  %v6263_v17 = vrot.slane %v5676_v45, 7  ;;  %9295 = vmatprep.mubr.f32.mxu0 %v14558_v50  ;;  %6879 = vmatprep.mubr.f32.mxu1 %v14326_v43 }
 0x44f   : > { %v12891_v21 = vadd.f32 %v12684_v60, %v5293_v46  ;;  %v4743_v23 = vpop.f32.mrf.mxu1  ;;  %v5678_v32 = vpop.f32.mrf.mxu0 }
 0x450   : > { %v5239_v57 = vsel %vm1157_vm0, %v5197_v37, %v5198_v6  ;;  %v6356_v34 = vsel %vm1157_vm0, %v14288_v40, %v6263_v17 }
 0x451   : > { %14559 = vst [vmem:[#allocation52_spill] sm:$0xff] %v12891_v21  ;;  %v5294_v56 = vadd.f32 %v5239_v57, %v4743_v23  ;;  %v12899_v0 = vadd.f32 %v6356_v34, %v5678_v32  ;;  %v4747_v45 = vpop.f32.mrf.mxu1  ;;  %v5682_v59 = vpop.f32.mrf.mxu0  ;;  %6880 = vmatmul.mubr.f32.gmra.mxu1 %v14558_v50  ;;  %9296 = vmatmul.mubr.f32.gmra.mxu0 %v14560_v62 }
 0x452   : > { %v5199_v60 = vrot.slane %v4747_v45, 7  ;;  %v6264_v46 = vrot.slane %v5682_v59, 7  ;;  %9298 = vmatprep.mubr.f32.mxu0 %v12106_v25  ;;  %6885 = vmatprep.mubr.f32.mxu1 %v14326_v43 }
 0x453   : > { %v12906_v37 = vadd.f32 %v12697_v7, %v5294_v56  ;;  %v4749_v10 = vpop.f32.mrf.mxu1  ;;  %v5684_v40 = vpop.f32.mrf.mxu0 }
 0x454   : > { %v5238_v23 = vsel %vm1157_vm0, %v5198_v6, %v5199_v60  ;;  %v6355_v32 = vsel %vm1157_vm0, %v6263_v17, %v6264_v46 }
 0x455   : > { %14561 = vst [vmem:[#allocation21_spill] sm:$0xff] %v12906_v37  ;;  %v5295_v50 = vadd.f32 %v5238_v23, %v4749_v10  ;;  %v12912_v57 = vadd.f32 %v6355_v32, %v5684_v40  ;;  %v4753_v34 = vpop.f32.mrf.mxu1  ;;  %v5688_v59 = vpop.f32.mrf.mxu0  ;;  %6886 = vmatmul.mubr.f32.gmra.mxu1 %v14560_v62  ;;  %9299 = vmatmul.mubr.f32.gmra.mxu0 %v12115_v12 }
 0x456   : > { %v5200_v45 = vrot.slane %v4753_v34, 7  ;;  %v6265_v7 = vrot.slane %v5688_v59, 7  ;;  %9301 = vmatprep.mubr.f32.mxu0 %v12120_v8  ;;  %6891 = vmatprep.mubr.f32.mxu1 %v14326_v43 }
 0x457   : > { %v12919_v6 = vadd.f32 %v12701_v1, %v5295_v50  ;;  %v4755_v56 = vpop.f32.mrf.mxu1  ;;  %v5690_v17 = vpop.f32.mrf.mxu0 }
 0x458   : > { %v5237_v10 = vsel %vm1157_vm0, %v5199_v60, %v5200_v45  ;;  %v6354_v40 = vsel %vm1157_vm0, %v6264_v46, %v6265_v7 }
 0x459   : > { %14562 = vst [vmem:[#allocation20_spill] sm:$0xff] %v12919_v6  ;;  %v5296_v62 = vadd.f32 %v5237_v10, %v4755_v56  ;;  %v12925_v23 = vadd.f32 %v6354_v40, %v5690_v17  ;;  %v4759_v32 = vpop.f32.mrf.mxu1  ;;  %v5694_v34 = vpop.f32.mrf.mxu0  ;;  %6892 = vmatmul.mubr.f32.gmra.mxu1 %v12106_v25  ;;  %9302 = vmatmul.mubr.f32.gmra.mxu0 %v12129_v29 }
 0x45a   : > { %v5201_v59 = vrot.slane %v4759_v32, 7  ;;  %v6266_v1 = vrot.slane %v5694_v34, 7  ;;  %9304 = vmatprep.mubr.f32.mxu0 %v12134_v5  ;;  %6897 = vmatprep.mubr.f32.mxu1 %v14326_v43 }
 0x45b   : > { %v12932_v60 = vadd.f32 %v12714_v63, %v5296_v62  ;;  %v4761_v50 = vpop.f32.mrf.mxu1  ;;  %v5696_v46 = vpop.f32.mrf.mxu0 }
 0x45c   : > { %v5236_v56 = vsel %vm1157_vm0, %v5200_v45, %v5201_v59  ;;  %v6353_v17 = vsel %vm1157_vm0, %v6265_v7, %v6266_v1 }
 0x45d   : > { %14563 = vst [vmem:[#allocation55_spill] sm:$0xff] %v12932_v60  ;;  %v5297_v25 = vadd.f32 %v5236_v56, %v4761_v50  ;;  %v12938_v10 = vadd.f32 %v6353_v17, %v5696_v46  ;;  %v4765_v40 = vpop.f32.mrf.mxu1  ;;  %v5700_v32 = vpop.f32.mrf.mxu0  ;;  %6898 = vmatmul.mubr.f32.gmra.mxu1 %v12115_v12  ;;  %9305 = vmatmul.mubr.f32.gmra.mxu0 %v12143_v47 }
 0x45e   : > { %v5202_v34 = vrot.slane %v4765_v40, 7  ;;  %v6267_v63 = vrot.slane %v5700_v32, 7  ;;  %9307 = vmatprep.mubr.f32.mxu0 %v12148_v38  ;;  %6903 = vmatprep.mubr.f32.mxu1 %v14326_v43 }
 0x45f   : > { %v12945_v45 = vadd.f32 %v12718_v4, %v5297_v25  ;;  %v4767_v62 = vpop.f32.mrf.mxu1  ;;  %v5702_v7 = vpop.f32.mrf.mxu0 }
 0x460   : > { %v5235_v50 = vsel %vm1157_vm0, %v5201_v59, %v5202_v34  ;;  %v6352_v46 = vsel %vm1157_vm0, %v6266_v1, %v6267_v63 }
 0x461   : > { %14564 = vst [vmem:[#allocation23_spill] sm:$0xff] %v12945_v45  ;;  %v5298_v12 = vadd.f32 %v5235_v50, %v4767_v62  ;;  %v12951_v56 = vadd.f32 %v6352_v46, %v5702_v7  ;;  %v4771_v17 = vpop.f32.mrf.mxu1  ;;  %v5706_v40 = vpop.f32.mrf.mxu0  ;;  %6904 = vmatmul.mubr.f32.gmra.mxu1 %v12120_v8  ;;  %9308 = vmatmul.mubr.f32.gmra.mxu0 %v12157_v20 }
 0x462   : > { %v5203_v32 = vrot.slane %v4771_v17, 7  ;;  %v6268_v4 = vrot.slane %v5706_v40, 7  ;;  %9310 = vmatprep.mubr.f32.mxu0 %v12162_v9  ;;  %6909 = vmatprep.mubr.f32.mxu1 %v14326_v43  ;;  %v14566_v40 = vld [vmem:[#allocation31_spill] sm:$0xff] }
 0x463   : > { %v12958_v59 = vadd.f32 %v12736_v3, %v5298_v12  ;;  %v4773_v25 = vpop.f32.mrf.mxu1  ;;  %v5708_v1 = vpop.f32.mrf.mxu0 }
 0x464   : > { %v5234_v62 = vsel %vm1157_vm0, %v5202_v34, %v5203_v32  ;;  %v6351_v7 = vsel %vm1157_vm0, %v6267_v63, %v6268_v4 }
 0x465   : > { %14565 = vst [vmem:[#allocation22_spill] sm:$0xff] %v12958_v59  ;;  %v5299_v8 = vadd.f32 %v5234_v62, %v4773_v25  ;;  %v12964_v50 = vadd.f32 %v6351_v7, %v5708_v1  ;;  %v4777_v46 = vpop.f32.mrf.mxu1  ;;  %v5712_v17 = vpop.f32.mrf.mxu0  ;;  %6910 = vmatmul.mubr.f32.gmra.mxu1 %v12129_v29  ;;  %9311 = vmatmul.mubr.f32.gmra.mxu0 %v14566_v40 }
 0x466   : > { %v5204_v45 = vrot.slane %v4777_v46, 7  ;;  %v6269_v3 = vrot.slane %v5712_v17, 7  ;;  %9313 = vmatprep.mubr.f32.mxu0 %v12176_v31  ;;  %6915 = vmatprep.mubr.f32.mxu1 %v14326_v43 }
 0x467   : > { %v12971_v34 = vadd.f32 %v12740_v27, %v5299_v8  ;;  %v4779_v12 = vpop.f32.mrf.mxu1  ;;  %v5714_v63 = vpop.f32.mrf.mxu0 }
 0x468   : > { %v5233_v25 = vsel %vm1157_vm0, %v5203_v32, %v5204_v45  ;;  %v6350_v1 = vsel %vm1157_vm0, %v6268_v4, %v6269_v3 }
 0x469   : > { %14567 = vst [vmem:[#allocation56_spill] sm:$0xff] %v12971_v34  ;;  %v5300_v29 = vadd.f32 %v5233_v25, %v4779_v12  ;;  %v12977_v62 = vadd.f32 %v6350_v1, %v5714_v63  ;;  %v4783_v7 = vpop.f32.mrf.mxu1  ;;  %v5718_v46 = vpop.f32.mrf.mxu0  ;;  %6916 = vmatmul.mubr.f32.gmra.mxu1 %v12134_v5  ;;  %9314 = vmatmul.mubr.f32.gmra.mxu0 %v12185_v18 }
 0x46a   : > { %v5205_v17 = vrot.slane %v4783_v7, 7  ;;  %v6270_v27 = vrot.slane %v5718_v46, 7  ;;  %9316 = vmatprep.mubr.f32.mxu0 %v12190_v41  ;;  %6921 = vmatprep.mubr.f32.mxu1 %v14326_v43  ;;  %v14569_v46 = vld [vmem:[#allocation29_spill] sm:$0xff] }
 0x46b   : > { %v12984_v32 = vadd.f32 %v12757_v16, %v5300_v29  ;;  %v4785_v8 = vpop.f32.mrf.mxu1  ;;  %v5720_v4 = vpop.f32.mrf.mxu0 }
 0x46c   : > { %v5232_v12 = vsel %vm1157_vm0, %v5204_v45, %v5205_v17  ;;  %v6349_v63 = vsel %vm1157_vm0, %v6269_v3, %v6270_v27 }
 0x46d   : > { %14568 = vst [vmem:[#allocation25_spill] sm:$0xff] %v12984_v32  ;;  %v5301_v5 = vadd.f32 %v5232_v12, %v4785_v8  ;;  %v12990_v25 = vadd.f32 %v6349_v63, %v5720_v4  ;;  %v4789_v1 = vpop.f32.mrf.mxu1  ;;  %v5724_v7 = vpop.f32.mrf.mxu0  ;;  %6922 = vmatmul.mubr.f32.gmra.mxu1 %v12143_v47  ;;  %9317 = vmatmul.mubr.f32.gmra.mxu0 %v14569_v46 }
 0x46e   : > { %v5206_v34 = vrot.slane %v4789_v1, 7  ;;  %v6271_v16 = vrot.slane %v5724_v7, 7  ;;  %9319 = vmatprep.mubr.f32.mxu0 %v12204_v61  ;;  %6927 = vmatprep.mubr.f32.mxu1 %v14326_v43  ;;  %v14571_v7 = vld [vmem:[#allocation61_spill] sm:$0xff] }
 0x46f   : > { %v12997_v45 = vadd.f32 %v12761_v22, %v5301_v5  ;;  %v4791_v29 = vpop.f32.mrf.mxu1  ;;  %v5726_v3 = vpop.f32.mrf.mxu0 }
 0x470   : > { %v5231_v8 = vsel %vm1157_vm0, %v5205_v17, %v5206_v34  ;;  %v6348_v4 = vsel %vm1157_vm0, %v6270_v27, %v6271_v16 }
 0x471   : > { %14570 = vst [vmem:[#allocation36_spill] sm:$0xff] %v12997_v45  ;;  %v5302_v47 = vadd.f32 %v5231_v8, %v4791_v29  ;;  %v13003_v12 = vadd.f32 %v6348_v4, %v5726_v3  ;;  %v4795_v63 = vpop.f32.mrf.mxu1  ;;  %v5730_v1 = vpop.f32.mrf.mxu0  ;;  %6928 = vmatmul.mubr.f32.gmra.mxu1 %v12148_v38  ;;  %9320 = vmatmul.mubr.f32.gmra.mxu0 %v14571_v7 }
 0x472   : > { %v5207_v32 = vrot.slane %v4795_v63, 7  ;;  %v6272_v22 = vrot.slane %v5730_v1, 7  ;;  %9322 = vmatprep.mubr.f32.mxu0 %v12218_v54  ;;  %6933 = vmatprep.mubr.f32.mxu1 %v14326_v43  ;;  %v14573_v1 = vld [vmem:[#allocation32_spill] sm:$0xff] }
 0x473   : > { %v13010_v17 = vadd.f32 %v12774_v14, %v5302_v47  ;;  %v4797_v5 = vpop.f32.mrf.mxu1  ;;  %v5732_v27 = vpop.f32.mrf.mxu0 }
 0x474   : > { %v5230_v29 = vsel %vm1157_vm0, %v5206_v34, %v5207_v32  ;;  %v6347_v3 = vsel %vm1157_vm0, %v6271_v16, %v6272_v22 }
 0x475   : > { %14572 = vst [vmem:[#allocation34_spill] sm:$0xff] %v13010_v17  ;;  %v5303_v38 = vadd.f32 %v5230_v29, %v4797_v5  ;;  %v13016_v8 = vadd.f32 %v6347_v3, %v5732_v27  ;;  %v4801_v4 = vpop.f32.mrf.mxu1  ;;  %v5736_v63 = vpop.f32.mrf.mxu0  ;;  %6934 = vmatmul.mubr.f32.gmra.mxu1 %v12157_v20  ;;  %9323 = vmatmul.mubr.f32.gmra.mxu0 %v14573_v1 }
 0x476   : > { %v5208_v45 = vrot.slane %v4801_v4, 7  ;;  %v6273_v14 = vrot.slane %v5736_v63, 7  ;;  %9325 = vmatprep.mubr.f32.mxu0 %v12234_v24  ;;  %6939 = vmatprep.mubr.f32.mxu1 %v14326_v43  ;;  %v14575_v63 = vld [vmem:[#allocation35_spill] sm:$0xff] }
 0x477   : > { %v13023_v34 = vadd.f32 %v12778_v26, %v5303_v38  ;;  %v4803_v47 = vpop.f32.mrf.mxu1  ;;  %v5738_v16 = vpop.f32.mrf.mxu0 }
 0x478   : > { %v5229_v5 = vsel %vm1157_vm0, %v5207_v32, %v5208_v45  ;;  %v6346_v27 = vsel %vm1157_vm0, %v6272_v22, %v6273_v14 }
 0x479   : > { %14574 = vst [vmem:[#allocation39_spill] sm:$0xff] %v13023_v34  ;;  %v5304_v20 = vadd.f32 %v5229_v5, %v4803_v47  ;;  %v13029_v29 = vadd.f32 %v6346_v27, %v5738_v16  ;;  %v4807_v3 = vpop.f32.mrf.mxu1  ;;  %v5742_v4 = vpop.f32.mrf.mxu0  ;;  %6940 = vmatmul.mubr.f32.gmra.mxu1 %v12162_v9  ;;  %9326 = vmatmul.mubr.f32.gmra.mxu0 %v14575_v63 }
 0x47a   : > { %v5209_v17 = vrot.slane %v4807_v3, 7  ;;  %v6274_v26 = vrot.slane %v5742_v4, 7  ;;  %9328 = vmatprep.mubr.f32.mxu0 %v12255_v19  ;;  %6945 = vmatprep.mubr.f32.mxu1 %v14326_v43  ;;  %v14577_v4 = vld [vmem:[#allocation64_spill] sm:$0xff] }
 0x47b   : > { %v13036_v32 = vadd.f32 %v12795_v52, %v5304_v20  ;;  %v4809_v38 = vpop.f32.mrf.mxu1  ;;  %v5744_v22 = vpop.f32.mrf.mxu0  ;;  %v14578_v20 = vld [vmem:[#allocation37_spill] sm:$0xff] }
 0x47c   : > { %v5228_v47 = vsel %vm1157_vm0, %v5208_v45, %v5209_v17  ;;  %v6345_v16 = vsel %vm1157_vm0, %v6273_v14, %v6274_v26 }
 0x47d   : > { %14576 = vst [vmem:[#allocation24_spill] sm:$0xff] %v13036_v32  ;;  %v5305_v9 = vadd.f32 %v5228_v47, %v4809_v38  ;;  %v13042_v5 = vadd.f32 %v6345_v16, %v5744_v22  ;;  %v4813_v27 = vpop.f32.mrf.mxu1  ;;  %v5748_v3 = vpop.f32.mrf.mxu0  ;;  %6946 = vmatmul.mubr.f32.gmra.mxu1 %v14566_v40  ;;  %9329 = vmatmul.mubr.f32.gmra.mxu0 %v14577_v4 }
 0x47e   : > { %v5210_v34 = vrot.slane %v4813_v27, 7  ;;  %v6275_v52 = vrot.slane %v5748_v3, 7  ;;  %9331 = vmatprep.mubr.f32.mxu0 %v14578_v20  ;;  %6951 = vmatprep.mubr.f32.mxu1 %v14326_v43  ;;  %v14580_v3 = vld [vmem:[#allocation65_spill] sm:$0xff] }
 0x47f   : > { %v13049_v45 = vadd.f32 %v12799_v49, %v5305_v9  ;;  %v4815_v32 = vpop.f32.mrf.mxu1  ;;  %v5750_v14 = vpop.f32.mrf.mxu0  ;;  %v14581_v9 = vld [vmem:[#allocation38_spill] sm:$0xff] }
 0x480   : > { %v5227_v38 = vsel %vm1157_vm0, %v5209_v17, %v5210_v34  ;;  %v6344_v22 = vsel %vm1157_vm0, %v6274_v26, %v6275_v52 }
 0x481   : > { %14579 = vst [vmem:[#allocation58_spill] sm:$0xff] %v13049_v45  ;;  %v5306_v40 = vadd.f32 %v5227_v38, %v4815_v32  ;;  %v13055_v47 = vadd.f32 %v6344_v22, %v5750_v14  ;;  %v4819_v16 = vpop.f32.mrf.mxu1  ;;  %v5754_v27 = vpop.f32.mrf.mxu0  ;;  %6952 = vmatmul.mubr.f32.gmra.mxu1 %v12176_v31  ;;  %9332 = vmatmul.mubr.f32.gmra.mxu0 %v14580_v3 }
 0x482   : > { %v5211_v59 = vrot.slane %v4819_v16, 7  ;;  %v6276_v49 = vrot.slane %v5754_v27, 7  ;;  %9334 = vmatprep.mubr.f32.mxu0 %v14581_v9  ;;  %6957 = vmatprep.mubr.f32.mxu1 %v14326_v43  ;;  %v14583_v27 = vld [vmem:[#allocation67_spill] sm:$0xff] }
 0x483   : > { %v13062_v17 = vadd.f32 %v12814_v11, %v5306_v40  ;;  %v4821_v45 = vpop.f32.mrf.mxu1  ;;  %v5756_v26 = vpop.f32.mrf.mxu0  ;;  %v14584_v40 = vld [vmem:[#allocation43_spill] sm:$0xff] }
 0x484   : > { %v5226_v32 = vsel %vm1157_vm0, %v5210_v34, %v5211_v59  ;;  %v6343_v14 = vsel %vm1157_vm0, %v6275_v52, %v6276_v49 }
 0x485   : > { %14582 = vst [vmem:[#allocation27_spill] sm:$0xff] %v13062_v17  ;;  %v5307_v31 = vadd.f32 %v5226_v32, %v4821_v45  ;;  %v13068_v38 = vadd.f32 %v6343_v14, %v5756_v26  ;;  %v4825_v22 = vpop.f32.mrf.mxu1  ;;  %v5760_v16 = vpop.f32.mrf.mxu0  ;;  %6958 = vmatmul.mubr.f32.gmra.mxu1 %v12185_v18  ;;  %9335 = vmatmul.mubr.f32.gmra.mxu0 %v14583_v27 }
 0x486   : > { %v5212_v60 = vrot.slane %v4825_v22, 7  ;;  %v6277_v11 = vrot.slane %v5760_v16, 7  ;;  %9337 = vmatprep.mubr.f32.mxu0 %v14584_v40  ;;  %6963 = vmatprep.mubr.f32.mxu1 %v14326_v43  ;;  %v14586_v16 = vld [vmem:[#allocation41_spill] sm:$0xff] }
 0x487   : > { %v13075_v34 = vadd.f32 %v12818_v48, %v5307_v31  ;;  %v4827_v17 = vpop.f32.mrf.mxu1  ;;  %v5762_v52 = vpop.f32.mrf.mxu0  ;;  %v14587_v31 = vld [vmem:[#allocation68_spill] sm:$0xff] }
 0x488   : > { %v5225_v45 = vsel %vm1157_vm0, %v5211_v59, %v5212_v60  ;;  %v6342_v26 = vsel %vm1157_vm0, %v6276_v49, %v6277_v11 }
 0x489   : > { %14585 = vst [vmem:[#allocation26_spill] sm:$0xff] %v13075_v34  ;;  %v5308_v18 = vadd.f32 %v5225_v45, %v4827_v17  ;;  %v13081_v32 = vadd.f32 %v6342_v26, %v5762_v52  ;;  %v4831_v14 = vpop.f32.mrf.mxu1  ;;  %v5766_v22 = vpop.f32.mrf.mxu0  ;;  %6964 = vmatmul.mubr.f32.gmra.mxu1 %v12190_v41  ;;  %9338 = vmatmul.mubr.f32.gmra.mxu0 %v14586_v16 }
 0x48a   : > { %v5213_v6 = vrot.slane %v4831_v14, 7  ;;  %v6278_v48 = vrot.slane %v5766_v22, 7  ;;  %9340 = vmatprep.mubr.f32.mxu0 %v14587_v31  ;;  %6969 = vmatprep.mubr.f32.mxu1 %v14326_v43  ;;  %v14589_v22 = vld [vmem:[#allocation47_spill] sm:$0xff] }
 0x48b   : > { %v13088_v59 = vadd.f32 %v12831_v35, %v5308_v18  ;;  %v4833_v34 = vpop.f32.mrf.mxu1  ;;  %v5768_v49 = vpop.f32.mrf.mxu0  ;;  %v14590_v18 = vld [vmem:[#allocation45_spill] sm:$0xff] }
 0x48c   : > { %v5224_v17 = vsel %vm1157_vm0, %v5212_v60, %v5213_v6  ;;  %v6341_v52 = vsel %vm1157_vm0, %v6277_v11, %v6278_v48 }
 0x48d   : > { %14588 = vst [vmem:[#allocation59_spill] sm:$0xff] %v13088_v59  ;;  %v5309_v41 = vadd.f32 %v5224_v17, %v4833_v34  ;;  %v13094_v45 = vadd.f32 %v6341_v52, %v5768_v49  ;;  %v4837_v26 = vpop.f32.mrf.mxu1  ;;  %v5772_v14 = vpop.f32.mrf.mxu0  ;;  %6970 = vmatmul.mubr.f32.gmra.mxu1 %v14569_v46  ;;  %9341 = vmatmul.mubr.f32.gmra.mxu0 %v14589_v22 }
 0x48e   : > { %v5214_v37 = vrot.slane %v4837_v26, 7  ;;  %v6279_v35 = vrot.slane %v5772_v14, 7  ;;  %9343 = vmatprep.mubr.f32.mxu0 %v14590_v18  ;;  %6975 = vmatprep.mubr.f32.mxu1 %v14326_v43  ;;  %v14592_v14 = vld [vmem:[#allocation70_spill] sm:$0xff] }
 0x48f   : > { %v13101_v60 = vadd.f32 %v12835_v33, %v5309_v41  ;;  %v4839_v59 = vpop.f32.mrf.mxu1  ;;  %v5774_v11 = vpop.f32.mrf.mxu0  ;;  %v14593_v41 = vld [vmem:[#allocation51_spill] sm:$0xff] }
 0x490   : > { %v5223_v34 = vsel %vm1157_vm0, %v5213_v6, %v5214_v37  ;;  %v6340_v49 = vsel %vm1157_vm0, %v6278_v48, %v6279_v35 }
 0x491   : > { %14591 = vst [vmem:[#allocation31_spill] sm:$0xff] %v13101_v60  ;;  %v5310_v46 = vadd.f32 %v5223_v34, %v4839_v59  ;;  %v13107_v17 = vadd.f32 %v6340_v49, %v5774_v11  ;;  %v4843_v52 = vpop.f32.mrf.mxu1  ;;  %v5778_v26 = vpop.f32.mrf.mxu0  ;;  %6976 = vmatmul.mubr.f32.gmra.mxu1 %v12204_v61  ;;  %9344 = vmatmul.mubr.f32.gmra.mxu0 %v14592_v14 }
 0x492   : > { %v5215_v21 = vrot.slane %v4843_v52, 7  ;;  %v6280_v33 = vrot.slane %v5778_v26, 7  ;;  %9346 = vmatprep.mubr.f32.mxu0 %v14593_v41  ;;  %6981 = vmatprep.mubr.f32.mxu1 %v14326_v43  ;;  %v14595_v26 = vld [vmem:[#allocation49_spill] sm:$0xff] }
 0x493   : > { %v13114_v6 = vadd.f32 %v12850_v30, %v5310_v46  ;;  %v4845_v60 = vpop.f32.mrf.mxu1  ;;  %v5780_v48 = vpop.f32.mrf.mxu0 }
 0x494   : > { %v5222_v59 = vsel %vm1157_vm0, %v5214_v37, %v5215_v21  ;;  %v6339_v11 = vsel %vm1157_vm0, %v6279_v35, %v6280_v33 }
 0x495   : > { %14594 = vst [vmem:[#allocation29_spill] sm:$0xff] %v13114_v6  ;;  %v5311_v61 = vadd.f32 %v5222_v59, %v4845_v60  ;;  %v13120_v34 = vadd.f32 %v6339_v11, %v5780_v48  ;;  %v4849_v49 = vpop.f32.mrf.mxu1  ;;  %v5784_v52 = vpop.f32.mrf.mxu0  ;;  %6982 = vmatmul.mubr.f32.gmra.mxu1 %v14571_v7  ;;  %9347 = vmatmul.mubr.f32.gmra.mxu0 %v14595_v26  ;;  %v14606_v6 = vld [vmem:[#allocation72_spill] sm:$0xff] }
 0x496   : > { %v5216_v44 = vrot.slane %v4849_v49, 7  ;;  %v6281_v30 = vrot.slane %v5784_v52, 7  ;;  %9349 = vmatprep.mubr.f32.mxu0 %v12357_v13  ;;  %6987 = vmatprep.mubr.f32.mxu1 %v14326_v43 }
 0x497   : > { %v13127_v37 = vadd.f32 %v12854_v28, %v5311_v61  ;;  %v4851_v46 = vpop.f32.mrf.mxu1  ;;  %v5786_v35 = vpop.f32.mrf.mxu0 }
 0x498   : > { %v5221_v60 = vsel %vm1157_vm0, %v5215_v21, %v5216_v44  ;;  %v6338_v48 = vsel %vm1157_vm0, %v6280_v33, %v6281_v30 }
 0x499   : > { %14596 = vst [vmem:[#allocation61_spill] sm:$0xff] %v13127_v37  ;;  %v5312_v7 = vadd.f32 %v5221_v60, %v4851_v46  ;;  %v13133_v59 = vadd.f32 %v6338_v48, %v5786_v35  ;;  %v4855_v11 = vpop.f32.mrf.mxu1  ;;  %v5790_v49 = vpop.f32.mrf.mxu0  ;;  %6988 = vmatmul.mubr.f32.gmra.mxu1 %v12218_v54  ;;  %9350 = vmatmul.mubr.f32.gmra.mxu0 %v12363_v55 }
 0x49a   : > { %v5217_v52 = vrot.slane %v4855_v11, 7  ;;  %v6282_v28 = vrot.slane %v5790_v49, 7  ;;  %9352 = vmatprep.mubr.f32.mxu0 %v12780_v53  ;;  %6993 = vmatprep.mubr.f32.mxu1 %v14326_v43 }
 0x49b   : > { %v13140_v21 = vadd.f32 %v12870_v39, %v5312_v7  ;;  %v4857_v61 = vpop.f32.mrf.mxu1  ;;  %v5792_v33 = vpop.f32.mrf.mxu0 }
 0x49c   : > { %v5220_v46 = vsel %vm1157_vm0, %v5216_v44, %v5217_v52  ;;  %v6337_v35 = vsel %vm1157_vm0, %v6281_v30, %v6282_v28 }
 0x49d   : > { %14597 = vst [vmem:[#allocation32_spill] sm:$0xff] %v13140_v21  ;;  %v5313_v54 = vadd.f32 %v5220_v46, %v4857_v61  ;;  %v13146_v60 = vadd.f32 %v6337_v35, %v5792_v33  ;;  %v13148_v48 = vpop.f32.mrf.mxu1  ;;  %v5796_v11 = vpop.f32.mrf.mxu0  ;;  %6994 = vmatmul.mubr.f32.gmra.mxu1 %v14573_v1  ;;  %9353 = vmatmul.mubr.f32.gmra.mxu0 %v12785_v51  ;;  %v14600_v61 = vld [vmem:[#allocation54_spill] sm:$0xff] }
 0x49e   : > { %14598 = vst [vmem:[#allocation35_spill] sm:$0xff] %v13148_v48  ;;  %v14289_v39 = vrot.slane %v13148_v48, 7  ;;  %v6283_v7 = vrot.slane %v5796_v11, 7  ;;  %9355 = vmatprep.mubr.f32.mxu0 %v12801_v15  ;;  %6999 = vmatprep.mubr.f32.mxu1 %v14326_v43  ;;  %v14290_v33 = vrot.slane %v14600_v61, 1 }
 0x49f   : > { %v13156_v44 = vadd.f32 %v12876_v2, %v5313_v54  ;;  %v4863_v30 = vpop.f32.mrf.mxu1  ;;  %v5798_v49 = vpop.f32.mrf.mxu0  ;;  %v14601_v2 = vrot.slane %v12842_v42, 1 }
 0x4a0   : > { %v5219_v1 = vsel %vm1157_vm0, %v5217_v52, %v14289_v39  ;;  %v6336_v46 = vsel %vm1157_vm0, %v6282_v28, %v6283_v7 }
 0x4a1   : > { %14599 = vst [vmem:[#allocation64_spill] sm:$0xff] %v13156_v44  ;;  %v5314_v35 = vadd.f32 %v5219_v1, %v4863_v30  ;;  %v13165_v11 = vadd.f32 %v6336_v46, %v5798_v49  ;;  %v5802_v21 = vpop.f32.mrf.mxu0  ;;  %v9187_v37 = vpop.f32.mrf.mxu1  ;;  %7000 = vmatmul.mubr.f32.gmra.mxu1 %v12234_v24  ;;  %9356 = vmatmul.mubr.f32.gmra.mxu0 %v14326_v43  ;;  %v14605_v44 = vld [vmem:[#allocation77_spill] sm:$0xff] }
 0x4a2   : > { %v5410_v54 = vsel %vm1302_vm1, %v14601_v2, %v14290_v33  ;;  %v6284_v52 = vrot.slane %v5802_v21, 7  ;;  %7005 = vmatprep.mubr.f32.mxu1 %v14326_v43  ;;  %9358 = vmatprep.mubr.f32.mxu0 %v14326_v43  ;;  %v6407_v24 = vrot.slane %v9187_v37, 1 }
 0x4a3   : > { %v13177_v28 = vadd.f32 %v5410_v54, %v5314_v35  ;;  %v5804_v30 = vpop.f32.mrf.mxu0  ;;  %v13179_v49 = vpop.f32.mrf.mxu1 }
 0x4a4   : > { %14603 = vst [vmem:[#allocation65_spill] sm:$0xff] %v13179_v49  ;;  %v6335_v1 = vsel %vm1157_vm0, %v6283_v7, %v6284_v52  ;;  %v14291_v46 = vrot.slane %v13179_v49, 1 }
 0x4a5   : > { %14602 = vst [vmem:[#allocation37_spill] sm:$0xff] %v13177_v28  ;;  %v13184_v42 = vadd.f32 %v6335_v1, %v5804_v30  ;;  %v5808_v39 = vpop.f32.mrf.mxu0  ;;  %v9190_v2 = vpop.f32.mrf.mxu1  ;;  %7006 = vmatmul.mubr.f32.gmra.mxu1 %v14575_v63  ;;  %9359 = vmatmul.mubr.f32.gmra.mxu0 %v14326_v43 }
 0x4a6   : > { %v13192_v21 = vsel %vm1302_vm1, %v14291_v46, %v6407_v24  ;;  %v6285_v37 = vrot.slane %v5808_v39, 7  ;;  %7011 = vmatprep.mubr.f32.mxu1 %v14326_v43  ;;  %v6409_v54 = vrot.slane %v9190_v2, 1 }
 0x4a7   : > { %14604 = vst [vmem:[#allocation38_spill] sm:$0xff] %v13192_v21  ;;  %v5810_v7 = vpop.f32.mrf.mxu0  ;;  %v6033_v35 = vpop.f32.mrf.mxu1 }
 0x4a8   : > { %v6334_v30 = vsel %vm1157_vm0, %v6284_v52, %v6285_v37  ;;  %v6408_v1 = vrot.slane %v6033_v35, 1 }
 0x4a9   : > { %v13197_v33 = vadd.f32 %v6334_v30, %v5810_v7  ;;  %v5814_v63 = vpop.f32.mrf.mxu0  ;;  %v9193_v28 = vpop.f32.mrf.mxu1  ;;  %7012 = vmatmul.mubr.f32.gmra.mxu1 %v12255_v19 }
 0x4aa   : > { %v6498_v46 = vsel %vm1302_vm1, %v6408_v1, %v6409_v54  ;;  %v6499_v39 = vsel %vm1302_vm1, %v6407_v24, %v6408_v1  ;;  %v6286_v21 = vrot.slane %v5814_v63, 7  ;;  %7017 = vmatprep.mubr.f32.mxu1 %v14326_v43  ;;  %v6411_v30 = vrot.slane %v9193_v28, 1 }
 0x4ab   : > { %v6503_v2 = vadd.f32 %v6499_v39, %v12899_v0  ;;  %v6504_v52 = vadd.f32 %v6498_v46, %v12912_v57  ;;  %v5816_v35 = vpop.f32.mrf.mxu0  ;;  %v6043_v7 = vpop.f32.mrf.mxu1 }
 0x4ac   : > { %v6333_v61 = vsel %vm1157_vm0, %v6285_v37, %v6286_v21  ;;  %v6410_v19 = vrot.slane %v6043_v7, 1 }
 0x4ad   : > { %v13210_v48 = vadd.f32 %v6503_v2, %v14605_v44  ;;  %v13213_v49 = vadd.f32 %v6504_v52, %v14606_v6  ;;  %v13215_v24 = vadd.f32 %v6333_v61, %v5816_v35  ;;  %v5820_v1 = vpop.f32.mrf.mxu0  ;;  %v9196_v63 = vpop.f32.mrf.mxu1  ;;  %7018 = vmatmul.mubr.f32.gmra.mxu1 %v14577_v4  ;;  %v14607_v2 = vld [vmem:[#allocation63_spill] sm:$0xff]  ;;  %v14608_v35 = vld [vmem:[#allocation60_spill] sm:$0xff] }
 0x4ae   : > { %v6496_v0 = vsel %vm1302_vm1, %v6410_v19, %v6411_v30  ;;  %v6497_v57 = vsel %vm1302_vm1, %v6409_v54, %v6410_v19  ;;  %v6287_v28 = vrot.slane %v5820_v1, 7  ;;  %7023 = vmatprep.mubr.f32.mxu1 %v14326_v43  ;;  %v6413_v37 = vrot.slane %v9196_v63, 1 }
 0x4af   : > { %v6505_v44 = vadd.f32 %v6497_v57, %v12925_v23  ;;  %v6506_v6 = vadd.f32 %v6496_v0, %v12938_v10  ;;  %v5822_v46 = vpop.f32.mrf.mxu0  ;;  %v6053_v61 = vpop.f32.mrf.mxu1 }
 0x4b0   : > { %v6332_v39 = vsel %vm1157_vm0, %v6286_v21, %v6287_v28  ;;  %v6412_v4 = vrot.slane %v6053_v61, 1  ;;  %v14609_v61 = vld [vmem:[#allocation74_spill] sm:$0xff] }
 0x4b1   : > { %v13228_v52 = vadd.f32 %v6505_v44, %v14607_v2  ;;  %v13231_v7 = vadd.f32 %v6506_v6, %v14608_v35  ;;  %v13233_v54 = vadd.f32 %v6332_v39, %v5822_v46  ;;  %v5826_v19 = vpop.f32.mrf.mxu0  ;;  %v9199_v1 = vpop.f32.mrf.mxu1  ;;  %7024 = vmatmul.mubr.f32.gmra.mxu1 %v14578_v20  ;;  %v14610_v35 = vld [vmem:[#allocation28_spill] sm:$0xff] }
 0x4b2   : > { %v6494_v23 = vsel %vm1302_vm1, %v6412_v4, %v6413_v37  ;;  %v6495_v10 = vsel %vm1302_vm1, %v6411_v30, %v6412_v4  ;;  %v6288_v21 = vrot.slane %v5826_v19, 7  ;;  %7029 = vmatprep.mubr.f32.mxu1 %v14326_v43  ;;  %v6415_v6 = vrot.slane %v9199_v1, 1 }
 0x4b3   : > { %v6507_v63 = vadd.f32 %v6495_v10, %v12951_v56  ;;  %v6508_v0 = vadd.f32 %v6494_v23, %v12964_v50  ;;  %v5828_v57 = vpop.f32.mrf.mxu0  ;;  %v6063_v44 = vpop.f32.mrf.mxu1 }
 0x4b4   : > { %v6331_v46 = vsel %vm1157_vm0, %v6287_v28, %v6288_v21  ;;  %v6414_v20 = vrot.slane %v6063_v44, 1 }
 0x4b5   : > { %v13246_v39 = vadd.f32 %v6507_v63, %v14609_v61  ;;  %v13248_v2 = vadd.f32 %v6331_v46, %v5828_v57  ;;  %v5832_v30 = vpop.f32.mrf.mxu0  ;;  %v9202_v4 = vpop.f32.mrf.mxu1  ;;  %7030 = vmatmul.mubr.f32.gmra.mxu1 %v14580_v3  ;;  %v13252_v56 = vadd.f32 %v6508_v0, %v14610_v35 }
 0x4b6   : > { %v6492_v50 = vsel %vm1302_vm1, %v6414_v20, %v6415_v6  ;;  %v6493_v19 = vsel %vm1302_vm1, %v6413_v37, %v6414_v20  ;;  %v6289_v28 = vrot.slane %v5832_v30, 7  ;;  %7035 = vmatprep.mubr.f32.mxu1 %v14326_v43  ;;  %v6417_v57 = vrot.slane %v9202_v4, 1  ;;  %v14611_v37 = vld [vmem:[#allocation69_spill] sm:$0xff]  ;;  %v14612_v30 = vld [vmem:[#allocation66_spill] sm:$0xff] }
 0x4b7   : > { %v6509_v1 = vadd.f32 %v6493_v19, %v12977_v62  ;;  %v6510_v23 = vadd.f32 %v6492_v50, %v12990_v25  ;;  %v5834_v10 = vpop.f32.mrf.mxu0  ;;  %v6073_v63 = vpop.f32.mrf.mxu1 }
 0x4b8   : > { %v6330_v3 = vsel %vm1157_vm0, %v6288_v21, %v6289_v28  ;;  %v6416_v0 = vrot.slane %v6073_v63, 1 }
 0x4b9   : > { %v13263_v44 = vadd.f32 %v6330_v3, %v5834_v10  ;;  %v5838_v46 = vpop.f32.mrf.mxu0  ;;  %v9205_v61 = vpop.f32.mrf.mxu1  ;;  %7036 = vmatmul.mubr.f32.gmra.mxu1 %v14581_v9  ;;  %v13267_v20 = vadd.f32 %v6509_v1, %v14611_v37  ;;  %v13270_v62 = vadd.f32 %v6510_v23, %v14612_v30 }
 0x4ba   : > { %v6490_v25 = vsel %vm1302_vm1, %v6416_v0, %v6417_v57  ;;  %v6491_v4 = vsel %vm1302_vm1, %v6415_v6, %v6416_v0  ;;  %v6290_v21 = vrot.slane %v5838_v46, 7  ;;  %7041 = vmatprep.mubr.f32.mxu1 %v14326_v43  ;;  %v6419_v1 = vrot.slane %v9205_v61, 1  ;;  %v14613_v6 = vld [vmem:[#allocation30_spill] sm:$0xff]  ;;  %v14614_v46 = vld [vmem:[#allocation73_spill] sm:$0xff] }
 0x4bb   : > { %v6511_v35 = vadd.f32 %v6491_v4, %v13003_v12  ;;  %v6512_v50 = vadd.f32 %v6490_v25, %v13016_v8  ;;  %v5840_v9 = vpop.f32.mrf.mxu0  ;;  %v6083_v19 = vpop.f32.mrf.mxu1 }
 0x4bc   : > { %v6329_v23 = vsel %vm1157_vm0, %v6289_v28, %v6290_v21  ;;  %v6418_v10 = vrot.slane %v6083_v19, 1 }
 0x4bd   : > { %v13281_v63 = vadd.f32 %v6329_v23, %v5840_v9  ;;  %v5844_v3 = vpop.f32.mrf.mxu0  ;;  %v9208_v37 = vpop.f32.mrf.mxu1  ;;  %7042 = vmatmul.mubr.f32.gmra.mxu1 %v14583_v27  ;;  %v13285_v0 = vadd.f32 %v6511_v35, %v14613_v6  ;;  %v13288_v12 = vadd.f32 %v6512_v50, %v14614_v46 }
 0x4be   : > { %v6488_v8 = vsel %vm1302_vm1, %v6418_v10, %v6419_v1  ;;  %v6489_v61 = vsel %vm1302_vm1, %v6417_v57, %v6418_v10  ;;  %v6291_v28 = vrot.slane %v5844_v3, 7  ;;  %7047 = vmatprep.mubr.f32.mxu1 %v14326_v43  ;;  %v6421_v35 = vrot.slane %v9208_v37, 1  ;;  %v14615_v57 = vld [vmem:[#allocation71_spill] sm:$0xff] }
 0x4bf   : > { %v6513_v30 = vadd.f32 %v6489_v61, %v13029_v29  ;;  %v6514_v25 = vadd.f32 %v6488_v8, %v13042_v5  ;;  %v5846_v27 = vpop.f32.mrf.mxu0  ;;  %v6093_v4 = vpop.f32.mrf.mxu1  ;;  %v14616_v3 = vld [vmem:[#allocation75_spill] sm:$0xff] }
 0x4c0   : > { %v6328_v50 = vsel %vm1157_vm0, %v6290_v21, %v6291_v28  ;;  %v6420_v9 = vrot.slane %v6093_v4, 1 }
 0x4c1   : > { %v13299_v19 = vadd.f32 %v6328_v50, %v5846_v27  ;;  %v5850_v23 = vpop.f32.mrf.mxu0  ;;  %v9211_v6 = vpop.f32.mrf.mxu1  ;;  %7048 = vmatmul.mubr.f32.gmra.mxu1 %v14584_v40  ;;  %v13303_v10 = vadd.f32 %v6513_v30, %v14615_v57  ;;  %v13306_v29 = vadd.f32 %v6514_v25, %v14616_v3 }
 0x4c2   : > { %v6486_v5 = vsel %vm1302_vm1, %v6420_v9, %v6421_v35  ;;  %v6487_v37 = vsel %vm1302_vm1, %v6419_v1, %v6420_v9  ;;  %v6292_v21 = vrot.slane %v5850_v23, 7  ;;  %7053 = vmatprep.mubr.f32.mxu1 %v14326_v43  ;;  %v6423_v30 = vrot.slane %v9211_v6, 1  ;;  %v14617_v1 = vld [vmem:[#allocation76_spill] sm:$0xff]  ;;  %v14618_v23 = vld [vmem:[#allocation42_spill] sm:$0xff] }
 0x4c3   : > { %v6515_v46 = vadd.f32 %v6487_v37, %v13055_v47  ;;  %v6516_v8 = vadd.f32 %v6486_v5, %v13068_v38  ;;  %v5852_v40 = vpop.f32.mrf.mxu0  ;;  %v6103_v61 = vpop.f32.mrf.mxu1 }
 0x4c4   : > { %v6327_v25 = vsel %vm1157_vm0, %v6291_v28, %v6292_v21  ;;  %v6422_v27 = vrot.slane %v6103_v61, 1 }
 0x4c5   : > { %v13317_v4 = vadd.f32 %v6327_v25, %v5852_v40  ;;  %v5856_v50 = vpop.f32.mrf.mxu0  ;;  %v9214_v57 = vpop.f32.mrf.mxu1  ;;  %7054 = vmatmul.mubr.f32.gmra.mxu1 %v14586_v16  ;;  %v13321_v9 = vadd.f32 %v6515_v46, %v14617_v1  ;;  %v13324_v47 = vadd.f32 %v6516_v8, %v14618_v23 }
 0x4c6   : > { %v6484_v38 = vsel %vm1302_vm1, %v6422_v27, %v6423_v30  ;;  %v6485_v6 = vsel %vm1302_vm1, %v6421_v35, %v6422_v27  ;;  %v6293_v28 = vrot.slane %v5856_v50, 7  ;;  %7059 = vmatprep.mubr.f32.mxu1 %v14326_v43  ;;  %v6425_v46 = vrot.slane %v9214_v57, 1  ;;  %v14619_v35 = vld [vmem:[#allocation40_spill] sm:$0xff]  ;;  %v14620_v50 = vld [vmem:[#allocation14_spill] sm:$0xff] }
 0x4c7   : > { %v6517_v3 = vadd.f32 %v6485_v6, %v13081_v32  ;;  %v6518_v5 = vadd.f32 %v6484_v38, %v13094_v45  ;;  %v5858_v16 = vpop.f32.mrf.mxu0  ;;  %v6113_v37 = vpop.f32.mrf.mxu1 }
 0x4c8   : > { %v6326_v8 = vsel %vm1157_vm0, %v6292_v21, %v6293_v28  ;;  %v6424_v40 = vrot.slane %v6113_v37, 1 }
 0x4c9   : > { %v13335_v61 = vadd.f32 %v6326_v8, %v5858_v16  ;;  %v5862_v25 = vpop.f32.mrf.mxu0  ;;  %v9217_v1 = vpop.f32.mrf.mxu1  ;;  %7060 = vmatmul.mubr.f32.gmra.mxu1 %v14587_v31  ;;  %v13339_v27 = vadd.f32 %v6517_v3, %v14619_v35  ;;  %v13342_v32 = vadd.f32 %v6518_v5, %v14620_v50 }
 0x4ca   : > { %v6482_v45 = vsel %vm1302_vm1, %v6424_v40, %v6425_v46  ;;  %v6483_v57 = vsel %vm1302_vm1, %v6423_v30, %v6424_v40  ;;  %v6294_v21 = vrot.slane %v5862_v25, 7  ;;  %7065 = vmatprep.mubr.f32.mxu1 %v14326_v43  ;;  %v6427_v3 = vrot.slane %v9217_v1, 1  ;;  %v14621_v30 = vld [vmem:[#allocation15_spill] sm:$0xff]  ;;  %v14622_v25 = vld [vmem:[#allocation44_spill] sm:$0xff] }
 0x4cb   : > { %v6519_v23 = vadd.f32 %v6483_v57, %v13107_v17  ;;  %v6520_v38 = vadd.f32 %v6482_v45, %v13120_v34  ;;  %v5864_v31 = vpop.f32.mrf.mxu0  ;;  %v6123_v6 = vpop.f32.mrf.mxu1 }
 0x4cc   : > { %v6325_v5 = vsel %vm1157_vm0, %v6293_v28, %v6294_v21  ;;  %v6426_v16 = vrot.slane %v6123_v6, 1 }
 0x4cd   : > { %v13353_v37 = vadd.f32 %v6325_v5, %v5864_v31  ;;  %v5868_v8 = vpop.f32.mrf.mxu0  ;;  %v9220_v35 = vpop.f32.mrf.mxu1  ;;  %7066 = vmatmul.mubr.f32.gmra.mxu1 %v14589_v22  ;;  %v13357_v40 = vadd.f32 %v6519_v23, %v14621_v30  ;;  %v13360_v17 = vadd.f32 %v6520_v38, %v14622_v25 }
 0x4ce   : > { %v6480_v34 = vsel %vm1302_vm1, %v6426_v16, %v6427_v3  ;;  %v6481_v1 = vsel %vm1302_vm1, %v6425_v46, %v6426_v16  ;;  %v6295_v28 = vrot.slane %v5868_v8, 7  ;;  %7071 = vmatprep.mubr.f32.mxu1 %v14326_v43  ;;  %v6429_v23 = vrot.slane %v9220_v35, 1  ;;  %v14623_v46 = vld [vmem:[#allocation46_spill] sm:$0xff] }
 0x4cf   : > { %v6521_v50 = vadd.f32 %v6481_v1, %v13133_v59  ;;  %v6522_v45 = vadd.f32 %v6480_v34, %v13146_v60  ;;  %v5870_v22 = vpop.f32.mrf.mxu0  ;;  %v6133_v57 = vpop.f32.mrf.mxu1 }
 0x4d0   : > { %v6324_v38 = vsel %vm1157_vm0, %v6294_v21, %v6295_v28  ;;  %v6428_v31 = vrot.slane %v6133_v57, 1 }
 0x4d1   : > { %v13371_v6 = vadd.f32 %v6324_v38, %v5870_v22  ;;  %v5874_v5 = vpop.f32.mrf.mxu0  ;;  %v9223_v30 = vpop.f32.mrf.mxu1  ;;  %7072 = vmatmul.mubr.f32.gmra.mxu1 %v14590_v18  ;;  %v13375_v16 = vadd.f32 %v6521_v50, %v14623_v46  ;;  %v13378_v59 = vadd.f32 %v6522_v45, %v12783_v58 }
 0x4d2   : > { %v6478_v60 = vsel %vm1302_vm1, %v6428_v31, %v6429_v23  ;;  %v6479_v8 = vsel %vm1302_vm1, %v6427_v3, %v6428_v31  ;;  %v6296_v21 = vrot.slane %v5874_v5, 7  ;;  %7077 = vmatprep.mubr.f32.mxu1 %v14326_v43  ;;  %v6431_v1 = vrot.slane %v9223_v30, 1  ;;  %v14624_v3 = vld [vmem:[#allocation17_spill] sm:$0xff]  ;;  %v14625_v31 = vld [vmem:[#allocation16_spill] sm:$0xff] }
 0x4d3   : > { %v6523_v35 = vadd.f32 %v6479_v8, %v13165_v11  ;;  %v6524_v25 = vadd.f32 %v6478_v60, %v13184_v42  ;;  %v5876_v18 = vpop.f32.mrf.mxu0  ;;  %v6143_v34 = vpop.f32.mrf.mxu1 }
 0x4d4   : > { %v6323_v58 = vsel %vm1157_vm0, %v6295_v28, %v6296_v21  ;;  %v6430_v50 = vrot.slane %v6143_v34, 1 }
 0x4d5   : > { %v13389_v45 = vadd.f32 %v6323_v58, %v5876_v18  ;;  %v5880_v22 = vpop.f32.mrf.mxu0  ;;  %v9226_v57 = vpop.f32.mrf.mxu1  ;;  %7078 = vmatmul.mubr.f32.gmra.mxu1 %v14592_v14  ;;  %v13393_v38 = vadd.f32 %v6523_v35, %v14624_v3  ;;  %v13396_v11 = vadd.f32 %v6524_v25, %v14625_v31 }
 0x4d6   : > { %v6476_v42 = vsel %vm1302_vm1, %v6430_v50, %v6431_v1  ;;  %v6477_v5 = vsel %vm1302_vm1, %v6429_v23, %v6430_v50  ;;  %v6297_v28 = vrot.slane %v5880_v22, 7  ;;  %7083 = vmatprep.mubr.f32.mxu1 %v14326_v43  ;;  %v6433_v8 = vrot.slane %v9226_v57, 1  ;;  %v14626_v23 = vld [vmem:[#allocation50_spill] sm:$0xff]  ;;  %v14627_v22 = vld [vmem:[#allocation48_spill] sm:$0xff] }
 0x4d7   : > { %v6525_v30 = vadd.f32 %v6477_v5, %v13197_v33  ;;  %v6526_v46 = vadd.f32 %v6476_v42, %v13215_v24  ;;  %v5882_v14 = vpop.f32.mrf.mxu0  ;;  %v6153_v60 = vpop.f32.mrf.mxu1 }
 0x4d8   : > { %v6322_v35 = vsel %vm1157_vm0, %v6296_v21, %v6297_v28  ;;  %v6432_v25 = vrot.slane %v6153_v60, 1 }
 0x4d9   : > { %v13407_v18 = vadd.f32 %v6322_v35, %v5882_v14  ;;  %v5886_v34 = vpop.f32.mrf.mxu0  ;;  %v9229_v58 = vpop.f32.mrf.mxu1  ;;  %7084 = vmatmul.mubr.f32.gmra.mxu1 %v14593_v41  ;;  %v13411_v50 = vadd.f32 %v6525_v30, %v14626_v23  ;;  %v13414_v33 = vadd.f32 %v6526_v46, %v14627_v22 }
 0x4da   : > { %v6474_v24 = vsel %vm1302_vm1, %v6432_v25, %v6433_v8  ;;  %v6475_v57 = vsel %vm1302_vm1, %v6431_v1, %v6432_v25  ;;  %v6298_v21 = vrot.slane %v5886_v34, 7  ;;  %7089 = vmatprep.mubr.f32.mxu1 %v14326_v43  ;;  %v6435_v5 = vrot.slane %v9229_v58, 1  ;;  %v14628_v1 = vld [vmem:[#allocation18_spill] sm:$0xff]  ;;  %v14629_v34 = vld [vmem:[#allocation52_spill] sm:$0xff] }
 0x4db   : > { %v6527_v3 = vadd.f32 %v6475_v57, %v13233_v54  ;;  %v6528_v31 = vadd.f32 %v6474_v24, %v13248_v2  ;;  %v5888_v41 = vpop.f32.mrf.mxu0  ;;  %v6163_v42 = vpop.f32.mrf.mxu1 }
 0x4dc   : > { %v6321_v30 = vsel %vm1157_vm0, %v6297_v28, %v6298_v21  ;;  %v6434_v46 = vrot.slane %v6163_v42, 1 }
 0x4dd   : > { %v13425_v14 = vadd.f32 %v6321_v30, %v5888_v41  ;;  %v5892_v60 = vpop.f32.mrf.mxu0  ;;  %v9232_v35 = vpop.f32.mrf.mxu1  ;;  %7090 = vmatmul.mubr.f32.gmra.mxu1 %v14595_v26  ;;  %v13429_v25 = vadd.f32 %v6527_v3, %v14628_v1  ;;  %v13432_v54 = vadd.f32 %v6528_v31, %v14629_v34 }
 0x4de   : > { %v6472_v2 = vsel %vm1302_vm1, %v6434_v46, %v6435_v5  ;;  %v6473_v58 = vsel %vm1302_vm1, %v6433_v8, %v6434_v46  ;;  %v6299_v28 = vrot.slane %v5892_v60, 7  ;;  %7095 = vmatprep.mubr.f32.mxu1 %v14326_v43  ;;  %v6437_v57 = vrot.slane %v9232_v35, 1  ;;  %v14630_v8 = vld [vmem:[#allocation21_spill] sm:$0xff]  ;;  %v14631_v60 = vld [vmem:[#allocation20_spill] sm:$0xff] }
 0x4df   : > { %v6529_v23 = vadd.f32 %v6473_v58, %v13263_v44  ;;  %v6530_v22 = vadd.f32 %v6472_v2, %v13281_v63  ;;  %v5894_v26 = vpop.f32.mrf.mxu0  ;;  %v6173_v24 = vpop.f32.mrf.mxu1 }
 0x4e0   : > { %v6320_v3 = vsel %vm1157_vm0, %v6298_v21, %v6299_v28  ;;  %v6436_v31 = vrot.slane %v6173_v24, 1 }
 0x4e1   : > { %v13443_v41 = vadd.f32 %v6320_v3, %v5894_v26  ;;  %v5898_v42 = vpop.f32.mrf.mxu0  ;;  %v9235_v30 = vpop.f32.mrf.mxu1  ;;  %7096 = vmatmul.mubr.f32.gmra.mxu1 %v12357_v13  ;;  %v13447_v46 = vadd.f32 %v6529_v23, %v14630_v8  ;;  %v13450_v44 = vadd.f32 %v6530_v22, %v14631_v60 }
 0x4e2   : > { %v6470_v63 = vsel %vm1302_vm1, %v6436_v31, %v6437_v57  ;;  %v6471_v35 = vsel %vm1302_vm1, %v6435_v5, %v6436_v31  ;;  %v6300_v21 = vrot.slane %v5898_v42, 7  ;;  %7101 = vmatprep.mubr.f32.mxu1 %v14326_v43  ;;  %v6439_v58 = vrot.slane %v9235_v30, 1  ;;  %v14632_v5 = vld [vmem:[#allocation55_spill] sm:$0xff] }
 0x4e3   : > { %v6531_v1 = vadd.f32 %v6471_v35, %v13299_v19  ;;  %v6532_v34 = vadd.f32 %v6470_v63, %v13317_v4  ;;  %v5900_v13 = vpop.f32.mrf.mxu0  ;;  %v6183_v2 = vpop.f32.mrf.mxu1  ;;  %v14633_v42 = vld [vmem:[#allocation23_spill] sm:$0xff] }
 0x4e4   : > { %v6319_v23 = vsel %vm1157_vm0, %v6299_v28, %v6300_v21  ;;  %v6438_v22 = vrot.slane %v6183_v2, 1 }
 0x4e5   : > { %v6396_v26 = vadd.f32 %v6319_v23, %v5900_v13  ;;  %v5904_v24 = vpop.f32.mrf.mxu0  ;;  %v9238_v3 = vpop.f32.mrf.mxu1  ;;  %7102 = vmatmul.mubr.f32.gmra.mxu1 %v12363_v55  ;;  %v13463_v31 = vadd.f32 %v6531_v1, %v14632_v5  ;;  %v13466_v8 = vadd.f32 %v6532_v34, %v14633_v42 }
 0x4e6   : > { %v6468_v19 = vsel %vm1302_vm1, %v6438_v22, %v6439_v58  ;;  %v6469_v4 = vsel %vm1302_vm1, %v6437_v57, %v6438_v22  ;;  %v6301_v30 = vrot.slane %v5904_v24, 7  ;;  %7107 = vmatprep.mubr.f32.mxu1 %v14326_v43  ;;  %v6441_v35 = vrot.slane %v9238_v3, 1  ;;  %v14634_v57 = vld [vmem:[#allocation22_spill] sm:$0xff]  ;;  %v14635_v24 = vld [vmem:[#allocation56_spill] sm:$0xff] }
 0x4e7   : > { %v6533_v28 = vadd.f32 %v6469_v4, %v13335_v61  ;;  %v6534_v60 = vadd.f32 %v6468_v19, %v13353_v37  ;;  %v5906_v55 = vpop.f32.mrf.mxu0  ;;  %v6193_v63 = vpop.f32.mrf.mxu1 }
 0x4e8   : > { %v6318_v1 = vsel %vm1157_vm0, %v6300_v21, %v6301_v30  ;;  %v6440_v34 = vrot.slane %v6193_v63, 1 }
 0x4e9   : > { %v6397_v13 = vadd.f32 %v6318_v1, %v5906_v55  ;;  %v5910_v2 = vpop.f32.mrf.mxu0  ;;  %v9241_v23 = vpop.f32.mrf.mxu1  ;;  %7108 = vmatmul.mubr.f32.gmra.mxu1 %v12780_v53  ;;  %v13479_v22 = vadd.f32 %v6533_v28, %v14634_v57  ;;  %v13482_v5 = vadd.f32 %v6534_v60, %v14635_v24 }
 0x4ea   : > { %v6466_v61 = vsel %vm1302_vm1, %v6440_v34, %v6441_v35  ;;  %v6467_v37 = vsel %vm1302_vm1, %v6439_v58, %v6440_v34  ;;  %v6302_v3 = vrot.slane %v5910_v2, 7  ;;  %7113 = vmatprep.mubr.f32.mxu1 %v14326_v43  ;;  %v6443_v4 = vrot.slane %v9241_v23, 1  ;;  %v14636_v58 = vld [vmem:[#allocation25_spill] sm:$0xff]  ;;  %v14637_v2 = vld [vmem:[#allocation36_spill] sm:$0xff] }
 0x4eb   : > { %v6535_v21 = vadd.f32 %v6467_v37, %v13371_v6  ;;  %v6536_v42 = vadd.f32 %v6466_v61, %v13389_v45  ;;  %v5912_v53 = vpop.f32.mrf.mxu0  ;;  %v6203_v19 = vpop.f32.mrf.mxu1 }
 0x4ec   : > { %v6317_v28 = vsel %vm1157_vm0, %v6301_v30, %v6302_v3  ;;  %v6442_v60 = vrot.slane %v6203_v19, 1 }
 0x4ed   : > { %v6398_v55 = vadd.f32 %v6317_v28, %v5912_v53  ;;  %v5916_v63 = vpop.f32.mrf.mxu0  ;;  %v9244_v1 = vpop.f32.mrf.mxu1  ;;  %7114 = vmatmul.mubr.f32.gmra.mxu1 %v12785_v51  ;;  %v13495_v34 = vadd.f32 %v6535_v21, %v14636_v58  ;;  %v13498_v57 = vadd.f32 %v6536_v42, %v14637_v2 }
 0x4ee   : > { %v6464_v6 = vsel %vm1302_vm1, %v6442_v60, %v6443_v4  ;;  %v6465_v45 = vsel %vm1302_vm1, %v6441_v35, %v6442_v60  ;;  %v6303_v23 = vrot.slane %v5916_v63, 7  ;;  %7119 = vmatprep.mubr.f32.mxu1 %v14326_v43  ;;  %v6445_v37 = vrot.slane %v9244_v1, 1  ;;  %v14638_v35 = vld [vmem:[#allocation34_spill] sm:$0xff]  ;;  %v14639_v63 = vld [vmem:[#allocation39_spill] sm:$0xff] }
 0x4ef   : > { %v6537_v30 = vadd.f32 %v6465_v45, %v13407_v18  ;;  %v6538_v24 = vadd.f32 %v6464_v6, %v13425_v14  ;;  %v5918_v51 = vpop.f32.mrf.mxu0  ;;  %v6213_v61 = vpop.f32.mrf.mxu1 }
 0x4f0   : > { %v6316_v21 = vsel %vm1157_vm0, %v6302_v3, %v6303_v23  ;;  %v6444_v42 = vrot.slane %v6213_v61, 1 }
 0x4f1   : > { %v6399_v53 = vadd.f32 %v6316_v21, %v5918_v51  ;;  %v5922_v19 = vpop.f32.mrf.mxu0  ;;  %v9247_v28 = vpop.f32.mrf.mxu1  ;;  %7120 = vmatmul.mubr.f32.gmra.mxu1 %v12801_v15  ;;  %v13511_v60 = vadd.f32 %v6537_v30, %v14638_v35  ;;  %v13514_v58 = vadd.f32 %v6538_v24, %v14639_v63  ;;  %v14640_v35 = vld [vmem:[#allocation24_spill] sm:$0xff] }
 0x4f2   : > { %v6462_v18 = vsel %vm1302_vm1, %v6444_v42, %v6445_v37  ;;  %v6463_v14 = vsel %vm1302_vm1, %v6443_v4, %v6444_v42  ;;  %v6304_v1 = vrot.slane %v5922_v19, 7  ;;  %7125 = vmatprep.mubr.f32.mxu1 %v14326_v43  ;;  %v6447_v45 = vrot.slane %v9247_v28, 1  ;;  %v14642_v42 = vld [vmem:[#allocation58_spill] sm:$0xff] }
 0x4f3   : > { %v6539_v3 = vadd.f32 %v6463_v14, %v13443_v41  ;;  %v6540_v2 = vadd.f32 %v6462_v18, %v6396_v26  ;;  %v5924_v6 = vpop.f32.mrf.mxu0  ;;  %v6223_v15 = vpop.f32.mrf.mxu1 }
 0x4f4   : > { %v6315_v30 = vsel %vm1157_vm0, %v6303_v23, %v6304_v1  ;;  %v6446_v24 = vrot.slane %v6223_v15, 1 }
 0x4f5   : > { %v6400_v51 = vadd.f32 %v6315_v30, %v5924_v6  ;;  %v5928_v61 = vpop.f32.mrf.mxu0  ;;  %v9250_v21 = vpop.f32.mrf.mxu1  ;;  %7126 = vmatmul.mubr.f32.gmra.mxu1 %v14326_v43  ;;  %v13526_v4 = vadd.f32 %v6539_v3, %v14640_v35  ;;  %v13529_v19 = vadd.f32 %v6540_v2, %v14642_v42  ;;  %v14644_v42 = vld [vmem:[#allocation27_spill] sm:$0xff] }
 0x4f6   : > { %v6460_v41 = vsel %vm1302_vm1, %v6446_v24, %v6447_v45  ;;  %v6461_v26 = vsel %vm1302_vm1, %v6445_v37, %v6446_v24  ;;  %v6305_v28 = vrot.slane %v5928_v61, 7  ;;  %7131 = vmatprep.mubr.f32.mxu1 %v14326_v43  ;;  %v6449_v6 = vrot.slane %v9250_v21, 1  ;;  %v14646_v37 = vld [vmem:[#allocation26_spill] sm:$0xff] }
 0x4f7   : > { %14641 = vst [vmem:[#allocation67_spill] sm:$0xff] %v13526_v4  ;;  %14643 = vst [vmem:[#allocation43_spill] sm:$0xff] %v13529_v19  ;;  %v6541_v23 = vadd.f32 %v6461_v26, %v6397_v13  ;;  %v6542_v63 = vadd.f32 %v6460_v41, %v6398_v55  ;;  %v5930_v18 = vpop.f32.mrf.mxu0  ;;  %v6233_v14 = vpop.f32.mrf.mxu1  ;;  %v14674_v4 = vld [vmem:[#allocation38_spill] sm:$0xff] }
 0x4f8   : > { %v6314_v3 = vsel %vm1157_vm0, %v6304_v1, %v6305_v28  ;;  %v6448_v15 = vrot.slane %v6233_v14, 1 }
 0x4f9   : > { %v6401_v2 = vadd.f32 %v6314_v3, %v5930_v18  ;;  %v5934_v30 = vpop.f32.mrf.mxu0  ;;  %v9253_v35 = vpop.f32.mrf.mxu1  ;;  %7132 = vmatmul.mubr.f32.gmra.mxu1 %v14326_v43  ;;  %v13540_v19 = vadd.f32 %v6541_v23, %v14644_v42  ;;  %v13543_v24 = vadd.f32 %v6542_v63, %v14646_v37  ;;  %v14648_v37 = vld [vmem:[#allocation59_spill] sm:$0xff] }
 0x4fa   : > { %v6458_v13 = vsel %vm1302_vm1, %v6448_v15, %v6449_v6  ;;  %v6459_v55 = vsel %vm1302_vm1, %v6447_v45, %v6448_v15  ;;  %v6306_v61 = vrot.slane %v5934_v30, 7  ;;  %7137 = vmatprep.mubr.f32.mxu1 %v14326_v43  ;;  %v6451_v18 = vrot.slane %v9253_v35, 1  ;;  %v14650_v45 = vld [vmem:[#allocation31_spill] sm:$0xff] }
 0x4fb   : > { %14645 = vst [vmem:[#allocation41_spill] sm:$0xff] %v13540_v19  ;;  %14647 = vst [vmem:[#allocation68_spill] sm:$0xff] %v13543_v24  ;;  %v6543_v1 = vadd.f32 %v6459_v55, %v6399_v53  ;;  %v6544_v21 = vadd.f32 %v6458_v13, %v6400_v51  ;;  %v5936_v41 = vpop.f32.mrf.mxu0  ;;  %v6243_v26 = vpop.f32.mrf.mxu1 }
 0x4fc   : > { %v6313_v23 = vsel %vm1157_vm0, %v6305_v28, %v6306_v61  ;;  %v6450_v14 = vrot.slane %v6243_v26, 1  ;;  %v14652_v26 = vld [vmem:[#allocation65_spill] sm:$0xff] }
 0x4fd   : > { %v6402_v63 = vadd.f32 %v6313_v23, %v5936_v41  ;;  %v5940_v3 = vpop.f32.mrf.mxu0  ;;  %v9256_v42 = vpop.f32.mrf.mxu1  ;;  %7138 = vmatmul.mubr.f32.gmra.mxu1 %v14326_v43  ;;  %v13554_v24 = vadd.f32 %v6543_v1, %v14648_v37  ;;  %v13557_v15 = vadd.f32 %v6544_v21, %v14650_v45  ;;  %v14653_v23 = vrot.slane %v14652_v26, 1  ;;  %v14661_v26 = vld [vmem:[#allocation35_spill] sm:$0xff] }
 0x4fe   : > { %v6456_v53 = vsel %vm1302_vm1, %v6450_v14, %v6451_v18  ;;  %v6457_v51 = vsel %vm1302_vm1, %v6449_v6, %v6450_v14  ;;  %v6307_v30 = vrot.slane %v5940_v3, 7  ;;  %v6453_v28 = vrot.slane %v9256_v42, 1  ;;  %v14654_v6 = vld [vmem:[#allocation29_spill] sm:$0xff] }
 0x4ff   : > { %14649 = vst [vmem:[#allocation47_spill] sm:$0xff] %v13554_v24  ;;  %14651 = vst [vmem:[#allocation45_spill] sm:$0xff] %v13557_v15  ;;  %v6545_v35 = vadd.f32 %v6457_v51, %v6401_v2  ;;  %v6546_v13 = vadd.f32 %v6456_v53, %v6402_v63  ;;  %v5942_v55 = vpop.f32.mrf.mxu0  ;;  %v6253_v41 = vpop.f32.mrf.mxu1  ;;  %v14656_v2 = vld [vmem:[#allocation61_spill] sm:$0xff] }
 0x500   : > { %v6312_v43 = vsel %vm1157_vm0, %v6306_v61, %v6307_v30  ;;  %v6452_v1 = vrot.slane %v6253_v41, 1  ;;  %v6501_v21 = vsel %vm1302_vm1, %v6453_v28, %v14653_v23  ;;  %v14662_v23 = vrot.slane %v14661_v26, 7 }
 0x501   : > { %v6403_v37 = vadd.f32 %v6312_v43, %v5942_v55  ;;  %v5946_v45 = vpop.f32.mrf.mxu0  ;;  %v13569_v15 = vpop.f32.mrf.mxu1  ;;  %v13572_v14 = vadd.f32 %v6545_v35, %v14654_v6  ;;  %v13575_v63 = vadd.f32 %v6546_v13, %v14656_v2  ;;  %v14659_v55 = vld [vmem:[#allocation33_spill] sm:$0xff]  ;;  %v14663_v6 = vld [vmem:[#allocation32_spill] sm:$0xff] }
 0x502   : > { %v6455_v3 = vsel %vm1302_vm1, %v6451_v18, %v6452_v1  ;;  %v6308_v61 = vrot.slane %v5946_v45, 7  ;;  %v6454_v42 = vsel %vm1302_vm1, %v6452_v1, %v6453_v28  ;;  %v14660_v43 = vrot.slane %v14659_v55, 7 }
 0x503   : > { %14655 = vst [vmem:[#allocation70_spill] sm:$0xff] %v13572_v14  ;;  %14657 = vst [vmem:[#allocation51_spill] sm:$0xff] %v13575_v63  ;;  %v6547_v53 = vadd.f32 %v6455_v3, %v6403_v37  ;;  %v5948_v51 = vpop.f32.mrf.mxu0  ;;  %v13581_v41 = vpop.f32.mrf.mxu1  ;;  %v14665_v37 = vld [vmem:[#allocation62_spill] sm:$0xff]  ;;  %v14666_v14 = vld [vmem:[#allocation19_spill] sm:$0xff] }
 0x504   : > { %14658 = vst [vmem:[#allocation49_spill] sm:$0xff] %v13581_v41  ;;  %v5266_v35 = vsel %vm1157_vm0, %v14662_v23, %v14660_v43  ;;  %v6311_v13 = vsel %vm1157_vm0, %v6307_v30, %v6308_v61  ;;  %v14667_v26 = vrot.slane %v14666_v14, 7  ;;  %v14668_v23 = vld [vmem:[#allocation64_spill] sm:$0xff] }
 0x505   : > { %v13592_v18 = vadd.f32 %v6547_v53, %v14663_v6  ;;  %v6404_v45 = vadd.f32 %v6311_v13, %v5948_v51  ;;  %v5952_v2 = vpop.f32.mrf.mxu0  ;;  %v6863_v28 = vpop.f32.mrf.mxu1  ;;  %v5267_v3 = vadd.f32 %v5266_v35, %v14665_v37  ;;  %v14669_v51 = vld [vmem:[#allocation53_spill] sm:$0xff] }
 0x506   : > { %v6309_v1 = vrot.slane %v5952_v2, 7  ;;  %v14670_v35 = vld [vmem:[#allocation57_spill] sm:$0xff]  ;;  %v7450_v24 = vrot.slane %v6863_v28, 7 }
 0x507   : > { %14664 = vst [vmem:[#allocation77_spill] sm:$0xff] %v13592_v18  ;;  %v6548_v41 = vadd.f32 %v6454_v42, %v6404_v45  ;;  %v5954_v63 = vpop.f32.mrf.mxu0  ;;  %v6865_v55 = vpop.f32.mrf.mxu1  ;;  %v14671_v42 = vrot.slane %v14670_v35, 1  ;;  %v14672_v45 = vld [vmem:[#allocation54_spill] sm:$0xff]  ;;  %v14677_v35 = vld [vmem:[#allocation37_spill] sm:$0xff] }
 0x508   : > { %v6357_v43 = vsel %vm1157_vm0, %v6309_v1, %v14667_v26  ;;  %v6310_v30 = vsel %vm1157_vm0, %v6308_v61, %v6309_v1  ;;  %v14673_v37 = vrot.slane %v14672_v45, 1 }
 0x509   : > { %v13602_v53 = vadd.f32 %v6548_v41, %v14668_v23  ;;  %v6358_v13 = vadd.f32 %v6357_v43, %v14669_v51  ;;  %v6405_v6 = vadd.f32 %v6310_v30, %v5954_v63  ;;  %v6869_v2 = vpop.f32.mrf.mxu1  ;;  %v9291_v18 = vpop.f32.mrf.mxu0  ;;  %v14295_v63 = vrot.slane %v13569_v15, 7 }
 0x50a   : > { %v5409_v14 = vsel %vm1302_vm1, %v14673_v37, %v14671_v42  ;;  %v7451_v26 = vrot.slane %v6869_v2, 7  ;;  %v7594_v43 = vrot.slane %v9291_v18, 1 }
 0x50b   : > { %v5411_v19 = vadd.f32 %v5409_v14, %v5267_v3  ;;  %v6502_v61 = vadd.f32 %v14674_v4, %v6358_v13  ;;  %v6549_v1 = vadd.f32 %v6501_v21, %v6405_v6  ;;  %v6871_v41 = vpop.f32.mrf.mxu1  ;;  %v13612_v23 = vpop.f32.mrf.mxu0  ;;  %v7543_v4 = vsel %vm1157_vm0, %v14295_v63, %v7450_v24 }
 0x50c   : > { %14675 = vst [vmem:[#allocation72_spill] sm:$0xff] %v13612_v23  ;;  %v14296_v30 = vrot.slane %v13612_v23, 1  ;;  %v7542_v21 = vsel %vm1157_vm0, %v7450_v24, %v7451_v26  ;;  %v7546_v37 = vadd.f32 %v7543_v4, %v6865_v55  ;;  %v13642_v55 = vld [vmem:[%s14208_s5] ss:$0 sm:$0xff] }
 0x50d   : > { %v13616_v51 = vadd.f32 %v6502_v61, %v5411_v19  ;;  %v13619_v45 = vadd.f32 %v6549_v1, %v14677_v35  ;;  %v6875_v42 = vpop.f32.mrf.mxu1  ;;  %v9294_v28 = vpop.f32.mrf.mxu0  ;;  %v7547_v14 = vadd.f32 %v7542_v21, %v6871_v41 }
 0x50e   : > { %v13631_v18 = vsel %vm1302_vm1, %v14296_v30, %v7594_v43  ;;  %v7452_v19 = vrot.slane %v6875_v42, 7  ;;  %v7596_v6 = vrot.slane %v9294_v28, 1 }
 0x50f   : > { %14676 = vst [vmem:[#allocation63_spill] sm:$0xff] %v13616_v51  ;;  %14678 = vst [vmem:[#allocation60_spill] sm:$0xff] %v13619_v45  ;;  %v6877_v3 = vpop.f32.mrf.mxu1  ;;  %v7220_v13 = vpop.f32.mrf.mxu0 }
 0x510   : > { %14679 = vst [vmem:[#allocation74_spill] sm:$0xff] %v13631_v18  ;;  %v7595_v2 = vrot.slane %v7220_v13, 1  ;;  %v7541_v35 = vsel %vm1157_vm0, %v7451_v26, %v7452_v19 }
 0x511   : > { %v6881_v61 = vpop.f32.mrf.mxu1  ;;  %v9297_v1 = vpop.f32.mrf.mxu0  ;;  %v7548_v4 = vadd.f32 %v7541_v35, %v6877_v3  ;;  %v7883_v35 = vld [vmem:[%s9794_s19 + $0x28] sm:$0xff] }
 0x512   : > { %v7685_v24 = vsel %vm1302_vm1, %v7595_v2, %v7596_v6  ;;  %v7686_v63 = vsel %vm1302_vm1, %v7594_v43, %v7595_v2  ;;  %v7453_v30 = vrot.slane %v6881_v61, 7  ;;  %v7598_v41 = vrot.slane %v9297_v1, 1  ;;  %v7882_v1 = vld [vmem:[%s9794_s19 + $0x20] sm:$0xff] }
 0x513   : > { %v7690_v45 = vadd.f32 %v7686_v63, %v7546_v37  ;;  %v7691_v42 = vadd.f32 %v7685_v24, %v7547_v14  ;;  %v6883_v51 = vpop.f32.mrf.mxu1  ;;  %v7230_v23 = vpop.f32.mrf.mxu0  ;;  %v13653_v37 = vld [vmem:[%s14209_s6] ss:$0 sm:$0xff] }
 0x514   : > { %v7540_v26 = vsel %vm1157_vm0, %v7452_v19, %v7453_v30  ;;  %v7597_v28 = vrot.slane %v7230_v23, 1 }
 0x515   : > { %v7786_v21 = vadd.f32 %v7690_v45, %v13210_v48  ;;  %v7787_v63 = vadd.f32 %v7691_v42, %v13213_v49  ;;  %v7549_v43 = vadd.f32 %v7540_v26, %v6883_v51  ;;  %v6887_v13 = vpop.f32.mrf.mxu1  ;;  %v13648_v2 = vpop.f32.mrf.mxu0 }
 0x516   : > { %v7683_v23 = vsel %vm1302_vm1, %v7597_v28, %v7598_v41  ;;  %v7684_v19 = vsel %vm1302_vm1, %v7596_v6, %v7597_v28  ;;  %v7454_v48 = vrot.slane %v6887_v13, 7 }
 0x517   : > { %v7985_v45 = vmul.f32 %v13642_v55, %v7786_v21  ;;  %v7986_v49 = vmul.f32 %v13642_v55, %v7787_v63  ;;  %v7692_v51 = vadd.f32 %v7684_v19, %v7548_v4  ;;  %v7693_v3 = vadd.f32 %v7683_v23, %v7549_v43  ;;  %v6889_v14 = vpop.f32.mrf.mxu1  ;;  %v7240_v61 = vpop.f32.mrf.mxu0 }
 0x518   : > { %v7539_v24 = vsel %vm1157_vm0, %v7453_v30, %v7454_v48  ;;  %v7599_v42 = vrot.slane %v7240_v61, 1 }
 0x519   : > { %v8040_v26 = vadd.f32 %v13653_v37, %v7985_v45  ;;  %v8041_v6 = vadd.f32 %v13653_v37, %v7986_v49  ;;  %v7788_v28 = vadd.f32 %v7692_v51, %v13228_v52  ;;  %v7789_v4 = vadd.f32 %v7693_v3, %v13231_v7  ;;  %v6893_v21 = vpop.f32.mrf.mxu1  ;;  %v13670_v63 = vpop.f32.mrf.mxu0  ;;  %v7884_v52 = vld [vmem:[%s9794_s19 + $0x30] sm:$0xff]  ;;  %v7885_v51 = vld [vmem:[%s9794_s19 + $0x38] sm:$0xff] }
 0x51a   : > { %v7550_v43 = vadd.f32 %v7539_v24, %v6889_v14  ;;  %v7682_v13 = vsel %vm1302_vm1, %v7598_v41, %v7599_v42  ;;  %v7455_v23 = vrot.slane %v6893_v21, 7  ;;  %v7600_v7 = vrot.slane %v13648_v2, 1 }
 0x51b   : > { %v8088_v30 = vadd.f32 %v8040_v26, %v7882_v1  ;;  %v8089_v19 = vadd.f32 %v8041_v6, %v7883_v35  ;;  %v7987_v61 = vmul.f32 %v13642_v55, %v7788_v28  ;;  %v7988_v45 = vmul.f32 %v13642_v55, %v7789_v4  ;;  %v6895_v18 = vpop.f32.mrf.mxu1  ;;  %v7250_v49 = vpop.f32.mrf.mxu0 }
 0x51c   : > { %v7694_v3 = vadd.f32 %v7682_v13, %v7550_v43  ;;  %v7538_v14 = vsel %vm1157_vm0, %v7454_v48, %v7455_v23  ;;  %v7601_v4 = vrot.slane %v7250_v49, 1  ;;  %v7681_v43 = vsel %vm1302_vm1, %v7599_v42, %v7600_v7  ;;  %v7886_v49 = vld [vmem:[%s9794_s19 + $0x40] sm:$0xff] }
 0x51d   : > { %v8136_v24 = vmax.f32 %v8088_v30, 0.0  ;;  %v8137_v41 = vmax.f32 %v8089_v19, 0.0  ;;  %v8042_v1 = vadd.f32 %v13653_v37, %v7987_v61  ;;  %v8043_v35 = vadd.f32 %v13653_v37, %v7988_v45  ;;  %v6899_v26 = vpop.f32.mrf.mxu1  ;;  %v13692_v13 = vpop.f32.mrf.mxu0 }
 0x51e   : > { %v7790_v6 = vadd.f32 %v7694_v3, %v13246_v39  ;;  %v7551_v28 = vadd.f32 %v7538_v14, %v6895_v18  ;;  %v7456_v21 = vrot.slane %v6899_v26, 7  ;;  %v7680_v14 = vsel %vm1302_vm1, %v7600_v7, %v7601_v4 }
 0x51f   : > { %8184 = vst [vmem:[%s13686_s14 + $0x8] sm:$0xff] %v8136_v24  ;;  %8185 = vst [vmem:[%s13686_s14 + $0x10] sm:$0xff] %v8137_v41  ;;  %v8090_v2 = vadd.f32 %v8042_v1, %v7884_v52  ;;  %v8091_v48 = vadd.f32 %v8043_v35, %v7885_v51  ;;  %v6901_v39 = vpop.f32.mrf.mxu1  ;;  %v7602_v41 = vrot.slane %v13670_v63, 1 }
 0x520   : > { %v7989_v18 = vmul.f32 %v13642_v55, %v7790_v6  ;;  %v7695_v30 = vadd.f32 %v7681_v43, %v7551_v28  ;;  %v7537_v19 = vsel %vm1157_vm0, %v7455_v23, %v7456_v21  ;;  %v7260_v23 = vpop.f32.mrf.mxu0 }
 0x521   : > { %v8138_v61 = vmax.f32 %v8090_v2, 0.0  ;;  %v8139_v45 = vmax.f32 %v8091_v48, 0.0  ;;  %v7552_v52 = vadd.f32 %v7537_v19, %v6901_v39  ;;  %v6905_v51 = vpop.f32.mrf.mxu1  ;;  %v7679_v48 = vsel %vm1302_vm1, %v7601_v4, %v7602_v41 }
 0x522   : > { %v8044_v3 = vadd.f32 %v13653_v37, %v7989_v18  ;;  %v7791_v42 = vadd.f32 %v7695_v30, %v13252_v56  ;;  %v7457_v24 = vrot.slane %v6905_v51, 7  ;;  %v7887_v56 = vld [vmem:[%s9794_s19 + $0x48] sm:$0xff]  ;;  %v7603_v18 = vrot.slane %v7260_v23, 1 }
 0x523   : > { %8186 = vst [vmem:[%s13686_s14 + $0x18] sm:$0xff] %v8138_v61  ;;  %8187 = vst [vmem:[%s13686_s14 + $0x20] sm:$0xff] %v8139_v45  ;;  %v7696_v1 = vadd.f32 %v7680_v14, %v7552_v52  ;;  %v6907_v35 = vpop.f32.mrf.mxu1  ;;  %v13714_v61 = vpop.f32.mrf.mxu0 }
 0x524   : > { %v8092_v26 = vadd.f32 %v8044_v3, %v7886_v49  ;;  %v7990_v6 = vmul.f32 %v13642_v55, %v7791_v42  ;;  %v7536_v28 = vsel %vm1157_vm0, %v7456_v21, %v7457_v24 }
 0x525   : > { %v7792_v2 = vadd.f32 %v7696_v1, %v13267_v20  ;;  %v7553_v7 = vadd.f32 %v7536_v28, %v6907_v35  ;;  %v6911_v43 = vpop.f32.mrf.mxu1  ;;  %v7888_v20 = vld [vmem:[%s9794_s19 + $0x50] sm:$0xff]  ;;  %v7678_v1 = vsel %vm1302_vm1, %v7602_v41, %v7603_v18 }
 0x526   : > { %v8140_v63 = vmax.f32 %v8092_v26, 0.0  ;;  %v8045_v39 = vadd.f32 %v13653_v37, %v7990_v6  ;;  %v7458_v30 = vrot.slane %v6911_v43, 7  ;;  %v7270_v6 = vpop.f32.mrf.mxu0 }
 0x527   : > { %v7991_v19 = vmul.f32 %v13642_v55, %v7792_v2  ;;  %v7697_v45 = vadd.f32 %v7679_v48, %v7553_v7  ;;  %v6913_v21 = vpop.f32.mrf.mxu1  ;;  %v7889_v2 = vld [vmem:[%s9794_s19 + $0x58] sm:$0xff] }
 0x528   : > { %8188 = vst [vmem:[%s13686_s14 + $0x28] sm:$0xff] %v8140_v63  ;;  %v8093_v49 = vadd.f32 %v8045_v39, %v7887_v56  ;;  %v7535_v4 = vsel %vm1157_vm0, %v7457_v24, %v7458_v30  ;;  %v7604_v24 = vrot.slane %v13692_v13, 1  ;;  %v7605_v39 = vrot.slane %v7270_v6, 1 }
 0x529   : > { %v8046_v52 = vadd.f32 %v13653_v37, %v7991_v19  ;;  %v7793_v51 = vadd.f32 %v7697_v45, %v13270_v62  ;;  %v7554_v3 = vadd.f32 %v7535_v4, %v6913_v21  ;;  %v6917_v42 = vpop.f32.mrf.mxu1  ;;  %v13735_v21 = vpop.f32.mrf.mxu0  ;;  %v7890_v4 = vld [vmem:[%s9794_s19 + $0x60] sm:$0xff] }
 0x52a   : > { %v8141_v14 = vmax.f32 %v8093_v49, 0.0  ;;  %v7459_v23 = vrot.slane %v6917_v42, 7  ;;  %v7677_v19 = vsel %vm1302_vm1, %v7603_v18, %v7604_v24 }
 0x52b   : > { %v8094_v35 = vadd.f32 %v8046_v52, %v7888_v20  ;;  %v7992_v26 = vmul.f32 %v13642_v55, %v7793_v51  ;;  %v7698_v28 = vadd.f32 %v7678_v1, %v7554_v3  ;;  %v6919_v56 = vpop.f32.mrf.mxu1 }
 0x52c   : > { %8189 = vst [vmem:[%s13686_s14 + $0x30] sm:$0xff] %v8141_v14  ;;  %v7534_v62 = vsel %vm1157_vm0, %v7458_v30, %v7459_v23  ;;  %v7676_v14 = vsel %vm1302_vm1, %v7604_v24, %v7605_v39 }
 0x52d   : > { %v8142_v7 = vmax.f32 %v8094_v35, 0.0  ;;  %v8047_v48 = vadd.f32 %v13653_v37, %v7992_v26  ;;  %v7794_v41 = vadd.f32 %v7698_v28, %v13285_v0  ;;  %v7555_v43 = vadd.f32 %v7534_v62, %v6919_v56  ;;  %v6923_v63 = vpop.f32.mrf.mxu1  ;;  %v7280_v26 = vpop.f32.mrf.mxu0 }
 0x52e   : > { %v7460_v45 = vrot.slane %v6923_v63, 7 }
 0x52f   : > { %8190 = vst [vmem:[%s13686_s14 + $0x38] sm:$0xff] %v8142_v7  ;;  %v8095_v13 = vadd.f32 %v8047_v48, %v7889_v2  ;;  %v7993_v49 = vmul.f32 %v13642_v55, %v7794_v41  ;;  %v7699_v30 = vadd.f32 %v7677_v19, %v7555_v43  ;;  %v6925_v20 = vpop.f32.mrf.mxu1  ;;  %v7891_v2 = vld [vmem:[%s9794_s19 + $0x68] sm:$0xff]  ;;  %v7607_v43 = vrot.slane %v7280_v26, 1 }
 0x530   : > { %v7533_v0 = vsel %vm1157_vm0, %v7459_v23, %v7460_v45  ;;  %v7606_v23 = vrot.slane %v13714_v61, 1  ;;  %v13756_v61 = vpop.f32.mrf.mxu0 }
 0x531   : > { %v8143_v52 = vmax.f32 %v8095_v13, 0.0  ;;  %v8048_v51 = vadd.f32 %v13653_v37, %v7993_v49  ;;  %v7795_v18 = vadd.f32 %v7699_v30, %v13288_v12  ;;  %v7556_v3 = vadd.f32 %v7533_v0, %v6925_v20  ;;  %v6929_v42 = vpop.f32.mrf.mxu1  ;;  %v7892_v20 = vld [vmem:[%s9794_s19 + $0x70] sm:$0xff] }
 0x532   : > { %v7461_v1 = vrot.slane %v6929_v42, 7  ;;  %v7675_v63 = vsel %vm1302_vm1, %v7605_v39, %v7606_v23  ;;  %v7290_v42 = vpop.f32.mrf.mxu0 }
 0x533   : > { %8191 = vst [vmem:[%s13686_s14 + $0x40] sm:$0xff] %v8143_v52  ;;  %v8096_v35 = vadd.f32 %v8048_v51, %v7890_v4  ;;  %v7994_v6 = vmul.f32 %v13642_v55, %v7795_v18  ;;  %v7700_v28 = vadd.f32 %v7676_v14, %v7556_v3  ;;  %v6931_v56 = vpop.f32.mrf.mxu1  ;;  %v7674_v18 = vsel %vm1302_vm1, %v7606_v23, %v7607_v43 }
 0x534   : > { %v7532_v12 = vsel %vm1157_vm0, %v7460_v45, %v7461_v1 }
 0x535   : > { %v8144_v62 = vmax.f32 %v8096_v35, 0.0  ;;  %v8049_v7 = vadd.f32 %v13653_v37, %v7994_v6  ;;  %v7796_v24 = vadd.f32 %v7700_v28, %v13303_v10  ;;  %v7557_v48 = vadd.f32 %v7532_v12, %v6931_v56  ;;  %v6935_v41 = vpop.f32.mrf.mxu1  ;;  %v7893_v28 = vld [vmem:[%s9794_s19 + $0x78] sm:$0xff] }
 0x536   : > { %v7462_v19 = vrot.slane %v6935_v41, 7  ;;  %v13776_v41 = vpop.f32.mrf.mxu0 }
 0x537   : > { %8192 = vst [vmem:[%s13686_s14 + $0x48] sm:$0xff] %v8144_v62  ;;  %v8097_v13 = vadd.f32 %v8049_v7, %v7891_v2  ;;  %v7995_v49 = vmul.f32 %v13642_v55, %v7796_v24  ;;  %v7701_v45 = vadd.f32 %v7675_v63, %v7557_v48  ;;  %v6937_v30 = vpop.f32.mrf.mxu1  ;;  %v7609_v7 = vrot.slane %v7290_v42, 1 }
 0x538   : > { %v7531_v10 = vsel %vm1157_vm0, %v7461_v1, %v7462_v19  ;;  %v7608_v1 = vrot.slane %v13735_v21, 1 }
 0x539   : > { %v8145_v4 = vmax.f32 %v8097_v13, 0.0  ;;  %v8050_v0 = vadd.f32 %v13653_v37, %v7995_v49  ;;  %v7797_v39 = vadd.f32 %v7701_v45, %v13306_v29  ;;  %v7558_v52 = vadd.f32 %v7531_v10, %v6937_v30  ;;  %v6941_v51 = vpop.f32.mrf.mxu1  ;;  %v7894_v49 = vld [vmem:[%s9794_s19 + $0x80] sm:$0xff] }
 0x53a   : > { %v7463_v3 = vrot.slane %v6941_v51, 7  ;;  %v7673_v24 = vsel %vm1302_vm1, %v7607_v43, %v7608_v1 }
 0x53b   : > { %8193 = vst [vmem:[%s13686_s14 + $0x50] sm:$0xff] %v8145_v4  ;;  %v8098_v14 = vadd.f32 %v8050_v0, %v7892_v20  ;;  %v7996_v35 = vmul.f32 %v13642_v55, %v7797_v39  ;;  %v7702_v26 = vadd.f32 %v7674_v18, %v7558_v52  ;;  %v6943_v6 = vpop.f32.mrf.mxu1  ;;  %v7672_v4 = vsel %vm1302_vm1, %v7608_v1, %v7609_v7  ;;  %v7300_v39 = vpop.f32.mrf.mxu0 }
 0x53c   : > { %v7530_v29 = vsel %vm1157_vm0, %v7462_v19, %v7463_v3 }
 0x53d   : > { %v8146_v56 = vmax.f32 %v8098_v14, 0.0  ;;  %v8051_v2 = vadd.f32 %v13653_v37, %v7996_v35  ;;  %v7798_v23 = vadd.f32 %v7702_v26, %v13321_v9  ;;  %v7559_v12 = vadd.f32 %v7530_v29, %v6943_v6  ;;  %v6947_v62 = vpop.f32.mrf.mxu1  ;;  %v7895_v14 = vld [vmem:[%s9794_s19 + $0x88] sm:$0xff] }
 0x53e   : > { %v7464_v48 = vrot.slane %v6947_v62, 7  ;;  %v7611_v29 = vrot.slane %v7300_v39, 1 }
 0x53f   : > { %8194 = vst [vmem:[%s13686_s14 + $0x58] sm:$0xff] %v8146_v56  ;;  %v8099_v21 = vadd.f32 %v8051_v2, %v7893_v28  ;;  %v7997_v63 = vmul.f32 %v13642_v55, %v7798_v23  ;;  %v7703_v19 = vadd.f32 %v7673_v24, %v7559_v12  ;;  %v6949_v13 = vpop.f32.mrf.mxu1  ;;  %v13797_v23 = vpop.f32.mrf.mxu0 }
 0x540   : > { %v7529_v9 = vsel %vm1157_vm0, %v7463_v3, %v7464_v48  ;;  %v7610_v3 = vrot.slane %v13756_v61, 1 }
 0x541   : > { %v8147_v45 = vmax.f32 %v8099_v21, 0.0  ;;  %v8052_v30 = vadd.f32 %v13653_v37, %v7997_v63  ;;  %v7799_v43 = vadd.f32 %v7703_v19, %v13324_v47  ;;  %v7560_v20 = vadd.f32 %v7529_v9, %v6949_v13  ;;  %v6953_v10 = vpop.f32.mrf.mxu1 }
 0x542   : > { %v7465_v0 = vrot.slane %v6953_v10, 7  ;;  %v7671_v56 = vsel %vm1302_vm1, %v7609_v7, %v7610_v3 }
 0x543   : > { %8195 = vst [vmem:[%s13686_s14 + $0x60] sm:$0xff] %v8147_v45  ;;  %v8100_v52 = vadd.f32 %v8052_v30, %v7894_v49  ;;  %v7998_v51 = vmul.f32 %v13642_v55, %v7799_v43  ;;  %v7704_v18 = vadd.f32 %v7672_v4, %v7560_v20  ;;  %v6955_v42 = vpop.f32.mrf.mxu1  ;;  %v7670_v49 = vsel %vm1302_vm1, %v7610_v3, %v7611_v29  ;;  %v7310_v45 = vpop.f32.mrf.mxu0 }
 0x544   : > { %v7528_v47 = vsel %vm1157_vm0, %v7464_v48, %v7465_v0  ;;  %v7896_v48 = vld [vmem:[%s9794_s19 + $0x90] sm:$0xff]  ;;  %v7612_v4 = vrot.slane %v13776_v41, 1  ;;  %v7613_v3 = vrot.slane %v7310_v45, 1 }
 0x545   : > { %v8148_v35 = vmax.f32 %v8100_v52, 0.0  ;;  %v8053_v26 = vadd.f32 %v13653_v37, %v7998_v51  ;;  %v7800_v6 = vadd.f32 %v7704_v18, %v13339_v27  ;;  %v7561_v1 = vadd.f32 %v7528_v47, %v6955_v42  ;;  %v6959_v28 = vpop.f32.mrf.mxu1 }
 0x546   : > { %v7466_v2 = vrot.slane %v6959_v28, 7  ;;  %v7898_v28 = vld [vmem:[%s9794_s19 + $0xa0] sm:$0xff] }
 0x547   : > { %8196 = vst [vmem:[%s13686_s14 + $0x68] sm:$0xff] %v8148_v35  ;;  %v8101_v61 = vadd.f32 %v8053_v26, %v7895_v14  ;;  %v7999_v12 = vmul.f32 %v13642_v55, %v7800_v6  ;;  %v7705_v62 = vadd.f32 %v7671_v56, %v7561_v1  ;;  %v6961_v24 = vpop.f32.mrf.mxu1  ;;  %v7669_v14 = vsel %vm1302_vm1, %v7611_v29, %v7612_v4  ;;  %v13818_v35 = vpop.f32.mrf.mxu0 }
 0x548   : > { %v7527_v27 = vsel %vm1157_vm0, %v7465_v0, %v7466_v2  ;;  %v7897_v0 = vld [vmem:[%s9794_s19 + $0x98] sm:$0xff] }
 0x549   : > { %v8149_v21 = vmax.f32 %v8101_v61, 0.0  ;;  %v8054_v63 = vadd.f32 %v13653_v37, %v7999_v12  ;;  %v7801_v7 = vadd.f32 %v7705_v62, %v13342_v32  ;;  %v7562_v19 = vadd.f32 %v7527_v27, %v6961_v24  ;;  %v6965_v13 = vpop.f32.mrf.mxu1 }
 0x54a   : > { %v7467_v9 = vrot.slane %v6965_v13, 7  ;;  %v7668_v62 = vsel %vm1302_vm1, %v7612_v4, %v7613_v3  ;;  %v7899_v13 = vld [vmem:[%s9794_s19 + $0xa8] sm:$0xff] }
 0x54b   : > { %8197 = vst [vmem:[%s13686_s14 + $0x70] sm:$0xff] %v8149_v21  ;;  %v8102_v30 = vadd.f32 %v8054_v63, %v7896_v48  ;;  %v8000_v43 = vmul.f32 %v13642_v55, %v7801_v7  ;;  %v7706_v20 = vadd.f32 %v7670_v49, %v7562_v19  ;;  %v6967_v10 = vpop.f32.mrf.mxu1  ;;  %v7320_v48 = vpop.f32.mrf.mxu0  ;;  %v7614_v19 = vrot.slane %v13797_v23, 1 }
 0x54c   : > { %v7526_v32 = vsel %vm1157_vm0, %v7466_v2, %v7467_v9 }
 0x54d   : > { %v8150_v39 = vmax.f32 %v8102_v30, 0.0  ;;  %v8055_v52 = vadd.f32 %v13653_v37, %v8000_v43  ;;  %v7802_v51 = vadd.f32 %v7706_v20, %v13357_v40  ;;  %v7563_v18 = vadd.f32 %v7526_v32, %v6967_v10  ;;  %v6971_v42 = vpop.f32.mrf.mxu1 }
 0x54e   : > { %v7468_v47 = vrot.slane %v6971_v42, 7  ;;  %v7615_v20 = vrot.slane %v7320_v48, 1  ;;  %v7667_v10 = vsel %vm1302_vm1, %v7613_v3, %v7614_v19 }
 0x54f   : > { %8198 = vst [vmem:[%s13686_s14 + $0x78] sm:$0xff] %v8150_v39  ;;  %v8103_v41 = vadd.f32 %v8055_v52, %v7897_v0  ;;  %v8001_v26 = vmul.f32 %v13642_v55, %v7802_v51  ;;  %v7707_v6 = vadd.f32 %v7669_v14, %v7563_v18  ;;  %v6973_v1 = vpop.f32.mrf.mxu1  ;;  %v13839_v0 = vpop.f32.mrf.mxu0  ;;  %v7900_v51 = vld [vmem:[%s9794_s19 + $0xb0] sm:$0xff] }
 0x550   : > { %v7525_v40 = vsel %vm1157_vm0, %v7467_v9, %v7468_v47 }
 0x551   : > { %v8151_v56 = vmax.f32 %v8103_v41, 0.0  ;;  %v8056_v2 = vadd.f32 %v13653_v37, %v8001_v26  ;;  %v7803_v29 = vadd.f32 %v7707_v6, %v13360_v17  ;;  %v7564_v61 = vadd.f32 %v7525_v40, %v6973_v1  ;;  %v6977_v12 = vpop.f32.mrf.mxu1  ;;  %v7330_v6 = vpop.f32.mrf.mxu0 }
 0x552   : > { %v7469_v24 = vrot.slane %v6977_v12, 7  ;;  %v7666_v41 = vsel %vm1302_vm1, %v7614_v19, %v7615_v20 }
 0x553   : > { %8199 = vst [vmem:[%s13686_s14 + $0x80] sm:$0xff] %v8151_v56  ;;  %v8104_v27 = vadd.f32 %v8056_v2, %v7898_v28  ;;  %v8002_v21 = vmul.f32 %v13642_v55, %v7803_v29  ;;  %v7708_v63 = vadd.f32 %v7668_v62, %v7564_v61  ;;  %v6979_v7 = vpop.f32.mrf.mxu1  ;;  %v7616_v2 = vrot.slane %v13818_v35, 1  ;;  %v7901_v29 = vld [vmem:[%s9794_s19 + $0xb8] sm:$0xff] }
 0x554   : > { %v7524_v17 = vsel %vm1157_vm0, %v7468_v47, %v7469_v24 }
 0x555   : > { %v8152_v49 = vmax.f32 %v8104_v27, 0.0  ;;  %v8057_v9 = vadd.f32 %v13653_v37, %v8002_v21  ;;  %v7804_v45 = vadd.f32 %v7708_v63, %v13375_v16  ;;  %v7565_v30 = vadd.f32 %v7524_v17, %v6979_v7  ;;  %v6983_v43 = vpop.f32.mrf.mxu1  ;;  %v13860_v7 = vpop.f32.mrf.mxu0 }
 0x556   : > { %v7470_v4 = vrot.slane %v6983_v43, 7  ;;  %v7617_v27 = vrot.slane %v7330_v6, 1  ;;  %v7665_v21 = vsel %vm1302_vm1, %v7615_v20, %v7616_v2 }
 0x557   : > { %8200 = vst [vmem:[%s13686_s14 + $0x88] sm:$0xff] %v8152_v49  ;;  %v8105_v23 = vadd.f32 %v8057_v9, %v7899_v13  ;;  %v8003_v32 = vmul.f32 %v13642_v55, %v7804_v45  ;;  %v7709_v39 = vadd.f32 %v7667_v10, %v7565_v30  ;;  %v6985_v52 = vpop.f32.mrf.mxu1  ;;  %v7902_v49 = vld [vmem:[%s9794_s19 + $0xc0] sm:$0xff] }
 0x558   : > { %v7523_v16 = vsel %vm1157_vm0, %v7469_v24, %v7470_v4  ;;  %v7664_v10 = vsel %vm1302_vm1, %v7616_v2, %v7617_v27 }
 0x559   : > { %v8153_v18 = vmax.f32 %v8105_v23, 0.0  ;;  %v8058_v42 = vadd.f32 %v13653_v37, %v8003_v32  ;;  %v7805_v3 = vadd.f32 %v7709_v39, %v13378_v59  ;;  %v7566_v14 = vadd.f32 %v7523_v16, %v6985_v52  ;;  %v6989_v47 = vpop.f32.mrf.mxu1  ;;  %v7340_v23 = vpop.f32.mrf.mxu0 }
 0x55a   : > { %v7471_v26 = vrot.slane %v6989_v47, 7  ;;  %v7618_v16 = vrot.slane %v13839_v0, 1 }
 0x55b   : > { %8201 = vst [vmem:[%s13686_s14 + $0x90] sm:$0xff] %v8153_v18  ;;  %v8106_v1 = vadd.f32 %v8058_v42, %v7900_v51  ;;  %v8004_v28 = vmul.f32 %v13642_v55, %v7805_v3  ;;  %v7710_v40 = vadd.f32 %v7666_v41, %v7566_v14  ;;  %v6991_v56 = vpop.f32.mrf.mxu1  ;;  %v7903_v18 = vld [vmem:[%s9794_s19 + $0xc8] sm:$0xff] }
 0x55c   : > { %v7522_v59 = vsel %vm1157_vm0, %v7470_v4, %v7471_v26  ;;  %v7663_v6 = vsel %vm1302_vm1, %v7617_v27, %v7618_v16 }
 0x55d   : > { %v8154_v61 = vmax.f32 %v8106_v1, 0.0  ;;  %v8059_v12 = vadd.f32 %v13653_v37, %v8004_v28  ;;  %v7806_v62 = vadd.f32 %v7710_v40, %v13393_v38  ;;  %v7567_v24 = vadd.f32 %v7522_v59, %v6991_v56  ;;  %v6995_v48 = vpop.f32.mrf.mxu1  ;;  %v13881_v28 = vpop.f32.mrf.mxu0 }
 0x55e   : > { %v7472_v63 = vrot.slane %v6995_v48, 7 }
 0x55f   : > { %8202 = vst [vmem:[%s13686_s14 + $0x98] sm:$0xff] %v8154_v61  ;;  %v8107_v35 = vadd.f32 %v8059_v12, %v7901_v29  ;;  %v8005_v19 = vmul.f32 %v13642_v55, %v7806_v62  ;;  %v7711_v13 = vadd.f32 %v7665_v21, %v7567_v24  ;;  %v6997_v17 = vpop.f32.mrf.mxu1  ;;  %v7904_v29 = vld [vmem:[%s9794_s19 + $0xd0] sm:$0xff]  ;;  %v7350_v21 = vpop.f32.mrf.mxu0 }
 0x560   : > { %v7521_v38 = vsel %vm1157_vm0, %v7471_v26, %v7472_v63  ;;  %v7619_v26 = vrot.slane %v7340_v23, 1 }
 0x561   : > { %v8155_v9 = vmax.f32 %v8107_v35, 0.0  ;;  %v8060_v45 = vadd.f32 %v13653_v37, %v8005_v19  ;;  %v7807_v30 = vadd.f32 %v7711_v13, %v13396_v11  ;;  %v7568_v43 = vadd.f32 %v7521_v38, %v6997_v17  ;;  %v7001_v20 = vpop.f32.mrf.mxu1  ;;  %v13902_v23 = vpop.f32.mrf.mxu0 }
 0x562   : > { %v7473_v4 = vrot.slane %v7001_v20, 7  ;;  %v7662_v48 = vsel %vm1302_vm1, %v7618_v16, %v7619_v26  ;;  %v7620_v17 = vrot.slane %v13860_v7, 1  ;;  %v7621_v20 = vrot.slane %v7350_v21, 1 }
 0x563   : > { %8203 = vst [vmem:[%s13686_s14 + $0xa0] sm:$0xff] %v8155_v9  ;;  %v8108_v32 = vadd.f32 %v8060_v45, %v7902_v49  ;;  %v8006_v39 = vmul.f32 %v13642_v55, %v7807_v30  ;;  %v7712_v52 = vadd.f32 %v7664_v10, %v7568_v43  ;;  %v7003_v51 = vpop.f32.mrf.mxu1  ;;  %v7905_v49 = vld [vmem:[%s9794_s19 + $0xd8] sm:$0xff] }
 0x564   : > { %v7520_v11 = vsel %vm1157_vm0, %v7472_v63, %v7473_v4  ;;  %v7661_v10 = vsel %vm1302_vm1, %v7619_v26, %v7620_v17 }
 0x565   : > { %v8156_v42 = vmax.f32 %v8108_v32, 0.0  ;;  %v8061_v3 = vadd.f32 %v13653_v37, %v8006_v39  ;;  %v7808_v14 = vadd.f32 %v7712_v52, %v13411_v50  ;;  %v7569_v47 = vadd.f32 %v7520_v11, %v7003_v51  ;;  %v7007_v41 = vpop.f32.mrf.mxu1  ;;  %v7906_v51 = vld [vmem:[%s9794_s19 + $0xe0] sm:$0xff] }
 0x566   : > { %v7474_v1 = vrot.slane %v7007_v41, 7  ;;  %v7360_v41 = vpop.f32.mrf.mxu0 }
 0x567   : > { %8204 = vst [vmem:[%s13686_s14 + $0xa8] sm:$0xff] %v8156_v42  ;;  %v8109_v0 = vadd.f32 %v8061_v3, %v7903_v18  ;;  %v8007_v40 = vmul.f32 %v13642_v55, %v7808_v14  ;;  %v7713_v56 = vadd.f32 %v7663_v6, %v7569_v47  ;;  %v7009_v2 = vpop.f32.mrf.mxu1  ;;  %v7660_v14 = vsel %vm1302_vm1, %v7620_v17, %v7621_v20 }
 0x568   : > { %v7519_v50 = vsel %vm1157_vm0, %v7473_v4, %v7474_v1 }
 0x569   : > { %v8157_v59 = vmax.f32 %v8109_v0, 0.0  ;;  %v8062_v61 = vadd.f32 %v13653_v37, %v8007_v40  ;;  %v7809_v12 = vadd.f32 %v7713_v56, %v13414_v33  ;;  %v7570_v62 = vadd.f32 %v7519_v50, %v7009_v2  ;;  %v7013_v24 = vpop.f32.mrf.mxu1  ;;  %v7907_v56 = vld [vmem:[%s9794_s19 + $0xe8] sm:$0xff] }
 0x56a   : > { %v7475_v27 = vrot.slane %v7013_v24, 7  ;;  %v7622_v40 = vrot.slane %v13881_v28, 1 }
 0x56b   : > { %8205 = vst [vmem:[%s13686_s14 + $0xb0] sm:$0xff] %v8157_v59  ;;  %v8110_v63 = vadd.f32 %v8062_v61, %v7904_v29  ;;  %v8008_v35 = vmul.f32 %v13642_v55, %v7809_v12  ;;  %v7714_v19 = vadd.f32 %v7662_v48, %v7570_v62  ;;  %v7015_v13 = vpop.f32.mrf.mxu1  ;;  %v7623_v12 = vrot.slane %v7360_v41, 1  ;;  %v13923_v48 = vpop.f32.mrf.mxu0  ;;  %v7910_v41 = vld [vmem:[%s9794_s19 + $0x100] sm:$0xff] }
 0x56c   : > { %v7518_v33 = vsel %vm1157_vm0, %v7474_v1, %v7475_v27  ;;  %v7659_v62 = vsel %vm1302_vm1, %v7621_v20, %v7622_v40 }
 0x56d   : > { %v8158_v38 = vmax.f32 %v8110_v63, 0.0  ;;  %v8063_v9 = vadd.f32 %v13653_v37, %v8008_v35  ;;  %v7810_v45 = vadd.f32 %v7714_v19, %v13429_v25  ;;  %v7571_v30 = vadd.f32 %v7518_v33, %v7015_v13  ;;  %v7019_v43 = vpop.f32.mrf.mxu1  ;;  %v7908_v35 = vld [vmem:[%s9794_s19 + $0xf0] sm:$0xff] }
 0x56e   : > { %v7476_v4 = vrot.slane %v7019_v43, 7 }
 0x56f   : > { %8206 = vst [vmem:[%s13686_s14 + $0xb8] sm:$0xff] %v8158_v38  ;;  %v8111_v7 = vadd.f32 %v8063_v9, %v7905_v49  ;;  %v8009_v32 = vmul.f32 %v13642_v55, %v7810_v45  ;;  %v7715_v39 = vadd.f32 %v7661_v10, %v7571_v30  ;;  %v7021_v52 = vpop.f32.mrf.mxu1  ;;  %v7658_v38 = vsel %vm1302_vm1, %v7622_v40, %v7623_v12  ;;  %v7370_v45 = vpop.f32.mrf.mxu0 }
 0x570   : > { %v7517_v25 = vsel %vm1157_vm0, %v7475_v27, %v7476_v4 }
 0x571   : > { %v8159_v16 = vmax.f32 %v8111_v7, 0.0  ;;  %v8064_v18 = vadd.f32 %v13653_v37, %v8009_v32  ;;  %v7811_v11 = vadd.f32 %v7715_v39, %v13432_v54  ;;  %v7572_v42 = vadd.f32 %v7517_v25, %v7021_v52  ;;  %v7025_v3 = vpop.f32.mrf.mxu1  ;;  %v7909_v7 = vld [vmem:[%s9794_s19 + $0xf8] sm:$0xff] }
 0x572   : > { %v7477_v47 = vrot.slane %v7025_v3, 7 }
 0x573   : > { %8207 = vst [vmem:[%s13686_s14 + $0xc0] sm:$0xff] %v8159_v16  ;;  %v8112_v26 = vadd.f32 %v8064_v18, %v7906_v51  ;;  %v8010_v6 = vmul.f32 %v13642_v55, %v7811_v11  ;;  %v7716_v1 = vadd.f32 %v7660_v14, %v7572_v42  ;;  %v7027_v0 = vpop.f32.mrf.mxu1  ;;  %v7625_v16 = vrot.slane %v7370_v45, 1  ;;  %v13944_v42 = vpop.f32.mrf.mxu0 }
 0x574   : > { %v7516_v54 = vsel %vm1157_vm0, %v7476_v4, %v7477_v47  ;;  %v7624_v4 = vrot.slane %v13902_v23, 1 }
 0x575   : > { %v8160_v2 = vmax.f32 %v8112_v26, 0.0  ;;  %v8065_v29 = vadd.f32 %v13653_v37, %v8010_v6  ;;  %v7812_v50 = vadd.f32 %v7716_v1, %v13447_v46  ;;  %v7573_v59 = vadd.f32 %v7516_v54, %v7027_v0  ;;  %v7031_v61 = vpop.f32.mrf.mxu1 }
 0x576   : > { %v7478_v24 = vrot.slane %v7031_v61, 7  ;;  %v7657_v18 = vsel %vm1302_vm1, %v7623_v12, %v7624_v4  ;;  %v7626_v12 = vrot.slane %v13923_v48, 1 }
 0x577   : > { %8208 = vst [vmem:[%s13686_s14 + $0xc8] sm:$0xff] %v8160_v2  ;;  %v8113_v28 = vadd.f32 %v8065_v29, %v7907_v56  ;;  %v8011_v27 = vmul.f32 %v13642_v55, %v7812_v50  ;;  %v7717_v21 = vadd.f32 %v7659_v62, %v7573_v59  ;;  %v7033_v63 = vpop.f32.mrf.mxu1  ;;  %v7656_v56 = vsel %vm1302_vm1, %v7624_v4, %v7625_v16  ;;  %v7380_v2 = vpop.f32.mrf.mxu0  ;;  %v7911_v62 = vld [vmem:[%s9794_s19 + $0x108] sm:$0xff] }
 0x578   : > { %v7515_v46 = vsel %vm1157_vm0, %v7477_v47, %v7478_v24 }
 0x579   : > { %v8161_v19 = vmax.f32 %v8113_v28, 0.0  ;;  %v8066_v13 = vadd.f32 %v13653_v37, %v8011_v27  ;;  %v7813_v17 = vadd.f32 %v7717_v21, %v13450_v44  ;;  %v7574_v49 = vadd.f32 %v7515_v46, %v7033_v63  ;;  %v7037_v33 = vpop.f32.mrf.mxu1 }
 0x57a   : > { %v7479_v9 = vrot.slane %v7037_v33, 7  ;;  %v7655_v46 = vsel %vm1302_vm1, %v7625_v16, %v7626_v12 }
 0x57b   : > { %8209 = vst [vmem:[%s13686_s14 + $0xd0] sm:$0xff] %v8161_v19  ;;  %v8114_v30 = vadd.f32 %v8066_v13, %v7908_v35  ;;  %v8012_v43 = vmul.f32 %v13642_v55, %v7813_v17  ;;  %v7718_v20 = vadd.f32 %v7658_v38, %v7574_v49  ;;  %v7039_v10 = vpop.f32.mrf.mxu1  ;;  %v7627_v35 = vrot.slane %v7380_v2, 1  ;;  %v13965_v13 = vpop.f32.mrf.mxu0  ;;  %v7912_v38 = vld [vmem:[%s9794_s19 + $0x110] sm:$0xff] }
 0x57c   : > { %v7514_v44 = vsel %vm1157_vm0, %v7478_v24, %v7479_v9 }
 0x57d   : > { %v8162_v32 = vmax.f32 %v8114_v30, 0.0  ;;  %v8067_v39 = vadd.f32 %v13653_v37, %v8012_v43  ;;  %v7814_v52 = vadd.f32 %v7718_v20, %v13463_v31  ;;  %v7575_v51 = vadd.f32 %v7514_v44, %v7039_v10  ;;  %v7043_v25 = vpop.f32.mrf.mxu1 }
 0x57e   : > { %v7480_v11 = vrot.slane %v7043_v25, 7  ;;  %v7654_v10 = vsel %vm1302_vm1, %v7626_v12, %v7627_v35  ;;  %v7913_v25 = vld [vmem:[%s9794_s19 + $0x118] sm:$0xff]  ;;  %v14001_v12 = vld [vmem:[%s14208_s5] ss:$0 sm:$0xff] }
 0x57f   : > { %8210 = vst [vmem:[%s13686_s14 + $0xd8] sm:$0xff] %v8162_v32  ;;  %v8115_v23 = vadd.f32 %v8067_v39, %v7909_v7  ;;  %v8013_v3 = vmul.f32 %v13642_v55, %v7814_v52  ;;  %v7719_v14 = vadd.f32 %v7657_v18, %v7575_v51  ;;  %v7045_v47 = vpop.f32.mrf.mxu1  ;;  %v7390_v7 = vpop.f32.mrf.mxu0  ;;  %v7628_v51 = vrot.slane %v13944_v42, 1 }
 0x580   : > { %v7513_v31 = vsel %vm1157_vm0, %v7479_v9, %v7480_v11 }
 0x581   : > { %v8163_v26 = vmax.f32 %v8115_v23, 0.0  ;;  %v8068_v6 = vadd.f32 %v13653_v37, %v8013_v3  ;;  %v7815_v1 = vadd.f32 %v7719_v14, %v13466_v8  ;;  %v7576_v0 = vadd.f32 %v7513_v31, %v7045_v47  ;;  %v7049_v40 = vpop.f32.mrf.mxu1  ;;  %v13986_v31 = vpop.f32.mrf.mxu0 }
 0x582   : > { %v7481_v54 = vrot.slane %v7049_v40, 7  ;;  %v7629_v14 = vrot.slane %v7390_v7, 1  ;;  %v7653_v47 = vsel %vm1302_vm1, %v7627_v35, %v7628_v51 }
 0x583   : > { %8211 = vst [vmem:[%s13686_s14 + $0xe0] sm:$0xff] %v8163_v26  ;;  %v8116_v29 = vadd.f32 %v8068_v6, %v7910_v41  ;;  %v8014_v50 = vmul.f32 %v13642_v55, %v7815_v1  ;;  %v7720_v59 = vadd.f32 %v7656_v56, %v7576_v0  ;;  %v7051_v61 = vpop.f32.mrf.mxu1  ;;  %v7914_v0 = vld [vmem:[%s9794_s19 + $0x120] sm:$0xff] }
 0x584   : > { %v7512_v8 = vsel %vm1157_vm0, %v7480_v11, %v7481_v54 }
 0x585   : > { %v8164_v24 = vmax.f32 %v8116_v29, 0.0  ;;  %v8069_v28 = vadd.f32 %v13653_v37, %v8014_v50  ;;  %v7816_v27 = vadd.f32 %v7720_v59, %v13479_v22  ;;  %v7577_v21 = vadd.f32 %v7512_v8, %v7051_v61  ;;  %v7055_v63 = vpop.f32.mrf.mxu1  ;;  %v7400_v61 = vpop.f32.mrf.mxu0 }
 0x586   : > { %v7482_v19 = vrot.slane %v7055_v63, 7  ;;  %v7652_v50 = vsel %vm1302_vm1, %v7628_v51, %v7629_v14 }
 0x587   : > { %8212 = vst [vmem:[%s13686_s14 + $0xe8] sm:$0xff] %v8164_v24  ;;  %v8117_v48 = vadd.f32 %v8069_v28, %v7911_v62  ;;  %v8015_v17 = vmul.f32 %v13642_v55, %v7816_v27  ;;  %v7721_v49 = vadd.f32 %v7655_v46, %v7577_v21  ;;  %v7057_v33 = vpop.f32.mrf.mxu1  ;;  %v7915_v24 = vld [vmem:[%s9794_s19 + $0x128] sm:$0xff]  ;;  %v14011_v21 = vld [vmem:[%s14209_s6] ss:$0 sm:$0xff] }
 0x588   : > { %v7511_v22 = vsel %vm1157_vm0, %v7481_v54, %v7482_v19 }
 0x589   : > { %v8165_v9 = vmax.f32 %v8117_v48, 0.0  ;;  %v8070_v45 = vadd.f32 %v13653_v37, %v8015_v17  ;;  %v7817_v30 = vadd.f32 %v7721_v49, %v13482_v5  ;;  %v7578_v43 = vadd.f32 %v7511_v22, %v7057_v33  ;;  %v7061_v20 = vpop.f32.mrf.mxu1  ;;  %v14017_v49 = vpop.f32.mrf.mxu0 }
 0x58a   : > { %v7483_v4 = vrot.slane %v7061_v20, 7  ;;  %v7631_v48 = vrot.slane %v7400_v61, 1 }
 0x58b   : > { %8213 = vst [vmem:[%s13686_s14 + $0xf0] sm:$0xff] %v8165_v9  ;;  %v8118_v44 = vadd.f32 %v8070_v45, %v7912_v38  ;;  %v8016_v32 = vmul.f32 %v13642_v55, %v7817_v30  ;;  %v7722_v39 = vadd.f32 %v7654_v10, %v7578_v43  ;;  %v7063_v52 = vpop.f32.mrf.mxu1  ;;  %v7916_v45 = vld [vmem:[%s9794_s19 + $0x130] sm:$0xff] }
 0x58c   : > { %v7510_v5 = vsel %vm1157_vm0, %v7482_v19, %v7483_v4 }
 0x58d   : > { %v8166_v16 = vmax.f32 %v8118_v44, 0.0  ;;  %v8071_v18 = vadd.f32 %v13653_v37, %v8016_v32  ;;  %v7818_v11 = vadd.f32 %v7722_v39, %v13495_v34  ;;  %v7579_v23 = vadd.f32 %v7510_v5, %v7063_v52  ;;  %v7067_v3 = vpop.f32.mrf.mxu1  ;;  %v7410_v32 = vpop.f32.mrf.mxu0 }
 0x58e   : > { %v7484_v41 = vrot.slane %v7067_v3, 7  ;;  %v7632_v5 = vrot.slane %v13986_v31, 1 }
 0x58f   : > { %8214 = vst [vmem:[%s13686_s14 + $0xf8] sm:$0xff] %v8166_v16  ;;  %v8119_v42 = vadd.f32 %v8071_v18, %v7913_v25  ;;  %v8017_v26 = vmul.f32 %v13642_v55, %v7818_v11  ;;  %v7723_v6 = vadd.f32 %v7653_v47, %v7579_v23  ;;  %v7069_v1 = vpop.f32.mrf.mxu1  ;;  %v7917_v16 = vld [vmem:[%s9794_s19 + $0x138] sm:$0xff] }
 0x590   : > { %v7509_v34 = vsel %vm1157_vm0, %v7483_v4, %v7484_v41  ;;  %v14680_v23 = vld [vmem:[#allocation67_spill] sm:$0xff] }
 0x591   : > { %v8167_v40 = vmax.f32 %v8119_v42, 0.0  ;;  %v8072_v56 = vadd.f32 %v13653_v37, %v8017_v26  ;;  %v7819_v54 = vadd.f32 %v7723_v6, %v13498_v57  ;;  %v7580_v2 = vadd.f32 %v7509_v34, %v7069_v1  ;;  %v7073_v29 = vpop.f32.mrf.mxu1  ;;  %v14038_v6 = vpop.f32.mrf.mxu0 }
 0x592   : > { %v7485_v59 = vrot.slane %v7073_v29, 7  ;;  %v7630_v57 = vrot.slane %v13965_v13, 1  ;;  %v7649_v42 = vsel %vm1302_vm1, %v7631_v48, %v7632_v5  ;;  %v14681_v29 = vld [vmem:[#allocation43_spill] sm:$0xff] }
 0x593   : > { %8215 = vst [vmem:[%s13686_s14 + $0x100] sm:$0xff] %v8167_v40  ;;  %v8120_v55 = vadd.f32 %v8072_v56, %v7914_v0  ;;  %v8018_v62 = vmul.f32 %v14001_v12, %v7819_v54  ;;  %v7724_v37 = vadd.f32 %v7652_v50, %v7580_v2  ;;  %v7075_v8 = vpop.f32.mrf.mxu1  ;;  %v7918_v40 = vld [vmem:[%s9794_s19 + $0x140] sm:$0xff] }
 0x594   : > { %v7508_v28 = vsel %vm1157_vm0, %v7484_v41, %v7485_v59  ;;  %v7651_v13 = vsel %vm1302_vm1, %v7629_v14, %v7630_v57  ;;  %v7650_v7 = vsel %vm1302_vm1, %v7630_v57, %v7631_v48  ;;  %v7633_v41 = vrot.slane %v7410_v32, 1  ;;  %v14682_v48 = vld [vmem:[#allocation41_spill] sm:$0xff] }
 0x595   : > { %v8168_v27 = vmax.f32 %v8120_v55, 0.0  ;;  %v8073_v63 = vadd.f32 %v14011_v21, %v8018_v62  ;;  %v7820_v35 = vadd.f32 %v7724_v37, %v13511_v60  ;;  %v7581_v46 = vadd.f32 %v7508_v28, %v7075_v8  ;;  %v7079_v19 = vpop.f32.mrf.mxu1  ;;  %v7420_v37 = vpop.f32.mrf.mxu0 }
 0x596   : > { %v7486_v17 = vrot.slane %v7079_v19, 7  ;;  %v7648_v55 = vsel %vm1302_vm1, %v7632_v5, %v7633_v41 }
 0x597   : > { %8216 = vst [vmem:[%s13686_s14 + $0x108] sm:$0xff] %v8168_v27  ;;  %v8121_v33 = vadd.f32 %v8073_v63, %v7915_v24  ;;  %v8019_v38 = vmul.f32 %v14001_v12, %v7820_v35  ;;  %v7725_v22 = vadd.f32 %v7651_v13, %v7581_v46  ;;  %v7081_v9 = vpop.f32.mrf.mxu1  ;;  %v7634_v27 = vrot.slane %v14017_v49, 1  ;;  %v7919_v63 = vld [vmem:[%s9794_s19 + $0x148] sm:$0xff] }
 0x598   : > { %v7507_v60 = vsel %vm1157_vm0, %v7485_v59, %v7486_v17 }
 0x599   : > { %v8169_v30 = vmax.f32 %v8121_v33, 0.0  ;;  %v8074_v43 = vadd.f32 %v14011_v21, %v8019_v38  ;;  %v7821_v20 = vadd.f32 %v7725_v22, %v13514_v58  ;;  %v7582_v10 = vadd.f32 %v7507_v60, %v7081_v9  ;;  %v7085_v4 = vpop.f32.mrf.mxu1 }
 0x59a   : > { %v7487_v44 = vrot.slane %v7085_v4, 7  ;;  %v7635_v38 = vrot.slane %v7420_v37, 1  ;;  %v7647_v22 = vsel %vm1302_vm1, %v7633_v41, %v7634_v27  ;;  %v14685_v37 = vld [vmem:[#allocation45_spill] sm:$0xff] }
 0x59b   : > { %8217 = vst [vmem:[%s13686_s14 + $0x110] sm:$0xff] %v8169_v30  ;;  %v8122_v39 = vadd.f32 %v8074_v43, %v7916_v45  ;;  %v8020_v52 = vmul.f32 %v14001_v12, %v7821_v20  ;;  %v7726_v51 = vadd.f32 %v7650_v7, %v7582_v10  ;;  %v7087_v25 = vpop.f32.mrf.mxu1  ;;  %v14059_v45 = vpop.f32.mrf.mxu0  ;;  %v7920_v20 = vld [vmem:[%s9794_s19 + $0x150] sm:$0xff] }
 0x59c   : > { %v7506_v58 = vsel %vm1157_vm0, %v7486_v17, %v7487_v44 }
 0x59d   : > { %v8170_v18 = vmax.f32 %v8122_v39, 0.0  ;;  %v8075_v11 = vadd.f32 %v14011_v21, %v8020_v52  ;;  %v7822_v3 = vadd.f32 %v7726_v51, %v14680_v23  ;;  %v7583_v14 = vadd.f32 %v7506_v58, %v7087_v25  ;;  %v7091_v47 = vpop.f32.mrf.mxu1  ;;  %v7430_v5 = vpop.f32.mrf.mxu0 }
 0x59e   : > { %v7488_v26 = vrot.slane %v7091_v47, 7  ;;  %v7646_v51 = vsel %vm1302_vm1, %v7634_v27, %v7635_v38  ;;  %v7636_v23 = vrot.slane %v14038_v6, 1 }
 0x59f   : > { %8218 = vst [vmem:[%s13686_s14 + $0x118] sm:$0xff] %v8170_v18  ;;  %v8123_v31 = vadd.f32 %v8075_v11, %v7917_v16  ;;  %v8021_v1 = vmul.f32 %v14001_v12, %v7822_v3  ;;  %v7727_v0 = vadd.f32 %v7649_v42, %v7583_v14  ;;  %v7093_v34 = vpop.f32.mrf.mxu1  ;;  %v7921_v3 = vld [vmem:[%s9794_s19 + $0x158] sm:$0xff] }
 0x5a0   : > { %v7505_v56 = vsel %vm1157_vm0, %v7487_v44, %v7488_v26  ;;  %v14683_v44 = vld [vmem:[#allocation68_spill] sm:$0xff]  ;;  %v14684_v42 = vld [vmem:[#allocation47_spill] sm:$0xff] }
 0x5a1   : > { %v8171_v54 = vmax.f32 %v8123_v31, 0.0  ;;  %v8076_v2 = vadd.f32 %v14011_v21, %v8021_v1  ;;  %v7823_v50 = vadd.f32 %v7727_v0, %v14681_v29  ;;  %v7584_v59 = vadd.f32 %v7505_v56, %v7093_v34  ;;  %v7097_v61 = vpop.f32.mrf.mxu1  ;;  %v14080_v56 = vpop.f32.mrf.mxu0 }
 0x5a2   : > { %v7489_v62 = vrot.slane %v7097_v61, 7  ;;  %v7637_v0 = vrot.slane %v7430_v5, 1  ;;  %v7645_v34 = vsel %vm1302_vm1, %v7635_v38, %v7636_v23 }
 0x5a3   : > { %8219 = vst [vmem:[%s13686_s14 + $0x120] sm:$0xff] %v8171_v54  ;;  %v8124_v8 = vadd.f32 %v8076_v2, %v7918_v40  ;;  %v8022_v57 = vmul.f32 %v14001_v12, %v7823_v50  ;;  %v7728_v24 = vadd.f32 %v7648_v55, %v7584_v59  ;;  %v7099_v28 = vpop.f32.mrf.mxu1  ;;  %v7638_v50 = vrot.slane %v14059_v45, 1  ;;  %v7922_v59 = vld [vmem:[%s9794_s19 + $0x160] sm:$0xff] }
 0x5a4   : > { %v7504_v35 = vsel %vm1157_vm0, %v7488_v26, %v7489_v62  ;;  %v7644_v27 = vsel %vm1302_vm1, %v7636_v23, %v7637_v0  ;;  %v14686_v45 = vld [vmem:[#allocation70_spill] sm:$0xff] }
 0x5a5   : > { %v8172_v46 = vmax.f32 %v8124_v8, 0.0  ;;  %v8077_v19 = vadd.f32 %v14011_v21, %v8022_v57  ;;  %v7824_v13 = vadd.f32 %v7728_v24, %v14682_v48  ;;  %v7585_v17 = vadd.f32 %v7504_v35, %v7099_v28  ;;  %v7103_v33 = vpop.f32.mrf.mxu1  ;;  %v7440_v28 = vpop.f32.mrf.mxu0 }
 0x5a6   : > { %v7490_v9 = vrot.slane %v7103_v33, 7  ;;  %v7643_v33 = vsel %vm1302_vm1, %v7637_v0, %v7638_v50  ;;  %v7639_v38 = vrot.slane %v7440_v28, 1  ;;  %v14688_v0 = vld [vmem:[#allocation77_spill] sm:$0xff] }
 0x5a7   : > { %8220 = vst [vmem:[%s13686_s14 + $0x128] sm:$0xff] %v8172_v46  ;;  %v8125_v49 = vadd.f32 %v8077_v19, %v7919_v63  ;;  %v8023_v60 = vmul.f32 %v14001_v12, %v7824_v13  ;;  %v7729_v30 = vadd.f32 %v7647_v22, %v7585_v17  ;;  %v7105_v43 = vpop.f32.mrf.mxu1  ;;  %v7923_v13 = vld [vmem:[%s9794_s19 + $0x168] sm:$0xff] }
 0x5a8   : > { %v7503_v10 = vsel %vm1157_vm0, %v7489_v62, %v7490_v9 }
 0x5a9   : > { %v8173_v4 = vmax.f32 %v8125_v49, 0.0  ;;  %v8078_v7 = vadd.f32 %v14011_v21, %v8023_v60  ;;  %v7825_v32 = vadd.f32 %v7729_v30, %v14683_v44  ;;  %v7586_v39 = vadd.f32 %v7503_v10, %v7105_v43  ;;  %v7109_v52 = vpop.f32.mrf.mxu1  ;;  %v7924_v44 = vld [vmem:[%s9794_s19 + $0x170] sm:$0xff] }
 0x5aa   : > { %v7491_v25 = vrot.slane %v7109_v52, 7 }
 0x5ab   : > { %8221 = vst [vmem:[%s13686_s14 + $0x130] sm:$0xff] %v8173_v4  ;;  %v8126_v16 = vadd.f32 %v8078_v7, %v7920_v20  ;;  %v8024_v58 = vmul.f32 %v14001_v12, %v7825_v32  ;;  %v7730_v18 = vadd.f32 %v7646_v51, %v7586_v39  ;;  %v7111_v11 = vpop.f32.mrf.mxu1  ;;  %v7642_v39 = vsel %vm1302_vm1, %v7638_v50, %v7639_v38 }
 0x5ac   : > { %v7502_v14 = vsel %vm1157_vm0, %v7490_v9, %v7491_v25 }
 0x5ad   : > { %v8174_v47 = vmax.f32 %v8126_v16, 0.0  ;;  %v8079_v41 = vadd.f32 %v14011_v21, %v8024_v58  ;;  %v7826_v26 = vadd.f32 %v7730_v18, %v14684_v42  ;;  %v7587_v31 = vadd.f32 %v7502_v14, %v7111_v11  ;;  %v7115_v1 = vpop.f32.mrf.mxu1 }
 0x5ae   : > { %v7492_v40 = vrot.slane %v7115_v1, 7  ;;  %v7640_v18 = vrot.slane %v14080_v56, 1 }
 0x5af   : > { %8222 = vst [vmem:[%s13686_s14 + $0x138] sm:$0xff] %v8174_v47  ;;  %v8127_v6 = vadd.f32 %v8079_v41, %v7921_v3  ;;  %v8025_v54 = vmul.f32 %v14001_v12, %v7826_v26  ;;  %v7731_v2 = vadd.f32 %v7645_v34, %v7587_v31  ;;  %v7117_v29 = vpop.f32.mrf.mxu1  ;;  %v7925_v41 = vld [vmem:[%s9794_s19 + $0x178] sm:$0xff] }
 0x5b0   : > { %v7501_v61 = vsel %vm1157_vm0, %v7491_v25, %v7492_v40  ;;  %v14687_v25 = vld [vmem:[#allocation51_spill] sm:$0xff]  ;;  %v7641_v26 = vsel %vm1302_vm1, %v7639_v38, %v7640_v18 }
 0x5b1   : > { %v8175_v55 = vmax.f32 %v8127_v6, 0.0  ;;  %v8080_v62 = vadd.f32 %v14011_v21, %v8025_v54  ;;  %v7827_v8 = vadd.f32 %v7731_v2, %v14685_v37  ;;  %v7588_v57 = vadd.f32 %v7501_v61, %v7117_v29  ;;  %v7121_v24 = vpop.f32.mrf.mxu1 }
 0x5b2   : > { %v7493_v63 = vrot.slane %v7121_v24, 7  ;;  %v14689_v61 = vrot.slane %v13569_v15, 7  ;;  %v14690_v24 = vld [vmem:[#allocation49_spill] sm:$0xff] }
 0x5b3   : > { %8223 = vst [vmem:[%s13686_s14 + $0x140] sm:$0xff] %v8175_v55  ;;  %v8128_v35 = vadd.f32 %v8080_v62, %v7922_v59  ;;  %v8026_v46 = vmul.f32 %v14001_v12, %v7827_v8  ;;  %v7732_v19 = vadd.f32 %v7644_v27, %v7588_v57  ;;  %v7123_v48 = vpop.f32.mrf.mxu1  ;;  %v7926_v59 = vld [vmem:[%s9794_s19 + $0x180] sm:$0xff] }
 0x5b4   : > { %v7500_v17 = vsel %vm1157_vm0, %v7492_v40, %v7493_v63 }
 0x5b5   : > { %v8176_v22 = vmax.f32 %v8128_v35, 0.0  ;;  %v8081_v9 = vadd.f32 %v14011_v21, %v8026_v46  ;;  %v7828_v49 = vadd.f32 %v7732_v19, %v14686_v45  ;;  %v7589_v60 = vadd.f32 %v7500_v17, %v7123_v48  ;;  %v7127_v30 = vpop.f32.mrf.mxu1  ;;  %v14691_v35 = vld [vmem:[#allocation74_spill] sm:$0xff]  ;;  %v14692_v19 = vld [vmem:[#allocation72_spill] sm:$0xff]  ;;  %v7927_v17 = vld [vmem:[%s9794_s19 + $0x188] sm:$0xff] }
 0x5b6   : > { %v7494_v43 = vrot.slane %v7127_v30, 7  ;;  %v14693_v48 = vrot.slane %v14692_v19, 1  ;;  %v14695_v45 = vld [vmem:[#allocation60_spill] sm:$0xff] }
 0x5b7   : > { %8224 = vst [vmem:[%s13686_s14 + $0x148] sm:$0xff] %v8176_v22  ;;  %v8129_v20 = vadd.f32 %v8081_v9, %v7923_v13  ;;  %v8027_v10 = vmul.f32 %v14001_v12, %v7828_v49  ;;  %v7733_v4 = vadd.f32 %v7643_v33, %v7589_v60  ;;  %v7129_v7 = vpop.f32.mrf.mxu1  ;;  %v14694_v22 = vld [vmem:[#allocation63_spill] sm:$0xff] }
 0x5b8   : > { %v7499_v32 = vsel %vm1157_vm0, %v7493_v63, %v7494_v43  ;;  %v7688_v13 = vsel %vm1302_vm1, %v7640_v18, %v14693_v48 }
 0x5b9   : > { %v8177_v52 = vmax.f32 %v8129_v20, 0.0  ;;  %v8082_v51 = vadd.f32 %v14011_v21, %v8027_v10  ;;  %v7829_v5 = vadd.f32 %v7733_v4, %v14687_v25  ;;  %v7590_v16 = vadd.f32 %v7499_v32, %v7129_v7  ;;  %v7133_v58 = vpop.f32.mrf.mxu1  ;;  %v7928_v4 = vld [vmem:[%s9794_s19 + $0x190] sm:$0xff] }
 0x5ba   : > { %v7495_v11 = vrot.slane %v7133_v58, 7 }
 0x5bb   : > { %8225 = vst [vmem:[%s13686_s14 + $0x150] sm:$0xff] %v8177_v52  ;;  %v8130_v23 = vadd.f32 %v8082_v51, %v7924_v44  ;;  %v8028_v3 = vmul.f32 %v14001_v12, %v7829_v5  ;;  %v7734_v14 = vadd.f32 %v7642_v39, %v7590_v16  ;;  %v7135_v47 = vpop.f32.mrf.mxu1 }
 0x5bc   : > { %v7498_v42 = vsel %vm1157_vm0, %v7494_v43, %v7495_v11  ;;  %v7881_v43 = vld [vmem:[%s9794_s19 + $0x18] sm:$0xff]  ;;  %s9536_s19 = scalar_lea.vmem %s14158_s18, 6144 }
 0x5bd   : > { %v8178_v31 = vmax.f32 %v8130_v23, 0.0  ;;  %v8083_v1 = vadd.f32 %v14011_v21, %v8028_v3  ;;  %v7830_v34 = vadd.f32 %v7734_v14, %v14688_v0  ;;  %v7591_v40 = vadd.f32 %v7498_v42, %v7135_v47  ;;  %v7139_v56 = vpop.f32.mrf.mxu1  ;;  %p9537_p11 = scmp.ne.s32.totalorder %s14158_s18, %s9536_s19  ;;  %p9544_p12 = scmp.lt.s32.totalorder %s9542_s26, %s9536_s19 }
 0x5be   : > { %v7496_v6 = vrot.slane %v7139_v56, 7 }
 0x5bf   : > { %8226 = vst [vmem:[%s13686_s14 + $0x158] sm:$0xff] %v8178_v31  ;;  %v8131_v54 = vadd.f32 %v8083_v1, %v7925_v41  ;;  %v8029_v2 = vmul.f32 %v14001_v12, %v7830_v34  ;;  %v7735_v29 = vadd.f32 %v7641_v26, %v7591_v40  ;;  %v7141_v50 = vpop.f32.mrf.mxu1  ;;  %p9538_p1 = pnand %p9537_p11, %p14696_p10  ;;  %p9545_p7 = por %p9544_p12, %p9543_p6 }
 0x5c0   : > { %v7544_v55 = vsel %vm1157_vm0, %v7496_v6, %v14689_v61  ;;  %v7497_v62 = vsel %vm1157_vm0, %v7495_v11, %v7496_v6 }
 0x5c1   : > { %v8179_v37 = vmax.f32 %v8131_v54, 0.0  ;;  %v8084_v8 = vadd.f32 %v14011_v21, %v8029_v2  ;;  %v7831_v57 = vadd.f32 %v7735_v29, %v13602_v53  ;;  %v7545_v28 = vadd.f32 %v7544_v55, %v14690_v24  ;;  %p9539_p2 = pneg %p9538_p1 }
 0x5c2   : > { %v7592_v27 = vadd.f32 %v7497_v62, %v7141_v50 }
 0x5c3   : > { %8227 = vst [vmem:[%s13686_s14 + $0x160] sm:$0xff] %v8179_v37  ;;  %v8132_v63 = vadd.f32 %v8084_v8, %v7926_v59  ;;  %v8030_v15 = vmul.f32 %v14001_v12, %v7831_v57  ;;  %v7689_v46 = vadd.f32 %v14691_v35, %v7545_v28  ;;  %p9546_p9 = pnand %p9545_p7, %p9539_p2 }
 0x5c4   : > { %v7736_v53 = vadd.f32 %v7688_v13, %v7592_v27 }
 0x5c5   : > { %v8180_v33 = vmax.f32 %v8132_v63, 0.0  ;;  %v8085_v38 = vadd.f32 %v14011_v21, %v8030_v15  ;;  %v7785_v9 = vadd.f32 %v7689_v46, %v14694_v22 }
 0x5c6   : > { %v7832_v49 = vadd.f32 %v7736_v53, %v14695_v45 }
 0x5c7   : > { %8228 = vst [vmem:[%s13686_s14 + $0x168] sm:$0xff] %v8180_v33  ;;  %v8133_v60 = vadd.f32 %v8085_v38, %v7927_v17  ;;  %v7984_v30 = vmul.f32 %v14001_v12, %v7785_v9 }
 0x5c8   : > { %v8031_v36 = vmul.f32 %v14001_v12, %v7832_v49 }
 0x5c9   : > { %v8181_v20 = vmax.f32 %v8133_v60, 0.0  ;;  %v8039_v10 = vadd.f32 %v14011_v21, %v7984_v30 }
 0x5ca   : > { %v8086_v7 = vadd.f32 %v14011_v21, %v8031_v36 }
 0x5cb   : > { %8229 = vst [vmem:[%s13686_s14 + $0x170] sm:$0xff] %v8181_v20  ;;  %v8087_v44 = vadd.f32 %v8039_v10, %v7881_v43 }
 0x5cc   : > { %v8134_v32 = vadd.f32 %v8086_v7, %v7928_v4 }
 0x5cd   : > { %v8135_v39 = vmax.f32 %v8087_v44, 0.0 }
 0x5ce   : > { %v8182_v12 = vmax.f32 %v8134_v32, 0.0 }
 0x5cf   : > { %8183 = vst [vmem:[%s13686_s14] sm:$0xff] %v8135_v39 }
 0x5d0   : > { %8230 = vst [vmem:[%s13686_s14 + $0x178] sm:$0xff] %v8182_v12 }
 0x5d1   : > { %9549 = shalt.err (!%p9546_p9)
}
 0x5d2   : > { %s9550_s14 = scalar_lea.hbm %s14156_s13, 6144  ;;  %s9554_s1 = scalar_lea.hbm %s14211_s8, 12288 }
 0x5d3   : > { %p9551_p13 = scmp.ne.s32.totalorder %s14156_s13, %s9550_s14  ;;  %p9555_p4 = scmp.lt.s32.totalorder %s14156_s13, %s14211_s8 }
 0x5d4   : > { %p9556_p8 = scmp.lt.s32.totalorder %s9554_s1, %s9550_s14 }
 0x5d5   : > { %p9552_p5 = pnand %p9551_p13, %p14696_p10 }
 0x5d6   : > { %p9557_p3 = por %p9556_p8, %p9555_p4 }
 0x5d7   : > { %p9553_p0 = pneg %p9552_p5 }
 0x5d9   : > { %p9558_p11 = pnand %p9557_p3, %p9553_p0 }
 0x5db   : > { %9561 = shalt.err (!%p9558_p11)
}
 0x5dc   : > { %s9616_s23 = smov 128   ;;  %s9617_s11 = smov 8  }
 0x5dd   : > { %9376 = dma.vmem_to_hbm [thread:$0]  (%p14696_p10), %s14158_s18, 6144, %s14156_s13, %s8232_s9, %s9616_s23, %s9616_s23, %s9617_s11  }
 0x5de PF: > { %s8260_s19 = sand.u32 1, %s9592_s27   ;;  %p14697_p1 = scmp.ne.s32.totalorder %s14301_s12, 0 }
 0x5df   : > { %p14698_p2 = scmp.ge.s32.totalorder %s9604_s30, 2  ;;  %s8261_s20 = scalar_lea.sflag [#allocation6], %s8260_s19 }
 0x5e1   : > { %p9390_p6 = pnand %p14698_p2, %p14697_p1 }
 0x5e3   : > { %p9391_p12 = pneg %p9390_p6 }
 0x5e5   : > { %9587 = dma.done.wait (%p9391_p12), %s8261_s20, 6144  }
 0x5e6   : > { %9589 = vsyncadd (%p9391_p12), %s8261_s20, 4294961152  ;;  %p22_p7 = scmp.ge.s32.totalorder %s9735_s10, 4   ;;  %s14699_s27 = smov %s9596_s28 }
 0x5e7   : > { %s14700_s28 = smov %s9600_s29  ;;  %s14701_s29 = smov %s9751_s17 }
 0x5e8   : > { %s14702_s30 = smov %s9735_s10  ;;  %24 = sbr.rel (!%p22_p7) target bundleno = 9 (0x9), region = 109 }
 0x5ed   :  { %8266 = vsyncpa [#allocation5], 1 }
 0x5ee   :  { %8268 = vsyncpa [#allocation5 + $0x1], 1 }
 0x5ef   :  { %8269 = vsyncpa [#allocation8], 1 }
 0x5f0   :  { %8270 = vsyncpa [#allocation6], 1 }
 0x5f1   :  { %8272 = vsyncpa [#allocation6 + $0x1], 1 }

</bundles_post_ra>
